<compile_context>
chip_gen: v7x
topology: tpu7x:2x2x1
jax: 0.10.0
libtpu: 0.0.40
codegen_flags: <defaults>
</compile_context>

<pallas_src>
import functools

import jax
import jax.numpy as jnp
from jax.experimental import pallas as pl
from jax.experimental.pallas import tpu as pltpu


# ----------------------------------------------------------------------------
# Fused kernel
# ----------------------------------------------------------------------------
def _conv3x3(src_ref, w_ref, L, Wc):
    """3x3 same-conv as 9 accumulated dots on shifted flat slices (f32 acc)."""
    cout = w_ref.shape[2]
    acc = jnp.zeros((L, cout), jnp.float32)
    for ky in range(3):
        for kx in range(3):
            start = (ky + 1) * Wc + (kx - 1)                  # static offset
            lhs = src_ref[pl.ds(start, L), :].astype(jnp.bfloat16)
            acc = acc + jnp.dot(lhs, w_ref[ky * 3 + kx],
                                preferred_element_type=jnp.float32)
    return acc


def _zero_border_rows(buf, Wc, H):
    z = jnp.zeros((2 * Wc, buf.shape[1]), buf.dtype)
    buf[pl.ds(0, 2 * Wc), :] = z                              # rows 0,1
    buf[pl.ds((H + 2) * Wc, 2 * Wc), :] = z                   # rows H+2,H+3


def residual_stem_kernel(mask_ref, x_ref,
                         w1_ref, b1_ref, w2_ref, b2_ref, w3_ref, b3_ref,
                         w4_ref, b4_ref, wsk_ref, bsk_ref,
                         o_ref, h_buf, x1_buf, h2_buf, *, H, W):
    Wc = W + 2
    L = H * Wc
    mask = mask_ref[...]                                      # (L,1) kills pad cols

    for buf in (h_buf, x1_buf, h2_buf):
        _zero_border_rows(buf, Wc, H)

    # conv_block1: conv-BN-ReLU
    y = _conv3x3(x_ref, w1_ref, L, Wc) + b1_ref[...]
    h_buf[pl.ds(2 * Wc, L), :] = jnp.maximum(y, 0.0) * mask
    # conv_block1: conv-BN  -> x1
    y = _conv3x3(h_buf, w2_ref, L, Wc) + b2_ref[...]
    x1_buf[pl.ds(2 * Wc, L), :] = y * mask
    # conv_block2: conv-BN-ReLU
    y = _conv3x3(x1_buf, w3_ref, L, Wc) + b3_ref[...]
    h2_buf[pl.ds(2 * Wc, L), :] = jnp.maximum(y, 0.0) * mask
    # conv_block2 second conv-BN + conv_skip conv-BN, residual add, ReLU
    y = (_conv3x3(h2_buf, w4_ref, L, Wc) + b4_ref[...]
         + _conv3x3(x1_buf, wsk_ref, L, Wc) + bsk_ref[...])
    o_ref[...] = jnp.maximum(y, 0.0).astype(o_ref.dtype)      # pad cols dropped outside


# ----------------------------------------------------------------------------
# Wrapper: layout plumbing + pallas_call
# ----------------------------------------------------------------------------
def residual_stem_forward(params, x_nchw):
    N, Cin, H, W = x_nchw.shape
    C2 = params["b1c1"]["w"].shape[2]
    C = params["b2c2"]["w"].shape[2]
    Wc = W + 2
    L = H * Wc
    Lp = (H + 4) * Wc

    # NCHW -> NHWC once at the module boundary.
    x = jnp.transpose(x_nchw, (0, 2, 3, 1)).astype(jnp.float32)
    # 1 pad col each side; 1 pad row + 1 dummy row top/bottom; flatten rows.
    x_flat = jnp.pad(x, ((0, 0), (2, 2), (1, 1), (0, 0))).reshape(N, Lp, Cin)
    # Column mask: 1.0 at real columns, 0.0 at the two pad columns of each row.
    mask = jnp.pad(jnp.ones((H, W, 1), jnp.float32),
                   ((0, 0), (1, 1), (0, 0))).reshape(L, 1)

    kernel = functools.partial(residual_stem_kernel, H=H, W=W)

    def full(shape):
        return pl.BlockSpec(shape, lambda n, _s=shape: (0,) * len(_s))

    out_flat = pl.pallas_call(
        kernel,
        out_shape=jax.ShapeDtypeStruct((N, L, C), jnp.float32),
        grid=(N,),
        in_specs=[
            full((L, 1)),                                         # mask
            pl.BlockSpec((None, Lp, Cin), lambda n: (n, 0, 0)),   # x (flat, padded)
            full((9, Cin, C2)), full((1, C2)),                    # b1c1
            full((9, C2, C2)), full((1, C2)),                     # b1c2
            full((9, C2, C)), full((1, C)),                       # b2c1
            full((9, C, C)), full((1, C)),                        # b2c2
            full((9, C2, C)), full((1, C)),                       # skip
        ],
        out_specs=pl.BlockSpec((None, L, C), lambda n: (n, 0, 0)),
        scratch_shapes=[
            pltpu.VMEM((Lp, C2), jnp.float32),                    # h
            pltpu.VMEM((Lp, C2), jnp.float32),                    # x1
            pltpu.VMEM((Lp, C), jnp.float32),                     # h2
        ],
        compiler_params=pltpu.CompilerParams(
            dimension_semantics=("parallel",)),
    )(mask, x_flat,
      params["b1c1"]["w"], params["b1c1"]["b"],
      params["b1c2"]["w"], params["b1c2"]["b"],
      params["b2c1"]["w"], params["b2c1"]["b"],
      params["b2c2"]["w"], params["b2c2"]["b"],
      params["skip"]["w"], params["skip"]["b"])

    out = out_flat.reshape(N, H, Wc, C)[:, :, 1:1 + W, :]         # drop pad cols
    return jnp.transpose(out, (0, 3, 1, 2))                       # NHWC -> NCHW


# ----------------------------------------------------------------------------
# Parameter init (deterministic) and BN folding
# ----------------------------------------------------------------------------
def init_conv_bn(key, cin, cout):
    k1, k2, k3, k4, k5, k6 = jax.random.split(key, 6)
    return dict(
        w=jax.random.normal(k1, (cout, cin, 3, 3), jnp.float32) * 0.1,  # OIHW
        b=jax.random.normal(k2, (cout,), jnp.float32) * 0.05,
        gamma=1.0 + 0.1 * jax.random.normal(k3, (cout,), jnp.float32),
        beta=0.1 * jax.random.normal(k4, (cout,), jnp.float32),
        mean=0.1 * jax.random.normal(k5, (cout,), jnp.float32),
        var=1.0 + 0.1 * jnp.abs(jax.random.normal(k6, (cout,), jnp.float32)),
    )


def fold_conv_bn(raw, eps=1e-5):
    """Fold eval-mode BN into the conv: w' = w*s per cout, b' = (b-mean)*s+beta."""
    cout, cin = raw["w"].shape[0], raw["w"].shape[1]
    scale = raw["gamma"] / jnp.sqrt(raw["var"] + eps)
    bias = (raw["b"] - raw["mean"]) * scale + raw["beta"]
    # OIHW -> (ky, kx, ci, co), scale folded in, tap-major (9, ci, co), bf16.
    w = jnp.transpose(raw["w"], (2, 3, 1, 0)) * scale[None, None, None, :]
    return dict(w=w.reshape(9, cin, cout).astype(jnp.bfloat16),
                b=bias[None, :].astype(jnp.float32))


# ----------------------------------------------------------------------------
# Pure-JAX f32 reference (lax.conv), eval-mode BN, for verification
# ----------------------------------------------------------------------------
def _conv_bn_ref(x, p, relu, eps=1e-5):
    y = jax.lax.conv_general_dilated(
        x, p["w"], window_strides=(1, 1), padding=((1, 1), (1, 1)),
        dimension_numbers=("NCHW", "OIHW", "NCHW"))
    y = y + p["b"][None, :, None, None]
    y = (y - p["mean"][None, :, None, None]) / jnp.sqrt(
        p["var"][None, :, None, None] + eps)
    y = y * p["gamma"][None, :, None, None] + p["beta"][None, :, None, None]
    if relu:
        y = jnp.maximum(y, 0.0)
    return y


def reference_forward(raw, x_nchw):
    h = _conv_bn_ref(x_nchw, raw["b1c1"], True)
    x1 = _conv_bn_ref(h, raw["b1c2"], False)
    h2 = _conv_bn_ref(x1, raw["b2c1"], True)
    y = _conv_bn_ref(h2, raw["b2c2"], False) + _conv_bn_ref(x1, raw["skip"], False)
    return jnp.maximum(y, 0.0)


# ----------------------------------------------------------------------------
if __name__ == "__main__":
    key = jax.random.PRNGKey(0)
    input_dim, output_dim = 4, 32
    N, H, W = 2, 16, 16
    c_half = output_dim // 2

    kx, kp = jax.random.split(key)
    x = jax.random.normal(kx, (N, input_dim, H, W), jnp.float32)

    ks = jax.random.split(kp, 5)
    raw = dict(
        b1c1=init_conv_bn(ks[0], input_dim, c_half),
        b1c2=init_conv_bn(ks[1], c_half, c_half),
        b2c1=init_conv_bn(ks[2], c_half, output_dim),
        b2c2=init_conv_bn(ks[3], output_dim, output_dim),
        skip=init_conv_bn(ks[4], c_half, output_dim),
    )
    params = {k: fold_conv_bn(v) for k, v in raw.items()}

    fwd = jax.jit(residual_stem_forward)
    out = jax.block_until_ready(fwd(params, x))
    assert out.shape == (N, output_dim, H, W), out.shape

    ref = reference_forward(raw, x)
    max_err = float(jnp.max(jnp.abs(out - ref)))
    # Kernel uses bf16 MXU operands with f32 accumulation; reference is pure
    # f32, so tolerances are documented-loose (errors measured << threshold).
    assert jnp.allclose(out, ref, rtol=5e-2, atol=1e-1), max_err

    print("KERNEL_OK")
</pallas_src>

<mosaic_0001>
module attributes {stable_mosaic.version = 11 : i64} {
  func.func @residual_stem_kernel(%arg0: i32, %arg1: memref<288x1xf32, #tpu.memory_space<vmem>>, %arg2: memref<1x360x4xf32, #tpu.memory_space<vmem>>, %arg3: memref<9x4x16xbf16, #tpu.memory_space<vmem>>, %arg4: memref<1x16xf32, #tpu.memory_space<vmem>>, %arg5: memref<9x16x16xbf16, #tpu.memory_space<vmem>>, %arg6: memref<1x16xf32, #tpu.memory_space<vmem>>, %arg7: memref<9x16x32xbf16, #tpu.memory_space<vmem>>, %arg8: memref<1x32xf32, #tpu.memory_space<vmem>>, %arg9: memref<9x32x32xbf16, #tpu.memory_space<vmem>>, %arg10: memref<1x32xf32, #tpu.memory_space<vmem>>, %arg11: memref<9x16x32xbf16, #tpu.memory_space<vmem>>, %arg12: memref<1x32xf32, #tpu.memory_space<vmem>>, %arg13: memref<1x288x32xf32, #tpu.memory_space<vmem>>, %arg14: memref<360x16xf32, #tpu.memory_space<vmem>>, %arg15: memref<360x16xf32, #tpu.memory_space<vmem>>, %arg16: memref<360x32xf32, #tpu.memory_space<vmem>>) attributes {dimension_semantics = [#tpu.dimension_semantics<parallel>], iteration_bounds = array<i64: 2>, scalar_prefetch = 0 : i64, scratch_operands = 3 : i64, tpu.core_type = #tpu.core_type<tc>, window_params = [{pipeline_mode = #tpu.pipeline_mode<synchronous>, transform_indices = @transform_0, window_bounds = array<i64: 288, 1>}, {transform_indices = @transform_1, window_bounds = array<i64: 1, 360, 4>}, {pipeline_mode = #tpu.pipeline_mode<synchronous>, transform_indices = @transform_2, window_bounds = array<i64: 9, 4, 16>}, {pipeline_mode = #tpu.pipeline_mode<synchronous>, transform_indices = @transform_3, window_bounds = array<i64: 1, 16>}, {pipeline_mode = #tpu.pipeline_mode<synchronous>, transform_indices = @transform_4, window_bounds = array<i64: 9, 16, 16>}, {pipeline_mode = #tpu.pipeline_mode<synchronous>, transform_indices = @transform_5, window_bounds = array<i64: 1, 16>}, {pipeline_mode = #tpu.pipeline_mode<synchronous>, transform_indices = @transform_6, window_bounds = array<i64: 9, 16, 32>}, {pipeline_mode = #tpu.pipeline_mode<synchronous>, transform_indices = @transform_7, window_bounds = array<i64: 1, 32>}, {pipeline_mode = #tpu.pipeline_mode<synchronous>, transform_indices = @transform_8, window_bounds = array<i64: 9, 32, 32>}, {pipeline_mode = #tpu.pipeline_mode<synchronous>, transform_indices = @transform_9, window_bounds = array<i64: 1, 32>}, {pipeline_mode = #tpu.pipeline_mode<synchronous>, transform_indices = @transform_10, window_bounds = array<i64: 9, 16, 32>}, {pipeline_mode = #tpu.pipeline_mode<synchronous>, transform_indices = @transform_11, window_bounds = array<i64: 1, 32>}, {transform_indices = @transform_12, window_bounds = array<i64: 1, 288, 32>}]} {
    %c0 = arith.constant 0 : index
    %c0_0 = arith.constant 0 : index
    %0 = vector.load %arg1[%c0, %c0_0] : memref<288x1xf32, #tpu.memory_space<vmem>>, vector<288x1xf32>
    %cst = arith.constant 0.000000e+00 : f32
    %1 = vector.broadcast %cst : f32 to vector<36x16xf32>
    %c0_1 = arith.constant 0 : index
    %c0_2 = arith.constant 0 : index
    %2 = vector.load %arg14[%c0_1, %c0_2] : memref<360x16xf32, #tpu.memory_space<vmem>>, vector<36x16xf32>
    tpu.vector_store %arg14[%c0_1, %c0_2], %1 {strides = array<i32>} : memref<360x16xf32, #tpu.memory_space<vmem>>, vector<36x16xf32>,
    %c324 = arith.constant 324 : index
    %c0_3 = arith.constant 0 : index
    %3 = vector.load %arg14[%c324, %c0_3] : memref<360x16xf32, #tpu.memory_space<vmem>>, vector<36x16xf32>
    tpu.vector_store %arg14[%c324, %c0_3], %1 {strides = array<i32>} : memref<360x16xf32, #tpu.memory_space<vmem>>, vector<36x16xf32>,
    %cst_4 = arith.constant 0.000000e+00 : f32
    %4 = vector.broadcast %cst_4 : f32 to vector<36x16xf32>
    %c0_5 = arith.constant 0 : index
    %c0_6 = arith.constant 0 : index
    %5 = vector.load %arg15[%c0_5, %c0_6] : memref<360x16xf32, #tpu.memory_space<vmem>>, vector<36x16xf32>
    tpu.vector_store %arg15[%c0_5, %c0_6], %4 {strides = array<i32>} : memref<360x16xf32, #tpu.memory_space<vmem>>, vector<36x16xf32>,
    %c324_7 = arith.constant 324 : index
    %c0_8 = arith.constant 0 : index
    %6 = vector.load %arg15[%c324_7, %c0_8] : memref<360x16xf32, #tpu.memory_space<vmem>>, vector<36x16xf32>
    tpu.vector_store %arg15[%c324_7, %c0_8], %4 {strides = array<i32>} : memref<360x16xf32, #tpu.memory_space<vmem>>, vector<36x16xf32>,
    %cst_9 = arith.constant 0.000000e+00 : f32
    %7 = vector.broadcast %cst_9 : f32 to vector<36x32xf32>
    %c0_10 = arith.constant 0 : index
    %c0_11 = arith.constant 0 : index
    %8 = vector.load %arg16[%c0_10, %c0_11] : memref<360x32xf32, #tpu.memory_space<vmem>>, vector<36x32xf32>
    tpu.vector_store %arg16[%c0_10, %c0_11], %7 {strides = array<i32>} : memref<360x32xf32, #tpu.memory_space<vmem>>, vector<36x32xf32>,
    %c324_12 = arith.constant 324 : index
    %c0_13 = arith.constant 0 : index
    %9 = vector.load %arg16[%c324_12, %c0_13] : memref<360x32xf32, #tpu.memory_space<vmem>>, vector<36x32xf32>
    tpu.vector_store %arg16[%c324_12, %c0_13], %7 {strides = array<i32>} : memref<360x32xf32, #tpu.memory_space<vmem>>, vector<36x32xf32>,
    %cst_14 = arith.constant 0.000000e+00 : f32
    %10 = vector.broadcast %cst_14 : f32 to vector<288x16xf32>
    %c0_15 = arith.constant 0 : index
    %c17 = arith.constant 17 : index
    %c0_16 = arith.constant 0 : index
    %11 = vector.load %arg2[%c0_15, %c17, %c0_16] : memref<1x360x4xf32, #tpu.memory_space<vmem>>, vector<1x288x4xf32>
    %12 = vector.shape_cast %11 : vector<1x288x4xf32> to vector<288x4xf32>
    %13 = arith.truncf %12 : vector<288x4xf32> to vector<288x4xbf16>
    %c0_17 = arith.constant 0 : index
    %c0_18 = arith.constant 0 : index
    %c0_19 = arith.constant 0 : index
    %14 = vector.load %arg3[%c0_17, %c0_18, %c0_19] : memref<9x4x16xbf16, #tpu.memory_space<vmem>>, vector<1x4x16xbf16>
    %15 = vector.shape_cast %14 : vector<1x4x16xbf16> to vector<4x16xbf16>
    %cst_20 = arith.constant dense<0.000000e+00> : vector<288x16xf32>
    %16 = tpu.matmul %13, %15, %cst_20 {dimension_numbers = #tpu.dot_dimension_numbers<[1], [0], [0], [1], [0, 0, 1, 1], [], []>} : vector<288x4xbf16>, vector<4x16xbf16>, vector<288x16xf32> -> vector<288x16xf32>
    %17 = arith.addf %10, %16 : vector<288x16xf32>
    %c0_21 = arith.constant 0 : index
    %c18 = arith.constant 18 : index
    %c0_22 = arith.constant 0 : index
    %18 = vector.load %arg2[%c0_21, %c18, %c0_22] : memref<1x360x4xf32, #tpu.memory_space<vmem>>, vector<1x288x4xf32>
    %19 = vector.shape_cast %18 : vector<1x288x4xf32> to vector<288x4xf32>
    %20 = arith.truncf %19 : vector<288x4xf32> to vector<288x4xbf16>
    %c1 = arith.constant 1 : index
    %c0_23 = arith.constant 0 : index
    %c0_24 = arith.constant 0 : index
    %21 = vector.load %arg3[%c1, %c0_23, %c0_24] : memref<9x4x16xbf16, #tpu.memory_space<vmem>>, vector<1x4x16xbf16>
    %22 = vector.shape_cast %21 : vector<1x4x16xbf16> to vector<4x16xbf16>
    %cst_25 = arith.constant dense<0.000000e+00> : vector<288x16xf32>
    %23 = tpu.matmul %20, %22, %cst_25 {dimension_numbers = #tpu.dot_dimension_numbers<[1], [0], [0], [1], [0, 0, 1, 1], [], []>} : vector<288x4xbf16>, vector<4x16xbf16>, vector<288x16xf32> -> vector<288x16xf32>
    %24 = arith.addf %17, %23 : vector<288x16xf32>
    %c0_26 = arith.constant 0 : index
    %c19 = arith.constant 19 : index
    %c0_27 = arith.constant 0 : index
    %25 = vector.load %arg2[%c0_26, %c19, %c0_27] : memref<1x360x4xf32, #tpu.memory_space<vmem>>, vector<1x288x4xf32>
    %26 = vector.shape_cast %25 : vector<1x288x4xf32> to vector<288x4xf32>
    %27 = arith.truncf %26 : vector<288x4xf32> to vector<288x4xbf16>
    %c2 = arith.constant 2 : index
    %c0_28 = arith.constant 0 : index
    %c0_29 = arith.constant 0 : index
    %28 = vector.load %arg3[%c2, %c0_28, %c0_29] : memref<9x4x16xbf16, #tpu.memory_space<vmem>>, vector<1x4x16xbf16>
    %29 = vector.shape_cast %28 : vector<1x4x16xbf16> to vector<4x16xbf16>
    %cst_30 = arith.constant dense<0.000000e+00> : vector<288x16xf32>
    %30 = tpu.matmul %27, %29, %cst_30 {dimension_numbers = #tpu.dot_dimension_numbers<[1], [0], [0], [1], [0, 0, 1, 1], [], []>} : vector<288x4xbf16>, vector<4x16xbf16>, vector<288x16xf32> -> vector<288x16xf32>
    %31 = arith.addf %24, %30 : vector<288x16xf32>
    %c0_31 = arith.constant 0 : index
    %c35 = arith.constant 35 : index
    %c0_32 = arith.constant 0 : index
    %32 = vector.load %arg2[%c0_31, %c35, %c0_32] : memref<1x360x4xf32, #tpu.memory_space<vmem>>, vector<1x288x4xf32>
    %33 = vector.shape_cast %32 : vector<1x288x4xf32> to vector<288x4xf32>
    %34 = arith.truncf %33 : vector<288x4xf32> to vector<288x4xbf16>
    %c3 = arith.constant 3 : index
    %c0_33 = arith.constant 0 : index
    %c0_34 = arith.constant 0 : index
    %35 = vector.load %arg3[%c3, %c0_33, %c0_34] : memref<9x4x16xbf16, #tpu.memory_space<vmem>>, vector<1x4x16xbf16>
    %36 = vector.shape_cast %35 : vector<1x4x16xbf16> to vector<4x16xbf16>
    %cst_35 = arith.constant dense<0.000000e+00> : vector<288x16xf32>
    %37 = tpu.matmul %34, %36, %cst_35 {dimension_numbers = #tpu.dot_dimension_numbers<[1], [0], [0], [1], [0, 0, 1, 1], [], []>} : vector<288x4xbf16>, vector<4x16xbf16>, vector<288x16xf32> -> vector<288x16xf32>
    %38 = arith.addf %31, %37 : vector<288x16xf32>
    %c0_36 = arith.constant 0 : index
    %c36 = arith.constant 36 : index
    %c0_37 = arith.constant 0 : index
    %39 = vector.load %arg2[%c0_36, %c36, %c0_37] : memref<1x360x4xf32, #tpu.memory_space<vmem>>, vector<1x288x4xf32>
    %40 = vector.shape_cast %39 : vector<1x288x4xf32> to vector<288x4xf32>
    %41 = arith.truncf %40 : vector<288x4xf32> to vector<288x4xbf16>
    %c4 = arith.constant 4 : index
    %c0_38 = arith.constant 0 : index
    %c0_39 = arith.constant 0 : index
    %42 = vector.load %arg3[%c4, %c0_38, %c0_39] : memref<9x4x16xbf16, #tpu.memory_space<vmem>>, vector<1x4x16xbf16>
    %43 = vector.shape_cast %42 : vector<1x4x16xbf16> to vector<4x16xbf16>
    %cst_40 = arith.constant dense<0.000000e+00> : vector<288x16xf32>
    %44 = tpu.matmul %41, %43, %cst_40 {dimension_numbers = #tpu.dot_dimension_numbers<[1], [0], [0], [1], [0, 0, 1, 1], [], []>} : vector<288x4xbf16>, vector<4x16xbf16>, vector<288x16xf32> -> vector<288x16xf32>
    %45 = arith.addf %38, %44 : vector<288x16xf32>
    %c0_41 = arith.constant 0 : index
    %c37 = arith.constant 37 : index
    %c0_42 = arith.constant 0 : index
    %46 = vector.load %arg2[%c0_41, %c37, %c0_42] : memref<1x360x4xf32, #tpu.memory_space<vmem>>, vector<1x288x4xf32>
    %47 = vector.shape_cast %46 : vector<1x288x4xf32> to vector<288x4xf32>
    %48 = arith.truncf %47 : vector<288x4xf32> to vector<288x4xbf16>
    %c5 = arith.constant 5 : index
    %c0_43 = arith.constant 0 : index
    %c0_44 = arith.constant 0 : index
    %49 = vector.load %arg3[%c5, %c0_43, %c0_44] : memref<9x4x16xbf16, #tpu.memory_space<vmem>>, vector<1x4x16xbf16>
    %50 = vector.shape_cast %49 : vector<1x4x16xbf16> to vector<4x16xbf16>
    %cst_45 = arith.constant dense<0.000000e+00> : vector<288x16xf32>
    %51 = tpu.matmul %48, %50, %cst_45 {dimension_numbers = #tpu.dot_dimension_numbers<[1], [0], [0], [1], [0, 0, 1, 1], [], []>} : vector<288x4xbf16>, vector<4x16xbf16>, vector<288x16xf32> -> vector<288x16xf32>
    %52 = arith.addf %45, %51 : vector<288x16xf32>
    %c0_46 = arith.constant 0 : index
    %c53 = arith.constant 53 : index
    %c0_47 = arith.constant 0 : index
    %53 = vector.load %arg2[%c0_46, %c53, %c0_47] : memref<1x360x4xf32, #tpu.memory_space<vmem>>, vector<1x288x4xf32>
    %54 = vector.shape_cast %53 : vector<1x288x4xf32> to vector<288x4xf32>
    %55 = arith.truncf %54 : vector<288x4xf32> to vector<288x4xbf16>
    %c6 = arith.constant 6 : index
    %c0_48 = arith.constant 0 : index
    %c0_49 = arith.constant 0 : index
    %56 = vector.load %arg3[%c6, %c0_48, %c0_49] : memref<9x4x16xbf16, #tpu.memory_space<vmem>>, vector<1x4x16xbf16>
    %57 = vector.shape_cast %56 : vector<1x4x16xbf16> to vector<4x16xbf16>
    %cst_50 = arith.constant dense<0.000000e+00> : vector<288x16xf32>
    %58 = tpu.matmul %55, %57, %cst_50 {dimension_numbers = #tpu.dot_dimension_numbers<[1], [0], [0], [1], [0, 0, 1, 1], [], []>} : vector<288x4xbf16>, vector<4x16xbf16>, vector<288x16xf32> -> vector<288x16xf32>
    %59 = arith.addf %52, %58 : vector<288x16xf32>
    %c0_51 = arith.constant 0 : index
    %c54 = arith.constant 54 : index
    %c0_52 = arith.constant 0 : index
    %60 = vector.load %arg2[%c0_51, %c54, %c0_52] : memref<1x360x4xf32, #tpu.memory_space<vmem>>, vector<1x288x4xf32>
    %61 = vector.shape_cast %60 : vector<1x288x4xf32> to vector<288x4xf32>
    %62 = arith.truncf %61 : vector<288x4xf32> to vector<288x4xbf16>
    %c7 = arith.constant 7 : index
    %c0_53 = arith.constant 0 : index
    %c0_54 = arith.constant 0 : index
    %63 = vector.load %arg3[%c7, %c0_53, %c0_54] : memref<9x4x16xbf16, #tpu.memory_space<vmem>>, vector<1x4x16xbf16>
    %64 = vector.shape_cast %63 : vector<1x4x16xbf16> to vector<4x16xbf16>
    %cst_55 = arith.constant dense<0.000000e+00> : vector<288x16xf32>
    %65 = tpu.matmul %62, %64, %cst_55 {dimension_numbers = #tpu.dot_dimension_numbers<[1], [0], [0], [1], [0, 0, 1, 1], [], []>} : vector<288x4xbf16>, vector<4x16xbf16>, vector<288x16xf32> -> vector<288x16xf32>
    %66 = arith.addf %59, %65 : vector<288x16xf32>
    %c0_56 = arith.constant 0 : index
    %c55 = arith.constant 55 : index
    %c0_57 = arith.constant 0 : index
    %67 = vector.load %arg2[%c0_56, %c55, %c0_57] : memref<1x360x4xf32, #tpu.memory_space<vmem>>, vector<1x288x4xf32>
    %68 = vector.shape_cast %67 : vector<1x288x4xf32> to vector<288x4xf32>
    %69 = arith.truncf %68 : vector<288x4xf32> to vector<288x4xbf16>
    %c8 = arith.constant 8 : index
    %c0_58 = arith.constant 0 : index
    %c0_59 = arith.constant 0 : index
    %70 = vector.load %arg3[%c8, %c0_58, %c0_59] : memref<9x4x16xbf16, #tpu.memory_space<vmem>>, vector<1x4x16xbf16>
    %71 = vector.shape_cast %70 : vector<1x4x16xbf16> to vector<4x16xbf16>
    %cst_60 = arith.constant dense<0.000000e+00> : vector<288x16xf32>
    %72 = tpu.matmul %69, %71, %cst_60 {dimension_numbers = #tpu.dot_dimension_numbers<[1], [0], [0], [1], [0, 0, 1, 1], [], []>} : vector<288x4xbf16>, vector<4x16xbf16>, vector<288x16xf32> -> vector<288x16xf32>
    %73 = arith.addf %66, %72 : vector<288x16xf32>
    %c0_61 = arith.constant 0 : index
    %c0_62 = arith.constant 0 : index
    %74 = vector.load %arg4[%c0_61, %c0_62] : memref<1x16xf32, #tpu.memory_space<vmem>>, vector<1x16xf32>
    %75 = vector.broadcast %74 : vector<1x16xf32> to vector<288x16xf32>
    %76 = arith.addf %73, %75 : vector<288x16xf32>
    %cst_63 = arith.constant 0.000000e+00 : f32
    %77 = vector.broadcast %cst_63 : f32 to vector<288x16xf32>
    %78 = arith.maximumf %76, %77 : vector<288x16xf32>
    %79 = vector.broadcast %0 : vector<288x1xf32> to vector<288x16xf32>
    %80 = arith.mulf %78, %79 : vector<288x16xf32>
    %c36_64 = arith.constant 36 : index
    %c0_65 = arith.constant 0 : index
    %81 = vector.load %arg14[%c36_64, %c0_65] : memref<360x16xf32, #tpu.memory_space<vmem>>, vector<288x16xf32>
    tpu.vector_store %arg14[%c36_64, %c0_65], %80 {strides = array<i32>} : memref<360x16xf32, #tpu.memory_space<vmem>>, vector<288x16xf32>,
    %cst_66 = arith.constant 0.000000e+00 : f32
    %82 = vector.broadcast %cst_66 : f32 to vector<288x16xf32>
    %c17_67 = arith.constant 17 : index
    %c0_68 = arith.constant 0 : index
    %83 = vector.load %arg14[%c17_67, %c0_68] : memref<360x16xf32, #tpu.memory_space<vmem>>, vector<288x16xf32>
    %84 = arith.truncf %83 : vector<288x16xf32> to vector<288x16xbf16>
    %c0_69 = arith.constant 0 : index
    %c0_70 = arith.constant 0 : index
    %c0_71 = arith.constant 0 : index
    %85 = vector.load %arg5[%c0_69, %c0_70, %c0_71] : memref<9x16x16xbf16, #tpu.memory_space<vmem>>, vector<1x16x16xbf16>
    %86 = vector.shape_cast %85 : vector<1x16x16xbf16> to vector<16x16xbf16>
    %cst_72 = arith.constant dense<0.000000e+00> : vector<288x16xf32>
    %87 = tpu.matmul %84, %86, %cst_72 {dimension_numbers = #tpu.dot_dimension_numbers<[1], [0], [0], [1], [0, 0, 1, 1], [], []>} : vector<288x16xbf16>, vector<16x16xbf16>, vector<288x16xf32> -> vector<288x16xf32>
    %88 = arith.addf %82, %87 : vector<288x16xf32>
    %c18_73 = arith.constant 18 : index
    %c0_74 = arith.constant 0 : index
    %89 = vector.load %arg14[%c18_73, %c0_74] : memref<360x16xf32, #tpu.memory_space<vmem>>, vector<288x16xf32>
    %90 = arith.truncf %89 : vector<288x16xf32> to vector<288x16xbf16>
    %c1_75 = arith.constant 1 : index
    %c0_76 = arith.constant 0 : index
    %c0_77 = arith.constant 0 : index
    %91 = vector.load %arg5[%c1_75, %c0_76, %c0_77] : memref<9x16x16xbf16, #tpu.memory_space<vmem>>, vector<1x16x16xbf16>
    %92 = vector.shape_cast %91 : vector<1x16x16xbf16> to vector<16x16xbf16>
    %cst_78 = arith.constant dense<0.000000e+00> : vector<288x16xf32>
    %93 = tpu.matmul %90, %92, %cst_78 {dimension_numbers = #tpu.dot_dimension_numbers<[1], [0], [0], [1], [0, 0, 1, 1], [], []>} : vector<288x16xbf16>, vector<16x16xbf16>, vector<288x16xf32> -> vector<288x16xf32>
    %94 = arith.addf %88, %93 : vector<288x16xf32>
    %c19_79 = arith.constant 19 : index
    %c0_80 = arith.constant 0 : index
    %95 = vector.load %arg14[%c19_79, %c0_80] : memref<360x16xf32, #tpu.memory_space<vmem>>, vector<288x16xf32>
    %96 = arith.truncf %95 : vector<288x16xf32> to vector<288x16xbf16>
    %c2_81 = arith.constant 2 : index
    %c0_82 = arith.constant 0 : index
    %c0_83 = arith.constant 0 : index
    %97 = vector.load %arg5[%c2_81, %c0_82, %c0_83] : memref<9x16x16xbf16, #tpu.memory_space<vmem>>, vector<1x16x16xbf16>
    %98 = vector.shape_cast %97 : vector<1x16x16xbf16> to vector<16x16xbf16>
    %cst_84 = arith.constant dense<0.000000e+00> : vector<288x16xf32>
    %99 = tpu.matmul %96, %98, %cst_84 {dimension_numbers = #tpu.dot_dimension_numbers<[1], [0], [0], [1], [0, 0, 1, 1], [], []>} : vector<288x16xbf16>, vector<16x16xbf16>, vector<288x16xf32> -> vector<288x16xf32>
    %100 = arith.addf %94, %99 : vector<288x16xf32>
    %c35_85 = arith.constant 35 : index
    %c0_86 = arith.constant 0 : index
    %101 = vector.load %arg14[%c35_85, %c0_86] : memref<360x16xf32, #tpu.memory_space<vmem>>, vector<288x16xf32>
    %102 = arith.truncf %101 : vector<288x16xf32> to vector<288x16xbf16>
    %c3_87 = arith.constant 3 : index
    %c0_88 = arith.constant 0 : index
    %c0_89 = arith.constant 0 : index
    %103 = vector.load %arg5[%c3_87, %c0_88, %c0_89] : memref<9x16x16xbf16, #tpu.memory_space<vmem>>, vector<1x16x16xbf16>
    %104 = vector.shape_cast %103 : vector<1x16x16xbf16> to vector<16x16xbf16>
    %cst_90 = arith.constant dense<0.000000e+00> : vector<288x16xf32>
    %105 = tpu.matmul %102, %104, %cst_90 {dimension_numbers = #tpu.dot_dimension_numbers<[1], [0], [0], [1], [0, 0, 1, 1], [], []>} : vector<288x16xbf16>, vector<16x16xbf16>, vector<288x16xf32> -> vector<288x16xf32>
    %106 = arith.addf %100, %105 : vector<288x16xf32>
    %c36_91 = arith.constant 36 : index
    %c0_92 = arith.constant 0 : index
    %107 = vector.load %arg14[%c36_91, %c0_92] : memref<360x16xf32, #tpu.memory_space<vmem>>, vector<288x16xf32>
    %108 = arith.truncf %107 : vector<288x16xf32> to vector<288x16xbf16>
    %c4_93 = arith.constant 4 : index
    %c0_94 = arith.constant 0 : index
    %c0_95 = arith.constant 0 : index
    %109 = vector.load %arg5[%c4_93, %c0_94, %c0_95] : memref<9x16x16xbf16, #tpu.memory_space<vmem>>, vector<1x16x16xbf16>
    %110 = vector.shape_cast %109 : vector<1x16x16xbf16> to vector<16x16xbf16>
    %cst_96 = arith.constant dense<0.000000e+00> : vector<288x16xf32>
    %111 = tpu.matmul %108, %110, %cst_96 {dimension_numbers = #tpu.dot_dimension_numbers<[1], [0], [0], [1], [0, 0, 1, 1], [], []>} : vector<288x16xbf16>, vector<16x16xbf16>, vector<288x16xf32> -> vector<288x16xf32>
    %112 = arith.addf %106, %111 : vector<288x16xf32>
    %c37_97 = arith.constant 37 : index
    %c0_98 = arith.constant 0 : index
    %113 = vector.load %arg14[%c37_97, %c0_98] : memref<360x16xf32, #tpu.memory_space<vmem>>, vector<288x16xf32>
    %114 = arith.truncf %113 : vector<288x16xf32> to vector<288x16xbf16>
    %c5_99 = arith.constant 5 : index
    %c0_100 = arith.constant 0 : index
    %c0_101 = arith.constant 0 : index
    %115 = vector.load %arg5[%c5_99, %c0_100, %c0_101] : memref<9x16x16xbf16, #tpu.memory_space<vmem>>, vector<1x16x16xbf16>
    %116 = vector.shape_cast %115 : vector<1x16x16xbf16> to vector<16x16xbf16>
    %cst_102 = arith.constant dense<0.000000e+00> : vector<288x16xf32>
    %117 = tpu.matmul %114, %116, %cst_102 {dimension_numbers = #tpu.dot_dimension_numbers<[1], [0], [0], [1], [0, 0, 1, 1], [], []>} : vector<288x16xbf16>, vector<16x16xbf16>, vector<288x16xf32> -> vector<288x16xf32>
    %118 = arith.addf %112, %117 : vector<288x16xf32>
    %c53_103 = arith.constant 53 : index
    %c0_104 = arith.constant 0 : index
    %119 = vector.load %arg14[%c53_103, %c0_104] : memref<360x16xf32, #tpu.memory_space<vmem>>, vector<288x16xf32>
    %120 = arith.truncf %119 : vector<288x16xf32> to vector<288x16xbf16>
    %c6_105 = arith.constant 6 : index
    %c0_106 = arith.constant 0 : index
    %c0_107 = arith.constant 0 : index
    %121 = vector.load %arg5[%c6_105, %c0_106, %c0_107] : memref<9x16x16xbf16, #tpu.memory_space<vmem>>, vector<1x16x16xbf16>
    %122 = vector.shape_cast %121 : vector<1x16x16xbf16> to vector<16x16xbf16>
    %cst_108 = arith.constant dense<0.000000e+00> : vector<288x16xf32>
    %123 = tpu.matmul %120, %122, %cst_108 {dimension_numbers = #tpu.dot_dimension_numbers<[1], [0], [0], [1], [0, 0, 1, 1], [], []>} : vector<288x16xbf16>, vector<16x16xbf16>, vector<288x16xf32> -> vector<288x16xf32>
    %124 = arith.addf %118, %123 : vector<288x16xf32>
    %c54_109 = arith.constant 54 : index
    %c0_110 = arith.constant 0 : index
    %125 = vector.load %arg14[%c54_109, %c0_110] : memref<360x16xf32, #tpu.memory_space<vmem>>, vector<288x16xf32>
    %126 = arith.truncf %125 : vector<288x16xf32> to vector<288x16xbf16>
    %c7_111 = arith.constant 7 : index
    %c0_112 = arith.constant 0 : index
    %c0_113 = arith.constant 0 : index
    %127 = vector.load %arg5[%c7_111, %c0_112, %c0_113] : memref<9x16x16xbf16, #tpu.memory_space<vmem>>, vector<1x16x16xbf16>
    %128 = vector.shape_cast %127 : vector<1x16x16xbf16> to vector<16x16xbf16>
    %cst_114 = arith.constant dense<0.000000e+00> : vector<288x16xf32>
    %129 = tpu.matmul %126, %128, %cst_114 {dimension_numbers = #tpu.dot_dimension_numbers<[1], [0], [0], [1], [0, 0, 1, 1], [], []>} : vector<288x16xbf16>, vector<16x16xbf16>, vector<288x16xf32> -> vector<288x16xf32>
    %130 = arith.addf %124, %129 : vector<288x16xf32>
    %c55_115 = arith.constant 55 : index
    %c0_116 = arith.constant 0 : index
    %131 = vector.load %arg14[%c55_115, %c0_116] : memref<360x16xf32, #tpu.memory_space<vmem>>, vector<288x16xf32>
    %132 = arith.truncf %131 : vector<288x16xf32> to vector<288x16xbf16>
    %c8_117 = arith.constant 8 : index
    %c0_118 = arith.constant 0 : index
    %c0_119 = arith.constant 0 : index
    %133 = vector.load %arg5[%c8_117, %c0_118, %c0_119] : memref<9x16x16xbf16, #tpu.memory_space<vmem>>, vector<1x16x16xbf16>
    %134 = vector.shape_cast %133 : vector<1x16x16xbf16> to vector<16x16xbf16>
    %cst_120 = arith.constant dense<0.000000e+00> : vector<288x16xf32>
    %135 = tpu.matmul %132, %134, %cst_120 {dimension_numbers = #tpu.dot_dimension_numbers<[1], [0], [0], [1], [0, 0, 1, 1], [], []>} : vector<288x16xbf16>, vector<16x16xbf16>, vector<288x16xf32> -> vector<288x16xf32>
    %136 = arith.addf %130, %135 : vector<288x16xf32>
    %c0_121 = arith.constant 0 : index
    %c0_122 = arith.constant 0 : index
    %137 = vector.load %arg6[%c0_121, %c0_122] : memref<1x16xf32, #tpu.memory_space<vmem>>, vector<1x16xf32>
    %138 = vector.broadcast %137 : vector<1x16xf32> to vector<288x16xf32>
    %139 = arith.addf %136, %138 : vector<288x16xf32>
    %140 = vector.broadcast %0 : vector<288x1xf32> to vector<288x16xf32>
    %141 = arith.mulf %139, %140 : vector<288x16xf32>
    %c36_123 = arith.constant 36 : index
    %c0_124 = arith.constant 0 : index
    %142 = vector.load %arg15[%c36_123, %c0_124] : memref<360x16xf32, #tpu.memory_space<vmem>>, vector<288x16xf32>
    tpu.vector_store %arg15[%c36_123, %c0_124], %141 {strides = array<i32>} : memref<360x16xf32, #tpu.memory_space<vmem>>, vector<288x16xf32>,
    %cst_125 = arith.constant 0.000000e+00 : f32
    %143 = vector.broadcast %cst_125 : f32 to vector<288x32xf32>
    %c17_126 = arith.constant 17 : index
    %c0_127 = arith.constant 0 : index
    %144 = vector.load %arg15[%c17_126, %c0_127] : memref<360x16xf32, #tpu.memory_space<vmem>>, vector<288x16xf32>
    %145 = arith.truncf %144 : vector<288x16xf32> to vector<288x16xbf16>
    %c0_128 = arith.constant 0 : index
    %c0_129 = arith.constant 0 : index
    %c0_130 = arith.constant 0 : index
    %146 = vector.load %arg7[%c0_128, %c0_129, %c0_130] : memref<9x16x32xbf16, #tpu.memory_space<vmem>>, vector<1x16x32xbf16>
    %147 = vector.shape_cast %146 : vector<1x16x32xbf16> to vector<16x32xbf16>
    %cst_131 = arith.constant dense<0.000000e+00> : vector<288x32xf32>
    %148 = tpu.matmul %145, %147, %cst_131 {dimension_numbers = #tpu.dot_dimension_numbers<[1], [0], [0], [1], [0, 0, 1, 1], [], []>} : vector<288x16xbf16>, vector<16x32xbf16>, vector<288x32xf32> -> vector<288x32xf32>
    %149 = arith.addf %143, %148 : vector<288x32xf32>
    %c18_132 = arith.constant 18 : index
    %c0_133 = arith.constant 0 : index
    %150 = vector.load %arg15[%c18_132, %c0_133] : memref<360x16xf32, #tpu.memory_space<vmem>>, vector<288x16xf32>
    %151 = arith.truncf %150 : vector<288x16xf32> to vector<288x16xbf16>
    %c1_134 = arith.constant 1 : index
    %c0_135 = arith.constant 0 : index
    %c0_136 = arith.constant 0 : index
    %152 = vector.load %arg7[%c1_134, %c0_135, %c0_136] : memref<9x16x32xbf16, #tpu.memory_space<vmem>>, vector<1x16x32xbf16>
    %153 = vector.shape_cast %152 : vector<1x16x32xbf16> to vector<16x32xbf16>
    %cst_137 = arith.constant dense<0.000000e+00> : vector<288x32xf32>
    %154 = tpu.matmul %151, %153, %cst_137 {dimension_numbers = #tpu.dot_dimension_numbers<[1], [0], [0], [1], [0, 0, 1, 1], [], []>} : vector<288x16xbf16>, vector<16x32xbf16>, vector<288x32xf32> -> vector<288x32xf32>
    %155 = arith.addf %149, %154 : vector<288x32xf32>
    %c19_138 = arith.constant 19 : index
    %c0_139 = arith.constant 0 : index
    %156 = vector.load %arg15[%c19_138, %c0_139] : memref<360x16xf32, #tpu.memory_space<vmem>>, vector<288x16xf32>
    %157 = arith.truncf %156 : vector<288x16xf32> to vector<288x16xbf16>
    %c2_140 = arith.constant 2 : index
    %c0_141 = arith.constant 0 : index
    %c0_142 = arith.constant 0 : index
    %158 = vector.load %arg7[%c2_140, %c0_141, %c0_142] : memref<9x16x32xbf16, #tpu.memory_space<vmem>>, vector<1x16x32xbf16>
    %159 = vector.shape_cast %158 : vector<1x16x32xbf16> to vector<16x32xbf16>
    %cst_143 = arith.constant dense<0.000000e+00> : vector<288x32xf32>
    %160 = tpu.matmul %157, %159, %cst_143 {dimension_numbers = #tpu.dot_dimension_numbers<[1], [0], [0], [1], [0, 0, 1, 1], [], []>} : vector<288x16xbf16>, vector<16x32xbf16>, vector<288x32xf32> -> vector<288x32xf32>
    %161 = arith.addf %155, %160 : vector<288x32xf32>
    %c35_144 = arith.constant 35 : index
    %c0_145 = arith.constant 0 : index
    %162 = vector.load %arg15[%c35_144, %c0_145] : memref<360x16xf32, #tpu.memory_space<vmem>>, vector<288x16xf32>
    %163 = arith.truncf %162 : vector<288x16xf32> to vector<288x16xbf16>
    %c3_146 = arith.constant 3 : index
    %c0_147 = arith.constant 0 : index
    %c0_148 = arith.constant 0 : index
    %164 = vector.load %arg7[%c3_146, %c0_147, %c0_148] : memref<9x16x32xbf16, #tpu.memory_space<vmem>>, vector<1x16x32xbf16>
    %165 = vector.shape_cast %164 : vector<1x16x32xbf16> to vector<16x32xbf16>
    %cst_149 = arith.constant dense<0.000000e+00> : vector<288x32xf32>
    %166 = tpu.matmul %163, %165, %cst_149 {dimension_numbers = #tpu.dot_dimension_numbers<[1], [0], [0], [1], [0, 0, 1, 1], [], []>} : vector<288x16xbf16>, vector<16x32xbf16>, vector<288x32xf32> -> vector<288x32xf32>
    %167 = arith.addf %161, %166 : vector<288x32xf32>
    %c36_150 = arith.constant 36 : index
    %c0_151 = arith.constant 0 : index
    %168 = vector.load %arg15[%c36_150, %c0_151] : memref<360x16xf32, #tpu.memory_space<vmem>>, vector<288x16xf32>
    %169 = arith.truncf %168 : vector<288x16xf32> to vector<288x16xbf16>
    %c4_152 = arith.constant 4 : index
    %c0_153 = arith.constant 0 : index
    %c0_154 = arith.constant 0 : index
    %170 = vector.load %arg7[%c4_152, %c0_153, %c0_154] : memref<9x16x32xbf16, #tpu.memory_space<vmem>>, vector<1x16x32xbf16>
    %171 = vector.shape_cast %170 : vector<1x16x32xbf16> to vector<16x32xbf16>
    %cst_155 = arith.constant dense<0.000000e+00> : vector<288x32xf32>
    %172 = tpu.matmul %169, %171, %cst_155 {dimension_numbers = #tpu.dot_dimension_numbers<[1], [0], [0], [1], [0, 0, 1, 1], [], []>} : vector<288x16xbf16>, vector<16x32xbf16>, vector<288x32xf32> -> vector<288x32xf32>
    %173 = arith.addf %167, %172 : vector<288x32xf32>
    %c37_156 = arith.constant 37 : index
    %c0_157 = arith.constant 0 : index
    %174 = vector.load %arg15[%c37_156, %c0_157] : memref<360x16xf32, #tpu.memory_space<vmem>>, vector<288x16xf32>
    %175 = arith.truncf %174 : vector<288x16xf32> to vector<288x16xbf16>
    %c5_158 = arith.constant 5 : index
    %c0_159 = arith.constant 0 : index
    %c0_160 = arith.constant 0 : index
    %176 = vector.load %arg7[%c5_158, %c0_159, %c0_160] : memref<9x16x32xbf16, #tpu.memory_space<vmem>>, vector<1x16x32xbf16>
    %177 = vector.shape_cast %176 : vector<1x16x32xbf16> to vector<16x32xbf16>
    %cst_161 = arith.constant dense<0.000000e+00> : vector<288x32xf32>
    %178 = tpu.matmul %175, %177, %cst_161 {dimension_numbers = #tpu.dot_dimension_numbers<[1], [0], [0], [1], [0, 0, 1, 1], [], []>} : vector<288x16xbf16>, vector<16x32xbf16>, vector<288x32xf32> -> vector<288x32xf32>
    %179 = arith.addf %173, %178 : vector<288x32xf32>
    %c53_162 = arith.constant 53 : index
    %c0_163 = arith.constant 0 : index
    %180 = vector.load %arg15[%c53_162, %c0_163] : memref<360x16xf32, #tpu.memory_space<vmem>>, vector<288x16xf32>
    %181 = arith.truncf %180 : vector<288x16xf32> to vector<288x16xbf16>
    %c6_164 = arith.constant 6 : index
    %c0_165 = arith.constant 0 : index
    %c0_166 = arith.constant 0 : index
    %182 = vector.load %arg7[%c6_164, %c0_165, %c0_166] : memref<9x16x32xbf16, #tpu.memory_space<vmem>>, vector<1x16x32xbf16>
    %183 = vector.shape_cast %182 : vector<1x16x32xbf16> to vector<16x32xbf16>
    %cst_167 = arith.constant dense<0.000000e+00> : vector<288x32xf32>
    %184 = tpu.matmul %181, %183, %cst_167 {dimension_numbers = #tpu.dot_dimension_numbers<[1], [0], [0], [1], [0, 0, 1, 1], [], []>} : vector<288x16xbf16>, vector<16x32xbf16>, vector<288x32xf32> -> vector<288x32xf32>
    %185 = arith.addf %179, %184 : vector<288x32xf32>
    %c54_168 = arith.constant 54 : index
    %c0_169 = arith.constant 0 : index
    %186 = vector.load %arg15[%c54_168, %c0_169] : memref<360x16xf32, #tpu.memory_space<vmem>>, vector<288x16xf32>
    %187 = arith.truncf %186 : vector<288x16xf32> to vector<288x16xbf16>
    %c7_170 = arith.constant 7 : index
    %c0_171 = arith.constant 0 : index
    %c0_172 = arith.constant 0 : index
    %188 = vector.load %arg7[%c7_170, %c0_171, %c0_172] : memref<9x16x32xbf16, #tpu.memory_space<vmem>>, vector<1x16x32xbf16>
    %189 = vector.shape_cast %188 : vector<1x16x32xbf16> to vector<16x32xbf16>
    %cst_173 = arith.constant dense<0.000000e+00> : vector<288x32xf32>
    %190 = tpu.matmul %187, %189, %cst_173 {dimension_numbers = #tpu.dot_dimension_numbers<[1], [0], [0], [1], [0, 0, 1, 1], [], []>} : vector<288x16xbf16>, vector<16x32xbf16>, vector<288x32xf32> -> vector<288x32xf32>
    %191 = arith.addf %185, %190 : vector<288x32xf32>
    %c55_174 = arith.constant 55 : index
    %c0_175 = arith.constant 0 : index
    %192 = vector.load %arg15[%c55_174, %c0_175] : memref<360x16xf32, #tpu.memory_space<vmem>>, vector<288x16xf32>
    %193 = arith.truncf %192 : vector<288x16xf32> to vector<288x16xbf16>
    %c8_176 = arith.constant 8 : index
    %c0_177 = arith.constant 0 : index
    %c0_178 = arith.constant 0 : index
    %194 = vector.load %arg7[%c8_176, %c0_177, %c0_178] : memref<9x16x32xbf16, #tpu.memory_space<vmem>>, vector<1x16x32xbf16>
    %195 = vector.shape_cast %194 : vector<1x16x32xbf16> to vector<16x32xbf16>
    %cst_179 = arith.constant dense<0.000000e+00> : vector<288x32xf32>
    %196 = tpu.matmul %193, %195, %cst_179 {dimension_numbers = #tpu.dot_dimension_numbers<[1], [0], [0], [1], [0, 0, 1, 1], [], []>} : vector<288x16xbf16>, vector<16x32xbf16>, vector<288x32xf32> -> vector<288x32xf32>
    %197 = arith.addf %191, %196 : vector<288x32xf32>
    %c0_180 = arith.constant 0 : index
    %c0_181 = arith.constant 0 : index
    %198 = vector.load %arg8[%c0_180, %c0_181] : memref<1x32xf32, #tpu.memory_space<vmem>>, vector<1x32xf32>
    %199 = vector.broadcast %198 : vector<1x32xf32> to vector<288x32xf32>
    %200 = arith.addf %197, %199 : vector<288x32xf32>
    %cst_182 = arith.constant 0.000000e+00 : f32
    %201 = vector.broadcast %cst_182 : f32 to vector<288x32xf32>
    %202 = arith.maximumf %200, %201 : vector<288x32xf32>
    %203 = vector.broadcast %0 : vector<288x1xf32> to vector<288x32xf32>
    %204 = arith.mulf %202, %203 : vector<288x32xf32>
    %c36_183 = arith.constant 36 : index
    %c0_184 = arith.constant 0 : index
    %205 = vector.load %arg16[%c36_183, %c0_184] : memref<360x32xf32, #tpu.memory_space<vmem>>, vector<288x32xf32>
    tpu.vector_store %arg16[%c36_183, %c0_184], %204 {strides = array<i32>} : memref<360x32xf32, #tpu.memory_space<vmem>>, vector<288x32xf32>,
    %cst_185 = arith.constant 0.000000e+00 : f32
    %206 = vector.broadcast %cst_185 : f32 to vector<288x32xf32>
    %c17_186 = arith.constant 17 : index
    %c0_187 = arith.constant 0 : index
    %207 = vector.load %arg16[%c17_186, %c0_187] : memref<360x32xf32, #tpu.memory_space<vmem>>, vector<288x32xf32>
    %208 = arith.truncf %207 : vector<288x32xf32> to vector<288x32xbf16>
    %c0_188 = arith.constant 0 : index
    %c0_189 = arith.constant 0 : index
    %c0_190 = arith.constant 0 : index
    %209 = vector.load %arg9[%c0_188, %c0_189, %c0_190] : memref<9x32x32xbf16, #tpu.memory_space<vmem>>, vector<1x32x32xbf16>
    %210 = vector.shape_cast %209 : vector<1x32x32xbf16> to vector<32x32xbf16>
    %cst_191 = arith.constant dense<0.000000e+00> : vector<288x32xf32>
    %211 = tpu.matmul %208, %210, %cst_191 {dimension_numbers = #tpu.dot_dimension_numbers<[1], [0], [0], [1], [0, 0, 1, 1], [], []>} : vector<288x32xbf16>, vector<32x32xbf16>, vector<288x32xf32> -> vector<288x32xf32>
    %212 = arith.addf %206, %211 : vector<288x32xf32>
    %c18_192 = arith.constant 18 : index
    %c0_193 = arith.constant 0 : index
    %213 = vector.load %arg16[%c18_192, %c0_193] : memref<360x32xf32, #tpu.memory_space<vmem>>, vector<288x32xf32>
    %214 = arith.truncf %213 : vector<288x32xf32> to vector<288x32xbf16>
    %c1_194 = arith.constant 1 : index
    %c0_195 = arith.constant 0 : index
    %c0_196 = arith.constant 0 : index
    %215 = vector.load %arg9[%c1_194, %c0_195, %c0_196] : memref<9x32x32xbf16, #tpu.memory_space<vmem>>, vector<1x32x32xbf16>
    %216 = vector.shape_cast %215 : vector<1x32x32xbf16> to vector<32x32xbf16>
    %cst_197 = arith.constant dense<0.000000e+00> : vector<288x32xf32>
    %217 = tpu.matmul %214, %216, %cst_197 {dimension_numbers = #tpu.dot_dimension_numbers<[1], [0], [0], [1], [0, 0, 1, 1], [], []>} : vector<288x32xbf16>, vector<32x32xbf16>, vector<288x32xf32> -> vector<288x32xf32>
    %218 = arith.addf %212, %217 : vector<288x32xf32>
    %c19_198 = arith.constant 19 : index
    %c0_199 = arith.constant 0 : index
    %219 = vector.load %arg16[%c19_198, %c0_199] : memref<360x32xf32, #tpu.memory_space<vmem>>, vector<288x32xf32>
    %220 = arith.truncf %219 : vector<288x32xf32> to vector<288x32xbf16>
    %c2_200 = arith.constant 2 : index
    %c0_201 = arith.constant 0 : index
    %c0_202 = arith.constant 0 : index
    %221 = vector.load %arg9[%c2_200, %c0_201, %c0_202] : memref<9x32x32xbf16, #tpu.memory_space<vmem>>, vector<1x32x32xbf16>
    %222 = vector.shape_cast %221 : vector<1x32x32xbf16> to vector<32x32xbf16>
    %cst_203 = arith.constant dense<0.000000e+00> : vector<288x32xf32>
    %223 = tpu.matmul %220, %222, %cst_203 {dimension_numbers = #tpu.dot_dimension_numbers<[1], [0], [0], [1], [0, 0, 1, 1], [], []>} : vector<288x32xbf16>, vector<32x32xbf16>, vector<288x32xf32> -> vector<288x32xf32>
    %224 = arith.addf %218, %223 : vector<288x32xf32>
    %c35_204 = arith.constant 35 : index
    %c0_205 = arith.constant 0 : index
    %225 = vector.load %arg16[%c35_204, %c0_205] : memref<360x32xf32, #tpu.memory_space<vmem>>, vector<288x32xf32>
    %226 = arith.truncf %225 : vector<288x32xf32> to vector<288x32xbf16>
    %c3_206 = arith.constant 3 : index
    %c0_207 = arith.constant 0 : index
    %c0_208 = arith.constant 0 : index
    %227 = vector.load %arg9[%c3_206, %c0_207, %c0_208] : memref<9x32x32xbf16, #tpu.memory_space<vmem>>, vector<1x32x32xbf16>
    %228 = vector.shape_cast %227 : vector<1x32x32xbf16> to vector<32x32xbf16>
    %cst_209 = arith.constant dense<0.000000e+00> : vector<288x32xf32>
    %229 = tpu.matmul %226, %228, %cst_209 {dimension_numbers = #tpu.dot_dimension_numbers<[1], [0], [0], [1], [0, 0, 1, 1], [], []>} : vector<288x32xbf16>, vector<32x32xbf16>, vector<288x32xf32> -> vector<288x32xf32>
    %230 = arith.addf %224, %229 : vector<288x32xf32>
    %c36_210 = arith.constant 36 : index
    %c0_211 = arith.constant 0 : index
    %231 = vector.load %arg16[%c36_210, %c0_211] : memref<360x32xf32, #tpu.memory_space<vmem>>, vector<288x32xf32>
    %232 = arith.truncf %231 : vector<288x32xf32> to vector<288x32xbf16>
    %c4_212 = arith.constant 4 : index
    %c0_213 = arith.constant 0 : index
    %c0_214 = arith.constant 0 : index
    %233 = vector.load %arg9[%c4_212, %c0_213, %c0_214] : memref<9x32x32xbf16, #tpu.memory_space<vmem>>, vector<1x32x32xbf16>
    %234 = vector.shape_cast %233 : vector<1x32x32xbf16> to vector<32x32xbf16>
    %cst_215 = arith.constant dense<0.000000e+00> : vector<288x32xf32>
    %235 = tpu.matmul %232, %234, %cst_215 {dimension_numbers = #tpu.dot_dimension_numbers<[1], [0], [0], [1], [0, 0, 1, 1], [], []>} : vector<288x32xbf16>, vector<32x32xbf16>, vector<288x32xf32> -> vector<288x32xf32>
    %236 = arith.addf %230, %235 : vector<288x32xf32>
    %c37_216 = arith.constant 37 : index
    %c0_217 = arith.constant 0 : index
    %237 = vector.load %arg16[%c37_216, %c0_217] : memref<360x32xf32, #tpu.memory_space<vmem>>, vector<288x32xf32>
    %238 = arith.truncf %237 : vector<288x32xf32> to vector<288x32xbf16>
    %c5_218 = arith.constant 5 : index
    %c0_219 = arith.constant 0 : index
    %c0_220 = arith.constant 0 : index
    %239 = vector.load %arg9[%c5_218, %c0_219, %c0_220] : memref<9x32x32xbf16, #tpu.memory_space<vmem>>, vector<1x32x32xbf16>
    %240 = vector.shape_cast %239 : vector<1x32x32xbf16> to vector<32x32xbf16>
    %cst_221 = arith.constant dense<0.000000e+00> : vector<288x32xf32>
    %241 = tpu.matmul %238, %240, %cst_221 {dimension_numbers = #tpu.dot_dimension_numbers<[1], [0], [0], [1], [0, 0, 1, 1], [], []>} : vector<288x32xbf16>, vector<32x32xbf16>, vector<288x32xf32> -> vector<288x32xf32>
    %242 = arith.addf %236, %241 : vector<288x32xf32>
    %c53_222 = arith.constant 53 : index
    %c0_223 = arith.constant 0 : index
    %243 = vector.load %arg16[%c53_222, %c0_223] : memref<360x32xf32, #tpu.memory_space<vmem>>, vector<288x32xf32>
    %244 = arith.truncf %243 : vector<288x32xf32> to vector<288x32xbf16>
    %c6_224 = arith.constant 6 : index
    %c0_225 = arith.constant 0 : index
    %c0_226 = arith.constant 0 : index
    %245 = vector.load %arg9[%c6_224, %c0_225, %c0_226] : memref<9x32x32xbf16, #tpu.memory_space<vmem>>, vector<1x32x32xbf16>
    %246 = vector.shape_cast %245 : vector<1x32x32xbf16> to vector<32x32xbf16>
    %cst_227 = arith.constant dense<0.000000e+00> : vector<288x32xf32>
    %247 = tpu.matmul %244, %246, %cst_227 {dimension_numbers = #tpu.dot_dimension_numbers<[1], [0], [0], [1], [0, 0, 1, 1], [], []>} : vector<288x32xbf16>, vector<32x32xbf16>, vector<288x32xf32> -> vector<288x32xf32>
    %248 = arith.addf %242, %247 : vector<288x32xf32>
    %c54_228 = arith.constant 54 : index
    %c0_229 = arith.constant 0 : index
    %249 = vector.load %arg16[%c54_228, %c0_229] : memref<360x32xf32, #tpu.memory_space<vmem>>, vector<288x32xf32>
    %250 = arith.truncf %249 : vector<288x32xf32> to vector<288x32xbf16>
    %c7_230 = arith.constant 7 : index
    %c0_231 = arith.constant 0 : index
    %c0_232 = arith.constant 0 : index
    %251 = vector.load %arg9[%c7_230, %c0_231, %c0_232] : memref<9x32x32xbf16, #tpu.memory_space<vmem>>, vector<1x32x32xbf16>
    %252 = vector.shape_cast %251 : vector<1x32x32xbf16> to vector<32x32xbf16>
    %cst_233 = arith.constant dense<0.000000e+00> : vector<288x32xf32>
    %253 = tpu.matmul %250, %252, %cst_233 {dimension_numbers = #tpu.dot_dimension_numbers<[1], [0], [0], [1], [0, 0, 1, 1], [], []>} : vector<288x32xbf16>, vector<32x32xbf16>, vector<288x32xf32> -> vector<288x32xf32>
    %254 = arith.addf %248, %253 : vector<288x32xf32>
    %c55_234 = arith.constant 55 : index
    %c0_235 = arith.constant 0 : index
    %255 = vector.load %arg16[%c55_234, %c0_235] : memref<360x32xf32, #tpu.memory_space<vmem>>, vector<288x32xf32>
    %256 = arith.truncf %255 : vector<288x32xf32> to vector<288x32xbf16>
    %c8_236 = arith.constant 8 : index
    %c0_237 = arith.constant 0 : index
    %c0_238 = arith.constant 0 : index
    %257 = vector.load %arg9[%c8_236, %c0_237, %c0_238] : memref<9x32x32xbf16, #tpu.memory_space<vmem>>, vector<1x32x32xbf16>
    %258 = vector.shape_cast %257 : vector<1x32x32xbf16> to vector<32x32xbf16>
    %cst_239 = arith.constant dense<0.000000e+00> : vector<288x32xf32>
    %259 = tpu.matmul %256, %258, %cst_239 {dimension_numbers = #tpu.dot_dimension_numbers<[1], [0], [0], [1], [0, 0, 1, 1], [], []>} : vector<288x32xbf16>, vector<32x32xbf16>, vector<288x32xf32> -> vector<288x32xf32>
    %260 = arith.addf %254, %259 : vector<288x32xf32>
    %c0_240 = arith.constant 0 : index
    %c0_241 = arith.constant 0 : index
    %261 = vector.load %arg10[%c0_240, %c0_241] : memref<1x32xf32, #tpu.memory_space<vmem>>, vector<1x32xf32>
    %262 = vector.broadcast %261 : vector<1x32xf32> to vector<288x32xf32>
    %263 = arith.addf %260, %262 : vector<288x32xf32>
    %cst_242 = arith.constant 0.000000e+00 : f32
    %264 = vector.broadcast %cst_242 : f32 to vector<288x32xf32>
    %c17_243 = arith.constant 17 : index
    %c0_244 = arith.constant 0 : index
    %265 = vector.load %arg15[%c17_243, %c0_244] : memref<360x16xf32, #tpu.memory_space<vmem>>, vector<288x16xf32>
    %266 = arith.truncf %265 : vector<288x16xf32> to vector<288x16xbf16>
    %c0_245 = arith.constant 0 : index
    %c0_246 = arith.constant 0 : index
    %c0_247 = arith.constant 0 : index
    %267 = vector.load %arg11[%c0_245, %c0_246, %c0_247] : memref<9x16x32xbf16, #tpu.memory_space<vmem>>, vector<1x16x32xbf16>
    %268 = vector.shape_cast %267 : vector<1x16x32xbf16> to vector<16x32xbf16>
    %cst_248 = arith.constant dense<0.000000e+00> : vector<288x32xf32>
    %269 = tpu.matmul %266, %268, %cst_248 {dimension_numbers = #tpu.dot_dimension_numbers<[1], [0], [0], [1], [0, 0, 1, 1], [], []>} : vector<288x16xbf16>, vector<16x32xbf16>, vector<288x32xf32> -> vector<288x32xf32>
    %270 = arith.addf %264, %269 : vector<288x32xf32>
    %c18_249 = arith.constant 18 : index
    %c0_250 = arith.constant 0 : index
    %271 = vector.load %arg15[%c18_249, %c0_250] : memref<360x16xf32, #tpu.memory_space<vmem>>, vector<288x16xf32>
    %272 = arith.truncf %271 : vector<288x16xf32> to vector<288x16xbf16>
    %c1_251 = arith.constant 1 : index
    %c0_252 = arith.constant 0 : index
    %c0_253 = arith.constant 0 : index
    %273 = vector.load %arg11[%c1_251, %c0_252, %c0_253] : memref<9x16x32xbf16, #tpu.memory_space<vmem>>, vector<1x16x32xbf16>
    %274 = vector.shape_cast %273 : vector<1x16x32xbf16> to vector<16x32xbf16>
    %cst_254 = arith.constant dense<0.000000e+00> : vector<288x32xf32>
    %275 = tpu.matmul %272, %274, %cst_254 {dimension_numbers = #tpu.dot_dimension_numbers<[1], [0], [0], [1], [0, 0, 1, 1], [], []>} : vector<288x16xbf16>, vector<16x32xbf16>, vector<288x32xf32> -> vector<288x32xf32>
    %276 = arith.addf %270, %275 : vector<288x32xf32>
    %c19_255 = arith.constant 19 : index
    %c0_256 = arith.constant 0 : index
    %277 = vector.load %arg15[%c19_255, %c0_256] : memref<360x16xf32, #tpu.memory_space<vmem>>, vector<288x16xf32>
    %278 = arith.truncf %277 : vector<288x16xf32> to vector<288x16xbf16>
    %c2_257 = arith.constant 2 : index
    %c0_258 = arith.constant 0 : index
    %c0_259 = arith.constant 0 : index
    %279 = vector.load %arg11[%c2_257, %c0_258, %c0_259] : memref<9x16x32xbf16, #tpu.memory_space<vmem>>, vector<1x16x32xbf16>
    %280 = vector.shape_cast %279 : vector<1x16x32xbf16> to vector<16x32xbf16>
    %cst_260 = arith.constant dense<0.000000e+00> : vector<288x32xf32>
    %281 = tpu.matmul %278, %280, %cst_260 {dimension_numbers = #tpu.dot_dimension_numbers<[1], [0], [0], [1], [0, 0, 1, 1], [], []>} : vector<288x16xbf16>, vector<16x32xbf16>, vector<288x32xf32> -> vector<288x32xf32>
    %282 = arith.addf %276, %281 : vector<288x32xf32>
    %c35_261 = arith.constant 35 : index
    %c0_262 = arith.constant 0 : index
    %283 = vector.load %arg15[%c35_261, %c0_262] : memref<360x16xf32, #tpu.memory_space<vmem>>, vector<288x16xf32>
    %284 = arith.truncf %283 : vector<288x16xf32> to vector<288x16xbf16>
    %c3_263 = arith.constant 3 : index
    %c0_264 = arith.constant 0 : index
    %c0_265 = arith.constant 0 : index
    %285 = vector.load %arg11[%c3_263, %c0_264, %c0_265] : memref<9x16x32xbf16, #tpu.memory_space<vmem>>, vector<1x16x32xbf16>
    %286 = vector.shape_cast %285 : vector<1x16x32xbf16> to vector<16x32xbf16>
    %cst_266 = arith.constant dense<0.000000e+00> : vector<288x32xf32>
    %287 = tpu.matmul %284, %286, %cst_266 {dimension_numbers = #tpu.dot_dimension_numbers<[1], [0], [0], [1], [0, 0, 1, 1], [], []>} : vector<288x16xbf16>, vector<16x32xbf16>, vector<288x32xf32> -> vector<288x32xf32>
    %288 = arith.addf %282, %287 : vector<288x32xf32>
    %c36_267 = arith.constant 36 : index
    %c0_268 = arith.constant 0 : index
    %289 = vector.load %arg15[%c36_267, %c0_268] : memref<360x16xf32, #tpu.memory_space<vmem>>, vector<288x16xf32>
    %290 = arith.truncf %289 : vector<288x16xf32> to vector<288x16xbf16>
    %c4_269 = arith.constant 4 : index
    %c0_270 = arith.constant 0 : index
    %c0_271 = arith.constant 0 : index
    %291 = vector.load %arg11[%c4_269, %c0_270, %c0_271] : memref<9x16x32xbf16, #tpu.memory_space<vmem>>, vector<1x16x32xbf16>
    %292 = vector.shape_cast %291 : vector<1x16x32xbf16> to vector<16x32xbf16>
    %cst_272 = arith.constant dense<0.000000e+00> : vector<288x32xf32>
    %293 = tpu.matmul %290, %292, %cst_272 {dimension_numbers = #tpu.dot_dimension_numbers<[1], [0], [0], [1], [0, 0, 1, 1], [], []>} : vector<288x16xbf16>, vector<16x32xbf16>, vector<288x32xf32> -> vector<288x32xf32>
    %294 = arith.addf %288, %293 : vector<288x32xf32>
    %c37_273 = arith.constant 37 : index
    %c0_274 = arith.constant 0 : index
    %295 = vector.load %arg15[%c37_273, %c0_274] : memref<360x16xf32, #tpu.memory_space<vmem>>, vector<288x16xf32>
    %296 = arith.truncf %295 : vector<288x16xf32> to vector<288x16xbf16>
    %c5_275 = arith.constant 5 : index
    %c0_276 = arith.constant 0 : index
    %c0_277 = arith.constant 0 : index
    %297 = vector.load %arg11[%c5_275, %c0_276, %c0_277] : memref<9x16x32xbf16, #tpu.memory_space<vmem>>, vector<1x16x32xbf16>
    %298 = vector.shape_cast %297 : vector<1x16x32xbf16> to vector<16x32xbf16>
    %cst_278 = arith.constant dense<0.000000e+00> : vector<288x32xf32>
    %299 = tpu.matmul %296, %298, %cst_278 {dimension_numbers = #tpu.dot_dimension_numbers<[1], [0], [0], [1], [0, 0, 1, 1], [], []>} : vector<288x16xbf16>, vector<16x32xbf16>, vector<288x32xf32> -> vector<288x32xf32>
    %300 = arith.addf %294, %299 : vector<288x32xf32>
    %c53_279 = arith.constant 53 : index
    %c0_280 = arith.constant 0 : index
    %301 = vector.load %arg15[%c53_279, %c0_280] : memref<360x16xf32, #tpu.memory_space<vmem>>, vector<288x16xf32>
    %302 = arith.truncf %301 : vector<288x16xf32> to vector<288x16xbf16>
    %c6_281 = arith.constant 6 : index
    %c0_282 = arith.constant 0 : index
    %c0_283 = arith.constant 0 : index
    %303 = vector.load %arg11[%c6_281, %c0_282, %c0_283] : memref<9x16x32xbf16, #tpu.memory_space<vmem>>, vector<1x16x32xbf16>
    %304 = vector.shape_cast %303 : vector<1x16x32xbf16> to vector<16x32xbf16>
    %cst_284 = arith.constant dense<0.000000e+00> : vector<288x32xf32>
    %305 = tpu.matmul %302, %304, %cst_284 {dimension_numbers = #tpu.dot_dimension_numbers<[1], [0], [0], [1], [0, 0, 1, 1], [], []>} : vector<288x16xbf16>, vector<16x32xbf16>, vector<288x32xf32> -> vector<288x32xf32>
    %306 = arith.addf %300, %305 : vector<288x32xf32>
    %c54_285 = arith.constant 54 : index
    %c0_286 = arith.constant 0 : index
    %307 = vector.load %arg15[%c54_285, %c0_286] : memref<360x16xf32, #tpu.memory_space<vmem>>, vector<288x16xf32>
    %308 = arith.truncf %307 : vector<288x16xf32> to vector<288x16xbf16>
    %c7_287 = arith.constant 7 : index
    %c0_288 = arith.constant 0 : index
    %c0_289 = arith.constant 0 : index
    %309 = vector.load %arg11[%c7_287, %c0_288, %c0_289] : memref<9x16x32xbf16, #tpu.memory_space<vmem>>, vector<1x16x32xbf16>
    %310 = vector.shape_cast %309 : vector<1x16x32xbf16> to vector<16x32xbf16>
    %cst_290 = arith.constant dense<0.000000e+00> : vector<288x32xf32>
    %311 = tpu.matmul %308, %310, %cst_290 {dimension_numbers = #tpu.dot_dimension_numbers<[1], [0], [0], [1], [0, 0, 1, 1], [], []>} : vector<288x16xbf16>, vector<16x32xbf16>, vector<288x32xf32> -> vector<288x32xf32>
    %312 = arith.addf %306, %311 : vector<288x32xf32>
    %c55_291 = arith.constant 55 : index
    %c0_292 = arith.constant 0 : index
    %313 = vector.load %arg15[%c55_291, %c0_292] : memref<360x16xf32, #tpu.memory_space<vmem>>, vector<288x16xf32>
    %314 = arith.truncf %313 : vector<288x16xf32> to vector<288x16xbf16>
    %c8_293 = arith.constant 8 : index
    %c0_294 = arith.constant 0 : index
    %c0_295 = arith.constant 0 : index
    %315 = vector.load %arg11[%c8_293, %c0_294, %c0_295] : memref<9x16x32xbf16, #tpu.memory_space<vmem>>, vector<1x16x32xbf16>
    %316 = vector.shape_cast %315 : vector<1x16x32xbf16> to vector<16x32xbf16>
    %cst_296 = arith.constant dense<0.000000e+00> : vector<288x32xf32>
    %317 = tpu.matmul %314, %316, %cst_296 {dimension_numbers = #tpu.dot_dimension_numbers<[1], [0], [0], [1], [0, 0, 1, 1], [], []>} : vector<288x16xbf16>, vector<16x32xbf16>, vector<288x32xf32> -> vector<288x32xf32>
    %318 = arith.addf %312, %317 : vector<288x32xf32>
    %319 = arith.addf %263, %318 : vector<288x32xf32>
    %c0_297 = arith.constant 0 : index
    %c0_298 = arith.constant 0 : index
    %320 = vector.load %arg12[%c0_297, %c0_298] : memref<1x32xf32, #tpu.memory_space<vmem>>, vector<1x32xf32>
    %321 = vector.broadcast %320 : vector<1x32xf32> to vector<288x32xf32>
    %322 = arith.addf %319, %321 : vector<288x32xf32>
    %cst_299 = arith.constant 0.000000e+00 : f32
    %323 = vector.broadcast %cst_299 : f32 to vector<288x32xf32>
    %324 = arith.maximumf %322, %323 : vector<288x32xf32>
    %c0_300 = arith.constant 0 : index
    %c0_301 = arith.constant 0 : index
    %c0_302 = arith.constant 0 : index
    %325 = vector.load %arg13[%c0_300, %c0_301, %c0_302] : memref<1x288x32xf32, #tpu.memory_space<vmem>>, vector<1x288x32xf32>
    %326 = vector.shape_cast %325 : vector<1x288x32xf32> to vector<288x32xf32>
    %327 = vector.shape_cast %324 : vector<288x32xf32> to vector<1x288x32xf32>
    tpu.vector_store %arg13[%c0_300, %c0_301, %c0_302], %327 {strides = array<i32>} : memref<1x288x32xf32, #tpu.memory_space<vmem>>, vector<1x288x32xf32>,
    return
  }
  func.func @transform_0(%arg0: i32) -> (i32, i32) {
    %c0_i32 = arith.constant 0 : i32
    %c0_i32_0 = arith.constant 0 : i32
    %c0_i32_1 = arith.constant 0 : i32
    return %c0_i32, %c0_i32_0 : i32, i32
  }
  func.func @transform_1(%arg0: i32) -> (i32, i32, i32) {
    %c0_i32 = arith.constant 0 : i32
    %c0_i32_0 = arith.constant 0 : i32
    %c0_i32_1 = arith.constant 0 : i32
    return %arg0, %c0_i32, %c0_i32_0 : i32, i32, i32
  }
  func.func @transform_2(%arg0: i32) -> (i32, i32, i32) {
    %c0_i32 = arith.constant 0 : i32
    %c0_i32_0 = arith.constant 0 : i32
    %c0_i32_1 = arith.constant 0 : i32
    %c0_i32_2 = arith.constant 0 : i32
    return %c0_i32, %c0_i32_0, %c0_i32_1 : i32, i32, i32
  }
  func.func @transform_3(%arg0: i32) -> (i32, i32) {
    %c0_i32 = arith.constant 0 : i32
    %c0_i32_0 = arith.constant 0 : i32
    %c0_i32_1 = arith.constant 0 : i32
    return %c0_i32, %c0_i32_0 : i32, i32
  }
  func.func @transform_4(%arg0: i32) -> (i32, i32, i32) {
    %c0_i32 = arith.constant 0 : i32
    %c0_i32_0 = arith.constant 0 : i32
    %c0_i32_1 = arith.constant 0 : i32
    %c0_i32_2 = arith.constant 0 : i32
    return %c0_i32, %c0_i32_0, %c0_i32_1 : i32, i32, i32
  }
  func.func @transform_5(%arg0: i32) -> (i32, i32) {
    %c0_i32 = arith.constant 0 : i32
    %c0_i32_0 = arith.constant 0 : i32
    %c0_i32_1 = arith.constant 0 : i32
    return %c0_i32, %c0_i32_0 : i32, i32
  }
  func.func @transform_6(%arg0: i32) -> (i32, i32, i32) {
    %c0_i32 = arith.constant 0 : i32
    %c0_i32_0 = arith.constant 0 : i32
    %c0_i32_1 = arith.constant 0 : i32
    %c0_i32_2 = arith.constant 0 : i32
    return %c0_i32, %c0_i32_0, %c0_i32_1 : i32, i32, i32
  }
  func.func @transform_7(%arg0: i32) -> (i32, i32) {
    %c0_i32 = arith.constant 0 : i32
    %c0_i32_0 = arith.constant 0 : i32
    %c0_i32_1 = arith.constant 0 : i32
    return %c0_i32, %c0_i32_0 : i32, i32
  }
  func.func @transform_8(%arg0: i32) -> (i32, i32, i32) {
    %c0_i32 = arith.constant 0 : i32
    %c0_i32_0 = arith.constant 0 : i32
    %c0_i32_1 = arith.constant 0 : i32
    %c0_i32_2 = arith.constant 0 : i32
    return %c0_i32, %c0_i32_0, %c0_i32_1 : i32, i32, i32
  }
  func.func @transform_9(%arg0: i32) -> (i32, i32) {
    %c0_i32 = arith.constant 0 : i32
    %c0_i32_0 = arith.constant 0 : i32
    %c0_i32_1 = arith.constant 0 : i32
    return %c0_i32, %c0_i32_0 : i32, i32
  }
  func.func @transform_10(%arg0: i32) -> (i32, i32, i32) {
    %c0_i32 = arith.constant 0 : i32
    %c0_i32_0 = arith.constant 0 : i32
    %c0_i32_1 = arith.constant 0 : i32
    %c0_i32_2 = arith.constant 0 : i32
    return %c0_i32, %c0_i32_0, %c0_i32_1 : i32, i32, i32
  }
  func.func @transform_11(%arg0: i32) -> (i32, i32) {
    %c0_i32 = arith.constant 0 : i32
    %c0_i32_0 = arith.constant 0 : i32
    %c0_i32_1 = arith.constant 0 : i32
    return %c0_i32, %c0_i32_0 : i32, i32
  }
  func.func @transform_12(%arg0: i32) -> (i32, i32, i32) {
    %c0_i32 = arith.constant 0 : i32
    %c0_i32_0 = arith.constant 0 : i32
    %c0_i32_1 = arith.constant 0 : i32
    return %arg0, %c0_i32, %c0_i32_0 : i32, i32, i32
  }
}

</mosaic_0001>

<bundles_post_ra>
// kernel: residual_stem_forward.1
= control target key start
LH: loop header
LB: loop body
LE: loop exit
PB: predicated region body
PF: predicated region fallthrough
CT: control target
= control target key end

     0   :  { %s21061_s21 = smov 0   ;;  %s23446_s0 = inlined_call_operand.vmem [shape: f32[288,1], index: 0, kind: input, shape index: {}]   ;;  %s23447_s1 = inlined_call_operand.vmem [shape: f32[2,360,4], index: 1, kind: input, shape index: {}]   ;;  %s23448_s2 = inlined_call_operand.vmem [shape: bf16[9,4,16], index: 2, kind: input, shape index: {}]   ;;  %s23449_s3 = inlined_call_operand.vmem [shape: f32[1,16], index: 3, kind: input, shape index: {}]   ;;  %s23450_s4 = inlined_call_operand.vmem [shape: bf16[9,16,16], index: 4, kind: input, shape index: {}]   ;;  %s23451_s5 = inlined_call_operand.vmem [shape: f32[1,16], index: 5, kind: input, shape index: {}]   ;;  %s23452_s6 = inlined_call_operand.vmem [shape: bf16[9,16,32], index: 6, kind: input, shape index: {}]   ;;  %s23453_s7 = inlined_call_operand.vmem [shape: f32[1,32], index: 7, kind: input, shape index: {}]   ;;  %s23454_s8 = inlined_call_operand.vmem [shape: bf16[9,32,32], index: 8, kind: input, shape index: {}]   ;;  %s23455_s9 = inlined_call_operand.vmem [shape: f32[1,32], index: 9, kind: input, shape index: {}]   ;;  %s23456_s10 = inlined_call_operand.vmem [shape: bf16[9,16,32], index: 10, kind: input, shape index: {}]   ;;  %s23457_s11 = inlined_call_operand.vmem [shape: f32[1,32], index: 11, kind: input, shape index: {}]   ;;  %s23458_s12 = inlined_call_operand.vmem [shape: f32[2,288,32], index: 12, kind: output, shape index: {}]  }
   0x1 LB: > { %s15854_s22 = sadd.s32 4294967295, %s20992_s21   ;;  %p15858_p0 = scmp.ge.s32.totalorder %s20992_s21, 1  ;;  %s20992_s21 = sphi %s21061_s21, %s22_s21  }
   0x2   : > { %p362_p1 = scmp.lt.s32.totalorder %s20992_s21, 3 }
   0x4   : > { %p363_p2 = pnand %p15858_p0, %p362_p1 }
   0x6   : > { %366 = sbr.rel (%p363_p2) target bundleno = 3668 (0xe54), region = 68 }
   0xd   : > { %v15861_v0 = vld [vmem:[%s23448_s2 + $0x2] sm:$0x3]  ;;  %vm651_vm0 = vcmask 1041408   ;;  %p404_p3 = scmp.lt.s32.totalorder %s15854_s22, 1  ;;  %v539_v2 = vld [vmem:[%s23448_s2] sm:$0x3] }
   0xe   : > { %20917 = vmatprep.subr.msk.bf16.mxu0 %vm651_vm0, %v15861_v0  ;;  %v653_v1 = vsel %vm651_vm0, %v15861_v0, 0  ;;  %vm596_vm1 = vcmask 31744   ;;  %v887_v11 = vsel %vm651_vm0, %v539_v2, 0  ;;  %v21097_v13 = vld [vmem:[%s23448_s2 + $0x4] sm:$0x3]  ;;  %vm451_vm2 = vcmask 130048  }
   0xf   : > { %17676 = vmatpush3.bf16.msra.mxu0 %v653_v1  ;;  %s23514_s22 = smov (!%p404_p3, %s15854_s22), 1  ;;  %vm456_vm3 = vcmask 125952   ;;  %vm473_vm4 = vcmask 261120   ;;  %vm478_vm5 = vcmask 257024  }
  0x10   : > { %20918 = vmatprep.subr.msk.bf16.mxu0 %vm651_vm0, %v539_v2  ;;  %s20926_s27 = smul.u32 360, %s23514_s22 }
  0x11   : > { %s20927_s29 = smul.u32 288, %s23514_s22 }
  0x12   : > { %s21084_s30 = scalar_lea.vmem %s23447_s1, %s20926_s27 }
  0x13   : > { %v540_v3 = vld [vmem:[%s21084_s30 + $0x12] sm:$0xff]  ;;  %v541_v4 = vld [vmem:[%s21084_s30 + $0x1a] sm:$0xff]  ;;  %v542_v5 = vld [vmem:[%s21084_s30 + $0x22] sm:$0xff]  ;;  %s23301_s22 = scalar_lea.vmem %s23458_s12, %s20927_s29 }
  0x14   : > { %v576_v6 = vpack.c.bf16 %v541_v4, %v540_v3  ;;  %v543_v7 = vld [vmem:[%s21084_s30 + $0x2a] sm:$0xff]  ;;  %v544_v8 = vld [vmem:[%s21084_s30 + $0x32] sm:$0xff]  ;;  %v545_v9 = vld [vmem:[%s21084_s30 + $0x3a] sm:$0xff]  ;;  %v1177_v4 = vsel %vm651_vm0, %v21097_v13, 0 }
  0x15   : > { %v577_v10 = vpack.c.bf16 %v543_v7, %v542_v5  ;;  %v578_v12 = vpack.c.bf16 %v545_v9, %v544_v8  ;;  %v546_v14 = vld [vmem:[%s21084_s30 + $0x42] sm:$0xff]  ;;  %v547_v15 = vld [vmem:[%s21084_s30 + $0x4a] sm:$0xff]  ;;  %v548_v16 = vld [vmem:[%s21084_s30 + $0x52] sm:$0xff] }
  0x16   : > { %17677 = vmatprep.mubr.msk.bf16.mxu0 %vm596_vm1, %v576_v6  ;;  %v549_v17 = vld [vmem:[%s21084_s30 + $0x5a] sm:$0xff]  ;;  %v579_v18 = vpack.c.bf16 %v547_v15, %v546_v14  ;;  %v550_v20 = vld [vmem:[%s21084_s30 + $0x62] sm:$0xff]  ;;  %v551_v21 = vld [vmem:[%s21084_s30 + $0x6a] sm:$0xff] }
  0x17   : > { %17678 = vmatmul.mubr.msk.bf16.vlgmr.msra.gmra.mrb[0].mxu0 %vm596_vm1, %v577_v10  ;;  %v580_v19 = vpack.c.bf16 %v549_v17, %v548_v16  ;;  %v552_v22 = vld [vmem:[%s21084_s30 + $0x72] sm:$0xff]  ;;  %v553_v23 = vld [vmem:[%s21084_s30 + $0x7a] sm:$0xff]  ;;  %v581_v24 = vpack.c.bf16 %v551_v21, %v550_v20  ;;  %v554_v26 = vld [vmem:[%s21084_s30 + $0x82] sm:$0xff] }
  0x18   : > { %17714 = vmatpush3.bf16.msra.mxu0 %v887_v11  ;;  %17681 = vmatprep.mubr.msk.bf16.mxu0 %vm596_vm1, %v578_v12  ;;  %v582_v25 = vpack.c.bf16 %v553_v23, %v552_v22  ;;  %v555_v27 = vld [vmem:[%s21084_s30 + $0x8a] sm:$0xff]  ;;  %v556_v28 = vld [vmem:[%s21084_s30 + $0x92] sm:$0xff]  ;;  %v557_v29 = vld [vmem:[%s21084_s30 + $0x9a] sm:$0xff] }
  0x19   : > { %20919 = vmatprep.subr.msk.bf16.mxu0 %vm651_vm0, %v21097_v13  ;;  %v583_v30 = vpack.c.bf16 %v555_v27, %v554_v26  ;;  %v584_v31 = vpack.c.bf16 %v557_v29, %v556_v28  ;;  %v558_v32 = vld [vmem:[%s21084_s30 + $0xa2] sm:$0xff]  ;;  %v559_v33 = vld [vmem:[%s21084_s30 + $0xaa] sm:$0xff]  ;;  %v560_v34 = vld [vmem:[%s21084_s30 + $0xb2] sm:$0xff] }
  0x1a   : > { %v561_v35 = vld [vmem:[%s21084_s30 + $0xba] sm:$0xff]  ;;  %v585_v36 = vpack.c.bf16 %v559_v33, %v558_v32  ;;  %v562_v38 = vld [vmem:[%s21084_s30 + $0xc2] sm:$0xff]  ;;  %v563_v39 = vld [vmem:[%s21084_s30 + $0xca] sm:$0xff] }
  0x1b   : > { %v586_v37 = vpack.c.bf16 %v561_v35, %v560_v34  ;;  %v564_v40 = vld [vmem:[%s21084_s30 + $0xd2] sm:$0xff]  ;;  %v565_v41 = vld [vmem:[%s21084_s30 + $0xda] sm:$0xff]  ;;  %v587_v42 = vpack.c.bf16 %v563_v39, %v562_v38  ;;  %v566_v44 = vld [vmem:[%s21084_s30 + $0xe2] sm:$0xff] }
  0x1c   : > { %v588_v43 = vpack.c.bf16 %v565_v41, %v564_v40  ;;  %v567_v45 = vld [vmem:[%s21084_s30 + $0xea] sm:$0xff]  ;;  %v568_v46 = vld [vmem:[%s21084_s30 + $0xf2] sm:$0xff]  ;;  %v569_v47 = vld [vmem:[%s21084_s30 + $0xfa] sm:$0xff] }
  0x1d   : > { %v589_v48 = vpack.c.bf16 %v567_v45, %v566_v44  ;;  %v590_v49 = vpack.c.bf16 %v569_v47, %v568_v46  ;;  %v570_v50 = vld [vmem:[%s21084_s30 + $0x102] sm:$0xff]  ;;  %v571_v51 = vld [vmem:[%s21084_s30 + $0x10a] sm:$0xff]  ;;  %v572_v52 = vld [vmem:[%s21084_s30 + $0x112] sm:$0xff] }
  0x1e   : > { %v573_v53 = vld [vmem:[%s21084_s30 + $0x11a] sm:$0xff]  ;;  %v591_v54 = vpack.c.bf16 %v571_v51, %v570_v50  ;;  %v574_v56 = vld [vmem:[%s21084_s30 + $0x122] sm:$0xff]  ;;  %v575_v57 = vld [vmem:[%s21084_s30 + $0x12a] sm:$0xff] }
  0x1f   : > { %17682 = vmatmul.mubr.msk.bf16.gmra.mrb[4].mxu0 %vm596_vm1, %v579_v18  ;;  %v592_v55 = vpack.c.bf16 %v573_v53, %v572_v52  ;;  %v485_v58 = vld [vmem:[%s21084_s30 + $0x11] sm:$0xff]  ;;  %v486_v59 = vld [vmem:[%s21084_s30 + $0x19] sm:$0xff]  ;;  %v593_v60 = vpack.c.bf16 %v575_v57, %v574_v56  ;;  %v487_v62 = vld [vmem:[%s21084_s30 + $0x21] sm:$0xff] }
  0x20   : > { %17685 = vmatprep.mubr.msk.bf16.mxu0 %vm596_vm1, %v580_v19  ;;  %v521_v61 = vpack.c.bf16 %v486_v59, %v485_v58  ;;  %v488_v63 = vld [vmem:[%s21084_s30 + $0x29] sm:$0xff]  ;;  %v489_v0 = vld [vmem:[%s21084_s30 + $0x31] sm:$0xff]  ;;  %v490_v1 = vld [vmem:[%s21084_s30 + $0x39] sm:$0xff] }
  0x21   : > { %v522_v2 = vpack.c.bf16 %v488_v63, %v487_v62  ;;  %v523_v3 = vpack.c.bf16 %v490_v1, %v489_v0  ;;  %v21160_v5 = vld [vmem:[%s23448_s2 + $0x6] sm:$0x3]  ;;  %v492_v7 = vld [vmem:[%s21084_s30 + $0x49] sm:$0xff]  ;;  %v493_v8 = vld [vmem:[%s21084_s30 + $0x51] sm:$0xff] }
  0x22   : > { %v491_v6 = vld [vmem:[%s21084_s30 + $0x41] sm:$0xff]  ;;  %v494_v9 = vld [vmem:[%s21084_s30 + $0x59] sm:$0xff]  ;;  %v496_v13 = vld [vmem:[%s21084_s30 + $0x69] sm:$0xff] }
  0x23   : > { %v524_v10 = vpack.c.bf16 %v492_v7, %v491_v6  ;;  %v525_v11 = vpack.c.bf16 %v494_v9, %v493_v8  ;;  %v495_v12 = vld [vmem:[%s21084_s30 + $0x61] sm:$0xff]  ;;  %v497_v14 = vld [vmem:[%s21084_s30 + $0x71] sm:$0xff]  ;;  %v498_v15 = vld [vmem:[%s21084_s30 + $0x79] sm:$0xff] }
  0x24   : > { %v526_v16 = vpack.c.bf16 %v496_v13, %v495_v12  ;;  %v527_v17 = vpack.c.bf16 %v498_v15, %v497_v14  ;;  %v499_v18 = vld [vmem:[%s21084_s30 + $0x81] sm:$0xff]  ;;  %v500_v19 = vld [vmem:[%s21084_s30 + $0x89] sm:$0xff]  ;;  %v501_v20 = vld [vmem:[%s21084_s30 + $0x91] sm:$0xff] }
  0x25   : > { %v502_v21 = vld [vmem:[%s21084_s30 + $0x99] sm:$0xff]  ;;  %v528_v22 = vpack.c.bf16 %v500_v19, %v499_v18  ;;  %v505_v26 = vld [vmem:[%s21084_s30 + $0xb1] sm:$0xff]  ;;  %v1072_v62 = vld [vmem:[%s21084_s30 + $0x43] sm:$0xff] }
  0x26   : > { %v529_v23 = vpack.c.bf16 %v502_v21, %v501_v20  ;;  %v506_v27 = vld [vmem:[%s21084_s30 + $0xb9] sm:$0xff]  ;;  %v509_v32 = vld [vmem:[%s21084_s30 + $0xd1] sm:$0xff] }
  0x27   : > { %17686 = vmatmul.mubr.msk.bf16.gmra.mrb[8].mxu0 %vm596_vm1, %v581_v24  ;;  %v503_v24 = vld [vmem:[%s21084_s30 + $0xa1] sm:$0xff]  ;;  %v531_v29 = vpack.c.bf16 %v506_v27, %v505_v26  ;;  %v510_v33 = vld [vmem:[%s21084_s30 + $0xd9] sm:$0xff]  ;;  %v513_v38 = vld [vmem:[%s21084_s30 + $0xf1] sm:$0xff] }
  0x28   : > { %17689 = vmatprep.mubr.msk.bf16.mxu0 %vm596_vm1, %v582_v25  ;;  %v504_v25 = vld [vmem:[%s21084_s30 + $0xa9] sm:$0xff]  ;;  %v533_v35 = vpack.c.bf16 %v510_v33, %v509_v32  ;;  %v514_v39 = vld [vmem:[%s21084_s30 + $0xf9] sm:$0xff]  ;;  %v517_v44 = vld [vmem:[%s21084_s30 + $0x111] sm:$0xff] }
  0x29   : > { %v530_v28 = vpack.c.bf16 %v504_v25, %v503_v24  ;;  %v535_v41 = vpack.c.bf16 %v514_v39, %v513_v38  ;;  %v518_v45 = vld [vmem:[%s21084_s30 + $0x119] sm:$0xff]  ;;  %v1073_v63 = vld [vmem:[%s21084_s30 + $0x4b] sm:$0xff] }
  0x2a   : > { %v537_v47 = vpack.c.bf16 %v518_v45, %v517_v44  ;;  %v1066_v50 = vld [vmem:[%s21084_s30 + $0x13] sm:$0xff]  ;;  %v1067_v51 = vld [vmem:[%s21084_s30 + $0x1b] sm:$0xff]  ;;  %v15955_v44 = vld [vmem:[%s23448_s2 + $0xa] sm:$0x3] }
  0x2b   : > { %v1102_v53 = vpack.c.bf16 %v1067_v51, %v1066_v50  ;;  %v1070_v56 = vld [vmem:[%s21084_s30 + $0x33] sm:$0xff]  ;;  %v1071_v57 = vld [vmem:[%s21084_s30 + $0x3b] sm:$0xff] }
  0x2c   : > { %v21220_v59 = vpack.c.bf16 %v1071_v57, %v1070_v56  ;;  %v1074_v0 = vld [vmem:[%s21084_s30 + $0x53] sm:$0xff]  ;;  %v1075_v1 = vld [vmem:[%s21084_s30 + $0x5b] sm:$0xff]  ;;  %v2155_v57 = vsel %vm651_vm0, %v15955_v44, 0 }
  0x2d   : > { %v1078_v6 = vld [vmem:[%s21084_s30 + $0x73] sm:$0xff]  ;;  %v1079_v7 = vld [vmem:[%s21084_s30 + $0x7b] sm:$0xff] }
  0x2e   : > { %v1108_v9 = vpack.c.bf16 %v1079_v7, %v1078_v6  ;;  %v1082_v12 = vld [vmem:[%s21084_s30 + $0x93] sm:$0xff]  ;;  %v1083_v13 = vld [vmem:[%s21084_s30 + $0x9b] sm:$0xff] }
  0x2f   : > { %17690 = vmatmul.mubr.msk.bf16.gmra.mrb[12].mxu0 %vm596_vm1, %v583_v30  ;;  %v507_v30 = vld [vmem:[%s21084_s30 + $0xc1] sm:$0xff]  ;;  %v1110_v15 = vpack.c.bf16 %v1083_v13, %v1082_v12  ;;  %v1086_v18 = vld [vmem:[%s21084_s30 + $0xb3] sm:$0xff] }
  0x30   : > { %17693 = vmatprep.mubr.msk.bf16.mxu0 %vm596_vm1, %v584_v31  ;;  %v508_v31 = vld [vmem:[%s21084_s30 + $0xc9] sm:$0xff]  ;;  %v1087_v19 = vld [vmem:[%s21084_s30 + $0xbb] sm:$0xff]  ;;  %v1090_v24 = vld [vmem:[%s21084_s30 + $0xd3] sm:$0xff] }
  0x31   : > { %v532_v34 = vpack.c.bf16 %v508_v31, %v507_v30  ;;  %v1112_v21 = vpack.c.bf16 %v1087_v19, %v1086_v18  ;;  %v1091_v25 = vld [vmem:[%s21084_s30 + $0xdb] sm:$0xff]  ;;  %v1094_v30 = vld [vmem:[%s21084_s30 + $0xf3] sm:$0xff] }
  0x32   : > { %v1114_v27 = vpack.c.bf16 %v1091_v25, %v1090_v24  ;;  %v1095_v31 = vld [vmem:[%s21084_s30 + $0xfb] sm:$0xff]  ;;  %v1426_v45 = vld [vmem:[%s21084_s30 + $0x133] sm:$0xff] }
  0x33   : > { %v1116_v33 = vpack.c.bf16 %v1095_v31, %v1094_v30  ;;  %v1720_v51 = vld [vmem:[%s21084_s30 + $0x34] sm:$0xff] }
  0x34   : > { %v1732_v7 = vld [vmem:[%s21084_s30 + $0x94] sm:$0xff] }
  0x35   : > { %v1736_v13 = vld [vmem:[%s21084_s30 + $0xb4] sm:$0xff] }
  0x36   : > { %v1740_v19 = vld [vmem:[%s21084_s30 + $0xd4] sm:$0xff] }
  0x37   : > { %17694 = vmatmul.mubr.msk.bf16.gmra.mrb[16].mxu0 %vm596_vm1, %v585_v36  ;;  %v511_v36 = vld [vmem:[%s21084_s30 + $0xe1] sm:$0xff]  ;;  %v1744_v25 = vld [vmem:[%s21084_s30 + $0xf4] sm:$0xff] }
  0x38   : > { %17697 = vmatprep.mubr.msk.bf16.mxu0 %vm596_vm1, %v586_v37  ;;  %v512_v37 = vld [vmem:[%s21084_s30 + $0xe9] sm:$0xff]  ;;  %v1748_v31 = vld [vmem:[%s21084_s30 + $0x114] sm:$0xff] }
  0x39   : > { %v534_v40 = vpack.c.bf16 %v512_v37, %v511_v36  ;;  %v1098_v36 = vld [vmem:[%s21084_s30 + $0x113] sm:$0xff]  ;;  %v1099_v37 = vld [vmem:[%s21084_s30 + $0x11b] sm:$0xff] }
  0x3a   : > { %v1118_v39 = vpack.c.bf16 %v1099_v37, %v1098_v36  ;;  %v1752_v37 = vld [vmem:[%s21084_s30 + $0x134] sm:$0xff] }
  0x3f   : > { %17698 = vmatmul.mubr.msk.bf16.gmra.mrb[20].mxu0 %vm596_vm1, %v587_v42  ;;  %v515_v42 = vld [vmem:[%s21084_s30 + $0x101] sm:$0xff] }
  0x40   : > { %17701 = vmatprep.mubr.msk.bf16.mxu0 %vm596_vm1, %v588_v43  ;;  %v516_v43 = vld [vmem:[%s21084_s30 + $0x109] sm:$0xff] }
  0x41   : > { %v536_v46 = vpack.c.bf16 %v516_v43, %v515_v42 }
  0x47   : > { %17702 = vmatmul.mubr.msk.bf16.gmra.mrb[24].mxu0 %vm596_vm1, %v589_v48  ;;  %v519_v48 = vld [vmem:[%s21084_s30 + $0x121] sm:$0xff] }
  0x48   : > { %17705 = vmatprep.mubr.msk.bf16.mxu0 %vm596_vm1, %v590_v49  ;;  %v520_v49 = vld [vmem:[%s21084_s30 + $0x129] sm:$0xff] }
  0x49   : > { %v538_v52 = vpack.c.bf16 %v520_v49, %v519_v48  ;;  %v1719_v48 = vld [vmem:[%s21084_s30 + $0x2c] sm:$0xff] }
  0x4f   : > { %17706 = vmatmul.mubr.msk.bf16.gmra.mrb[28].mxu0 %vm596_vm1, %v591_v54  ;;  %v1068_v54 = vld [vmem:[%s21084_s30 + $0x23] sm:$0xff] }
  0x50   : > { %17709 = vmatprep.mubr.msk.bf16.mxu0 %vm596_vm1, %v592_v55  ;;  %v1069_v55 = vld [vmem:[%s21084_s30 + $0x2b] sm:$0xff] }
  0x51   : > { %v21218_v58 = vpack.c.bf16 %v1069_v55, %v1068_v54  ;;  %v1723_v54 = vld [vmem:[%s21084_s30 + $0x4c] sm:$0xff] }
  0x57   : > { %17710 = vmatmul.mubr.msk.bf16.gmra.mrb[32].mxu0 %vm596_vm1, %v593_v60  ;;  %v1503_v60 = vsel %vm651_vm0, %v21160_v5, 0 }
  0x58   : > { %17715 = vmatprep.mubr.msk.bf16.mxu0 %vm596_vm1, %v521_v61  ;;  %v21227_v61 = vld [vmem:[%s23448_s2 + $0x8] sm:$0x3] }
  0x59   : > { %v1829_v43 = vsel %vm651_vm0, %v21227_v61, 0 }
  0x5f   : > { %17716 = vmatmul.mubr.msk.bf16.vlgmr.msra.gmra.mrb[0].mxu0 %vm596_vm1, %v522_v2  ;;  %v1105_v2 = vpack.c.bf16 %v1073_v63, %v1072_v62  ;;  %v1727_v62 = vld [vmem:[%s21084_s30 + $0x6c] sm:$0xff] }
  0x60   : > { %17752 = vmatpush3.bf16.msra.mxu0 %v1177_v4  ;;  %17719 = vmatprep.mubr.msk.bf16.mxu0 %vm596_vm1, %v523_v3  ;;  %v1106_v3 = vpack.c.bf16 %v1075_v1, %v1074_v0  ;;  %v1076_v4 = vld [vmem:[%s21084_s30 + $0x63] sm:$0xff]  ;;  %v1728_v1 = vld [vmem:[%s21084_s30 + $0x74] sm:$0xff] }
  0x61   : > { %20920 = vmatprep.subr.msk.bf16.mxu0 %vm651_vm0, %v21160_v5  ;;  %v1077_v5 = vld [vmem:[%s21084_s30 + $0x6b] sm:$0xff] }
  0x62   : > { %v1107_v8 = vpack.c.bf16 %v1077_v5, %v1076_v4  ;;  %v1731_v4 = vld [vmem:[%s21084_s30 + $0x8c] sm:$0xff] }
  0x67   : > { %17720 = vmatmul.mubr.msk.bf16.gmra.mrb[4].mxu0 %vm596_vm1, %v524_v10  ;;  %v1080_v10 = vld [vmem:[%s21084_s30 + $0x83] sm:$0xff] }
  0x68   : > { %17723 = vmatprep.mubr.msk.bf16.mxu0 %vm596_vm1, %v525_v11  ;;  %v1081_v11 = vld [vmem:[%s21084_s30 + $0x8b] sm:$0xff] }
  0x69   : > { %v1109_v14 = vpack.c.bf16 %v1081_v11, %v1080_v10  ;;  %v1735_v10 = vld [vmem:[%s21084_s30 + $0xac] sm:$0xff] }
  0x6f   : > { %17724 = vmatmul.mubr.msk.bf16.gmra.mrb[8].mxu0 %vm596_vm1, %v526_v16  ;;  %v1084_v16 = vld [vmem:[%s21084_s30 + $0xa3] sm:$0xff] }
  0x70   : > { %17727 = vmatprep.mubr.msk.bf16.mxu0 %vm596_vm1, %v527_v17  ;;  %v1085_v17 = vld [vmem:[%s21084_s30 + $0xab] sm:$0xff] }
  0x71   : > { %v1111_v20 = vpack.c.bf16 %v1085_v17, %v1084_v16  ;;  %v1739_v16 = vld [vmem:[%s21084_s30 + $0xcc] sm:$0xff] }
  0x77   : > { %17728 = vmatmul.mubr.msk.bf16.gmra.mrb[12].mxu0 %vm596_vm1, %v528_v22  ;;  %v1088_v22 = vld [vmem:[%s21084_s30 + $0xc3] sm:$0xff] }
  0x78   : > { %17731 = vmatprep.mubr.msk.bf16.mxu0 %vm596_vm1, %v529_v23  ;;  %v1089_v23 = vld [vmem:[%s21084_s30 + $0xcb] sm:$0xff] }
  0x79   : > { %v1113_v26 = vpack.c.bf16 %v1089_v23, %v1088_v22  ;;  %v1743_v22 = vld [vmem:[%s21084_s30 + $0xec] sm:$0xff] }
  0x7f   : > { %17732 = vmatmul.mubr.msk.bf16.gmra.mrb[16].mxu0 %vm596_vm1, %v530_v28  ;;  %v1092_v28 = vld [vmem:[%s21084_s30 + $0xe3] sm:$0xff] }
  0x80   : > { %17735 = vmatprep.mubr.msk.bf16.mxu0 %vm596_vm1, %v531_v29  ;;  %v1093_v29 = vld [vmem:[%s21084_s30 + $0xeb] sm:$0xff] }
  0x81   : > { %v1115_v32 = vpack.c.bf16 %v1093_v29, %v1092_v28  ;;  %v1747_v28 = vld [vmem:[%s21084_s30 + $0x10c] sm:$0xff] }
  0x87   : > { %17736 = vmatmul.mubr.msk.bf16.gmra.mrb[20].mxu0 %vm596_vm1, %v532_v34  ;;  %v1096_v34 = vld [vmem:[%s21084_s30 + $0x103] sm:$0xff] }
  0x88   : > { %17739 = vmatprep.mubr.msk.bf16.mxu0 %vm596_vm1, %v533_v35  ;;  %v1097_v35 = vld [vmem:[%s21084_s30 + $0x10b] sm:$0xff] }
  0x89   : > { %v1117_v38 = vpack.c.bf16 %v1097_v35, %v1096_v34  ;;  %v1751_v34 = vld [vmem:[%s21084_s30 + $0x12c] sm:$0xff] }
  0x8f   : > { %17740 = vmatmul.mubr.msk.bf16.gmra.mrb[24].mxu0 %vm596_vm1, %v534_v40  ;;  %v1100_v40 = vld [vmem:[%s21084_s30 + $0x123] sm:$0xff] }
  0x90   : > { %17743 = vmatprep.mubr.msk.bf16.mxu0 %vm596_vm1, %v535_v41  ;;  %v1101_v41 = vld [vmem:[%s21084_s30 + $0x12b] sm:$0xff] }
  0x91   : > { %v1119_v42 = vpack.c.bf16 %v1101_v41, %v1100_v40  ;;  %v2045_v40 = vld [vmem:[%s21084_s30 + $0x2d] sm:$0xff] }
  0x97   : > { %17744 = vmatmul.mubr.msk.bf16.gmra.mrb[28].mxu0 %vm596_vm1, %v536_v46  ;;  %v1427_v46 = vld [vmem:[%s21084_s30 + $0x13b] sm:$0xff] }
  0x98   : > { %17747 = vmatprep.mubr.msk.bf16.mxu0 %vm596_vm1, %v537_v47  ;;  %v1718_v47 = vld [vmem:[%s21084_s30 + $0x24] sm:$0xff]  ;;  %v1445_v49 = vpack.c.bf16 %v1427_v46, %v1426_v45  ;;  %v2049_v46 = vld [vmem:[%s21084_s30 + $0x4d] sm:$0xff] }
  0x99   : > { %v1754_v50 = vpack.c.bf16 %v1719_v48, %v1718_v47  ;;  %v2048_v45 = vld [vmem:[%s21084_s30 + $0x45] sm:$0xff] }
  0x9a   : > { %v21379_v48 = vpack.c.bf16 %v2049_v46, %v2048_v45  ;;  %v426_v45 = vld [vmem:[%s23446_s0 + $0x58] sm:$0xff]  ;;  %v425_v46 = vld [vmem:[%s23446_s0 + $0x50] sm:$0xff] }
  0x9f   : > { %17748 = vmatmul.mubr.msk.bf16.gmra.mrb[32].mxu0 %vm596_vm1, %v538_v52  ;;  %v1721_v52 = vld [vmem:[%s21084_s30 + $0x3c] sm:$0xff] }
  0xa0   : > { %17753 = vmatprep.mubr.msk.bf16.mxu0 %vm596_vm1, %v1102_v53  ;;  %v1722_v53 = vld [vmem:[%s21084_s30 + $0x44] sm:$0xff]  ;;  %v1755_v55 = vpack.c.bf16 %v1721_v52, %v1720_v51  ;;  %v2050_v51 = vld [vmem:[%s21084_s30 + $0x55] sm:$0xff] }
  0xa1   : > { %v1756_v56 = vpack.c.bf16 %v1723_v54, %v1722_v53  ;;  %v2051_v52 = vld [vmem:[%s21084_s30 + $0x5d] sm:$0xff]  ;;  %v2052_v53 = vld [vmem:[%s21084_s30 + $0x65] sm:$0xff]  ;;  %v2053_v54 = vld [vmem:[%s21084_s30 + $0x6d] sm:$0xff] }
  0xa7   : > { %17754 = vmatmul.mubr.msk.bf16.vlgmr.msra.gmra.mrb[0].mxu0 %vm596_vm1, %v21218_v58 }
  0xa8   : > { %17790 = vmatpush3.bf16.msra.mxu0 %v1503_v60  ;;  %17757 = vmatprep.mubr.msk.bf16.mxu0 %vm596_vm1, %v21220_v59  ;;  %v1725_v60 = vld [vmem:[%s21084_s30 + $0x5c] sm:$0xff] }
  0xa9   : > { %20921 = vmatprep.subr.msk.bf16.mxu0 %vm651_vm0, %v21227_v61  ;;  %v1726_v61 = vld [vmem:[%s21084_s30 + $0x64] sm:$0xff] }
  0xaa   : > { %v1758_v0 = vpack.c.bf16 %v1727_v62, %v1726_v61 }
  0xaf   : > { %17758 = vmatmul.mubr.msk.bf16.gmra.mrb[4].mxu0 %vm596_vm1, %v1105_v2 }
  0xb0   : > { %17761 = vmatprep.mubr.msk.bf16.mxu0 %vm596_vm1, %v1106_v3 }
  0xb7   : > { %17762 = vmatmul.mubr.msk.bf16.gmra.mrb[8].mxu0 %vm596_vm1, %v1107_v8 }
  0xb8   : > { %17765 = vmatprep.mubr.msk.bf16.mxu0 %vm596_vm1, %v1108_v9 }
  0xbf   : > { %17766 = vmatmul.mubr.msk.bf16.gmra.mrb[12].mxu0 %vm596_vm1, %v1109_v14 }
  0xc0   : > { %17769 = vmatprep.mubr.msk.bf16.mxu0 %vm596_vm1, %v1110_v15 }
  0xc7   : > { %17770 = vmatmul.mubr.msk.bf16.gmra.mrb[16].mxu0 %vm596_vm1, %v1111_v20 }
  0xc8   : > { %17773 = vmatprep.mubr.msk.bf16.mxu0 %vm596_vm1, %v1112_v21 }
  0xcf   : > { %17774 = vmatmul.mubr.msk.bf16.gmra.mrb[20].mxu0 %vm596_vm1, %v1113_v26 }
  0xd0   : > { %17777 = vmatprep.mubr.msk.bf16.mxu0 %vm596_vm1, %v1114_v27 }
  0xd7   : > { %17778 = vmatmul.mubr.msk.bf16.gmra.mrb[24].mxu0 %vm596_vm1, %v1115_v32 }
  0xd8   : > { %17781 = vmatprep.mubr.msk.bf16.mxu0 %vm596_vm1, %v1116_v33 }
  0xdf   : > { %17782 = vmatmul.mubr.msk.bf16.gmra.mrb[28].mxu0 %vm596_vm1, %v1117_v38 }
  0xe0   : > { %17785 = vmatprep.mubr.msk.bf16.mxu0 %vm596_vm1, %v1118_v39 }
  0xe7   : > { %17786 = vmatmul.mubr.msk.bf16.gmra.mrb[32].mxu0 %vm596_vm1, %v1119_v42 }
  0xe8   : > { %17791 = vmatprep.mubr.msk.bf16.mxu0 %vm596_vm1, %v21218_v58  ;;  %v21319_v58 = vld [vmem:[%s23448_s2 + $0xc] sm:$0x3] }
  0xef   : > { %17792 = vmatmul.mubr.msk.bf16.vlgmr.msra.gmra.mrb[0].mxu0 %vm596_vm1, %v21220_v59  ;;  %v1724_v59 = vld [vmem:[%s21084_s30 + $0x54] sm:$0xff] }
  0xf0   : > { %17828 = vmatpush3.bf16.msra.mxu0 %v1829_v43  ;;  %17795 = vmatprep.mubr.msk.bf16.mxu0 %vm596_vm1, %v1105_v2  ;;  %v1757_v63 = vpack.c.bf16 %v1725_v60, %v1724_v59  ;;  %v1729_v2 = vld [vmem:[%s21084_s30 + $0x7c] sm:$0xff]  ;;  %v2056_v59 = vld [vmem:[%s21084_s30 + $0x85] sm:$0xff]  ;;  %v2057_v60 = vld [vmem:[%s21084_s30 + $0x8d] sm:$0xff] }
  0xf1   : > { %20922 = vmatprep.subr.msk.bf16.mxu0 %vm651_vm0, %v15955_v44  ;;  %v1759_v5 = vpack.c.bf16 %v1729_v2, %v1728_v1  ;;  %v2046_v43 = vld [vmem:[%s21084_s30 + $0x35] sm:$0xff]  ;;  %v2047_v44 = vld [vmem:[%s21084_s30 + $0x3d] sm:$0xff]  ;;  %v2086_v62 = vpack.c.bf16 %v2057_v60, %v2056_v59  ;;  %v2060_v1 = vld [vmem:[%s21084_s30 + $0xa5] sm:$0xff] }
  0xf2   : > { %v21377_v47 = vpack.c.bf16 %v2047_v44, %v2046_v43  ;;  %v2061_v2 = vld [vmem:[%s21084_s30 + $0xad] sm:$0xff]  ;;  %v423_v44 = vld [vmem:[%s23446_s0 + $0x40] sm:$0xff] }
  0xf3   : > { %v424_v43 = vld [vmem:[%s23446_s0 + $0x48] sm:$0xff] }
  0xf4   : > { %v2698_v59 = vld [vmem:[%s21084_s30 + $0x46] sm:$0xff]  ;;  %v2699_v60 = vld [vmem:[%s21084_s30 + $0x4e] sm:$0xff] }
  0xf7   : > { %17796 = vmatmul.mubr.msk.bf16.gmra.mrb[4].mxu0 %vm596_vm1, %v1106_v3  ;;  %v1730_v3 = vld [vmem:[%s21084_s30 + $0x84] sm:$0xff] }
  0xf8   : > { %17799 = vmatprep.mubr.msk.bf16.mxu0 %vm596_vm1, %v1107_v8  ;;  %v1760_v6 = vpack.c.bf16 %v1731_v4, %v1730_v3  ;;  %v1733_v8 = vld [vmem:[%s21084_s30 + $0x9c] sm:$0xff]  ;;  %v2088_v4 = vpack.c.bf16 %v2061_v2, %v2060_v1  ;;  %v433_v1 = vld [vmem:[%s23446_s0 + $0x90] sm:$0xff] }
  0xf9   : > { %v1761_v11 = vpack.c.bf16 %v1733_v8, %v1732_v7  ;;  %v2064_v7 = vld [vmem:[%s21084_s30 + $0xc5] sm:$0xff]  ;;  %v2065_v8 = vld [vmem:[%s21084_s30 + $0xcd] sm:$0xff] }
  0xff   : > { %17800 = vmatmul.mubr.msk.bf16.gmra.mrb[8].mxu0 %vm596_vm1, %v1108_v9  ;;  %v1734_v9 = vld [vmem:[%s21084_s30 + $0xa4] sm:$0xff] }
 0x100   : > { %17803 = vmatprep.mubr.msk.bf16.mxu0 %vm596_vm1, %v1109_v14  ;;  %v1762_v12 = vpack.c.bf16 %v1735_v10, %v1734_v9  ;;  %v1737_v14 = vld [vmem:[%s21084_s30 + $0xbc] sm:$0xff]  ;;  %v2090_v10 = vpack.c.bf16 %v2065_v8, %v2064_v7  ;;  %v2703_v7 = vld [vmem:[%s21084_s30 + $0x6e] sm:$0xff] }
 0x101   : > { %v1763_v17 = vpack.c.bf16 %v1737_v14, %v1736_v13  ;;  %v2068_v13 = vld [vmem:[%s21084_s30 + $0xe5] sm:$0xff]  ;;  %v2069_v14 = vld [vmem:[%s21084_s30 + $0xed] sm:$0xff]  ;;  %v2704_v8 = vld [vmem:[%s21084_s30 + $0x76] sm:$0xff] }
 0x107   : > { %17804 = vmatmul.mubr.msk.bf16.gmra.mrb[12].mxu0 %vm596_vm1, %v1110_v15  ;;  %v1738_v15 = vld [vmem:[%s21084_s30 + $0xc4] sm:$0xff] }
 0x108   : > { %17807 = vmatprep.mubr.msk.bf16.mxu0 %vm596_vm1, %v1111_v20  ;;  %v1764_v18 = vpack.c.bf16 %v1739_v16, %v1738_v15  ;;  %v1741_v20 = vld [vmem:[%s21084_s30 + $0xdc] sm:$0xff]  ;;  %v2092_v16 = vpack.c.bf16 %v2069_v14, %v2068_v13  ;;  %v440_v14 = vld [vmem:[%s23446_s0 + $0xc8] sm:$0xff] }
 0x109   : > { %v1765_v23 = vpack.c.bf16 %v1741_v20, %v1740_v19  ;;  %v2072_v19 = vld [vmem:[%s21084_s30 + $0x105] sm:$0xff]  ;;  %v2073_v20 = vld [vmem:[%s21084_s30 + $0x10d] sm:$0xff] }
 0x10f   : > { %17808 = vmatmul.mubr.msk.bf16.gmra.mrb[16].mxu0 %vm596_vm1, %v1112_v21  ;;  %v1742_v21 = vld [vmem:[%s21084_s30 + $0xe4] sm:$0xff] }
 0x110   : > { %17811 = vmatprep.mubr.msk.bf16.mxu0 %vm596_vm1, %v1113_v26  ;;  %v1766_v24 = vpack.c.bf16 %v1743_v22, %v1742_v21  ;;  %v1745_v26 = vld [vmem:[%s21084_s30 + $0xfc] sm:$0xff]  ;;  %v2094_v22 = vpack.c.bf16 %v2073_v20, %v2072_v19 }
 0x111   : > { %v1767_v29 = vpack.c.bf16 %v1745_v26, %v1744_v25  ;;  %v2076_v25 = vld [vmem:[%s21084_s30 + $0x125] sm:$0xff]  ;;  %v2077_v26 = vld [vmem:[%s21084_s30 + $0x12d] sm:$0xff]  ;;  %v442_v20 = vld [vmem:[%s23446_s0 + $0xd8] sm:$0xff] }
 0x112   : > { %v2709_v19 = vld [vmem:[%s21084_s30 + $0x9e] sm:$0xff] }
 0x117   : > { %17812 = vmatmul.mubr.msk.bf16.gmra.mrb[20].mxu0 %vm596_vm1, %v1114_v27  ;;  %v1746_v27 = vld [vmem:[%s21084_s30 + $0x104] sm:$0xff] }
 0x118   : > { %17815 = vmatprep.mubr.msk.bf16.mxu0 %vm596_vm1, %v1115_v32  ;;  %v1768_v30 = vpack.c.bf16 %v1747_v28, %v1746_v27  ;;  %v1749_v32 = vld [vmem:[%s21084_s30 + $0x11c] sm:$0xff]  ;;  %v2096_v28 = vpack.c.bf16 %v2077_v26, %v2076_v25  ;;  %v444_v25 = vld [vmem:[%s23446_s0 + $0xe8] sm:$0xff] }
 0x119   : > { %v1769_v35 = vpack.c.bf16 %v1749_v32, %v1748_v31  ;;  %v443_v26 = vld [vmem:[%s23446_s0 + $0xe0] sm:$0xff] }
 0x11f   : > { %17816 = vmatmul.mubr.msk.bf16.gmra.mrb[24].mxu0 %vm596_vm1, %v1116_v33  ;;  %v1750_v33 = vld [vmem:[%s21084_s30 + $0x124] sm:$0xff] }
 0x120   : > { %17819 = vmatprep.mubr.msk.bf16.mxu0 %vm596_vm1, %v1117_v38  ;;  %v1770_v36 = vpack.c.bf16 %v1751_v34, %v1750_v33  ;;  %v1753_v38 = vld [vmem:[%s21084_s30 + $0x13c] sm:$0xff]  ;;  %v21446_v33 = vld [vmem:[%s23448_s2 + $0x10] sm:$0x3] }
 0x121   : > { %v1771_v41 = vpack.c.bf16 %v1753_v38, %v1752_v37  ;;  %v417_v34 = vld [vmem:[%s23446_s0 + $0x10] sm:$0xff]  ;;  %v418_v37 = vld [vmem:[%s23446_s0 + $0x18] sm:$0xff]  ;;  %v416_v38 = vld [vmem:[%s23446_s0 + $0x8] sm:$0xff] }
 0x127   : > { %17820 = vmatmul.mubr.msk.bf16.gmra.mrb[28].mxu0 %vm596_vm1, %v1118_v39  ;;  %v2044_v39 = vld [vmem:[%s21084_s30 + $0x25] sm:$0xff] }
 0x128   : > { %17823 = vmatprep.mubr.msk.bf16.mxu0 %vm596_vm1, %v1119_v42  ;;  %v2080_v42 = vpack.c.bf16 %v2045_v40, %v2044_v39  ;;  %v420_v39 = vld [vmem:[%s23446_s0 + $0x28] sm:$0xff]  ;;  %v419_v40 = vld [vmem:[%s23446_s0 + $0x20] sm:$0xff] }
 0x12f   : > { %17824 = vmatmul.mubr.msk.bf16.gmra.mrb[32].mxu0 %vm596_vm1, %v1445_v49  ;;  %v2481_v49 = vsel %vm651_vm0, %v21319_v58, 0 }
 0x130   : > { %17829 = vmatprep.mubr.msk.bf16.mxu0 %vm596_vm1, %v1754_v50  ;;  %v21386_v50 = vld [vmem:[%s23448_s2 + $0xe] sm:$0x3] }
 0x131   : > { %v2807_v32 = vsel %vm651_vm0, %v21386_v50, 0 }
 0x137   : > { %17830 = vmatmul.mubr.msk.bf16.vlgmr.msra.gmra.mrb[0].mxu0 %vm596_vm1, %v1755_v55  ;;  %v2083_v55 = vpack.c.bf16 %v2051_v52, %v2050_v51  ;;  %v2696_v51 = vld [vmem:[%s21084_s30 + $0x36] sm:$0xff]  ;;  %v2697_v52 = vld [vmem:[%s21084_s30 + $0x3e] sm:$0xff] }
 0x138   : > { %17866 = vmatpush3.bf16.msra.mxu0 %v2155_v57  ;;  %17833 = vmatprep.mubr.msk.bf16.mxu0 %vm596_vm1, %v1756_v56  ;;  %v2084_v56 = vpack.c.bf16 %v2053_v54, %v2052_v53  ;;  %v2054_v57 = vld [vmem:[%s21084_s30 + $0x75] sm:$0xff] }
 0x139   : > { %20923 = vmatprep.subr.msk.bf16.mxu0 %vm651_vm0, %v21319_v58  ;;  %v2055_v58 = vld [vmem:[%s21084_s30 + $0x7d] sm:$0xff] }
 0x13a   : > { %v2085_v61 = vpack.c.bf16 %v2055_v58, %v2054_v57  ;;  %v430_v53 = vld [vmem:[%s23446_s0 + $0x78] sm:$0xff]  ;;  %v432_v57 = vld [vmem:[%s23446_s0 + $0x88] sm:$0xff]  ;;  %v431_v58 = vld [vmem:[%s23446_s0 + $0x80] sm:$0xff] }
 0x13f   : > { %17834 = vmatmul.mubr.msk.bf16.gmra.mrb[4].mxu0 %vm596_vm1, %v1757_v63  ;;  %v2058_v63 = vld [vmem:[%s21084_s30 + $0x95] sm:$0xff] }
 0x140   : > { %17837 = vmatprep.mubr.msk.bf16.mxu0 %vm596_vm1, %v1758_v0  ;;  %v2059_v0 = vld [vmem:[%s21084_s30 + $0x9d] sm:$0xff] }
 0x141   : > { %v2087_v3 = vpack.c.bf16 %v2059_v0, %v2058_v63  ;;  %v434_v63 = vld [vmem:[%s23446_s0 + $0x98] sm:$0xff]  ;;  %v2733_v0 = vpack.c.bf16 %v2699_v60, %v2698_v59 }
 0x142   : > { %v2728_v59 = vld [vmem:[%s21084_s30 + $0x136] sm:$0xff]  ;;  %v2729_v60 = vld [vmem:[%s21084_s30 + $0x13e] sm:$0xff] }
 0x147   : > { %17838 = vmatmul.mubr.msk.bf16.gmra.mrb[8].mxu0 %vm596_vm1, %v1759_v5  ;;  %v2062_v5 = vld [vmem:[%s21084_s30 + $0xb5] sm:$0xff] }
 0x148   : > { %17841 = vmatprep.mubr.msk.bf16.mxu0 %vm596_vm1, %v1760_v6  ;;  %v2063_v6 = vld [vmem:[%s21084_s30 + $0xbd] sm:$0xff] }
 0x149   : > { %v2089_v9 = vpack.c.bf16 %v2063_v6, %v2062_v5  ;;  %v435_v5 = vld [vmem:[%s23446_s0 + $0xa0] sm:$0xff] }
 0x14a   : > { %v2702_v6 = vld [vmem:[%s21084_s30 + $0x66] sm:$0xff] }
 0x14f   : > { %17842 = vmatmul.mubr.msk.bf16.gmra.mrb[12].mxu0 %vm596_vm1, %v1761_v11  ;;  %v2066_v11 = vld [vmem:[%s21084_s30 + $0xd5] sm:$0xff] }
 0x150   : > { %17845 = vmatprep.mubr.msk.bf16.mxu0 %vm596_vm1, %v1762_v12  ;;  %v2067_v12 = vld [vmem:[%s21084_s30 + $0xdd] sm:$0xff] }
 0x151   : > { %v2091_v15 = vpack.c.bf16 %v2067_v12, %v2066_v11  ;;  %v2735_v11 = vpack.c.bf16 %v2703_v7, %v2702_v6  ;;  %v437_v12 = vld [vmem:[%s23446_s0 + $0xb0] sm:$0xff] }
 0x152   : > { %v3025_v6 = vld [vmem:[%s21084_s30 + $0x4f] sm:$0xff]  ;;  %v3026_v7 = vld [vmem:[%s21084_s30 + $0x57] sm:$0xff] }
 0x157   : > { %17846 = vmatmul.mubr.msk.bf16.gmra.mrb[16].mxu0 %vm596_vm1, %v1763_v17  ;;  %v2070_v17 = vld [vmem:[%s21084_s30 + $0xf5] sm:$0xff] }
 0x158   : > { %17849 = vmatprep.mubr.msk.bf16.mxu0 %vm596_vm1, %v1764_v18  ;;  %v2071_v18 = vld [vmem:[%s21084_s30 + $0xfd] sm:$0xff] }
 0x159   : > { %v2093_v21 = vpack.c.bf16 %v2071_v18, %v2070_v17  ;;  %v2707_v17 = vld [vmem:[%s21084_s30 + $0x8e] sm:$0xff]  ;;  %v2708_v18 = vld [vmem:[%s21084_s30 + $0x96] sm:$0xff] }
 0x15f   : > { %17850 = vmatmul.mubr.msk.bf16.gmra.mrb[20].mxu0 %vm596_vm1, %v1765_v23  ;;  %v2074_v23 = vld [vmem:[%s21084_s30 + $0x115] sm:$0xff] }
 0x160   : > { %17853 = vmatprep.mubr.msk.bf16.mxu0 %vm596_vm1, %v1766_v24  ;;  %v2075_v24 = vld [vmem:[%s21084_s30 + $0x11d] sm:$0xff] }
 0x161   : > { %v2095_v27 = vpack.c.bf16 %v2075_v24, %v2074_v23  ;;  %v21578_v23 = vld [vmem:[%s23450_s4 + $0x8] sm:$0xff]   ;;  %v2738_v24 = vpack.c.bf16 %v2709_v19, %v2708_v18  ;;  %v3034_v19 = vld [vmem:[%s21084_s30 + $0x97] sm:$0xff] }
 0x162   : > { %v3033_v18 = vld [vmem:[%s21084_s30 + $0x8f] sm:$0xff] }
 0x167   : > { %17854 = vmatmul.mubr.msk.bf16.gmra.mrb[24].mxu0 %vm596_vm1, %v1767_v29  ;;  %v2078_v29 = vld [vmem:[%s21084_s30 + $0x135] sm:$0xff] }
 0x168   : > { %17857 = vmatprep.mubr.msk.bf16.mxu0 %vm596_vm1, %v1768_v30  ;;  %v2079_v30 = vld [vmem:[%s21084_s30 + $0x13d] sm:$0xff] }
 0x169   : > { %v2097_v31 = vpack.c.bf16 %v2079_v30, %v2078_v29  ;;  %v2712_v29 = vld [vmem:[%s21084_s30 + $0xb6] sm:$0xff]  ;;  %v2713_v30 = vld [vmem:[%s21084_s30 + $0xbe] sm:$0xff] }
 0x16f   : > { %17858 = vmatmul.mubr.msk.bf16.gmra.mrb[28].mxu0 %vm596_vm1, %v1769_v35  ;;  %v415_v35 = vld [vmem:[%s23446_s0] sm:$0xff] }
 0x170   : > { %17861 = vmatprep.mubr.msk.bf16.mxu0 %vm596_vm1, %v1770_v36  ;;  %v20994_v36 = vmov 0  }
 0x171   : > { %20939 = vset.pattern.permute.xlu1 %v20994_v36  ;;  %20938 = vset.pattern.permute.xlu0 %v20994_v36  ;;  %v447_v36 = vld [vmem:[%s23446_s0 + $0x100] sm:$0xff] }
 0x172   : > { %3439 = vperm.xlu1 %20939, %v417_v34   ;;  %3429 = vperm.xlu0 %20938, %v415_v35   ;;  %v2740_v34 = vpack.c.bf16 %v2713_v30, %v2712_v29  ;;  %v448_v35 = vld [vmem:[%s23446_s0 + $0x108] sm:$0xff] }
 0x173   : > { %v3040_v29 = vld [vmem:[%s21084_s30 + $0xc7] sm:$0xff]  ;;  %v3041_v30 = vld [vmem:[%s21084_s30 + $0xcf] sm:$0xff] }
 0x176   : > { %3444 = vperm.xlu1 %20939, %v418_v37   ;;  %3434 = vperm.xlu0 %20938, %v416_v38   ;;  %v2714_v37 = vld [vmem:[%s21084_s30 + $0xc6] sm:$0xff]  ;;  %v2715_v38 = vld [vmem:[%s21084_s30 + $0xce] sm:$0xff] }
 0x177   : > { %17862 = vmatmul.mubr.msk.bf16.gmra.mrb[32].mxu0 %vm596_vm1, %v1771_v41  ;;  %v422_v41 = vld [vmem:[%s23446_s0 + $0x38] sm:$0xff] }
 0x178   : > { %17867 = vmatprep.mubr.msk.bf16.mxu0 %vm596_vm1, %v2080_v42  ;;  %v421_v42 = vld [vmem:[%s23446_s0 + $0x30] sm:$0xff] }
 0x17a   : > { %3454 = vperm.xlu1 %20939, %v420_v39   ;;  %3449 = vperm.xlu0 %20938, %v419_v40   ;;  %v2716_v39 = vld [vmem:[%s21084_s30 + $0xd6] sm:$0xff]  ;;  %v2717_v40 = vld [vmem:[%s21084_s30 + $0xde] sm:$0xff] }
 0x17e   : > { %3464 = vperm.xlu1 %20939, %v422_v41   ;;  %3459 = vperm.xlu0 %20938, %v421_v42   ;;  %v450_v41 = vld [vmem:[%s23446_s0 + $0x118] sm:$0xff]  ;;  %v2741_v42 = vpack.c.bf16 %v2715_v38, %v2714_v37 }
 0x17f   : > { %17868 = vmatmul.mubr.msk.bf16.vlgmr.msra.gmra.mrb[0].mxu0 %vm596_vm1, %v21377_v47  ;;  %v3046_v37 = vld [vmem:[%s21084_s30 + $0xf7] sm:$0xff]  ;;  %v3047_v38 = vld [vmem:[%s21084_s30 + $0xff] sm:$0xff] }
 0x180   : > { %17904 = vmatpush3.bf16.msra.mxu0 %v2481_v49  ;;  %17871 = vmatprep.mubr.msk.bf16.mxu0 %vm596_vm1, %v21379_v48  ;;  %v2404_v49 = vld [vmem:[%s21084_s30 + $0x145] sm:$0xff] }
 0x181   : > { %20924 = vmatprep.subr.msk.bf16.mxu0 %vm651_vm0, %v21386_v50  ;;  %v2405_v50 = vld [vmem:[%s21084_s30 + $0x14d] sm:$0xff] }
 0x182   : > { %3474 = vperm.xlu1 %20939, %v424_v43   ;;  %3469 = vperm.xlu0 %20938, %v423_v44   ;;  %v2423_v54 = vpack.c.bf16 %v2405_v50, %v2404_v49  ;;  %v449_v43 = vld [vmem:[%s23446_s0 + $0x110] sm:$0xff]  ;;  %v2742_v44 = vpack.c.bf16 %v2717_v40, %v2716_v39  ;;  %v3070_v40 = vpack.c.bf16 %v3047_v38, %v3046_v37 }
 0x186   : > { %3484 = vperm.xlu1 %20939, %v426_v45   ;;  %3479 = vperm.xlu0 %20938, %v425_v46   ;;  %v2718_v45 = vld [vmem:[%s21084_s30 + $0xe6] sm:$0xff]  ;;  %v2719_v46 = vld [vmem:[%s21084_s30 + $0xee] sm:$0xff] }
 0x187   : > { %17872 = vmatmul.mubr.msk.bf16.gmra.mrb[4].mxu0 %vm596_vm1, %v2083_v55  ;;  %v2743_v49 = vpack.c.bf16 %v2719_v46, %v2718_v45 }
 0x188   : > { %17875 = vmatprep.mubr.msk.bf16.mxu0 %vm596_vm1, %v2084_v56 }
 0x18f   : > { %17876 = vmatmul.mubr.msk.bf16.gmra.mrb[8].mxu0 %vm596_vm1, %v2085_v61 }
 0x190   : > { %17879 = vmatprep.mubr.msk.bf16.mxu0 %vm596_vm1, %v2086_v62 }
 0x197   : > { %17880 = vmatmul.mubr.msk.bf16.gmra.mrb[12].mxu0 %vm596_vm1, %v2087_v3 }
 0x198   : > { %17883 = vmatprep.mubr.msk.bf16.mxu0 %vm596_vm1, %v2088_v4 }
 0x19f   : > { %17884 = vmatmul.mubr.msk.bf16.gmra.mrb[16].mxu0 %vm596_vm1, %v2089_v9 }
 0x1a0   : > { %17887 = vmatprep.mubr.msk.bf16.mxu0 %vm596_vm1, %v2090_v10 }
 0x1a7   : > { %17888 = vmatmul.mubr.msk.bf16.gmra.mrb[20].mxu0 %vm596_vm1, %v2091_v15 }
 0x1a8   : > { %17891 = vmatprep.mubr.msk.bf16.mxu0 %vm596_vm1, %v2092_v16 }
 0x1af   : > { %17892 = vmatmul.mubr.msk.bf16.gmra.mrb[24].mxu0 %vm596_vm1, %v2093_v21 }
 0x1b0   : > { %17895 = vmatprep.mubr.msk.bf16.mxu0 %vm596_vm1, %v2094_v22 }
 0x1b7   : > { %17896 = vmatmul.mubr.msk.bf16.gmra.mrb[28].mxu0 %vm596_vm1, %v2095_v27 }
 0x1b8   : > { %17899 = vmatprep.mubr.msk.bf16.mxu0 %vm596_vm1, %v2096_v28 }
 0x1bf   : > { %17900 = vmatmul.mubr.msk.bf16.gmra.mrb[32].mxu0 %vm596_vm1, %v2097_v31 }
 0x1c0   : > { %17905 = vmatprep.mubr.msk.bf16.mxu0 %vm596_vm1, %v21377_v47  ;;  %v428_v47 = vld [vmem:[%s23446_s0 + $0x68] sm:$0xff] }
 0x1c1   : > { %3494 = vperm.xlu1 %20939, %v428_v47   ;;  %v2720_v47 = vld [vmem:[%s21084_s30 + $0xf6] sm:$0xff] }
 0x1c5   : > { %3504 = vperm.xlu1 %20939, %v430_v53   ;;  %v2724_v53 = vld [vmem:[%s21084_s30 + $0x116] sm:$0xff] }
 0x1c7   : > { %17906 = vmatmul.mubr.msk.bf16.vlgmr.msra.gmra.mrb[0].mxu0 %vm596_vm1, %v21379_v48  ;;  %v427_v48 = vld [vmem:[%s23446_s0 + $0x60] sm:$0xff] }
 0x1c8   : > { %17942 = vmatpush3.bf16.msra.mxu0 %v2807_v32  ;;  %17909 = vmatprep.mubr.msk.bf16.mxu0 %vm596_vm1, %v2083_v55  ;;  %v429_v55 = vld [vmem:[%s23446_s0 + $0x70] sm:$0xff] }
 0x1c9   : > { %20925 = vmatprep.subr.msk.bf16.mxu0 %vm651_vm0, %v21446_v33  ;;  %3489 = vperm.xlu0 %20938, %v427_v48   ;;  %v2721_v48 = vld [vmem:[%s21084_s30 + $0xfe] sm:$0xff] }
 0x1ca   : > { %3514 = vperm.xlu1 %20939, %v432_v57   ;;  %v2744_v50 = vpack.c.bf16 %v2721_v48, %v2720_v47  ;;  %v2726_v57 = vld [vmem:[%s21084_s30 + $0x126] sm:$0xff]  ;;  %v3053_v48 = vld [vmem:[%s21084_s30 + $0x12f] sm:$0xff] }
 0x1cb   : > { %v3052_v47 = vld [vmem:[%s21084_s30 + $0x127] sm:$0xff] }
 0x1cd   : > { %3499 = vperm.xlu0 %20938, %v429_v55  }
 0x1ce   : > { %3524 = vperm.xlu1 %20939, %v434_v63   ;;  %v2730_v63 = vld [vmem:[%s21084_s30 + $0x146] sm:$0xff] }
 0x1cf   : > { %17910 = vmatmul.mubr.msk.bf16.gmra.mrb[4].mxu0 %vm596_vm1, %v2084_v56  ;;  %v2732_v56 = vpack.c.bf16 %v2697_v52, %v2696_v51  ;;  %v2722_v51 = vld [vmem:[%s21084_s30 + $0x106] sm:$0xff]  ;;  %v2723_v52 = vld [vmem:[%s21084_s30 + $0x10e] sm:$0xff] }
 0x1d0   : > { %17913 = vmatprep.mubr.msk.bf16.mxu0 %vm596_vm1, %v2085_v61  ;;  %v2700_v61 = vld [vmem:[%s21084_s30 + $0x56] sm:$0xff]  ;;  %v2745_v55 = vpack.c.bf16 %v2723_v52, %v2722_v51  ;;  %v3073_v51 = vpack.c.bf16 %v3053_v48, %v3052_v47 }
 0x1d1   : > { %3509 = vperm.xlu0 %20938, %v431_v58   ;;  %v2727_v58 = vld [vmem:[%s21084_s30 + $0x12e] sm:$0xff] }
 0x1d5   : > { %3519 = vperm.xlu0 %20938, %v433_v1   ;;  %v3022_v1 = vld [vmem:[%s21084_s30 + $0x37] sm:$0xff] }
 0x1d7   : > { %17914 = vmatmul.mubr.msk.bf16.gmra.mrb[8].mxu0 %vm596_vm1, %v2086_v62  ;;  %v2701_v62 = vld [vmem:[%s21084_s30 + $0x5e] sm:$0xff] }
 0x1d8   : > { %17917 = vmatprep.mubr.msk.bf16.mxu0 %vm596_vm1, %v2087_v3  ;;  %v2734_v2 = vpack.c.bf16 %v2701_v62, %v2700_v61  ;;  %v3133_v3 = vsel %vm651_vm0, %v21446_v33, 0  ;;  %v445_v33 = vld [vmem:[%s23446_s0 + $0xf0] sm:$0xff]  ;;  %v2747_v61 = vpack.c.bf16 %v2727_v58, %v2726_v57  ;;  %v2748_v62 = vpack.c.bf16 %v2729_v60, %v2728_v59  ;;  %v21721_v60 = vld [vmem:[%s23450_s4] sm:$0xff]  }
 0x1d9   : > { %3529 = vperm.xlu0 %20938, %v435_v5   ;;  %v3024_v5 = vld [vmem:[%s21084_s30 + $0x47] sm:$0xff] }
 0x1dd   : > { %3539 = vperm.xlu0 %20938, %v437_v12   ;;  %v3029_v12 = vld [vmem:[%s21084_s30 + $0x6f] sm:$0xff] }
 0x1df   : > { %17918 = vmatmul.mubr.msk.bf16.gmra.mrb[12].mxu0 %vm596_vm1, %v2088_v4  ;;  %v436_v4 = vld [vmem:[%s23446_s0 + $0xa8] sm:$0xff] }
 0x1e0   : > { %17921 = vmatprep.mubr.msk.bf16.mxu0 %vm596_vm1, %v2089_v9  ;;  %v2705_v9 = vld [vmem:[%s21084_s30 + $0x7e] sm:$0xff]  ;;  %3534 = vperm.xlu1 %20939, %v436_v4  }
 0x1e1   : > { %v2736_v13 = vpack.c.bf16 %v2705_v9, %v2704_v8  ;;  %v3027_v8 = vld [vmem:[%s21084_s30 + $0x5f] sm:$0xff]  ;;  %v3059_v9 = vpack.c.bf16 %v3025_v6, %v3024_v5 }
 0x1e7   : > { %17922 = vmatmul.mubr.msk.bf16.gmra.mrb[16].mxu0 %vm596_vm1, %v2090_v10  ;;  %v438_v10 = vld [vmem:[%s23446_s0 + $0xb8] sm:$0xff] }
 0x1e8   : > { %17925 = vmatprep.mubr.msk.bf16.mxu0 %vm596_vm1, %v2091_v15  ;;  %3544 = vperm.xlu1 %20939, %v438_v10   ;;  %v439_v15 = vld [vmem:[%s23446_s0 + $0xc0] sm:$0xff]  ;;  %v3060_v10 = vpack.c.bf16 %v3027_v8, %v3026_v7 }
 0x1e9   : > { %3549 = vperm.xlu0 %20938, %v439_v15  }
 0x1ec   : > { %3554 = vperm.xlu1 %20939, %v440_v14   ;;  %v3031_v14 = vld [vmem:[%s21084_s30 + $0x7f] sm:$0xff] }
 0x1ef   : > { %17926 = vmatmul.mubr.msk.bf16.gmra.mrb[20].mxu0 %vm596_vm1, %v2092_v16  ;;  %v2706_v16 = vld [vmem:[%s21084_s30 + $0x86] sm:$0xff] }
 0x1f0   : > { %17929 = vmatprep.mubr.msk.bf16.mxu0 %vm596_vm1, %v2093_v21  ;;  %v2737_v21 = vpack.c.bf16 %v2707_v17, %v2706_v16  ;;  %3564 = vperm.xlu1 %20939, %v442_v20   ;;  %v3032_v17 = vld [vmem:[%s21084_s30 + $0x87] sm:$0xff]  ;;  %v3035_v20 = vld [vmem:[%s21084_s30 + $0x9f] sm:$0xff] }
 0x1f4   : > { %3574 = vperm.xlu1 %20939, %v444_v25   ;;  %v3038_v25 = vld [vmem:[%s21084_s30 + $0xb7] sm:$0xff] }
 0x1f7   : > { %17930 = vmatmul.mubr.msk.bf16.gmra.mrb[24].mxu0 %vm596_vm1, %v2094_v22  ;;  %v441_v22 = vld [vmem:[%s23446_s0 + $0xd0] sm:$0xff] }
 0x1f8   : > { %17933 = vmatprep.mubr.msk.bf16.mxu0 %vm596_vm1, %v2095_v27  ;;  %3559 = vperm.xlu0 %20938, %v441_v22   ;;  %v2710_v27 = vld [vmem:[%s21084_s30 + $0xa6] sm:$0xff]  ;;  %v3064_v22 = vpack.c.bf16 %v3035_v20, %v3034_v19 }
 0x1fc   : > { %3569 = vperm.xlu0 %20938, %v443_v26   ;;  %v3039_v26 = vld [vmem:[%s21084_s30 + $0xbf] sm:$0xff] }
 0x1ff   : > { %17934 = vmatmul.mubr.msk.bf16.gmra.mrb[28].mxu0 %vm596_vm1, %v2096_v28  ;;  %v2711_v28 = vld [vmem:[%s21084_s30 + $0xae] sm:$0xff] }
 0x200   : > { %17937 = vmatprep.mubr.msk.bf16.mxu0 %vm596_vm1, %v2097_v31  ;;  %v446_v31 = vld [vmem:[%s23446_s0 + $0xf8] sm:$0xff]  ;;  %v2739_v32 = vpack.c.bf16 %v2711_v28, %v2710_v27  ;;  %3579 = vperm.xlu0 %20938, %v445_v33   ;;  %v3066_v28 = vpack.c.bf16 %v3039_v26, %v3038_v25  ;;  %v3067_v33 = vpack.c.bf16 %v3041_v30, %v3040_v29 }
 0x201   : > { %3584 = vperm.xlu1 %20939, %v446_v31   ;;  %v3042_v31 = vld [vmem:[%s21084_s30 + $0xd7] sm:$0xff] }
 0x204   : > { %3589 = vperm.xlu0 %20938, %v447_v36   ;;  %v3045_v36 = vld [vmem:[%s21084_s30 + $0xef] sm:$0xff] }
 0x205   : > { %3594 = vperm.xlu1 %20939, %v448_v35   ;;  %v3044_v35 = vld [vmem:[%s21084_s30 + $0xe7] sm:$0xff] }
 0x206   : > { %v3069_v39 = vpack.c.bf16 %v3045_v36, %v3044_v35 }
 0x207   : > { %17938 = vmatmul.mubr.msk.bf16.gmra.mrb[32].mxu0 %vm596_vm1, %v2423_v54  ;;  %v2725_v54 = vld [vmem:[%s21084_s30 + $0x11e] sm:$0xff] }
 0x208   : > { %17943 = vmatprep.mubr.msk.bf16.mxu0 %vm596_vm1, %v2732_v56  ;;  %3599 = vperm.xlu0 %20938, %v449_v43   ;;  %v2746_v56 = vpack.c.bf16 %v2725_v54, %v2724_v53  ;;  %v3050_v43 = vld [vmem:[%s21084_s30 + $0x117] sm:$0xff]  ;;  %v3056_v53 = vld [vmem:[%s21084_s30 + $0x147] sm:$0xff]  ;;  %v3057_v54 = vld [vmem:[%s21084_s30 + $0x14f] sm:$0xff] }
 0x209   : > { %3604 = vperm.xlu1 %20939, %v450_v41   ;;  %v3048_v41 = vld [vmem:[%s21084_s30 + $0x107] sm:$0xff] }
 0x20f   : > { %17944 = vmatmul.mubr.msk.bf16.vlgmr.msra.gmra.mrb[0].mxu0 %vm596_vm1, %v2733_v0  ;;  %v2731_v0 = vld [vmem:[%s21084_s30 + $0x14e] sm:$0xff] }
 0x210   : > { %17980 = vmatpush3.bf16.msra.mxu0 %v3133_v3  ;;  %17947 = vmatprep.mubr.msk.bf16.mxu0 %vm596_vm1, %v2734_v2  ;;  %v3023_v2 = vld [vmem:[%s21084_s30 + $0x3f] sm:$0xff]  ;;  %v2749_v3 = vpack.c.bf16 %v2731_v0, %v2730_v63  ;;  %v21747_v63 = vpop.permute.xlu0 %3429  ;;  %v21749_v0 = vpop.permute.xlu1 %3439 }
 0x211   : > { %18017 = vmatprep.subr.bf16.mxu0 %v21578_v23  ;;  %v3058_v4 = vpack.c.bf16 %v3023_v2, %v3022_v1 }
 0x214   : > { %v21751_v1 = vpop.permute.xlu0 %3434  ;;  %v21753_v2 = vpop.permute.xlu1 %3444 }
 0x217   : > { %17948 = vmatmul.mubr.msk.bf16.gmra.mrb[4].mxu0 %vm596_vm1, %v2735_v11  ;;  %v3028_v11 = vld [vmem:[%s21084_s30 + $0x67] sm:$0xff] }
 0x218   : > { %17951 = vmatprep.mubr.msk.bf16.mxu0 %vm596_vm1, %v2736_v13  ;;  %v3030_v13 = vld [vmem:[%s21084_s30 + $0x77] sm:$0xff]  ;;  %v3061_v15 = vpack.c.bf16 %v3029_v12, %v3028_v11  ;;  %v21774_v11 = vld [vmem:[%s23449_s3] ss:$0 sm:$0xff] }
 0x219   : > { %v3062_v16 = vpack.c.bf16 %v3031_v14, %v3030_v13 }
 0x21f   : > { %17952 = vmatmul.mubr.msk.bf16.gmra.mrb[8].mxu0 %vm596_vm1, %v2737_v21  ;;  %v3063_v21 = vpack.c.bf16 %v3033_v18, %v3032_v17 }
 0x220   : > { %17955 = vmatprep.mubr.msk.bf16.mxu0 %vm596_vm1, %v2738_v24  ;;  %v3037_v24 = vld [vmem:[%s21084_s30 + $0xaf] sm:$0xff] }
 0x227   : > { %17956 = vmatmul.mubr.msk.bf16.gmra.mrb[12].mxu0 %vm596_vm1, %v2739_v32  ;;  %v3043_v32 = vld [vmem:[%s21084_s30 + $0xdf] sm:$0xff] }
 0x228   : > { %17959 = vmatprep.mubr.msk.bf16.mxu0 %vm596_vm1, %v2740_v34  ;;  %v3068_v34 = vpack.c.bf16 %v3043_v32, %v3042_v31 }
 0x22f   : > { %17960 = vmatmul.mubr.msk.bf16.gmra.mrb[16].mxu0 %vm596_vm1, %v2741_v42  ;;  %v3049_v42 = vld [vmem:[%s21084_s30 + $0x10f] sm:$0xff] }
 0x230   : > { %17963 = vmatprep.mubr.msk.bf16.mxu0 %vm596_vm1, %v2742_v44  ;;  %v3051_v44 = vld [vmem:[%s21084_s30 + $0x11f] sm:$0xff]  ;;  %v3071_v45 = vpack.c.bf16 %v3049_v42, %v3048_v41 }
 0x231   : > { %v3072_v46 = vpack.c.bf16 %v3051_v44, %v3050_v43 }
 0x237   : > { %17964 = vmatmul.mubr.msk.bf16.gmra.mrb[20].mxu0 %vm596_vm1, %v2743_v49  ;;  %v3054_v49 = vld [vmem:[%s21084_s30 + $0x137] sm:$0xff] }
 0x238   : > { %17967 = vmatprep.mubr.msk.bf16.mxu0 %vm596_vm1, %v2744_v50  ;;  %v3055_v50 = vld [vmem:[%s21084_s30 + $0x13f] sm:$0xff] }
 0x239   : > { %v3074_v52 = vpack.c.bf16 %v3055_v50, %v3054_v49 }
 0x23f   : > { %17968 = vmatmul.mubr.msk.bf16.gmra.mrb[24].mxu0 %vm596_vm1, %v2745_v55  ;;  %v3075_v55 = vpack.c.bf16 %v3057_v54, %v3056_v53 }
 0x240   : > { %17971 = vmatprep.mubr.msk.bf16.mxu0 %vm596_vm1, %v2746_v56  ;;  %v23459_v56 = vmov 0.0  }
 0x241   : > { %454 = vst.msk [vmem:[#allocation2 + $0x10] sm:$0xff] %vm451_vm2, %v23459_v56  ;;  %455 = vst.msk [vmem:[#allocation2 + $0x18] sm:$0xff] %vm451_vm2, %v23459_v56 }
 0x242   : > { %457 = vst.msk [vmem:[#allocation2 + $0x20] sm:$0xf] %vm456_vm3, %v23459_v56  ;;  %467 = vst.msk [vmem:[#allocation3 + $0x20] sm:$0xf] %vm456_vm3, %v23459_v56 }
 0x243   : > { %458 = vst.msk [vmem:[#allocation2 + $0x144] sm:$0xff] %vm451_vm2, %v23459_v56  ;;  %459 = vst.msk [vmem:[#allocation2 + $0x14c] sm:$0xff] %vm451_vm2, %v23459_v56 }
 0x244   : > { %460 = vst.msk [vmem:[#allocation2 + $0x154] sm:$0xff] %vm451_vm2, %v23459_v56  ;;  %465 = vst.msk [vmem:[#allocation3 + $0x10] sm:$0xff] %vm451_vm2, %v23459_v56 }
 0x245   : > { %466 = vst.msk [vmem:[#allocation3 + $0x18] sm:$0xff] %vm451_vm2, %v23459_v56  ;;  %468 = vst.msk [vmem:[#allocation3 + $0x144] sm:$0xff] %vm451_vm2, %v23459_v56 }
 0x246   : > { %469 = vst.msk [vmem:[#allocation3 + $0x14c] sm:$0xff] %vm451_vm2, %v23459_v56  ;;  %470 = vst.msk [vmem:[#allocation3 + $0x154] sm:$0xff] %vm451_vm2, %v23459_v56 }
 0x247   : > { %17972 = vmatmul.mubr.msk.bf16.gmra.mrb[28].mxu0 %vm596_vm1, %v2747_v61  ;;  %476 = vst.msk [vmem:[#allocation4 + $0x10] sm:$0xff] %vm473_vm4, %v23459_v56  ;;  %477 = vst.msk [vmem:[#allocation4 + $0x18] sm:$0xff] %vm473_vm4, %v23459_v56  ;;  %v21737_v61 = vld [vmem:[%s23450_s4 + $0x20] sm:$0xff]  }
 0x248   : > { %17975 = vmatprep.mubr.msk.bf16.mxu0 %vm596_vm1, %v2748_v62  ;;  %v3735_v57 = vld [vmem:[#allocation2 + $0x12] sm:$0xff]  ;;  %480 = vst.msk [vmem:[#allocation4 + $0x144] sm:$0xff] %vm473_vm4, %v23459_v56  ;;  %481 = vst.msk [vmem:[#allocation4 + $0x14c] sm:$0xff] %vm473_vm4, %v23459_v56  ;;  %19403 = vmatprep.subr.bf16.mxu1 %v21737_v61  ;;  %v21744_v62 = vld [vmem:[%s23450_s4 + $0x28] sm:$0xff]  }
 0x249   : > { %v3736_v58 = vld [vmem:[#allocation2 + $0x1a] sm:$0xff]  ;;  %482 = vst.msk [vmem:[#allocation4 + $0x154] sm:$0xff] %vm473_vm4, %v23459_v56  ;;  %19404 = vmatpush3.bf16.msra.mxu1 %v21737_v61 }
 0x24a   : > { %v3771_v59 = vpack.c.bf16 %v3736_v58, %v3735_v57  ;;  %18207 = vmatprep.subr.bf16.mxu1 %v21744_v62 }
 0x24f   : > { %17976 = vmatmul.mubr.msk.bf16.gmra.mrb[32].mxu0 %vm596_vm1, %v2749_v3  ;;  %v21755_v3 = vpop.permute.xlu0 %3449 }
 0x250   : > { %17981 = vmatprep.mubr.msk.bf16.mxu0 %vm596_vm1, %v3058_v4  ;;  %v21757_v4 = vpop.permute.xlu1 %3454 }
 0x251   : > { %23480 = vst [vmem:[#allocation5_spill] sm:$0xff] %v21757_v4 }
 0x253   : > { %v21759_v5 = vpop.permute.xlu0 %3459 }
 0x254   : > { %v21761_v6 = vpop.permute.xlu1 %3464 }
 0x255   : > { %23481 = vst [vmem:[#allocation6_spill] sm:$0xff] %v21761_v6 }
 0x257   : > { %17982 = vmatmul.mubr.msk.bf16.vlgmr.msra.gmra.mrb[0].mxu0 %vm596_vm1, %v3059_v9  ;;  %v21763_v7 = vpop.permute.xlu0 %3469 }
 0x258   : > { %17985 = vmatprep.mubr.msk.bf16.mxu0 %vm596_vm1, %v3060_v10  ;;  %18018 = vmatpush3.bf16.msra.mxu0 %v21578_v23  ;;  %v3036_v23 = vld [vmem:[%s21084_s30 + $0xa7] sm:$0xff]  ;;  %v21765_v8 = vpop.permute.xlu1 %3474 }
 0x259   : > { %v3065_v27 = vpack.c.bf16 %v3037_v24, %v3036_v23  ;;  %18055 = vmatprep.subr.bf16.mxu0 %v21721_v60  ;;  %23482 = vst [vmem:[#allocation7_spill] sm:$0xff] %v21765_v8 }
 0x25b   : > { %v21767_v9 = vpop.permute.xlu0 %3479 }
 0x25c   : > { %v21769_v10 = vpop.permute.xlu1 %3484 }
 0x25d   : > { %23483 = vst [vmem:[#allocation8_spill] sm:$0xff] %v21769_v10 }
 0x25f   : > { %17986 = vmatmul.mubr.msk.bf16.gmra.mrb[4].mxu0 %vm596_vm1, %v3061_v15  ;;  %v21777_v15 = vpop.permute.xlu0 %3489 }
 0x260   : > { %17989 = vmatprep.mubr.msk.bf16.mxu0 %vm596_vm1, %v3062_v16 }
 0x263   : > { %v21788_v29 = vpop.permute.xlu0 %3499 }
 0x267   : > { %17990 = vmatmul.mubr.msk.bf16.gmra.mrb[8].mxu0 %vm596_vm1, %v3063_v21  ;;  %v21781_v21 = vpop.permute.xlu1 %3494  ;;  %v21801_v44 = vpop.permute.xlu0 %3509 }
 0x268   : > { %17993 = vmatprep.mubr.msk.bf16.mxu0 %vm596_vm1, %v3064_v22 }
 0x26f   : > { %17994 = vmatmul.mubr.msk.bf16.gmra.mrb[12].mxu0 %vm596_vm1, %v3065_v27 }
 0x270   : > { %17997 = vmatprep.mubr.msk.bf16.mxu0 %vm596_vm1, %v3066_v28 }
 0x277   : > { %17998 = vmatmul.mubr.msk.bf16.gmra.mrb[16].mxu0 %vm596_vm1, %v3067_v33 }
 0x278   : > { %18001 = vmatprep.mubr.msk.bf16.mxu0 %vm596_vm1, %v3068_v34  ;;  %v21794_v34 = vpop.permute.xlu1 %3504 }
 0x27c   : > { %v21806_v48 = vpop.permute.xlu1 %3514 }
 0x27f   : > { %18002 = vmatmul.mubr.msk.bf16.gmra.mrb[20].mxu0 %vm596_vm1, %v3069_v39 }
 0x280   : > { %18005 = vmatprep.mubr.msk.bf16.mxu0 %vm596_vm1, %v3070_v40 }
 0x287   : > { %18006 = vmatmul.mubr.msk.bf16.gmra.mrb[24].mxu0 %vm596_vm1, %v3071_v45 }
 0x288   : > { %18009 = vmatprep.mubr.msk.bf16.mxu0 %vm596_vm1, %v3072_v46 }
 0x28f   : > { %18010 = vmatmul.mubr.msk.bf16.gmra.mrb[28].mxu0 %vm596_vm1, %v3073_v51 }
 0x290   : > { %18013 = vmatprep.mubr.msk.bf16.mxu0 %vm596_vm1, %v3074_v52 }
 0x297   : > { %18014 = vmatmul.mubr.msk.bf16.gmra.mrb[32].mxu0 %vm596_vm1, %v3075_v55 }
 0x298   : > { %18019 = vmatprep.mubr.msk.bf16.mxu0 %vm451_vm2, %v3771_v59 }
 0x32a   : > { %v17983_v12 = vpop.f32.mrb[0].mxu0 }
 0x32b   : > { %v3357_v13 = vadd.f32 %v17983_v12, %v21774_v11  ;;  %v3169_v14 = vpop.f32.mrb[1].mxu0 }
 0x32c   : > { %v3355_v16 = vadd.f32 %v21774_v11, %v3169_v14  ;;  %v17984_v17 = vpop.f32.mrb[2].mxu0  ;;  %v21817_v14 = vld [vmem:[%s23450_s4 + $0x10] sm:$0xff]  }
 0x32d   : > { %v3393_v18 = vmax.f32 %v3357_v13, 0.0  ;;  %v3358_v19 = vadd.f32 %v17984_v17, %v21774_v11  ;;  %v3172_v20 = vpop.f32.mrb[3].mxu0 }
 0x32e   : > { %v3391_v22 = vmax.f32 %v3355_v16, 0.0  ;;  %v3356_v23 = vadd.f32 %v21774_v11, %v3172_v20 }
 0x32f   : > { %v3609_v24 = vmul.f32 %v21749_v0, %v3393_v18  ;;  %v3394_v25 = vmax.f32 %v3358_v19, 0.0  ;;  %v21820_v19 = vpop.permute.xlu0 %3519 }
 0x330   : > { %v3607_v26 = vmul.f32 %v21747_v63, %v3391_v22  ;;  %v3392_v27 = vmax.f32 %v3356_v23, 0.0 }
 0x331   : > { %3645 = vst.msk [vmem:[#allocation2 + $0x34] sm:$0xff] %vm451_vm2, %v3609_v24  ;;  %v3610_v28 = vmul.f32 %v21753_v2, %v3394_v25  ;;  %v21827_v25 = vpop.permute.xlu1 %3524 }
 0x332   : > { %3643 = vst.msk [vmem:[#allocation2 + $0x24] sm:$0xff] %vm451_vm2, %v3607_v26  ;;  %v3608_v30 = vmul.f32 %v21751_v1, %v3392_v27  ;;  %v17987_v31 = vpop.f32.mrb[4].mxu0 }
 0x333   : > { %3646 = vst.msk [vmem:[#allocation2 + $0x3c] sm:$0xff] %vm451_vm2, %v3610_v28  ;;  %v3361_v32 = vadd.f32 %v17987_v31, %v21774_v11  ;;  %v3185_v33 = vpop.f32.mrb[5].mxu0 }
 0x334   : > { %3644 = vst.msk [vmem:[#allocation2 + $0x2c] sm:$0xff] %vm451_vm2, %v3608_v30  ;;  %v3359_v35 = vadd.f32 %v21774_v11, %v3185_v33  ;;  %v17988_v36 = vpop.f32.mrb[6].mxu0 }
 0x335   : > { %v3397_v37 = vmax.f32 %v3361_v32, 0.0  ;;  %v3362_v38 = vadd.f32 %v17988_v36, %v21774_v11  ;;  %v3188_v39 = vpop.f32.mrb[7].mxu0 }
 0x336   : > { %v3395_v40 = vmax.f32 %v3359_v35, 0.0  ;;  %v3360_v41 = vadd.f32 %v21774_v11, %v3188_v39 }
 0x337   : > { %v3613_v42 = vmul.f32 %v21759_v5, %v3397_v37  ;;  %v3398_v43 = vmax.f32 %v3362_v38, 0.0  ;;  %v21837_v38 = vpop.permute.xlu0 %3529 }
 0x338   : > { %v3611_v45 = vmul.f32 %v21755_v3, %v3395_v40  ;;  %v3396_v46 = vmax.f32 %v3360_v41, 0.0 }
 0x339   : > { %3649 = vst.msk [vmem:[#allocation2 + $0x54] sm:$0xff] %vm451_vm2, %v3613_v42  ;;  %v3614_v47 = vmul.f32 %v21761_v6, %v3398_v43  ;;  %v3737_v54 = vld [vmem:[#allocation2 + $0x22] sm:$0xff] }
 0x33a   : > { %3647 = vst.msk [vmem:[#allocation2 + $0x44] sm:$0xff] %vm451_vm2, %v3611_v45  ;;  %v3612_v49 = vmul.f32 %v21757_v4, %v3396_v46  ;;  %v17991_v50 = vpop.f32.mrb[8].mxu0  ;;  %v3740_v51 = vld [vmem:[#allocation2 + $0x3a] sm:$0xff] }
 0x33b   : > { %3650 = vst.msk [vmem:[#allocation2 + $0x5c] sm:$0xff] %vm451_vm2, %v3614_v47  ;;  %v3365_v52 = vadd.f32 %v17991_v50, %v21774_v11  ;;  %v3201_v53 = vpop.f32.mrb[9].mxu0  ;;  %v3738_v55 = vld [vmem:[#allocation2 + $0x2a] sm:$0xff]  ;;  %v3739_v57 = vld [vmem:[#allocation2 + $0x32] sm:$0xff]  ;;  %v21842_v47 = vpop.permute.xlu1 %3534 }
 0x33c   : > { %3648 = vst.msk [vmem:[#allocation2 + $0x4c] sm:$0xff] %vm451_vm2, %v3612_v49  ;;  %v3363_v58 = vadd.f32 %v21774_v11, %v3201_v53  ;;  %v17992_v59 = vpop.f32.mrb[10].mxu0  ;;  %v3772_v12 = vpack.c.bf16 %v3738_v55, %v3737_v54  ;;  %v3773_v13 = vpack.c.bf16 %v3740_v51, %v3739_v57  ;;  %v21851_v57 = vpop.permute.xlu0 %3539 }
 0x33d   : > { %v3401_v16 = vmax.f32 %v3365_v52, 0.0  ;;  %v3366_v17 = vadd.f32 %v17992_v59, %v21774_v11  ;;  %v3204_v18 = vpop.f32.mrb[11].mxu0 }
 0x33e   : > { %v3399_v20 = vmax.f32 %v3363_v58, 0.0  ;;  %v3364_v22 = vadd.f32 %v21774_v11, %v3204_v18  ;;  %18020 = vmatmul.mubr.msk.bf16.vlgmr.msra.gmra.mrb[36].mxu0 %vm451_vm2, %v3772_v12 }
 0x33f   : > { %v3617_v23 = vmul.f32 %v21767_v9, %v3401_v16  ;;  %v3402_v24 = vmax.f32 %v3366_v17, 0.0  ;;  %18023 = vmatprep.mubr.msk.bf16.mxu0 %vm451_vm2, %v3773_v13  ;;  %18056 = vmatpush3.bf16.msra.mxu0 %v21721_v60 }
 0x340   : > { %v3615_v26 = vmul.f32 %v21763_v7, %v3399_v20  ;;  %v3400_v27 = vmax.f32 %v3364_v22, 0.0  ;;  %18093 = vmatprep.subr.bf16.mxu0 %v21817_v14  ;;  %v21857_v22 = vpop.permute.xlu1 %3544 }
 0x341   : > { %3653 = vst.msk [vmem:[#allocation2 + $0x74] sm:$0xff] %vm451_vm2, %v3617_v23  ;;  %v3618_v28 = vmul.f32 %v21769_v10, %v3402_v24  ;;  %v3741_v35 = vld [vmem:[#allocation2 + $0x42] sm:$0xff] }
 0x342   : > { %3651 = vst.msk [vmem:[#allocation2 + $0x64] sm:$0xff] %vm451_vm2, %v3615_v26  ;;  %v3616_v30 = vmul.f32 %v21765_v8, %v3400_v27  ;;  %v17995_v31 = vpop.f32.mrb[12].mxu0  ;;  %v3744_v32 = vld [vmem:[#allocation2 + $0x5a] sm:$0xff] }
 0x343   : > { %3654 = vst.msk [vmem:[#allocation2 + $0x7c] sm:$0xff] %vm451_vm2, %v3618_v28  ;;  %v3369_v60 = vadd.f32 %v17995_v31, %v21774_v11  ;;  %v3217_v33 = vpop.f32.mrb[13].mxu0  ;;  %v3742_v36 = vld [vmem:[#allocation2 + $0x4a] sm:$0xff]  ;;  %v3743_v37 = vld [vmem:[#allocation2 + $0x52] sm:$0xff] }
 0x344   : > { %3652 = vst.msk [vmem:[#allocation2 + $0x6c] sm:$0xff] %vm451_vm2, %v3616_v30  ;;  %v3367_v39 = vadd.f32 %v21774_v11, %v3217_v33  ;;  %v17996_v40 = vpop.f32.mrb[14].mxu0  ;;  %v3774_v41 = vpack.c.bf16 %v3742_v36, %v3741_v35  ;;  %v3775_v42 = vpack.c.bf16 %v3744_v32, %v3743_v37  ;;  %v21866_v36 = vpop.permute.xlu0 %3549 }
 0x345   : > { %v3405_v43 = vmax.f32 %v3369_v60, 0.0  ;;  %v3370_v45 = vadd.f32 %v17996_v40, %v21774_v11  ;;  %v3220_v46 = vpop.f32.mrb[15].mxu0 }
 0x346   : > { %v3403_v49 = vmax.f32 %v3367_v39, 0.0  ;;  %v3368_v50 = vadd.f32 %v21774_v11, %v3220_v46  ;;  %18024 = vmatmul.mubr.msk.bf16.gmra.mrb[40].mxu0 %vm451_vm2, %v3774_v41  ;;  %v21871_v41 = vpop.permute.xlu1 %3554 }
 0x347   : > { %v3621_v51 = vmul.f32 %v21788_v29, %v3405_v43  ;;  %v3406_v52 = vmax.f32 %v3370_v45, 0.0  ;;  %18027 = vmatprep.mubr.msk.bf16.mxu0 %vm451_vm2, %v3775_v42 }
 0x348   : > { %v3619_v53 = vmul.f32 %v21777_v15, %v3403_v49  ;;  %v3404_v54 = vmax.f32 %v3368_v50, 0.0 }
 0x349   : > { %3657 = vst.msk [vmem:[#allocation2 + $0x94] sm:$0xff] %vm451_vm2, %v3621_v51  ;;  %v3622_v55 = vmul.f32 %v21794_v34, %v3406_v52  ;;  %v3745_v17 = vld [vmem:[#allocation2 + $0x62] sm:$0xff] }
 0x34a   : > { %3655 = vst.msk [vmem:[#allocation2 + $0x84] sm:$0xff] %vm451_vm2, %v3619_v53  ;;  %v3620_v58 = vmul.f32 %v21781_v21, %v3404_v54  ;;  %v17999_v59 = vpop.f32.mrb[16].mxu0  ;;  %v3748_v12 = vld [vmem:[#allocation2 + $0x7a] sm:$0xff] }
 0x34b   : > { %3658 = vst.msk [vmem:[#allocation2 + $0x9c] sm:$0xff] %vm451_vm2, %v3622_v55  ;;  %v3373_v13 = vadd.f32 %v17999_v59, %v21774_v11  ;;  %v3233_v16 = vpop.f32.mrb[17].mxu0  ;;  %v3746_v18 = vld [vmem:[#allocation2 + $0x6a] sm:$0xff]  ;;  %v3747_v20 = vld [vmem:[#allocation2 + $0x72] sm:$0xff] }
 0x34c   : > { %3656 = vst.msk [vmem:[#allocation2 + $0x8c] sm:$0xff] %vm451_vm2, %v3620_v58  ;;  %v3371_v23 = vadd.f32 %v21774_v11, %v3233_v16  ;;  %v18000_v24 = vpop.f32.mrb[18].mxu0  ;;  %v3776_v26 = vpack.c.bf16 %v3746_v18, %v3745_v17  ;;  %v3777_v27 = vpack.c.bf16 %v3748_v12, %v3747_v20  ;;  %v21880_v16 = vpop.permute.xlu0 %3559 }
 0x34d   : > { %v3409_v28 = vmax.f32 %v3373_v13, 0.0  ;;  %v3374_v30 = vadd.f32 %v18000_v24, %v21774_v11  ;;  %v3236_v31 = vpop.f32.mrb[19].mxu0  ;;  %v21886_v24 = vpop.permute.xlu1 %3564 }
 0x34e   : > { %v3407_v32 = vmax.f32 %v3371_v23, 0.0  ;;  %v3372_v60 = vadd.f32 %v21774_v11, %v3236_v31  ;;  %18028 = vmatmul.mubr.msk.bf16.gmra.mrb[44].mxu0 %vm451_vm2, %v3776_v26 }
 0x34f   : > { %v3625_v33 = vmul.f32 %v21820_v19, %v3409_v28  ;;  %v3410_v35 = vmax.f32 %v3374_v30, 0.0  ;;  %18031 = vmatprep.mubr.msk.bf16.mxu0 %vm451_vm2, %v3777_v27 }
 0x350   : > { %v3623_v37 = vmul.f32 %v21801_v44, %v3407_v32  ;;  %v3408_v39 = vmax.f32 %v3372_v60, 0.0 }
 0x351   : > { %3661 = vst.msk [vmem:[#allocation2 + $0xb4] sm:$0xff] %vm451_vm2, %v3625_v33  ;;  %v3626_v40 = vmul.f32 %v21827_v25, %v3410_v35  ;;  %v3749_v50 = vld [vmem:[#allocation2 + $0x82] sm:$0xff] }
 0x352   : > { %3659 = vst.msk [vmem:[#allocation2 + $0xa4] sm:$0xff] %vm451_vm2, %v3623_v37  ;;  %v3624_v42 = vmul.f32 %v21806_v48, %v3408_v39  ;;  %v18003_v43 = vpop.f32.mrb[20].mxu0  ;;  %v3752_v45 = vld [vmem:[#allocation2 + $0x9a] sm:$0xff] }
 0x353   : > { %3662 = vst.msk [vmem:[#allocation2 + $0xbc] sm:$0xff] %vm451_vm2, %v3626_v40  ;;  %v3377_v46 = vadd.f32 %v18003_v43, %v21774_v11  ;;  %v3249_v49 = vpop.f32.mrb[21].mxu0  ;;  %v3750_v51 = vld [vmem:[#allocation2 + $0x8a] sm:$0xff]  ;;  %v3751_v52 = vld [vmem:[#allocation2 + $0x92] sm:$0xff] }
 0x354   : > { %3660 = vst.msk [vmem:[#allocation2 + $0xac] sm:$0xff] %vm451_vm2, %v3624_v42  ;;  %v3375_v53 = vadd.f32 %v21774_v11, %v3249_v49  ;;  %v18004_v54 = vpop.f32.mrb[22].mxu0  ;;  %v3778_v55 = vpack.c.bf16 %v3750_v51, %v3749_v50  ;;  %v3779_v58 = vpack.c.bf16 %v3752_v45, %v3751_v52  ;;  %v21895_v45 = vpop.permute.xlu0 %3569 }
 0x355   : > { %v3413_v59 = vmax.f32 %v3377_v46, 0.0  ;;  %v3378_v12 = vadd.f32 %v18004_v54, %v21774_v11  ;;  %v3252_v13 = vpop.f32.mrb[23].mxu0  ;;  %23484 = vst [vmem:[#allocation9_spill] sm:$0xff] %v21895_v45 }
 0x356   : > { %v3411_v17 = vmax.f32 %v3375_v53, 0.0  ;;  %v3376_v18 = vadd.f32 %v21774_v11, %v3252_v13  ;;  %18032 = vmatmul.mubr.msk.bf16.gmra.mrb[48].mxu0 %vm451_vm2, %v3778_v55  ;;  %v21905_v13 = vpop.permute.xlu1 %3574 }
 0x357   : > { %v3629_v20 = vmul.f32 %v21851_v57, %v3413_v59  ;;  %v3414_v23 = vmax.f32 %v3378_v12, 0.0  ;;  %18035 = vmatprep.mubr.msk.bf16.mxu0 %vm451_vm2, %v3779_v58  ;;  %v21903_v12 = vld [vmem:[%s23450_s4 + $0x30] sm:$0xff]   ;;  %23485 = vst [vmem:[#allocation10_spill] sm:$0xff] %v21905_v13 }
 0x358   : > { %v3627_v26 = vmul.f32 %v21837_v38, %v3411_v17  ;;  %v3412_v27 = vmax.f32 %v3376_v18, 0.0  ;;  %v4944_v53 = vld [vmem:[#allocation2 + $0xb4] sm:$0xff] }
 0x359   : > { %3665 = vst.msk [vmem:[#allocation2 + $0xd4] sm:$0xff] %vm451_vm2, %v3629_v20  ;;  %v3630_v28 = vmul.f32 %v21857_v22, %v3414_v23  ;;  %v3753_v30 = vld [vmem:[#allocation2 + $0xa2] sm:$0xff] }
 0x35a   : > { %3663 = vst.msk [vmem:[#allocation2 + $0xc4] sm:$0xff] %vm451_vm2, %v3627_v26  ;;  %v3628_v31 = vmul.f32 %v21842_v47, %v3412_v27  ;;  %v18007_v32 = vpop.f32.mrb[24].mxu0  ;;  %v4942_v60 = vld [vmem:[#allocation2 + $0xa4] sm:$0xff]  ;;  %v3756_v33 = vld [vmem:[#allocation2 + $0xba] sm:$0xff] }
 0x35b   : > { %v4945_v35 = vld [vmem:[#allocation2 + $0xbc] sm:$0xff]  ;;  %3666 = vst.msk [vmem:[#allocation2 + $0xdc] sm:$0xff] %vm451_vm2, %v3630_v28  ;;  %v3381_v37 = vadd.f32 %v18007_v32, %v21774_v11  ;;  %v3265_v39 = vpop.f32.mrb[25].mxu0  ;;  %v3754_v40 = vld [vmem:[#allocation2 + $0xaa] sm:$0xff]  ;;  %v3755_v43 = vld [vmem:[#allocation2 + $0xb2] sm:$0xff] }
 0x35c   : > { %v4943_v42 = vld [vmem:[#allocation2 + $0xac] sm:$0xff]  ;;  %3664 = vst.msk [vmem:[#allocation2 + $0xcc] sm:$0xff] %vm451_vm2, %v3628_v31  ;;  %v3379_v46 = vadd.f32 %v21774_v11, %v3265_v39  ;;  %v18008_v49 = vpop.f32.mrb[26].mxu0  ;;  %v3780_v50 = vpack.c.bf16 %v3754_v40, %v3753_v30  ;;  %v3781_v52 = vpack.c.bf16 %v3756_v33, %v3755_v43  ;;  %v4971_v59 = vpack.c.bf16 %v4945_v35, %v4944_v53  ;;  %v21918_v31 = vpop.permute.xlu0 %3579 }
 0x35d   : > { %v4970_v51 = vpack.c.bf16 %v4943_v42, %v4942_v60  ;;  %v3417_v54 = vmax.f32 %v3381_v37, 0.0  ;;  %v3382_v55 = vadd.f32 %v18008_v49, %v21774_v11  ;;  %v3268_v58 = vpop.f32.mrb[27].mxu0  ;;  %23486 = vst [vmem:[#allocation11_spill] sm:$0xff] %v21918_v31 }
 0x35e   : > { %v3415_v17 = vmax.f32 %v3379_v46, 0.0  ;;  %v3380_v18 = vadd.f32 %v21774_v11, %v3268_v58  ;;  %18036 = vmatmul.mubr.msk.bf16.gmra.mrb[52].mxu0 %vm451_vm2, %v3780_v50  ;;  %v21924_v46 = vpop.permute.xlu1 %3584 }
 0x35f   : > { %18187 = vmatprep.mubr.msk.bf16.mxu1 %vm451_vm2, %v4970_v51  ;;  %v3633_v20 = vmul.f32 %v21880_v16, %v3417_v54  ;;  %v3418_v23 = vmax.f32 %v3382_v55, 0.0  ;;  %18039 = vmatprep.mubr.msk.bf16.mxu0 %vm451_vm2, %v3781_v52  ;;  %23487 = vst [vmem:[#allocation12_spill] sm:$0xff] %v21924_v46 }
 0x360   : > { %18188 = vmatmul.mubr.msk.bf16.vlgmr.msra.gmra.mrb[0].mxu1 %vm451_vm2, %v4971_v59  ;;  %v3631_v26 = vmul.f32 %v21866_v36, %v3415_v17  ;;  %v3416_v27 = vmax.f32 %v3380_v18, 0.0  ;;  %v4948_v54 = vld [vmem:[#allocation2 + $0xd4] sm:$0xff] }
 0x361   : > { %18208 = vmatpush3.bf16.msra.mxu1 %v21744_v62  ;;  %3669 = vst.msk [vmem:[#allocation2 + $0xf4] sm:$0xff] %vm451_vm2, %v3633_v20  ;;  %v3634_v28 = vmul.f32 %v21886_v24, %v3418_v23  ;;  %v3757_v30 = vld [vmem:[#allocation2 + $0xc2] sm:$0xff] }
 0x362   : > { %18245 = vmatprep.subr.bf16.mxu1 %v21903_v12  ;;  %3667 = vst.msk [vmem:[#allocation2 + $0xe4] sm:$0xff] %vm451_vm2, %v3631_v26  ;;  %v3632_v32 = vmul.f32 %v21871_v41, %v3416_v27  ;;  %v18011_v60 = vpop.f32.mrb[28].mxu0  ;;  %v4946_v33 = vld [vmem:[#allocation2 + $0xc4] sm:$0xff]  ;;  %v3760_v35 = vld [vmem:[#allocation2 + $0xda] sm:$0xff]  ;;  %v21935_v27 = vpop.permute.xlu0 %3589 }
 0x363   : > { %v4949_v37 = vld [vmem:[#allocation2 + $0xdc] sm:$0xff]  ;;  %3670 = vst.msk [vmem:[#allocation2 + $0xfc] sm:$0xff] %vm451_vm2, %v3634_v28  ;;  %v3385_v62 = vadd.f32 %v18011_v60, %v21774_v11  ;;  %v3281_v39 = vpop.f32.mrb[29].mxu0  ;;  %v3758_v40 = vld [vmem:[#allocation2 + $0xca] sm:$0xff]  ;;  %v3759_v43 = vld [vmem:[#allocation2 + $0xd2] sm:$0xff] }
 0x364   : > { %v4947_v42 = vld [vmem:[#allocation2 + $0xcc] sm:$0xff]  ;;  %3668 = vst.msk [vmem:[#allocation2 + $0xec] sm:$0xff] %vm451_vm2, %v3632_v32  ;;  %v3383_v49 = vadd.f32 %v21774_v11, %v3281_v39  ;;  %v18012_v50 = vpop.f32.mrb[30].mxu0  ;;  %v3782_v51 = vpack.c.bf16 %v3758_v40, %v3757_v30  ;;  %v3783_v53 = vpack.c.bf16 %v3760_v35, %v3759_v43  ;;  %v4973_v17 = vpack.c.bf16 %v4949_v37, %v4948_v54 }
 0x365   : > { %v4972_v52 = vpack.c.bf16 %v4947_v42, %v4946_v33  ;;  %v3421_v55 = vmax.f32 %v3385_v62, 0.0  ;;  %v3386_v58 = vadd.f32 %v18012_v50, %v21774_v11  ;;  %v3284_v59 = vpop.f32.mrb[31].mxu0  ;;  %23488 = vst [vmem:[#allocation13_spill] sm:$0xff] %v21935_v27  ;;  %v21940_v33 = vpop.permute.xlu1 %3594 }
 0x366   : > { %v3419_v18 = vmax.f32 %v3383_v49, 0.0  ;;  %v3384_v20 = vadd.f32 %v21774_v11, %v3284_v59  ;;  %18040 = vmatmul.mubr.msk.bf16.gmra.mrb[56].mxu0 %vm451_vm2, %v3782_v51  ;;  %23489 = vst [vmem:[#allocation14_spill] sm:$0xff] %v21940_v33 }
 0x367   : > { %18191 = vmatprep.mubr.msk.bf16.mxu1 %vm451_vm2, %v4972_v52  ;;  %v3637_v23 = vmul.f32 %v21918_v31, %v3421_v55  ;;  %v3422_v26 = vmax.f32 %v3386_v58, 0.0  ;;  %18043 = vmatprep.mubr.msk.bf16.mxu0 %vm451_vm2, %v3783_v53 }
 0x368   : > { %18192 = vmatmul.mubr.msk.bf16.gmra.mrb[4].mxu1 %vm451_vm2, %v4973_v17  ;;  %v3635_v28 = vmul.f32 %v21895_v45, %v3419_v18  ;;  %v3420_v30 = vmax.f32 %v3384_v20, 0.0  ;;  %v4952_v59 = vld [vmem:[#allocation2 + $0xf4] sm:$0xff] }
 0x369   : > { %3673 = vst.msk [vmem:[#allocation2 + $0x114] sm:$0xff] %vm451_vm2, %v3637_v23  ;;  %v3638_v32 = vmul.f32 %v21924_v46, %v3422_v26  ;;  %v3761_v60 = vld [vmem:[#allocation2 + $0xe2] sm:$0xff]  ;;  %v21949_v26 = vpop.permute.xlu0 %3599 }
 0x36a   : > { %3671 = vst.msk [vmem:[#allocation2 + $0x104] sm:$0xff] %vm451_vm2, %v3635_v28  ;;  %v3636_v35 = vmul.f32 %v21905_v13, %v3420_v30  ;;  %v18015_v37 = vpop.f32.mrb[32].mxu0  ;;  %v4950_v62 = vld [vmem:[#allocation2 + $0xe4] sm:$0xff]  ;;  %v3764_v39 = vld [vmem:[#allocation2 + $0xfa] sm:$0xff]  ;;  %23490 = vst [vmem:[#allocation15_spill] sm:$0xff] %v21949_v26 }
 0x36b   : > { %v4953_v40 = vld [vmem:[#allocation2 + $0xfc] sm:$0xff]  ;;  %3674 = vst.msk [vmem:[#allocation2 + $0x11c] sm:$0xff] %vm451_vm2, %v3638_v32  ;;  %v3389_v42 = vadd.f32 %v18015_v37, %v21774_v11  ;;  %v3297_v43 = vpop.f32.mrb[33].mxu0  ;;  %v3762_v49 = vld [vmem:[#allocation2 + $0xea] sm:$0xff]  ;;  %v3763_v51 = vld [vmem:[#allocation2 + $0xf2] sm:$0xff] }
 0x36c   : > { %v4951_v50 = vld [vmem:[#allocation2 + $0xec] sm:$0xff]  ;;  %3672 = vst.msk [vmem:[#allocation2 + $0x10c] sm:$0xff] %vm451_vm2, %v3636_v35  ;;  %v3387_v52 = vadd.f32 %v21774_v11, %v3297_v43  ;;  %v18016_v53 = vpop.f32.mrb[34].mxu0  ;;  %v3784_v54 = vpack.c.bf16 %v3762_v49, %v3761_v60  ;;  %v3785_v58 = vpack.c.bf16 %v3764_v39, %v3763_v51  ;;  %v4975_v23 = vpack.c.bf16 %v4953_v40, %v4952_v59  ;;  %v21957_v35 = vpop.permute.xlu1 %3604 }
 0x36d   : > { %v4974_v55 = vpack.c.bf16 %v4951_v50, %v4950_v62  ;;  %v3425_v17 = vmax.f32 %v3389_v42, 0.0  ;;  %v3390_v18 = vadd.f32 %v18016_v53, %v21774_v11  ;;  %v3300_v20 = vpop.f32.mrb[35].mxu0  ;;  %23491 = vst [vmem:[#allocation16_spill] sm:$0xff] %v21957_v35 }
 0x36e   : > { %v3423_v28 = vmax.f32 %v3387_v52, 0.0  ;;  %v3388_v30 = vadd.f32 %v21774_v11, %v3300_v20  ;;  %18044 = vmatmul.mubr.msk.bf16.gmra.mrb[60].mxu0 %vm451_vm2, %v3784_v54  ;;  %v5256_v20 = vld [vmem:[#allocation2 + $0x25] sm:$0xff] }
 0x36f   : > { %18195 = vmatprep.mubr.msk.bf16.mxu1 %vm451_vm2, %v4974_v55  ;;  %v3641_v32 = vmul.f32 %v21949_v26, %v3425_v17  ;;  %v3426_v60 = vmax.f32 %v3390_v18, 0.0  ;;  %18047 = vmatprep.mubr.msk.bf16.mxu0 %vm451_vm2, %v3785_v58  ;;  %v3679_v17 = vld [vmem:[#allocation2 + $0x11] sm:$0xff]  ;;  %v3680_v18 = vld [vmem:[#allocation2 + $0x19] sm:$0xff] }
 0x370   : > { %18196 = vmatmul.mubr.msk.bf16.gmra.mrb[8].mxu1 %vm451_vm2, %v4975_v23  ;;  %v3639_v37 = vmul.f32 %v21935_v27, %v3423_v28  ;;  %v3424_v62 = vmax.f32 %v3388_v30, 0.0  ;;  %v4956_v58 = vld [vmem:[#allocation2 + $0x114] sm:$0xff] }
 0x371   : > { %3677 = vst.msk [vmem:[#allocation2 + $0x134] sm:$0xff] %vm451_vm2, %v3641_v32  ;;  %v3642_v11 = vmul.f32 %v21957_v35, %v3426_v60  ;;  %v3765_v39 = vld [vmem:[#allocation2 + $0x102] sm:$0xff]  ;;  %v5257_v30 = vld [vmem:[#allocation2 + $0x2d] sm:$0xff] }
 0x372   : > { %3675 = vst.msk [vmem:[#allocation2 + $0x124] sm:$0xff] %vm451_vm2, %v3639_v37  ;;  %v3640_v40 = vmul.f32 %v21940_v33, %v3424_v62  ;;  %v4954_v42 = vld [vmem:[#allocation2 + $0x104] sm:$0xff]  ;;  %v3768_v43 = vld [vmem:[#allocation2 + $0x11a] sm:$0xff]  ;;  %v3715_v62 = vpack.c.bf16 %v3680_v18, %v3679_v17 }
 0x373   : > { %v4957_v49 = vld [vmem:[#allocation2 + $0x11c] sm:$0xff]  ;;  %3678 = vst.msk [vmem:[#allocation2 + $0x13c] sm:$0xff] %vm451_vm2, %v3642_v11  ;;  %v3766_v50 = vld [vmem:[#allocation2 + $0x10a] sm:$0xff]  ;;  %v3767_v52 = vld [vmem:[#allocation2 + $0x112] sm:$0xff] }
 0x374   : > { %v4955_v51 = vld [vmem:[#allocation2 + $0x10c] sm:$0xff]  ;;  %3676 = vst.msk [vmem:[#allocation2 + $0x12c] sm:$0xff] %vm451_vm2, %v3640_v40  ;;  %v3786_v53 = vpack.c.bf16 %v3766_v50, %v3765_v39  ;;  %v3787_v55 = vpack.c.bf16 %v3768_v43, %v3767_v52  ;;  %v4977_v59 = vpack.c.bf16 %v4957_v49, %v4956_v58  ;;  %v5292_v43 = vpack.c.bf16 %v5257_v30, %v5256_v20  ;;  %v3681_v52 = vld [vmem:[#allocation2 + $0x21] sm:$0xff]  ;;  %v5258_v18 = vld [vmem:[#allocation2 + $0x35] sm:$0xff] }
 0x375   : > { %v4976_v54 = vpack.c.bf16 %v4955_v51, %v4954_v42  ;;  %v3682_v49 = vld [vmem:[#allocation2 + $0x29] sm:$0xff]  ;;  %v3683_v50 = vld [vmem:[#allocation2 + $0x31] sm:$0xff]  ;;  %v3684_v51 = vld [vmem:[#allocation2 + $0x39] sm:$0xff] }
 0x376   : > { %18048 = vmatmul.mubr.msk.bf16.gmra.mrb[64].mxu0 %vm451_vm2, %v3786_v53  ;;  %v5259_v53 = vld [vmem:[#allocation2 + $0x3d] sm:$0xff]  ;;  %v5261_v58 = vld [vmem:[#allocation2 + $0x4d] sm:$0xff]  ;;  %v3717_v17 = vpack.c.bf16 %v3684_v51, %v3683_v50  ;;  %v5284_v56 = vld [vmem:[#allocation2 + $0x105] sm:$0xff] }
 0x377   : > { %18199 = vmatprep.mubr.msk.bf16.mxu1 %vm451_vm2, %v4976_v54  ;;  %18051 = vmatprep.mubr.msk.bf16.mxu0 %vm451_vm2, %v3787_v55  ;;  %v3716_v54 = vpack.c.bf16 %v3682_v49, %v3681_v52  ;;  %v5260_v55 = vld [vmem:[#allocation2 + $0x45] sm:$0xff]  ;;  %v21981_v20 = vpack.c.bf16 %v5259_v53, %v5258_v18  ;;  %v3691_v50 = vld [vmem:[#allocation2 + $0x71] sm:$0xff]  ;;  %v3692_v51 = vld [vmem:[#allocation2 + $0x79] sm:$0xff] }
 0x378   : > { %18200 = vmatmul.mubr.msk.bf16.gmra.mrb[12].mxu1 %vm451_vm2, %v4977_v59  ;;  %v4960_v40 = vld [vmem:[#allocation2 + $0x134] sm:$0xff]  ;;  %v3686_v30 = vld [vmem:[#allocation2 + $0x49] sm:$0xff]  ;;  %v3689_v52 = vld [vmem:[#allocation2 + $0x61] sm:$0xff] }
 0x379   : > { %v3769_v23 = vld [vmem:[#allocation2 + $0x122] sm:$0xff]  ;;  %v21978_v59 = vld [vmem:[%s23450_s4 + $0x18] sm:$0xff]  }
 0x37a   : > { %v4961_v28 = vld [vmem:[#allocation2 + $0x13c] sm:$0xff]  ;;  %v4958_v60 = vld [vmem:[#allocation2 + $0x124] sm:$0xff] }
 0x37b   : > { %v3770_v32 = vld [vmem:[#allocation2 + $0x12a] sm:$0xff]  ;;  %v4979_v42 = vpack.c.bf16 %v4961_v28, %v4960_v40  ;;  %v21990_v28 = vpack.c.bf16 %v5261_v58, %v5260_v55  ;;  %v5267_v53 = vld [vmem:[#allocation2 + $0x7d] sm:$0xff]  ;;  %v5266_v18 = vld [vmem:[#allocation2 + $0x75] sm:$0xff] }
 0x37c   : > { %v4959_v37 = vld [vmem:[#allocation2 + $0x12c] sm:$0xff]  ;;  %v3788_v11 = vpack.c.bf16 %v3770_v32, %v3769_v23  ;;  %v21986_v23 = vld [vmem:[%s23450_s4 + $0x38] sm:$0xff]   ;;  %v3709_v33 = vld [vmem:[#allocation2 + $0x101] sm:$0xff] }
 0x37d   : > { %v4978_v39 = vpack.c.bf16 %v4959_v37, %v4958_v60  ;;  %v3687_v32 = vld [vmem:[#allocation2 + $0x51] sm:$0xff]  ;;  %v3688_v60 = vld [vmem:[#allocation2 + $0x59] sm:$0xff]  ;;  %v3685_v37 = vld [vmem:[#allocation2 + $0x41] sm:$0xff] }
 0x37e   : > { %18052 = vmatmul.mubr.msk.bf16.gmra.mrb[68].mxu0 %vm451_vm2, %v3788_v11  ;;  %v5264_v11 = vld [vmem:[#allocation2 + $0x65] sm:$0xff]  ;;  %v3719_v40 = vpack.c.bf16 %v3688_v60, %v3687_v32  ;;  %v5269_v58 = vld [vmem:[#allocation2 + $0x8d] sm:$0xff]  ;;  %v4267_v27 = vld [vmem:[#allocation2 + $0x1b] sm:$0xff] }
 0x37f   : > { %18203 = vmatprep.mubr.msk.bf16.mxu1 %vm451_vm2, %v4978_v39  ;;  %18057 = vmatprep.mubr.msk.bf16.mxu0 %vm451_vm2, %v3715_v62  ;;  %v5263_v62 = vld [vmem:[#allocation2 + $0x5d] sm:$0xff]  ;;  %v5265_v39 = vld [vmem:[#allocation2 + $0x6d] sm:$0xff]  ;;  %v5268_v55 = vld [vmem:[#allocation2 + $0x85] sm:$0xff] }
 0x380   : > { %18204 = vmatmul.mubr.msk.bf16.gmra.mrb[16].mxu1 %vm451_vm2, %v4979_v42  ;;  %v5262_v42 = vld [vmem:[#allocation2 + $0x55] sm:$0xff]  ;;  %v3690_v49 = vld [vmem:[#allocation2 + $0x69] sm:$0xff]  ;;  %v22013_v32 = vpack.c.bf16 %v5269_v58, %v5268_v55  ;;  %v3697_v58 = vld [vmem:[#allocation2 + $0xa1] sm:$0xff] }
 0x381   : > { %18209 = vmatprep.mubr.msk.bf16.mxu1 %vm451_vm2, %v5292_v43  ;;  %v22000_v43 = vpack.c.bf16 %v5263_v62, %v5262_v42  ;;  %v3694_v60 = vld [vmem:[#allocation2 + $0x89] sm:$0xff]  ;;  %v3696_v62 = vld [vmem:[#allocation2 + $0x99] sm:$0xff] }
 0x382   : > { %v5273_v42 = vld [vmem:[#allocation2 + $0xad] sm:$0xff]  ;;  %v3700_v55 = vld [vmem:[#allocation2 + $0xb9] sm:$0xff]  ;;  %v5288_v35 = vld [vmem:[#allocation2 + $0x125] sm:$0xff] }
 0x386   : > { %18058 = vmatmul.mubr.msk.bf16.vlgmr.msra.gmra.mrb[36].mxu0 %vm451_vm2, %v3716_v54  ;;  %v3720_v54 = vpack.c.bf16 %v3690_v49, %v3689_v52 }
 0x387   : > { %18061 = vmatprep.mubr.msk.bf16.mxu0 %vm451_vm2, %v3717_v17  ;;  %18094 = vmatpush3.bf16.msra.mxu0 %v21817_v14  ;;  %v3718_v14 = vpack.c.bf16 %v3686_v30, %v3685_v37  ;;  %v3721_v17 = vpack.c.bf16 %v3692_v51, %v3691_v50  ;;  %v22010_v30 = vpack.c.bf16 %v5267_v53, %v5266_v18  ;;  %v3695_v37 = vld [vmem:[#allocation2 + $0x91] sm:$0xff]  ;;  %v3698_v53 = vld [vmem:[#allocation2 + $0xa9] sm:$0xff] }
 0x388   : > { %18210 = vmatmul.mubr.msk.bf16.vlgmr.msra.gmra.mrb[20].mxu1 %vm451_vm2, %v21981_v20  ;;  %18131 = vmatprep.subr.bf16.mxu0 %v21978_v59  ;;  %v3723_v49 = vpack.c.bf16 %v3696_v62, %v3695_v37  ;;  %v5270_v50 = vld [vmem:[#allocation2 + $0x95] sm:$0xff]  ;;  %v3724_v18 = vpack.c.bf16 %v3698_v53, %v3697_v58  ;;  %v5277_v37 = vld [vmem:[#allocation2 + $0xcd] sm:$0xff]  ;;  %v5279_v53 = vld [vmem:[#allocation2 + $0xdd] sm:$0xff] }
 0x389   : > { %18246 = vmatpush3.bf16.msra.mxu1 %v21903_v12  ;;  %18213 = vmatprep.mubr.msk.bf16.mxu1 %vm451_vm2, %v21990_v28  ;;  %v22003_v12 = vpack.c.bf16 %v5265_v39, %v5264_v11  ;;  %v5271_v11 = vld [vmem:[#allocation2 + $0x9d] sm:$0xff]  ;;  %v5281_v58 = vld [vmem:[#allocation2 + $0xed] sm:$0xff] }
 0x38a   : > { %18283 = vmatprep.subr.bf16.mxu1 %v21986_v23  ;;  %v22020_v51 = vpack.c.bf16 %v5271_v11, %v5270_v50  ;;  %v3701_v50 = vld [vmem:[#allocation2 + $0xc1] sm:$0xff] }
 0x38e   : > { %18062 = vmatmul.mubr.msk.bf16.gmra.mrb[40].mxu0 %vm451_vm2, %v3718_v14  ;;  %v3693_v14 = vld [vmem:[#allocation2 + $0x81] sm:$0xff] }
 0x38f   : > { %18065 = vmatprep.mubr.msk.bf16.mxu0 %vm451_vm2, %v3719_v40  ;;  %v3722_v39 = vpack.c.bf16 %v3694_v60, %v3693_v14  ;;  %v5272_v40 = vld [vmem:[#allocation2 + $0xa5] sm:$0xff]  ;;  %v5274_v14 = vld [vmem:[#allocation2 + $0xb5] sm:$0xff] }
 0x390   : > { %18214 = vmatmul.mubr.msk.bf16.gmra.mrb[24].mxu1 %vm451_vm2, %v22000_v43  ;;  %v22023_v52 = vpack.c.bf16 %v5273_v42, %v5272_v40  ;;  %v5276_v60 = vld [vmem:[#allocation2 + $0xc5] sm:$0xff]  ;;  %v3703_v42 = vld [vmem:[#allocation2 + $0xd1] sm:$0xff] }
 0x391   : > { %18217 = vmatprep.mubr.msk.bf16.mxu1 %vm451_vm2, %v22003_v12  ;;  %v3702_v40 = vld [vmem:[#allocation2 + $0xc9] sm:$0xff] }
 0x396   : > { %18066 = vmatmul.mubr.msk.bf16.gmra.mrb[44].mxu0 %vm451_vm2, %v3720_v54  ;;  %v3699_v54 = vld [vmem:[#allocation2 + $0xb1] sm:$0xff] }
 0x397   : > { %18069 = vmatprep.mubr.msk.bf16.mxu0 %vm451_vm2, %v3721_v17  ;;  %v5275_v17 = vld [vmem:[#allocation2 + $0xbd] sm:$0xff]  ;;  %v3725_v62 = vpack.c.bf16 %v3700_v55, %v3699_v54  ;;  %v3726_v54 = vpack.c.bf16 %v3702_v40, %v3701_v50  ;;  %v5280_v55 = vld [vmem:[#allocation2 + $0xe5] sm:$0xff] }
 0x398   : > { %18218 = vmatmul.mubr.msk.bf16.gmra.mrb[28].mxu1 %vm451_vm2, %v22010_v30  ;;  %v22030_v11 = vpack.c.bf16 %v5275_v17, %v5274_v14  ;;  %v3707_v14 = vld [vmem:[#allocation2 + $0xf1] sm:$0xff]  ;;  %v3708_v40 = vld [vmem:[#allocation2 + $0xf9] sm:$0xff]  ;;  %v3705_v50 = vld [vmem:[#allocation2 + $0xe1] sm:$0xff] }
 0x399   : > { %18221 = vmatprep.mubr.msk.bf16.mxu1 %vm451_vm2, %v22013_v32 }
 0x39e   : > { %18070 = vmatmul.mubr.msk.bf16.gmra.mrb[48].mxu0 %vm451_vm2, %v3722_v39  ;;  %v22033_v39 = vpack.c.bf16 %v5277_v37, %v5276_v60  ;;  %v22043_v37 = vpack.c.bf16 %v5281_v58, %v5280_v55 }
 0x39f   : > { %18073 = vmatprep.mubr.msk.bf16.mxu0 %vm451_vm2, %v3723_v49  ;;  %v3704_v49 = vld [vmem:[#allocation2 + $0xd9] sm:$0xff] }
 0x3a0   : > { %18222 = vmatmul.mubr.msk.bf16.gmra.mrb[32].mxu1 %vm451_vm2, %v22020_v51  ;;  %v3727_v17 = vpack.c.bf16 %v3704_v49, %v3703_v42  ;;  %v5283_v42 = vld [vmem:[#allocation2 + $0xfd] sm:$0xff] }
 0x3a1   : > { %18225 = vmatprep.mubr.msk.bf16.mxu1 %vm451_vm2, %v22023_v52 }
 0x3a6   : > { %18074 = vmatmul.mubr.msk.bf16.gmra.mrb[52].mxu0 %vm451_vm2, %v3724_v18  ;;  %v5278_v18 = vld [vmem:[#allocation2 + $0xd5] sm:$0xff] }
 0x3a7   : > { %18077 = vmatprep.mubr.msk.bf16.mxu0 %vm451_vm2, %v3725_v62  ;;  %v22040_v60 = vpack.c.bf16 %v5279_v53, %v5278_v18  ;;  %v3706_v62 = vld [vmem:[#allocation2 + $0xe9] sm:$0xff]  ;;  %v3729_v53 = vpack.c.bf16 %v3708_v40, %v3707_v14  ;;  %v5282_v18 = vld [vmem:[#allocation2 + $0xf5] sm:$0xff]  ;;  %v5287_v14 = vld [vmem:[#allocation2 + $0x11d] sm:$0xff] }
 0x3a8   : > { %18226 = vmatmul.mubr.msk.bf16.gmra.mrb[0].mxu1 %vm451_vm2, %v22030_v11  ;;  %v3728_v49 = vpack.c.bf16 %v3706_v62, %v3705_v50  ;;  %v22050_v55 = vpack.c.bf16 %v5283_v42, %v5282_v18  ;;  %v3711_v62 = vld [vmem:[#allocation2 + $0x111] sm:$0xff]  ;;  %v3712_v50 = vld [vmem:[#allocation2 + $0x119] sm:$0xff] }
 0x3a9   : > { %18229 = vmatprep.mubr.msk.bf16.mxu1 %vm451_vm2, %v22033_v39  ;;  %v3731_v42 = vpack.c.bf16 %v3712_v50, %v3711_v62  ;;  %v5286_v18 = vld [vmem:[#allocation2 + $0x115] sm:$0xff]  ;;  %v5291_v50 = vld [vmem:[#allocation2 + $0x13d] sm:$0xff] }
 0x3aa   : > { %v5290_v62 = vld [vmem:[#allocation2 + $0x135] sm:$0xff] }
 0x3ae   : > { %18078 = vmatmul.mubr.msk.bf16.gmra.mrb[56].mxu0 %vm451_vm2, %v3726_v54  ;;  %v5285_v54 = vld [vmem:[#allocation2 + $0x10d] sm:$0xff] }
 0x3af   : > { %18081 = vmatprep.mubr.msk.bf16.mxu0 %vm451_vm2, %v3727_v17  ;;  %v22053_v58 = vpack.c.bf16 %v5285_v54, %v5284_v56  ;;  %v3710_v17 = vld [vmem:[#allocation2 + $0x109] sm:$0xff]  ;;  %v22060_v56 = vpack.c.bf16 %v5287_v14, %v5286_v18  ;;  %v22070_v14 = vpack.c.bf16 %v5291_v50, %v5290_v62 }
 0x3b0   : > { %18230 = vmatmul.mubr.msk.bf16.gmra.mrb[4].mxu1 %vm451_vm2, %v22040_v60  ;;  %v3730_v40 = vpack.c.bf16 %v3710_v17, %v3709_v33  ;;  %v3714_v33 = vld [vmem:[#allocation2 + $0x129] sm:$0xff]  ;;  %v3713_v17 = vld [vmem:[#allocation2 + $0x121] sm:$0xff] }
 0x3b1   : > { %18233 = vmatprep.mubr.msk.bf16.mxu1 %vm451_vm2, %v22043_v37  ;;  %v4268_v18 = vld [vmem:[#allocation2 + $0x23] sm:$0xff] }
 0x3b6   : > { %18082 = vmatmul.mubr.msk.bf16.gmra.mrb[60].mxu0 %vm451_vm2, %v3728_v49  ;;  %v5289_v49 = vld [vmem:[#allocation2 + $0x12d] sm:$0xff] }
 0x3b7   : > { %18085 = vmatprep.mubr.msk.bf16.mxu0 %vm451_vm2, %v3729_v53  ;;  %v22063_v54 = vpack.c.bf16 %v5289_v49, %v5288_v35  ;;  %v4266_v53 = vld [vmem:[#allocation2 + $0x13] sm:$0xff]  ;;  %v4269_v35 = vld [vmem:[#allocation2 + $0x2b] sm:$0xff] }
 0x3b8   : > { %18234 = vmatmul.mubr.msk.bf16.gmra.mrb[8].mxu1 %vm451_vm2, %v22050_v55  ;;  %v4302_v26 = vpack.c.bf16 %v4267_v27, %v4266_v53  ;;  %v4270_v49 = vld [vmem:[#allocation2 + $0x33] sm:$0xff]  ;;  %v22077_v13 = vpack.c.bf16 %v4269_v35, %v4268_v18  ;;  %v4283_v35 = vld [vmem:[#allocation2 + $0x9b] sm:$0xff] }
 0x3b9   : > { %18237 = vmatprep.mubr.msk.bf16.mxu1 %vm451_vm2, %v22053_v58  ;;  %v4274_v53 = vld [vmem:[#allocation2 + $0x53] sm:$0xff] }
 0x3be   : > { %18086 = vmatmul.mubr.msk.bf16.gmra.mrb[64].mxu0 %vm451_vm2, %v3730_v40  ;;  %v3732_v40 = vpack.c.bf16 %v3714_v33, %v3713_v17  ;;  %v4275_v33 = vld [vmem:[#allocation2 + $0x5b] sm:$0xff]  ;;  %v4272_v17 = vld [vmem:[#allocation2 + $0x43] sm:$0xff] }
 0x3bf   : > { %18089 = vmatprep.mubr.msk.bf16.mxu0 %vm451_vm2, %v3731_v42  ;;  %v4271_v42 = vld [vmem:[#allocation2 + $0x3b] sm:$0xff]  ;;  %v22100_v50 = vpack.c.bf16 %v4275_v33, %v4274_v53  ;;  %v4284_v53 = vld [vmem:[#allocation2 + $0xa3] sm:$0xff] }
 0x3c0   : > { %18238 = vmatmul.mubr.msk.bf16.gmra.mrb[12].mxu1 %vm451_vm2, %v22060_v56  ;;  %v22079_v27 = vpack.c.bf16 %v4271_v42, %v4270_v49  ;;  %v4280_v49 = vld [vmem:[#allocation2 + $0x83] sm:$0xff] }
 0x3c1   : > { %18241 = vmatprep.mubr.msk.bf16.mxu1 %vm451_vm2, %v22063_v54 }
 0x3c6   : > { %18090 = vmatmul.mubr.msk.bf16.gmra.mrb[68].mxu0 %vm451_vm2, %v3732_v40 }
 0x3c7   : > { %18095 = vmatprep.mubr.msk.bf16.mxu0 %vm451_vm2, %v4302_v26  ;;  %v22086_v26 = vld [vmem:[%s23450_s4 + $0x40] sm:$0xff]  }
 0x3c8   : > { %18242 = vmatmul.mubr.msk.bf16.gmra.mrb[16].mxu1 %vm451_vm2, %v22070_v14 }
 0x3c9   : > { %18247 = vmatprep.mubr.msk.bf16.mxu1 %vm451_vm2, %v21981_v20  ;;  %v4273_v20 = vld [vmem:[#allocation2 + $0x4b] sm:$0xff] }
 0x3ca   : > { %v22098_v62 = vpack.c.bf16 %v4273_v20, %v4272_v17  ;;  %v4287_v20 = vld [vmem:[#allocation2 + $0xbb] sm:$0xff] }
 0x3ce   : > { %18096 = vmatmul.mubr.msk.bf16.vlgmr.msra.gmra.mrb[36].mxu0 %vm451_vm2, %v22077_v13 }
 0x3cf   : > { %18099 = vmatprep.mubr.msk.bf16.mxu0 %vm451_vm2, %v22079_v27  ;;  %18132 = vmatpush3.bf16.msra.mxu0 %v21978_v59  ;;  %v4278_v59 = vld [vmem:[#allocation2 + $0x73] sm:$0xff] }
 0x3d0   : > { %18248 = vmatmul.mubr.msk.bf16.vlgmr.msra.gmra.mrb[20].mxu1 %vm451_vm2, %v21990_v28  ;;  %18169 = vmatprep.subr.bf16.mxu0 %v21737_v61  ;;  %v4277_v61 = vld [vmem:[#allocation2 + $0x6b] sm:$0xff]  ;;  %v4276_v28 = vld [vmem:[#allocation2 + $0x63] sm:$0xff] }
 0x3d1   : > { %18284 = vmatpush3.bf16.msra.mxu1 %v21986_v23  ;;  %18251 = vmatprep.mubr.msk.bf16.mxu1 %vm451_vm2, %v22000_v43  ;;  %v4279_v23 = vld [vmem:[#allocation2 + $0x7b] sm:$0xff]  ;;  %v22110_v43 = vpack.c.bf16 %v4277_v61, %v4276_v28 }
 0x3d2   : > { %18321 = vmatprep.subr.bf16.mxu1 %v22086_v26  ;;  %v22112_v40 = vpack.c.bf16 %v4279_v23, %v4278_v59  ;;  %v4291_v61 = vld [vmem:[#allocation2 + $0xdb] sm:$0xff]  ;;  %v4288_v59 = vld [vmem:[#allocation2 + $0xc3] sm:$0xff] }
 0x3d6   : > { %18100 = vmatmul.mubr.msk.bf16.gmra.mrb[40].mxu0 %vm451_vm2, %v22098_v62 }
 0x3d7   : > { %18103 = vmatprep.mubr.msk.bf16.mxu0 %vm451_vm2, %v22100_v50 }
 0x3d8   : > { %18252 = vmatmul.mubr.msk.bf16.gmra.mrb[24].mxu1 %vm451_vm2, %v22003_v12  ;;  %v4281_v12 = vld [vmem:[#allocation2 + $0x8b] sm:$0xff] }
 0x3d9   : > { %18255 = vmatprep.mubr.msk.bf16.mxu1 %vm451_vm2, %v22010_v30  ;;  %v4282_v30 = vld [vmem:[#allocation2 + $0x93] sm:$0xff]  ;;  %v22122_v42 = vpack.c.bf16 %v4281_v12, %v4280_v49  ;;  %v4295_v12 = vld [vmem:[#allocation2 + $0xfb] sm:$0xff] }
 0x3da   : > { %v22124_v18 = vpack.c.bf16 %v4283_v35, %v4282_v30  ;;  %v4292_v30 = vld [vmem:[#allocation2 + $0xe3] sm:$0xff] }
 0x3de   : > { %18104 = vmatmul.mubr.msk.bf16.gmra.mrb[44].mxu0 %vm451_vm2, %v22110_v43 }
 0x3df   : > { %18107 = vmatprep.mubr.msk.bf16.mxu0 %vm451_vm2, %v22112_v40 }
 0x3e0   : > { %18256 = vmatmul.mubr.msk.bf16.gmra.mrb[28].mxu1 %vm451_vm2, %v22013_v32  ;;  %v4285_v32 = vld [vmem:[#allocation2 + $0xab] sm:$0xff] }
 0x3e1   : > { %18259 = vmatprep.mubr.msk.bf16.mxu1 %vm451_vm2, %v22020_v51  ;;  %v4286_v51 = vld [vmem:[#allocation2 + $0xb3] sm:$0xff]  ;;  %v22134_v33 = vpack.c.bf16 %v4285_v32, %v4284_v53  ;;  %v4299_v32 = vld [vmem:[#allocation2 + $0x11b] sm:$0xff] }
 0x3e2   : > { %v22136_v17 = vpack.c.bf16 %v4287_v20, %v4286_v51  ;;  %v4296_v51 = vld [vmem:[#allocation2 + $0x103] sm:$0xff] }
 0x3e6   : > { %18108 = vmatmul.mubr.msk.bf16.gmra.mrb[48].mxu0 %vm451_vm2, %v22122_v42 }
 0x3e7   : > { %18111 = vmatprep.mubr.msk.bf16.mxu0 %vm451_vm2, %v22124_v18 }
 0x3e8   : > { %18260 = vmatmul.mubr.msk.bf16.gmra.mrb[32].mxu1 %vm451_vm2, %v22023_v52  ;;  %v4289_v52 = vld [vmem:[#allocation2 + $0xcb] sm:$0xff] }
 0x3e9   : > { %18263 = vmatprep.mubr.msk.bf16.mxu1 %vm451_vm2, %v22030_v11  ;;  %v4290_v11 = vld [vmem:[#allocation2 + $0xd3] sm:$0xff]  ;;  %v22146_v23 = vpack.c.bf16 %v4289_v52, %v4288_v59 }
 0x3ea   : > { %v22148_v28 = vpack.c.bf16 %v4291_v61, %v4290_v11  ;;  %v5621_v52 = vld [vmem:[#allocation2 + $0x14d] sm:$0xff]  ;;  %v4300_v11 = vld [vmem:[#allocation2 + $0x123] sm:$0xff] }
 0x3ee   : > { %18112 = vmatmul.mubr.msk.bf16.gmra.mrb[52].mxu0 %vm451_vm2, %v22134_v33 }
 0x3ef   : > { %18115 = vmatprep.mubr.msk.bf16.mxu0 %vm451_vm2, %v22136_v17 }
 0x3f0   : > { %18264 = vmatmul.mubr.msk.bf16.gmra.mrb[0].mxu1 %vm451_vm2, %v22033_v39  ;;  %v4293_v39 = vld [vmem:[#allocation2 + $0xeb] sm:$0xff] }
 0x3f1   : > { %18267 = vmatprep.mubr.msk.bf16.mxu1 %vm451_vm2, %v22040_v60  ;;  %v4294_v60 = vld [vmem:[#allocation2 + $0xf3] sm:$0xff]  ;;  %v22158_v35 = vpack.c.bf16 %v4293_v39, %v4292_v30  ;;  %v5917_v39 = vld [vmem:[#allocation2 + $0x3e] sm:$0xff] }
 0x3f2   : > { %v22160_v49 = vpack.c.bf16 %v4295_v12, %v4294_v60  ;;  %v5916_v60 = vld [vmem:[#allocation2 + $0x36] sm:$0xff]  ;;  %v5921_v30 = vld [vmem:[#allocation2 + $0x5e] sm:$0xff] }
 0x3f3   : > { %v5952_v12 = vpack.c.bf16 %v5917_v39, %v5916_v60  ;;  %v5928_v60 = vld [vmem:[#allocation2 + $0x96] sm:$0xff] }
 0x3f6   : > { %18116 = vmatmul.mubr.msk.bf16.gmra.mrb[56].mxu0 %vm451_vm2, %v22146_v23 }
 0x3f7   : > { %18119 = vmatprep.mubr.msk.bf16.mxu0 %vm451_vm2, %v22148_v28 }
 0x3f8   : > { %18268 = vmatmul.mubr.msk.bf16.gmra.mrb[4].mxu1 %vm451_vm2, %v22043_v37  ;;  %v4297_v37 = vld [vmem:[#allocation2 + $0x10b] sm:$0xff] }
 0x3f9   : > { %18271 = vmatprep.mubr.msk.bf16.mxu1 %vm451_vm2, %v22050_v55  ;;  %v4298_v55 = vld [vmem:[#allocation2 + $0x113] sm:$0xff]  ;;  %v22170_v20 = vpack.c.bf16 %v4297_v37, %v4296_v51  ;;  %v5922_v51 = vld [vmem:[#allocation2 + $0x66] sm:$0xff] }
 0x3fa   : > { %v22172_v53 = vpack.c.bf16 %v4299_v32, %v4298_v55  ;;  %v5920_v55 = vld [vmem:[#allocation2 + $0x56] sm:$0xff] }
 0x3fb   : > { %v5954_v32 = vpack.c.bf16 %v5921_v30, %v5920_v55  ;;  %v5932_v30 = vld [vmem:[#allocation2 + $0xb6] sm:$0xff]  ;;  %v5937_v55 = vld [vmem:[#allocation2 + $0xde] sm:$0xff] }
 0x3fe   : > { %18120 = vmatmul.mubr.msk.bf16.gmra.mrb[60].mxu0 %vm451_vm2, %v22158_v35 }
 0x3ff   : > { %18123 = vmatprep.mubr.msk.bf16.mxu0 %vm451_vm2, %v22160_v49 }
 0x400   : > { %18272 = vmatmul.mubr.msk.bf16.gmra.mrb[8].mxu1 %vm451_vm2, %v22053_v58  ;;  %v4301_v58 = vld [vmem:[#allocation2 + $0x12b] sm:$0xff] }
 0x401   : > { %18275 = vmatprep.mubr.msk.bf16.mxu1 %vm451_vm2, %v22060_v56  ;;  %v5620_v56 = vld [vmem:[#allocation2 + $0x145] sm:$0xff]  ;;  %v22182_v61 = vpack.c.bf16 %v4301_v58, %v4300_v11  ;;  %v5923_v58 = vld [vmem:[#allocation2 + $0x6e] sm:$0xff] }
 0x402   : > { %v5639_v59 = vpack.c.bf16 %v5621_v52, %v5620_v56  ;;  %v5955_v56 = vpack.c.bf16 %v5923_v58, %v5922_v51  ;;  %v5926_v11 = vld [vmem:[#allocation2 + $0x86] sm:$0xff]  ;;  %v5939_v51 = vld [vmem:[#allocation2 + $0xee] sm:$0xff]  ;;  %v5941_v58 = vld [vmem:[#allocation2 + $0xfe] sm:$0xff] }
 0x406   : > { %18124 = vmatmul.mubr.msk.bf16.gmra.mrb[64].mxu0 %vm451_vm2, %v22170_v20 }
 0x407   : > { %18127 = vmatprep.mubr.msk.bf16.mxu0 %vm451_vm2, %v22172_v53 }
 0x408   : > { %18276 = vmatmul.mubr.msk.bf16.gmra.mrb[12].mxu1 %vm451_vm2, %v22063_v54  ;;  %v5918_v54 = vld [vmem:[#allocation2 + $0x46] sm:$0xff] }
 0x409   : > { %18279 = vmatprep.mubr.msk.bf16.mxu1 %vm451_vm2, %v22070_v14  ;;  %v5919_v14 = vld [vmem:[#allocation2 + $0x4e] sm:$0xff] }
 0x40a   : > { %v5953_v37 = vpack.c.bf16 %v5919_v14, %v5918_v54  ;;  %v5933_v54 = vld [vmem:[#allocation2 + $0xbe] sm:$0xff] }
 0x40e   : > { %18128 = vmatmul.mubr.msk.bf16.gmra.mrb[68].mxu0 %vm451_vm2, %v22182_v61 }
 0x40f   : > { %18133 = vmatprep.mubr.msk.bf16.mxu0 %vm451_vm2, %v22077_v13  ;;  %v20985_v13 = vld [vmem:[%s23450_s4 + $0x20] sm:$0xff]  }
 0x410   : > { %18280 = vmatmul.mubr.msk.bf16.gmra.mrb[16].mxu1 %vm451_vm2, %v5639_v59  ;;  %v5929_v59 = vld [vmem:[#allocation2 + $0x9e] sm:$0xff] }
 0x411   : > { %18285 = vmatprep.mubr.msk.bf16.mxu1 %vm451_vm2, %v5952_v12  ;;  %v5931_v12 = vld [vmem:[#allocation2 + $0xae] sm:$0xff] }
 0x416   : > { %18134 = vmatmul.mubr.msk.bf16.vlgmr.msra.gmra.mrb[36].mxu0 %vm451_vm2, %v22079_v27  ;;  %v5925_v27 = vld [vmem:[#allocation2 + $0x7e] sm:$0xff] }
 0x417   : > { %18137 = vmatprep.mubr.msk.bf16.mxu0 %vm451_vm2, %v22098_v62  ;;  %18170 = vmatpush3.bf16.msra.mxu0 %v20985_v13  ;;  %v5924_v62 = vld [vmem:[#allocation2 + $0x76] sm:$0xff] }
 0x418   : > { %18286 = vmatmul.mubr.msk.bf16.vlgmr.msra.gmra.mrb[20].mxu1 %vm451_vm2, %v5953_v37  ;;  %v5956_v52 = vpack.c.bf16 %v5925_v27, %v5924_v62  ;;  %v5935_v37 = vld [vmem:[#allocation2 + $0xce] sm:$0xff] }
 0x419   : > { %18322 = vmatpush3.bf16.msra.mxu1 %v22086_v26  ;;  %18289 = vmatprep.mubr.msk.bf16.mxu1 %vm451_vm2, %v5954_v32  ;;  %v5927_v26 = vld [vmem:[#allocation2 + $0x8e] sm:$0xff]  ;;  %v5936_v32 = vld [vmem:[#allocation2 + $0xd6] sm:$0xff] }
 0x41a   : > { %v5957_v39 = vpack.c.bf16 %v5927_v26, %v5926_v11  ;;  %v5943_v62 = vld [vmem:[#allocation2 + $0x10e] sm:$0xff]  ;;  %v5944_v26 = vld [vmem:[#allocation2 + $0x116] sm:$0xff] }
 0x41e   : > { %18138 = vmatmul.mubr.msk.bf16.gmra.mrb[40].mxu0 %vm451_vm2, %v22100_v50  ;;  %v5958_v50 = vpack.c.bf16 %v5929_v59, %v5928_v60  ;;  %v5947_v59 = vld [vmem:[#allocation2 + $0x12e] sm:$0xff]  ;;  %v5949_v60 = vld [vmem:[#allocation2 + $0x13e] sm:$0xff] }
 0x41f   : > { %18141 = vmatprep.mubr.msk.bf16.mxu0 %vm451_vm2, %v22110_v43  ;;  %v5930_v43 = vld [vmem:[#allocation2 + $0xa6] sm:$0xff] }
 0x420   : > { %18290 = vmatmul.mubr.msk.bf16.gmra.mrb[24].mxu1 %vm451_vm2, %v5955_v56  ;;  %v5959_v14 = vpack.c.bf16 %v5931_v12, %v5930_v43  ;;  %v5940_v56 = vld [vmem:[#allocation2 + $0xf6] sm:$0xff]  ;;  %v5950_v12 = vld [vmem:[#allocation2 + $0x146] sm:$0xff] }
 0x421   : > { %18293 = vmatprep.mubr.msk.bf16.mxu1 %vm451_vm2, %v5956_v52  ;;  %v5945_v52 = vld [vmem:[#allocation2 + $0x11e] sm:$0xff] }
 0x422   : > { %v4631_v43 = vld [vmem:[#allocation2 + $0x13b] sm:$0xff] }
 0x426   : > { %18142 = vmatmul.mubr.msk.bf16.gmra.mrb[44].mxu0 %vm451_vm2, %v22112_v40  ;;  %v5960_v40 = vpack.c.bf16 %v5933_v54, %v5932_v30  ;;  %v5951_v54 = vld [vmem:[#allocation2 + $0x14e] sm:$0xff] }
 0x427   : > { %18145 = vmatprep.mubr.msk.bf16.mxu0 %vm451_vm2, %v22122_v42  ;;  %v5934_v42 = vld [vmem:[#allocation2 + $0xc6] sm:$0xff] }
 0x428   : > { %18294 = vmatmul.mubr.msk.bf16.gmra.mrb[28].mxu1 %vm451_vm2, %v5957_v39  ;;  %v5961_v13 = vpack.c.bf16 %v5935_v37, %v5934_v42  ;;  %v5948_v39 = vld [vmem:[#allocation2 + $0x136] sm:$0xff]  ;;  %v5969_v42 = vpack.c.bf16 %v5951_v54, %v5950_v12  ;;  %v6247_v37 = vld [vmem:[#allocation2 + $0x3f] sm:$0xff] }
 0x429   : > { %18297 = vmatprep.mubr.msk.bf16.mxu1 %vm451_vm2, %v5958_v50  ;;  %v4937_v54 = vld [vmem:[#allocation2 + $0x7c] sm:$0xff] }
 0x42e   : > { %18146 = vmatmul.mubr.msk.bf16.gmra.mrb[48].mxu0 %vm451_vm2, %v22124_v18  ;;  %v5962_v18 = vpack.c.bf16 %v5937_v55, %v5936_v32  ;;  %v4931_v32 = vld [vmem:[#allocation2 + $0x4c] sm:$0xff] }
 0x42f   : > { %18149 = vmatprep.mubr.msk.bf16.mxu0 %vm451_vm2, %v22134_v33  ;;  %v5938_v33 = vld [vmem:[#allocation2 + $0xe6] sm:$0xff] }
 0x430   : > { %18298 = vmatmul.mubr.msk.bf16.gmra.mrb[32].mxu1 %vm451_vm2, %v5959_v14  ;;  %v5963_v27 = vpack.c.bf16 %v5939_v51, %v5938_v33  ;;  %v4927_v14 = vld [vmem:[#allocation2 + $0x2c] sm:$0xff] }
 0x431   : > { %18301 = vmatprep.mubr.msk.bf16.mxu1 %vm451_vm2, %v5960_v40  ;;  %v4926_v40 = vld [vmem:[#allocation2 + $0x24] sm:$0xff]  ;;  %v6249_v51 = vld [vmem:[#allocation2 + $0x4f] sm:$0xff] }
 0x432   : > { %v4962_v55 = vpack.c.bf16 %v4927_v14, %v4926_v40  ;;  %v6248_v33 = vld [vmem:[#allocation2 + $0x47] sm:$0xff] }
 0x433   : > { %v4939_v14 = vld [vmem:[#allocation2 + $0x8c] sm:$0xff] }
 0x434   : > { %v6256_v40 = vld [vmem:[#allocation2 + $0x87] sm:$0xff] }
 0x436   : > { %18150 = vmatmul.mubr.msk.bf16.gmra.mrb[52].mxu0 %vm451_vm2, %v22136_v17  ;;  %v5964_v17 = vpack.c.bf16 %v5941_v58, %v5940_v56  ;;  %v6251_v56 = vld [vmem:[#allocation2 + $0x5f] sm:$0xff] }
 0x437   : > { %18153 = vmatprep.mubr.msk.bf16.mxu0 %vm451_vm2, %v22146_v23  ;;  %v5942_v23 = vld [vmem:[#allocation2 + $0x106] sm:$0xff] }
 0x438   : > { %18302 = vmatmul.mubr.msk.bf16.gmra.mrb[0].mxu1 %vm451_vm2, %v5961_v13  ;;  %v5965_v11 = vpack.c.bf16 %v5943_v62, %v5942_v23  ;;  %v4929_v13 = vld [vmem:[#allocation2 + $0x3c] sm:$0xff]  ;;  %v6283_v23 = vpack.c.bf16 %v6249_v51, %v6248_v33  ;;  %v4940_v51 = vld [vmem:[#allocation2 + $0x94] sm:$0xff] }
 0x439   : > { %18305 = vmatprep.mubr.msk.bf16.mxu1 %vm451_vm2, %v5962_v18  ;;  %v4928_v18 = vld [vmem:[#allocation2 + $0x34] sm:$0xff]  ;;  %v4941_v33 = vld [vmem:[#allocation2 + $0x9c] sm:$0xff] }
 0x43a   : > { %v4963_v58 = vpack.c.bf16 %v4929_v13, %v4928_v18  ;;  %v6250_v62 = vld [vmem:[#allocation2 + $0x57] sm:$0xff] }
 0x43e   : > { %18154 = vmatmul.mubr.msk.bf16.gmra.mrb[56].mxu0 %vm451_vm2, %v22148_v28  ;;  %v5966_v28 = vpack.c.bf16 %v5945_v52, %v5944_v26  ;;  %v6284_v52 = vpack.c.bf16 %v6251_v56, %v6250_v62  ;;  %v4935_v26 = vld [vmem:[#allocation2 + $0x6c] sm:$0xff]  ;;  %v4969_v56 = vpack.c.bf16 %v4941_v33, %v4940_v51  ;;  %v6262_v62 = vld [vmem:[#allocation2 + $0xb7] sm:$0xff] }
 0x43f   : > { %18157 = vmatprep.mubr.msk.bf16.mxu0 %vm451_vm2, %v22158_v35  ;;  %v5946_v35 = vld [vmem:[#allocation2 + $0x126] sm:$0xff]  ;;  %v6281_v51 = vld [vmem:[#allocation2 + $0x14f] sm:$0xff] }
 0x440   : > { %18306 = vmatmul.mubr.msk.bf16.gmra.mrb[4].mxu1 %vm451_vm2, %v5963_v27  ;;  %v5967_v50 = vpack.c.bf16 %v5947_v59, %v5946_v35  ;;  %v4930_v27 = vld [vmem:[#allocation2 + $0x44] sm:$0xff]  ;;  %v6253_v59 = vld [vmem:[#allocation2 + $0x6f] sm:$0xff] }
 0x441   : > { %18309 = vmatprep.mubr.msk.bf16.mxu1 %vm451_vm2, %v5964_v17  ;;  %v4964_v17 = vpack.c.bf16 %v4931_v32, %v4930_v27  ;;  %v6252_v35 = vld [vmem:[#allocation2 + $0x67] sm:$0xff]  ;;  %v6258_v32 = vld [vmem:[#allocation2 + $0x97] sm:$0xff]  ;;  %v6261_v27 = vld [vmem:[#allocation2 + $0xaf] sm:$0xff] }
 0x442   : > { %v6280_v33 = vld [vmem:[#allocation2 + $0x147] sm:$0xff] }
 0x446   : > { %18158 = vmatmul.mubr.msk.bf16.gmra.mrb[60].mxu0 %vm451_vm2, %v22160_v49  ;;  %v5968_v49 = vpack.c.bf16 %v5949_v60, %v5948_v39  ;;  %v4934_v60 = vld [vmem:[#allocation2 + $0x64] sm:$0xff] }
 0x447   : > { %18161 = vmatprep.mubr.msk.bf16.mxu0 %vm451_vm2, %v22170_v20  ;;  %v4630_v20 = vld [vmem:[#allocation2 + $0x133] sm:$0xff] }
 0x448   : > { %18310 = vmatmul.mubr.msk.bf16.gmra.mrb[8].mxu1 %vm451_vm2, %v5965_v11  ;;  %v4649_v30 = vpack.c.bf16 %v4631_v43, %v4630_v20  ;;  %v4933_v11 = vld [vmem:[#allocation2 + $0x5c] sm:$0xff]  ;;  %v6285_v20 = vpack.c.bf16 %v6253_v59, %v6252_v35 }
 0x449   : > { %18313 = vmatprep.mubr.msk.bf16.mxu1 %vm451_vm2, %v5966_v28  ;;  %v4932_v28 = vld [vmem:[#allocation2 + $0x54] sm:$0xff] }
 0x44a   : > { %v4965_v39 = vpack.c.bf16 %v4933_v11, %v4932_v28  ;;  %v6254_v43 = vld [vmem:[#allocation2 + $0x77] sm:$0xff]  ;;  %v6264_v11 = vld [vmem:[#allocation2 + $0xc7] sm:$0xff]  ;;  %v6267_v28 = vld [vmem:[#allocation2 + $0xdf] sm:$0xff] }
 0x44b   : > { %v6266_v59 = vld [vmem:[#allocation2 + $0xd7] sm:$0xff] }
 0x44e   : > { %18162 = vmatmul.mubr.msk.bf16.gmra.mrb[64].mxu0 %vm451_vm2, %v22172_v53  ;;  %v6246_v53 = vld [vmem:[#allocation2 + $0x37] sm:$0xff] }
 0x44f   : > { %18165 = vmatprep.mubr.msk.bf16.mxu0 %vm451_vm2, %v22182_v61  ;;  %v6282_v61 = vpack.c.bf16 %v6247_v37, %v6246_v53  ;;  %v6259_v53 = vld [vmem:[#allocation2 + $0x9f] sm:$0xff] }
 0x450   : > { %18314 = vmatmul.mubr.msk.bf16.gmra.mrb[12].mxu1 %vm451_vm2, %v5967_v50  ;;  %v6255_v50 = vld [vmem:[#allocation2 + $0x7f] sm:$0xff]  ;;  %v6288_v18 = vpack.c.bf16 %v6259_v53, %v6258_v32  ;;  %v6277_v53 = vld [vmem:[#allocation2 + $0x12f] sm:$0xff] }
 0x451   : > { %18317 = vmatprep.mubr.msk.bf16.mxu1 %vm451_vm2, %v5968_v49  ;;  %v4966_v49 = vpack.c.bf16 %v4935_v26, %v4934_v60  ;;  %v6286_v12 = vpack.c.bf16 %v6255_v50, %v6254_v43  ;;  %v6265_v26 = vld [vmem:[#allocation2 + $0xcf] sm:$0xff]  ;;  %v6268_v60 = vld [vmem:[#allocation2 + $0xe7] sm:$0xff]  ;;  %v6270_v43 = vld [vmem:[#allocation2 + $0xf7] sm:$0xff] }
 0x452   : > { %v6291_v35 = vpack.c.bf16 %v6265_v26, %v6264_v11  ;;  %v6269_v50 = vld [vmem:[#allocation2 + $0xef] sm:$0xff] }
 0x456   : > { %18166 = vmatmul.mubr.msk.bf16.gmra.mrb[68].mxu0 %vm451_vm2, %v4649_v30  ;;  %v4936_v30 = vld [vmem:[#allocation2 + $0x74] sm:$0xff] }
 0x457   : > { %18171 = vmatprep.mubr.msk.bf16.mxu0 %vm451_vm2, %v4962_v55  ;;  %v4967_v37 = vpack.c.bf16 %v4937_v54, %v4936_v30  ;;  %v4938_v55 = vld [vmem:[#allocation2 + $0x84] sm:$0xff] }
 0x458   : > { %18318 = vmatmul.mubr.msk.bf16.gmra.mrb[16].mxu1 %vm451_vm2, %v5969_v42  ;;  %v6257_v42 = vld [vmem:[#allocation2 + $0x8f] sm:$0xff]  ;;  %v6272_v54 = vld [vmem:[#allocation2 + $0x107] sm:$0xff]  ;;  %v6275_v30 = vld [vmem:[#allocation2 + $0x11f] sm:$0xff] }
 0x459   : > { %18323 = vmatprep.mubr.msk.bf16.mxu1 %vm451_vm2, %v6282_v61  ;;  %v4968_v61 = vpack.c.bf16 %v4939_v14, %v4938_v55  ;;  %v6287_v13 = vpack.c.bf16 %v6257_v42, %v6256_v40  ;;  %v6273_v14 = vld [vmem:[#allocation2 + $0x10f] sm:$0xff]  ;;  %v6274_v42 = vld [vmem:[#allocation2 + $0x117] sm:$0xff]  ;;  %v6276_v55 = vld [vmem:[#allocation2 + $0x127] sm:$0xff] }
 0x45a   : > { %v6295_v40 = vpack.c.bf16 %v6273_v14, %v6272_v54  ;;  %v6297_v32 = vpack.c.bf16 %v6277_v53, %v6276_v55 }
 0x45e   : > { %18172 = vmatmul.mubr.msk.bf16.vlgmr.msra.gmra.mrb[36].mxu0 %vm451_vm2, %v4963_v58  ;;  %v6260_v58 = vld [vmem:[#allocation2 + $0xa7] sm:$0xff] }
 0x45f   : > { %18175 = vmatprep.mubr.msk.bf16.mxu0 %vm451_vm2, %v4964_v17  ;;  %v6263_v17 = vld [vmem:[#allocation2 + $0xbf] sm:$0xff] }
 0x460   : > { %18324 = vmatmul.mubr.msk.bf16.vlgmr.msra.gmra.mrb[20].mxu1 %vm451_vm2, %v6283_v23  ;;  %v6289_v23 = vpack.c.bf16 %v6261_v27, %v6260_v58  ;;  %v6299_v58 = vpack.c.bf16 %v6281_v51, %v6280_v33  ;;  %v20949_v27 = vld [vmem:[%s23452_s6 + $0x8] sm:$0xff]  }
 0x461   : > { %18327 = vmatprep.mubr.msk.bf16.mxu1 %vm451_vm2, %v6284_v52  ;;  %v6290_v52 = vpack.c.bf16 %v6263_v17, %v6262_v62  ;;  %18359 = vmatprep.subr.bf16.mxu0 %v20949_v27  ;;  %v6748_v17 = vld [vmem:[#allocation3 + $0x1a] sm:$0xff] }
 0x462   : > { %18360 = vmatpush3.bf16.msra.mxu0 %v20949_v27 }
 0x466   : > { %18176 = vmatmul.mubr.msk.bf16.gmra.mrb[40].mxu0 %vm451_vm2, %v4965_v39  ;;  %v6292_v39 = vpack.c.bf16 %v6267_v28, %v6266_v59 }
 0x467   : > { %18179 = vmatprep.mubr.msk.bf16.mxu0 %vm451_vm2, %v4966_v49  ;;  %v6271_v49 = vld [vmem:[#allocation2 + $0xff] sm:$0xff] }
 0x468   : > { %18328 = vmatmul.mubr.msk.bf16.gmra.mrb[24].mxu1 %vm451_vm2, %v6285_v20  ;;  %v6293_v20 = vpack.c.bf16 %v6269_v50, %v6268_v60 }
 0x469   : > { %18331 = vmatprep.mubr.msk.bf16.mxu1 %vm451_vm2, %v6286_v12  ;;  %v6294_v12 = vpack.c.bf16 %v6271_v49, %v6270_v43 }
 0x46e   : > { %18180 = vmatmul.mubr.msk.bf16.gmra.mrb[44].mxu0 %vm451_vm2, %v4967_v37  ;;  %v6296_v37 = vpack.c.bf16 %v6275_v30, %v6274_v42 }
 0x46f   : > { %18183 = vmatprep.mubr.msk.bf16.mxu0 %vm451_vm2, %v4968_v61  ;;  %v6278_v61 = vld [vmem:[#allocation2 + $0x137] sm:$0xff] }
 0x470   : > { %18332 = vmatmul.mubr.msk.bf16.gmra.mrb[28].mxu1 %vm451_vm2, %v6287_v13  ;;  %v6279_v13 = vld [vmem:[#allocation2 + $0x13f] sm:$0xff] }
 0x471   : > { %18335 = vmatprep.mubr.msk.bf16.mxu1 %vm451_vm2, %v6288_v18  ;;  %v6298_v18 = vpack.c.bf16 %v6279_v13, %v6278_v61 }
 0x476   : > { %18184 = vmatmul.mubr.msk.bf16.gmra.mrb[48].mxu0 %vm451_vm2, %v4969_v56  ;;  %v6747_v56 = vld [vmem:[#allocation3 + $0x12] sm:$0xff] }
 0x477   : > { %v6783_v62 = vpack.c.bf16 %v6748_v17, %v6747_v56 }
 0x478   : > { %18336 = vmatmul.mubr.msk.bf16.gmra.mrb[32].mxu1 %vm451_vm2, %v6289_v23  ;;  %v22276_v23 = vld [vmem:[%s23452_s6] sm:$0xff]  }
 0x479   : > { %18339 = vmatprep.mubr.msk.bf16.mxu1 %vm451_vm2, %v6290_v52  ;;  %18397 = vmatprep.subr.bf16.mxu0 %v22276_v23 }
 0x47a   : > { %18361 = vmatprep.mubr.msk.bf16.mxu0 %vm451_vm2, %v6783_v62 }
 0x480   : > { %18340 = vmatmul.mubr.msk.bf16.gmra.mrb[0].mxu1 %vm451_vm2, %v6291_v35 }
 0x481   : > { %18343 = vmatprep.mubr.msk.bf16.mxu1 %vm451_vm2, %v6292_v39 }
 0x488   : > { %18344 = vmatmul.mubr.msk.bf16.gmra.mrb[4].mxu1 %vm451_vm2, %v6293_v20 }
 0x489   : > { %18347 = vmatprep.mubr.msk.bf16.mxu1 %vm451_vm2, %v6294_v12 }
 0x490   : > { %18348 = vmatmul.mubr.msk.bf16.gmra.mrb[8].mxu1 %vm451_vm2, %v6295_v40 }
 0x491   : > { %18351 = vmatprep.mubr.msk.bf16.mxu1 %vm451_vm2, %v6296_v37 }
 0x498   : > { %18352 = vmatmul.mubr.msk.bf16.gmra.mrb[12].mxu1 %vm451_vm2, %v6297_v32  ;;  %v22323_v32 = vld [vmem:[%s23451_s5] ss:$0 sm:$0xff] }
 0x499   : > { %18355 = vmatprep.mubr.msk.bf16.mxu1 %vm451_vm2, %v6298_v18 }
 0x4a0   : > { %18356 = vmatmul.mubr.msk.bf16.gmra.mrb[16].mxu1 %vm451_vm2, %v6299_v58 }
 0x509   : > { %v22280_v52 = vpop.f32.mrb[52].mxu0 }
 0x50a   : > { %v22282_v11 = vpop.f32.mrb[53].mxu0 }
 0x50b   : > { %v22284_v26 = vpop.f32.mrb[54].mxu0 }
 0x50c   : > { %v22286_v28 = vpop.f32.mrb[55].mxu0 }
 0x511   : > { %v22288_v35 = vpop.f32.mrb[56].mxu0 }
 0x512   : > { %v22290_v59 = vpop.f32.mrb[57].mxu0 }
 0x513   : > { %v22292_v39 = vpop.f32.mrb[58].mxu0 }
 0x514   : > { %v22294_v60 = vpop.f32.mrb[59].mxu0 }
 0x519   : > { %v22296_v50 = vpop.f32.mrb[60].mxu0 }
 0x51a   : > { %v22298_v49 = vpop.f32.mrb[61].mxu0 }
 0x51b   : > { %v22300_v20 = vpop.f32.mrb[62].mxu0 }
 0x51c   : > { %v22302_v43 = vpop.f32.mrb[63].mxu0 }
 0x521   : > { %v22304_v12 = vpop.f32.mrb[64].mxu0 }
 0x522   : > { %v22306_v54 = vpop.f32.mrb[65].mxu0 }
 0x523   : > { %v22308_v14 = vpop.f32.mrb[66].mxu0 }
 0x524   : > { %v22310_v30 = vpop.f32.mrb[67].mxu0 }
 0x529   : > { %v22312_v40 = vpop.f32.mrb[68].mxu0 }
 0x52a   : > { %23492 = vst [vmem:[#allocation17_spill] sm:$0xff] %v22312_v40  ;;  %v22314_v42 = vpop.f32.mrb[69].mxu0 }
 0x52b   : > { %23493 = vst [vmem:[#allocation18_spill] sm:$0xff] %v22314_v42  ;;  %v22316_v37 = vpop.f32.mrb[70].mxu0 }
 0x52c   : > { %23494 = vst [vmem:[#allocation19_spill] sm:$0xff] %v22316_v37  ;;  %v22318_v55 = vpop.f32.mrb[71].mxu0 }
 0x52d   : > { %23495 = vst [vmem:[#allocation20_spill] sm:$0xff] %v22318_v55 }
 0x531   : > { %v18173_v53 = vpop.f32.mrb[36].mxu0 }
 0x532   : > { %v5077_v61 = vpop.f32.mrb[37].mxu0 }
 0x533   : > { %v18325_v13 = vpop.f32.mrb[20].mxu1  ;;  %v18174_v18 = vpop.f32.mrb[38].mxu0 }
 0x534   : > { %v19405_v33 = vadd.f32 %v18325_v13, %v18173_v53  ;;  %v6397_v51 = vpop.f32.mrb[21].mxu1  ;;  %v5080_v58 = vpop.f32.mrb[39].mxu0 }
 0x535   : > { %v19406_v27 = vadd.f32 %v6397_v51, %v5077_v61  ;;  %v18326_v56 = vpop.f32.mrb[22].mxu1 }
 0x536   : > { %v6585_v17 = vadd.f32 %v19405_v33, %v22323_v32  ;;  %v19407_v62 = vadd.f32 %v18326_v56, %v18174_v18  ;;  %v6400_v37 = vpop.f32.mrb[23].mxu1 }
 0x537   : > { %v6583_v55 = vadd.f32 %v19406_v27, %v22323_v32  ;;  %v19408_v42 = vadd.f32 %v6400_v37, %v5080_v58 }
 0x538   : > { %v6621_v40 = vmul.f32 %v6585_v17, %v21749_v0  ;;  %v6586_v46 = vadd.f32 %v19407_v62, %v22323_v32 }
 0x539   : > { %v6619_v45 = vmul.f32 %v6583_v55, %v21747_v63  ;;  %v6584_v31 = vadd.f32 %v19408_v42, %v22323_v32  ;;  %v18177_v53 = vpop.f32.mrb[40].mxu0 }
 0x53a   : > { %6657 = vst.msk [vmem:[#allocation3 + $0x34] sm:$0xff] %vm451_vm2, %v6621_v40  ;;  %v6622_v61 = vmul.f32 %v6586_v46, %v21753_v2  ;;  %v5093_v13 = vpop.f32.mrb[41].mxu0 }
 0x53b   : > { %6655 = vst.msk [vmem:[#allocation3 + $0x24] sm:$0xff] %vm451_vm2, %v6619_v45  ;;  %v6620_v18 = vmul.f32 %v6584_v31, %v21751_v1  ;;  %v18329_v33 = vpop.f32.mrb[24].mxu1  ;;  %v18178_v37 = vpop.f32.mrb[42].mxu0 }
 0x53c   : > { %6658 = vst.msk [vmem:[#allocation3 + $0x3c] sm:$0xff] %vm451_vm2, %v6622_v61  ;;  %v19409_v51 = vadd.f32 %v18329_v33, %v18177_v53  ;;  %v6413_v58 = vpop.f32.mrb[25].mxu1  ;;  %v5096_v27 = vpop.f32.mrb[43].mxu0 }
 0x53d   : > { %6656 = vst.msk [vmem:[#allocation3 + $0x2c] sm:$0xff] %vm451_vm2, %v6620_v18  ;;  %v19410_v42 = vadd.f32 %v6413_v58, %v5093_v13  ;;  %v18330_v55 = vpop.f32.mrb[26].mxu1 }
 0x53e   : > { %v6589_v40 = vadd.f32 %v19409_v51, %v22323_v32  ;;  %v19411_v56 = vadd.f32 %v18330_v55, %v18178_v37  ;;  %v6416_v46 = vpop.f32.mrb[27].mxu1 }
 0x53f   : > { %v6587_v17 = vadd.f32 %v19410_v42, %v22323_v32  ;;  %v19412_v45 = vadd.f32 %v6416_v46, %v5096_v27 }
 0x540   : > { %v6625_v31 = vmul.f32 %v6589_v40, %v21759_v5  ;;  %v6590_v62 = vadd.f32 %v19411_v56, %v22323_v32 }
 0x541   : > { %v6623_v61 = vmul.f32 %v6587_v17, %v21755_v3  ;;  %v6588_v53 = vadd.f32 %v19412_v45, %v22323_v32  ;;  %v18181_v33 = vpop.f32.mrb[44].mxu0 }
 0x542   : > { %6661 = vst.msk [vmem:[#allocation3 + $0x54] sm:$0xff] %vm451_vm2, %v6625_v31  ;;  %v6626_v13 = vmul.f32 %v6590_v62, %v21761_v6  ;;  %v5109_v18 = vpop.f32.mrb[45].mxu0  ;;  %v6749_v56 = vld [vmem:[#allocation3 + $0x22] sm:$0xff] }
 0x543   : > { %6659 = vst.msk [vmem:[#allocation3 + $0x44] sm:$0xff] %vm451_vm2, %v6623_v61  ;;  %v6624_v37 = vmul.f32 %v6588_v53, %v21757_v4  ;;  %v18333_v51 = vpop.f32.mrb[28].mxu1  ;;  %v18182_v58 = vpop.f32.mrb[46].mxu0  ;;  %v6752_v27 = vld [vmem:[#allocation3 + $0x3a] sm:$0xff]  ;;  %v22352_v61 = vld [vmem:[%s23452_s6 + $0x10] sm:$0xff]  }
 0x544   : > { %6662 = vst.msk [vmem:[#allocation3 + $0x5c] sm:$0xff] %vm451_vm2, %v6626_v13  ;;  %v19413_v42 = vadd.f32 %v18333_v51, %v18181_v33  ;;  %v6429_v55 = vpop.f32.mrb[29].mxu1  ;;  %v5112_v40 = vpop.f32.mrb[47].mxu0  ;;  %v6750_v46 = vld [vmem:[#allocation3 + $0x2a] sm:$0xff]  ;;  %v6751_v17 = vld [vmem:[#allocation3 + $0x32] sm:$0xff] }
 0x545   : > { %6660 = vst.msk [vmem:[#allocation3 + $0x4c] sm:$0xff] %vm451_vm2, %v6624_v37  ;;  %v19414_v45 = vadd.f32 %v6429_v55, %v5109_v18  ;;  %v18334_v31 = vpop.f32.mrb[30].mxu1  ;;  %v6784_v62 = vpack.c.bf16 %v6750_v46, %v6749_v56  ;;  %v6785_v6 = vpack.c.bf16 %v6752_v27, %v6751_v17 }
 0x546   : > { %v6593_v53 = vadd.f32 %v19413_v42, %v22323_v32  ;;  %v19415_v13 = vadd.f32 %v18334_v31, %v18182_v58  ;;  %v6432_v33 = vpop.f32.mrb[31].mxu1 }
 0x547   : > { %v6591_v51 = vadd.f32 %v19414_v45, %v22323_v32  ;;  %v19416_v4 = vadd.f32 %v6432_v33, %v5112_v40  ;;  %18362 = vmatmul.mubr.msk.bf16.vlgmr.msra.gmra.mrb[72].mxu0 %vm451_vm2, %v6784_v62 }
 0x548   : > { %v6629_v37 = vmul.f32 %v6593_v53, %v21767_v9  ;;  %v6594_v18 = vadd.f32 %v19415_v13, %v22323_v32  ;;  %18398 = vmatpush3.bf16.msra.mxu0 %v22276_v23  ;;  %18365 = vmatprep.mubr.msk.bf16.mxu0 %vm451_vm2, %v6785_v6 }
 0x549   : > { %v6627_v27 = vmul.f32 %v6591_v51, %v21763_v7  ;;  %v6592_v55 = vadd.f32 %v19416_v4, %v22323_v32  ;;  %v18185_v42 = vpop.f32.mrb[48].mxu0  ;;  %18435 = vmatprep.subr.bf16.mxu0 %v22352_v61 }
 0x54a   : > { %6665 = vst.msk [vmem:[#allocation3 + $0x74] sm:$0xff] %vm451_vm2, %v6629_v37  ;;  %v6630_v58 = vmul.f32 %v6594_v18, %v21769_v10  ;;  %v5125_v40 = vpop.f32.mrb[49].mxu0  ;;  %v6753_v31 = vld [vmem:[#allocation3 + $0x42] sm:$0xff] }
 0x54b   : > { %6663 = vst.msk [vmem:[#allocation3 + $0x64] sm:$0xff] %vm451_vm2, %v6627_v27  ;;  %v6628_v56 = vmul.f32 %v6592_v55, %v21765_v8  ;;  %v18337_v46 = vpop.f32.mrb[32].mxu1  ;;  %v18186_v23 = vpop.f32.mrb[50].mxu0  ;;  %v6756_v17 = vld [vmem:[#allocation3 + $0x5a] sm:$0xff] }
 0x54c   : > { %6666 = vst.msk [vmem:[#allocation3 + $0x7c] sm:$0xff] %vm451_vm2, %v6630_v58  ;;  %v19417_v6 = vadd.f32 %v18337_v46, %v18185_v42  ;;  %v6445_v45 = vpop.f32.mrb[33].mxu1  ;;  %v5128_v4 = vpop.f32.mrb[51].mxu0  ;;  %v6754_v62 = vld [vmem:[#allocation3 + $0x4a] sm:$0xff]  ;;  %v6755_v53 = vld [vmem:[#allocation3 + $0x52] sm:$0xff] }
 0x54d   : > { %6664 = vst.msk [vmem:[#allocation3 + $0x6c] sm:$0xff] %vm451_vm2, %v6628_v56  ;;  %v19418_v13 = vadd.f32 %v6445_v45, %v5125_v40  ;;  %v18338_v33 = vpop.f32.mrb[34].mxu1  ;;  %v6786_v51 = vpack.c.bf16 %v6754_v62, %v6753_v31  ;;  %v6787_v37 = vpack.c.bf16 %v6756_v17, %v6755_v53 }
 0x54e   : > { %v6597_v18 = vadd.f32 %v19417_v6, %v22323_v32  ;;  %v19419_v27 = vadd.f32 %v18338_v33, %v18186_v23  ;;  %v6448_v55 = vpop.f32.mrb[35].mxu1 }
 0x54f   : > { %v6595_v8 = vadd.f32 %v19418_v13, %v22323_v32  ;;  %v19420_v10 = vadd.f32 %v6448_v55, %v5128_v4  ;;  %18366 = vmatmul.mubr.msk.bf16.gmra.mrb[76].mxu0 %vm451_vm2, %v6786_v51 }
 0x550   : > { %v6633_v42 = vmul.f32 %v6597_v18, %v21788_v29  ;;  %v6598_v58 = vadd.f32 %v19419_v27, %v22323_v32  ;;  %18369 = vmatprep.mubr.msk.bf16.mxu0 %vm451_vm2, %v6787_v37 }
 0x551   : > { %v6631_v40 = vmul.f32 %v6595_v8, %v21777_v15  ;;  %v6596_v56 = vadd.f32 %v19420_v10, %v22323_v32 }
 0x552   : > { %6669 = vst.msk [vmem:[#allocation3 + $0x94] sm:$0xff] %vm451_vm2, %v6633_v42  ;;  %v6634_v46 = vmul.f32 %v6598_v58, %v21794_v34  ;;  %v6757_v31 = vld [vmem:[#allocation3 + $0x62] sm:$0xff] }
 0x553   : > { %6667 = vst.msk [vmem:[#allocation3 + $0x84] sm:$0xff] %vm451_vm2, %v6631_v40  ;;  %v6632_v23 = vmul.f32 %v6596_v56, %v21781_v21  ;;  %v18341_v17 = vpop.f32.mrb[0].mxu1  ;;  %v6760_v6 = vld [vmem:[#allocation3 + $0x7a] sm:$0xff] }
 0x554   : > { %6670 = vst.msk [vmem:[#allocation3 + $0x9c] sm:$0xff] %vm451_vm2, %v6634_v46  ;;  %v19421_v45 = vadd.f32 %v18341_v17, %v22280_v52  ;;  %v6461_v4 = vpop.f32.mrb[1].mxu1  ;;  %v6758_v62 = vld [vmem:[#allocation3 + $0x6a] sm:$0xff]  ;;  %v6759_v8 = vld [vmem:[#allocation3 + $0x72] sm:$0xff] }
 0x555   : > { %6668 = vst.msk [vmem:[#allocation3 + $0x8c] sm:$0xff] %vm451_vm2, %v6632_v23  ;;  %v19422_v10 = vadd.f32 %v6461_v4, %v22282_v11  ;;  %v18342_v53 = vpop.f32.mrb[2].mxu1  ;;  %v6788_v13 = vpack.c.bf16 %v6758_v62, %v6757_v31  ;;  %v6789_v33 = vpack.c.bf16 %v6760_v6, %v6759_v8 }
 0x556   : > { %v6601_v51 = vadd.f32 %v19421_v45, %v22323_v32  ;;  %v19423_v37 = vadd.f32 %v18342_v53, %v22284_v26  ;;  %v6464_v18 = vpop.f32.mrb[3].mxu1 }
 0x557   : > { %v6599_v27 = vadd.f32 %v19422_v10, %v22323_v32  ;;  %v19424_v52 = vadd.f32 %v6464_v18, %v22286_v28  ;;  %18370 = vmatmul.mubr.msk.bf16.gmra.mrb[80].mxu0 %vm451_vm2, %v6788_v13 }
 0x558   : > { %v6637_v55 = vmul.f32 %v6601_v51, %v21820_v19  ;;  %v6602_v42 = vadd.f32 %v19423_v37, %v22323_v32  ;;  %18373 = vmatprep.mubr.msk.bf16.mxu0 %vm451_vm2, %v6789_v33 }
 0x559   : > { %v6635_v11 = vmul.f32 %v6599_v27, %v21801_v44  ;;  %v6600_v58 = vadd.f32 %v19424_v52, %v22323_v32 }
 0x55a   : > { %6673 = vst.msk [vmem:[#allocation3 + $0xb4] sm:$0xff] %vm451_vm2, %v6637_v55  ;;  %v6638_v26 = vmul.f32 %v6602_v42, %v21827_v25  ;;  %v6761_v17 = vld [vmem:[#allocation3 + $0x82] sm:$0xff] }
 0x55b   : > { %6671 = vst.msk [vmem:[#allocation3 + $0xa4] sm:$0xff] %vm451_vm2, %v6635_v11  ;;  %v6636_v28 = vmul.f32 %v6600_v58, %v21806_v48  ;;  %v18345_v40 = vpop.f32.mrb[4].mxu1  ;;  %v6764_v56 = vld [vmem:[#allocation3 + $0x9a] sm:$0xff] }
 0x55c   : > { %6674 = vst.msk [vmem:[#allocation3 + $0xbc] sm:$0xff] %vm451_vm2, %v6638_v26  ;;  %v19425_v46 = vadd.f32 %v18345_v40, %v22288_v35  ;;  %v6477_v23 = vpop.f32.mrb[5].mxu1  ;;  %v6762_v6 = vld [vmem:[#allocation3 + $0x8a] sm:$0xff]  ;;  %v6763_v45 = vld [vmem:[#allocation3 + $0x92] sm:$0xff] }
 0x55d   : > { %6672 = vst.msk [vmem:[#allocation3 + $0xac] sm:$0xff] %vm451_vm2, %v6636_v28  ;;  %v19426_v4 = vadd.f32 %v6477_v23, %v22290_v59  ;;  %v18346_v31 = vpop.f32.mrb[6].mxu1  ;;  %v6790_v62 = vpack.c.bf16 %v6762_v6, %v6761_v17  ;;  %v6791_v8 = vpack.c.bf16 %v6764_v56, %v6763_v45 }
 0x55e   : > { %v6605_v10 = vadd.f32 %v19425_v46, %v22323_v32  ;;  %v19427_v53 = vadd.f32 %v18346_v31, %v22292_v39  ;;  %v6480_v13 = vpop.f32.mrb[7].mxu1 }
 0x55f   : > { %v6603_v33 = vadd.f32 %v19426_v4, %v22323_v32  ;;  %v19428_v35 = vadd.f32 %v6480_v13, %v22294_v60  ;;  %18374 = vmatmul.mubr.msk.bf16.gmra.mrb[84].mxu0 %vm451_vm2, %v6790_v62 }
 0x560   : > { %v6641_v51 = vmul.f32 %v6605_v10, %v21851_v57  ;;  %v6606_v37 = vadd.f32 %v19427_v53, %v22323_v32  ;;  %18377 = vmatprep.mubr.msk.bf16.mxu0 %vm451_vm2, %v6791_v8 }
 0x561   : > { %v6639_v59 = vmul.f32 %v6603_v33, %v21837_v38  ;;  %v6604_v18 = vadd.f32 %v19428_v35, %v22323_v32 }
 0x562   : > { %6677 = vst.msk [vmem:[#allocation3 + $0xd4] sm:$0xff] %vm451_vm2, %v6641_v51  ;;  %v6642_v39 = vmul.f32 %v6606_v37, %v21857_v22  ;;  %v6765_v11 = vld [vmem:[#allocation3 + $0xa2] sm:$0xff] }
 0x563   : > { %6675 = vst.msk [vmem:[#allocation3 + $0xc4] sm:$0xff] %vm451_vm2, %v6639_v59  ;;  %v6640_v60 = vmul.f32 %v6604_v18, %v21842_v47  ;;  %v18349_v27 = vpop.f32.mrb[8].mxu1  ;;  %v6768_v52 = vld [vmem:[#allocation3 + $0xba] sm:$0xff] }
 0x564   : > { %6678 = vst.msk [vmem:[#allocation3 + $0xdc] sm:$0xff] %vm451_vm2, %v6642_v39  ;;  %v19429_v55 = vadd.f32 %v18349_v27, %v22296_v50  ;;  %v6493_v42 = vpop.f32.mrb[9].mxu1  ;;  %v6766_v58 = vld [vmem:[#allocation3 + $0xaa] sm:$0xff]  ;;  %v6767_v26 = vld [vmem:[#allocation3 + $0xb2] sm:$0xff] }
 0x565   : > { %6676 = vst.msk [vmem:[#allocation3 + $0xcc] sm:$0xff] %vm451_vm2, %v6640_v60  ;;  %v19430_v28 = vadd.f32 %v6493_v42, %v22298_v49  ;;  %v18350_v40 = vpop.f32.mrb[10].mxu1  ;;  %v6792_v56 = vpack.c.bf16 %v6766_v58, %v6765_v11  ;;  %v6793_v46 = vpack.c.bf16 %v6768_v52, %v6767_v26  ;;  %v23496_v42 = vld [vmem:[#allocation11_spill] sm:$0xff] }
 0x566   : > { %v6609_v23 = vadd.f32 %v19429_v55, %v22323_v32  ;;  %v19431_v17 = vadd.f32 %v18350_v40, %v22300_v20  ;;  %v6496_v6 = vpop.f32.mrb[11].mxu1 }
 0x567   : > { %v6607_v45 = vadd.f32 %v19430_v28, %v22323_v32  ;;  %v19432_v50 = vadd.f32 %v6496_v6, %v22302_v43  ;;  %18378 = vmatmul.mubr.msk.bf16.gmra.mrb[88].mxu0 %vm451_vm2, %v6792_v56  ;;  %v23499_v56 = vld [vmem:[#allocation10_spill] sm:$0xff] }
 0x568   : > { %v6645_v4 = vmul.f32 %v6609_v23, %v21880_v16  ;;  %v6610_v31 = vadd.f32 %v19431_v17, %v22323_v32  ;;  %18381 = vmatprep.mubr.msk.bf16.mxu0 %vm451_vm2, %v6793_v46  ;;  %v23500_v17 = vld [vmem:[#allocation17_spill] sm:$0xff] }
 0x569   : > { %v6643_v49 = vmul.f32 %v6607_v45, %v21866_v36  ;;  %v6608_v62 = vadd.f32 %v19432_v50, %v22323_v32 }
 0x56a   : > { %6681 = vst.msk [vmem:[#allocation3 + $0xf4] sm:$0xff] %vm451_vm2, %v6645_v4  ;;  %v6646_v20 = vmul.f32 %v6610_v31, %v21886_v24  ;;  %v6769_v33 = vld [vmem:[#allocation3 + $0xc2] sm:$0xff] }
 0x56b   : > { %6679 = vst.msk [vmem:[#allocation3 + $0xe4] sm:$0xff] %vm451_vm2, %v6643_v49  ;;  %v6644_v43 = vmul.f32 %v6608_v62, %v21871_v41  ;;  %v18353_v8 = vpop.f32.mrb[12].mxu1  ;;  %v6772_v10 = vld [vmem:[#allocation3 + $0xda] sm:$0xff] }
 0x56c   : > { %6682 = vst.msk [vmem:[#allocation3 + $0xfc] sm:$0xff] %vm451_vm2, %v6646_v20  ;;  %v19433_v53 = vadd.f32 %v18353_v8, %v22304_v12  ;;  %v6509_v13 = vpop.f32.mrb[13].mxu1  ;;  %v6770_v35 = vld [vmem:[#allocation3 + $0xca] sm:$0xff]  ;;  %v6771_v51 = vld [vmem:[#allocation3 + $0xd2] sm:$0xff] }
 0x56d   : > { %6680 = vst.msk [vmem:[#allocation3 + $0xec] sm:$0xff] %vm451_vm2, %v6644_v43  ;;  %v19434_v37 = vadd.f32 %v6509_v13, %v22306_v54  ;;  %v18354_v59 = vpop.f32.mrb[14].mxu1  ;;  %v6794_v18 = vpack.c.bf16 %v6770_v35, %v6769_v33  ;;  %v6795_v39 = vpack.c.bf16 %v6772_v10, %v6771_v51  ;;  %v23497_v54 = vld [vmem:[#allocation9_spill] sm:$0xff]  ;;  %v23501_v49 = vld [vmem:[#allocation18_spill] sm:$0xff]  ;;  %v23503_v51 = vld [vmem:[#allocation20_spill] sm:$0xff] }
 0x56e   : > { %v6613_v60 = vadd.f32 %v19433_v53, %v22323_v32  ;;  %v19435_v27 = vadd.f32 %v18354_v59, %v22308_v14  ;;  %v6512_v52 = vpop.f32.mrb[15].mxu1  ;;  %v23498_v14 = vld [vmem:[#allocation12_spill] sm:$0xff]  ;;  %v23502_v53 = vld [vmem:[#allocation19_spill] sm:$0xff] }
 0x56f   : > { %v6611_v55 = vadd.f32 %v19434_v37, %v22323_v32  ;;  %v19436_v12 = vadd.f32 %v6512_v52, %v22310_v30  ;;  %18382 = vmatmul.mubr.msk.bf16.gmra.mrb[92].mxu0 %vm451_vm2, %v6794_v18  ;;  %v23504_v59 = vld [vmem:[#allocation15_spill] sm:$0xff] }
 0x570   : > { %v6649_v11 = vmul.f32 %v6613_v60, %v23496_v42  ;;  %v6614_v58 = vadd.f32 %v19435_v27, %v22323_v32  ;;  %18385 = vmatprep.mubr.msk.bf16.mxu0 %vm451_vm2, %v6795_v39  ;;  %v23505_v60 = vld [vmem:[#allocation13_spill] sm:$0xff] }
 0x571   : > { %v6647_v26 = vmul.f32 %v6611_v55, %v23497_v54  ;;  %v6612_v28 = vadd.f32 %v19436_v12, %v22323_v32  ;;  %v23506_v55 = vld [vmem:[#allocation16_spill] sm:$0xff] }
 0x572   : > { %6685 = vst.msk [vmem:[#allocation3 + $0x114] sm:$0xff] %vm451_vm2, %v6649_v11  ;;  %v6650_v40 = vmul.f32 %v6614_v58, %v23498_v14  ;;  %v6773_v50 = vld [vmem:[#allocation3 + $0xe2] sm:$0xff]  ;;  %v23507_v11 = vld [vmem:[#allocation14_spill] sm:$0xff] }
 0x573   : > { %6683 = vst.msk [vmem:[#allocation3 + $0x104] sm:$0xff] %vm451_vm2, %v6647_v26  ;;  %v6648_v30 = vmul.f32 %v6612_v28, %v23499_v56  ;;  %v18357_v46 = vpop.f32.mrb[16].mxu1  ;;  %v6776_v23 = vld [vmem:[#allocation3 + $0xfa] sm:$0xff] }
 0x574   : > { %6686 = vst.msk [vmem:[#allocation3 + $0x11c] sm:$0xff] %vm451_vm2, %v6650_v40  ;;  %v19437_v6 = vadd.f32 %v18357_v46, %v23500_v17  ;;  %v6525_v45 = vpop.f32.mrb[17].mxu1  ;;  %v6774_v4 = vld [vmem:[#allocation3 + $0xea] sm:$0xff]  ;;  %v6775_v31 = vld [vmem:[#allocation3 + $0xf2] sm:$0xff] }
 0x575   : > { %6684 = vst.msk [vmem:[#allocation3 + $0x10c] sm:$0xff] %vm451_vm2, %v6648_v30  ;;  %v19438_v62 = vadd.f32 %v6525_v45, %v23501_v49  ;;  %v18358_v20 = vpop.f32.mrb[18].mxu1  ;;  %v6796_v43 = vpack.c.bf16 %v6774_v4, %v6773_v50  ;;  %v6797_v8 = vpack.c.bf16 %v6776_v23, %v6775_v31  ;;  %v6692_v17 = vld [vmem:[#allocation3 + $0x19] sm:$0xff]  ;;  %v6694_v31 = vld [vmem:[#allocation3 + $0x29] sm:$0xff]  ;;  %v6695_v49 = vld [vmem:[#allocation3 + $0x31] sm:$0xff] }
 0x576   : > { %v6617_v10 = vadd.f32 %v19437_v6, %v22323_v32  ;;  %v19439_v13 = vadd.f32 %v18358_v20, %v23502_v53  ;;  %v6528_v33 = vpop.f32.mrb[19].mxu1  ;;  %v6693_v20 = vld [vmem:[#allocation3 + $0x21] sm:$0xff]  ;;  %v6698_v53 = vld [vmem:[#allocation3 + $0x49] sm:$0xff] }
 0x577   : > { %v6615_v35 = vadd.f32 %v19438_v62, %v22323_v32  ;;  %v19440_v37 = vadd.f32 %v6528_v33, %v23503_v51  ;;  %18386 = vmatmul.mubr.msk.bf16.gmra.mrb[96].mxu0 %vm451_vm2, %v6796_v43  ;;  %v6696_v62 = vld [vmem:[#allocation3 + $0x39] sm:$0xff]  ;;  %v6728_v43 = vpack.c.bf16 %v6694_v31, %v6693_v20  ;;  %v6715_v31 = vld [vmem:[#allocation3 + $0xd1] sm:$0xff] }
 0x578   : > { %v6653_v18 = vmul.f32 %v6617_v10, %v23504_v59  ;;  %v6618_v39 = vadd.f32 %v19439_v13, %v22323_v32  ;;  %18389 = vmatprep.mubr.msk.bf16.mxu0 %vm451_vm2, %v6797_v8  ;;  %v22481_v8 = vld [vmem:[%s23452_s6 + $0x18] sm:$0xff]   ;;  %v6729_v10 = vpack.c.bf16 %v6696_v62, %v6695_v49  ;;  %v6700_v33 = vld [vmem:[#allocation3 + $0x59] sm:$0xff]  ;;  %v6713_v62 = vld [vmem:[#allocation3 + $0xc1] sm:$0xff] }
 0x579   : > { %v6651_v27 = vmul.f32 %v6615_v35, %v23505_v60  ;;  %v6616_v52 = vadd.f32 %v19440_v37, %v22323_v32  ;;  %v6691_v32 = vld [vmem:[#allocation3 + $0x11] sm:$0xff]  ;;  %v6697_v35 = vld [vmem:[#allocation3 + $0x41] sm:$0xff]  ;;  %v6716_v49 = vld [vmem:[#allocation3 + $0xd9] sm:$0xff] }
 0x57a   : > { %6689 = vst.msk [vmem:[#allocation3 + $0x134] sm:$0xff] %vm451_vm2, %v6653_v18  ;;  %v6654_v12 = vmul.f32 %v6618_v39, %v23506_v55  ;;  %v6777_v28 = vld [vmem:[#allocation3 + $0x102] sm:$0xff]  ;;  %v6727_v50 = vpack.c.bf16 %v6692_v17, %v6691_v32  ;;  %v6699_v13 = vld [vmem:[#allocation3 + $0x51] sm:$0xff]  ;;  %v6730_v51 = vpack.c.bf16 %v6698_v53, %v6697_v35  ;;  %v6712_v17 = vld [vmem:[#allocation3 + $0xb9] sm:$0xff] }
 0x57b   : > { %6687 = vst.msk [vmem:[#allocation3 + $0x124] sm:$0xff] %vm451_vm2, %v6651_v27  ;;  %v6652_v58 = vmul.f32 %v6616_v52, %v23507_v11  ;;  %v6780_v26 = vld [vmem:[#allocation3 + $0x11a] sm:$0xff]  ;;  %v6731_v37 = vpack.c.bf16 %v6700_v33, %v6699_v13  ;;  %v6702_v18 = vld [vmem:[#allocation3 + $0x69] sm:$0xff]  ;;  %v6703_v39 = vld [vmem:[#allocation3 + $0x71] sm:$0xff] }
 0x57c   : > { %6690 = vst.msk [vmem:[#allocation3 + $0x13c] sm:$0xff] %vm451_vm2, %v6654_v12  ;;  %v6778_v40 = vld [vmem:[#allocation3 + $0x10a] sm:$0xff]  ;;  %v6779_v30 = vld [vmem:[#allocation3 + $0x112] sm:$0xff]  ;;  %v6701_v52 = vld [vmem:[#allocation3 + $0x61] sm:$0xff] }
 0x57d   : > { %6688 = vst.msk [vmem:[#allocation3 + $0x12c] sm:$0xff] %vm451_vm2, %v6652_v58  ;;  %v6798_v46 = vpack.c.bf16 %v6778_v40, %v6777_v28  ;;  %v6799_v23 = vpack.c.bf16 %v6780_v26, %v6779_v30  ;;  %v6704_v27 = vld [vmem:[#allocation3 + $0x79] sm:$0xff]  ;;  %v6732_v12 = vpack.c.bf16 %v6702_v18, %v6701_v52  ;;  %v6706_v58 = vld [vmem:[#allocation3 + $0x89] sm:$0xff]  ;;  %v6707_v26 = vld [vmem:[#allocation3 + $0x91] sm:$0xff] }
 0x57e   : > { %v6708_v28 = vld [vmem:[#allocation3 + $0x99] sm:$0xff]  ;;  %v6705_v40 = vld [vmem:[#allocation3 + $0x81] sm:$0xff]  ;;  %v6711_v32 = vld [vmem:[#allocation3 + $0xb1] sm:$0xff] }
 0x57f   : > { %18390 = vmatmul.mubr.msk.bf16.gmra.mrb[100].mxu0 %vm451_vm2, %v6798_v46  ;;  %v6734_v30 = vpack.c.bf16 %v6706_v58, %v6705_v40  ;;  %v6735_v46 = vpack.c.bf16 %v6708_v28, %v6707_v26  ;;  %v6719_v53 = vld [vmem:[#allocation3 + $0xf1] sm:$0xff]  ;;  %v6720_v13 = vld [vmem:[#allocation3 + $0xf9] sm:$0xff]  ;;  %v6717_v33 = vld [vmem:[#allocation3 + $0xe1] sm:$0xff] }
 0x580   : > { %18393 = vmatprep.mubr.msk.bf16.mxu0 %vm451_vm2, %v6799_v23  ;;  %v6710_v23 = vld [vmem:[#allocation3 + $0xa9] sm:$0xff]  ;;  %v6723_v18 = vld [vmem:[#allocation3 + $0x111] sm:$0xff]  ;;  %v7279_v58 = vld [vmem:[#allocation3 + $0x1b] sm:$0xff] }
 0x582   : > { %v6781_v6 = vld [vmem:[#allocation3 + $0x122] sm:$0xff] }
 0x583   : > { %v6725_v28 = vld [vmem:[#allocation3 + $0x121] sm:$0xff] }
 0x584   : > { %v6782_v45 = vld [vmem:[#allocation3 + $0x12a] sm:$0xff] }
 0x585   : > { %v6800_v4 = vpack.c.bf16 %v6782_v45, %v6781_v6  ;;  %v6709_v6 = vld [vmem:[#allocation3 + $0xa1] sm:$0xff]  ;;  %v6726_v26 = vld [vmem:[#allocation3 + $0x129] sm:$0xff] }
 0x586   : > { %v6736_v45 = vpack.c.bf16 %v6710_v23, %v6709_v6  ;;  %v7282_v23 = vld [vmem:[#allocation3 + $0x33] sm:$0xff] }
 0x587   : > { %18394 = vmatmul.mubr.msk.bf16.gmra.mrb[104].mxu0 %vm451_vm2, %v6800_v4  ;;  %v6714_v4 = vld [vmem:[#allocation3 + $0xc9] sm:$0xff] }
 0x588   : > { %18399 = vmatprep.mubr.msk.bf16.mxu0 %vm451_vm2, %v6727_v50  ;;  %v6737_v50 = vpack.c.bf16 %v6712_v17, %v6711_v32  ;;  %v6738_v20 = vpack.c.bf16 %v6714_v4, %v6713_v62  ;;  %v7283_v32 = vld [vmem:[#allocation3 + $0x3b] sm:$0xff]  ;;  %v7280_v17 = vld [vmem:[#allocation3 + $0x23] sm:$0xff]  ;;  %v7285_v4 = vld [vmem:[#allocation3 + $0x4b] sm:$0xff] }
 0x589   : > { %v7284_v62 = vld [vmem:[#allocation3 + $0x43] sm:$0xff] }
 0x58f   : > { %18400 = vmatmul.mubr.msk.bf16.vlgmr.msra.gmra.mrb[72].mxu0 %vm451_vm2, %v6728_v43  ;;  %v6739_v43 = vpack.c.bf16 %v6716_v49, %v6715_v31  ;;  %v7286_v31 = vld [vmem:[#allocation3 + $0x53] sm:$0xff]  ;;  %v7287_v49 = vld [vmem:[#allocation3 + $0x5b] sm:$0xff] }
 0x590   : > { %18436 = vmatpush3.bf16.msra.mxu0 %v22352_v61  ;;  %18403 = vmatprep.mubr.msk.bf16.mxu0 %vm451_vm2, %v6729_v10  ;;  %v6733_v61 = vpack.c.bf16 %v6704_v27, %v6703_v39  ;;  %v6718_v10 = vld [vmem:[#allocation3 + $0xe9] sm:$0xff]  ;;  %v6724_v39 = vld [vmem:[#allocation3 + $0x119] sm:$0xff]  ;;  %v6721_v27 = vld [vmem:[#allocation3 + $0x101] sm:$0xff] }
 0x591   : > { %18473 = vmatprep.subr.bf16.mxu0 %v22481_v8  ;;  %v6740_v35 = vpack.c.bf16 %v6718_v10, %v6717_v33  ;;  %v7289_v10 = vld [vmem:[#allocation3 + $0x6b] sm:$0xff]  ;;  %v7288_v33 = vld [vmem:[#allocation3 + $0x63] sm:$0xff] }
 0x597   : > { %18404 = vmatmul.mubr.msk.bf16.gmra.mrb[76].mxu0 %vm451_vm2, %v6730_v51  ;;  %v6741_v51 = vpack.c.bf16 %v6720_v13, %v6719_v53  ;;  %v7290_v53 = vld [vmem:[#allocation3 + $0x73] sm:$0xff]  ;;  %v7291_v13 = vld [vmem:[#allocation3 + $0x7b] sm:$0xff] }
 0x598   : > { %18407 = vmatprep.mubr.msk.bf16.mxu0 %vm451_vm2, %v6731_v37  ;;  %v6722_v37 = vld [vmem:[#allocation3 + $0x109] sm:$0xff] }
 0x599   : > { %v6742_v52 = vpack.c.bf16 %v6722_v37, %v6721_v27  ;;  %v7294_v37 = vld [vmem:[#allocation3 + $0x93] sm:$0xff] }
 0x59f   : > { %18408 = vmatmul.mubr.msk.bf16.gmra.mrb[80].mxu0 %vm451_vm2, %v6732_v12  ;;  %v6743_v12 = vpack.c.bf16 %v6724_v39, %v6723_v18  ;;  %v7295_v18 = vld [vmem:[#allocation3 + $0x9b] sm:$0xff]  ;;  %v7292_v39 = vld [vmem:[#allocation3 + $0x83] sm:$0xff] }
 0x5a0   : > { %18411 = vmatprep.mubr.msk.bf16.mxu0 %vm451_vm2, %v6733_v61  ;;  %v7278_v61 = vld [vmem:[#allocation3 + $0x13] sm:$0xff] }
 0x5a1   : > { %v7314_v40 = vpack.c.bf16 %v7279_v58, %v7278_v61  ;;  %v7298_v61 = vld [vmem:[#allocation3 + $0xb3] sm:$0xff]  ;;  %v7299_v58 = vld [vmem:[#allocation3 + $0xbb] sm:$0xff] }
 0x5a7   : > { %18412 = vmatmul.mubr.msk.bf16.gmra.mrb[84].mxu0 %vm451_vm2, %v6734_v30  ;;  %v6744_v30 = vpack.c.bf16 %v6726_v26, %v6725_v28  ;;  %v7296_v26 = vld [vmem:[#allocation3 + $0xa3] sm:$0xff] }
 0x5a8   : > { %18415 = vmatprep.mubr.msk.bf16.mxu0 %vm451_vm2, %v6735_v46  ;;  %v7281_v46 = vld [vmem:[#allocation3 + $0x2b] sm:$0xff] }
 0x5a9   : > { %v22503_v6 = vpack.c.bf16 %v7281_v46, %v7280_v17  ;;  %v7302_v46 = vld [vmem:[#allocation3 + $0xd3] sm:$0xff] }
 0x5af   : > { %18416 = vmatmul.mubr.msk.bf16.gmra.mrb[88].mxu0 %vm451_vm2, %v6736_v45  ;;  %v22508_v45 = vld [vmem:[%s23452_s6 + $0x20] sm:$0xff]  }
 0x5b0   : > { %18419 = vmatprep.mubr.msk.bf16.mxu0 %vm451_vm2, %v6737_v50  ;;  %v22510_v50 = vpack.c.bf16 %v7283_v32, %v7282_v23  ;;  %v7303_v23 = vld [vmem:[#allocation3 + $0xdb] sm:$0xff]  ;;  %v7300_v32 = vld [vmem:[#allocation3 + $0xc3] sm:$0xff] }
 0x5b7   : > { %18420 = vmatmul.mubr.msk.bf16.gmra.mrb[92].mxu0 %vm451_vm2, %v6738_v20  ;;  %v7317_v20 = vpack.c.bf16 %v7285_v4, %v7284_v62  ;;  %v7326_v4 = vpack.c.bf16 %v7303_v23, %v7302_v46  ;;  %v7307_v62 = vld [vmem:[#allocation3 + $0xfb] sm:$0xff]  ;;  %v22561_v46 = vld [vmem:[%s23452_s6 + $0x30] sm:$0xff]  }
 0x5b8   : > { %18423 = vmatprep.mubr.msk.bf16.mxu0 %vm451_vm2, %v6739_v43  ;;  %v7318_v43 = vpack.c.bf16 %v7287_v49, %v7286_v31  ;;  %v7305_v31 = vld [vmem:[#allocation3 + $0xeb] sm:$0xff]  ;;  %v7306_v49 = vld [vmem:[#allocation3 + $0xf3] sm:$0xff] }
 0x5bf   : > { %18424 = vmatmul.mubr.msk.bf16.gmra.mrb[96].mxu0 %vm451_vm2, %v6740_v35  ;;  %v7320_v35 = vpack.c.bf16 %v7291_v13, %v7290_v53  ;;  %v7328_v13 = vpack.c.bf16 %v7307_v62, %v7306_v49  ;;  %v7946_v49 = vld [vmem:[#allocation3 + $0x64] sm:$0xff] }
 0x5c0   : > { %18427 = vmatprep.mubr.msk.bf16.mxu0 %vm451_vm2, %v6741_v51  ;;  %v7293_v51 = vld [vmem:[#allocation3 + $0x8b] sm:$0xff] }
 0x5c1   : > { %v7321_v27 = vpack.c.bf16 %v7293_v51, %v7292_v39  ;;  %v7310_v51 = vld [vmem:[#allocation3 + $0x113] sm:$0xff] }
 0x5c7   : > { %18428 = vmatmul.mubr.msk.bf16.gmra.mrb[100].mxu0 %vm451_vm2, %v6742_v52  ;;  %v7322_v52 = vpack.c.bf16 %v7295_v18, %v7294_v37  ;;  %v7311_v37 = vld [vmem:[#allocation3 + $0x11b] sm:$0xff]  ;;  %v7308_v18 = vld [vmem:[#allocation3 + $0x103] sm:$0xff] }
 0x5c8   : > { %18431 = vmatprep.mubr.msk.bf16.mxu0 %vm451_vm2, %v6743_v12  ;;  %v7297_v12 = vld [vmem:[#allocation3 + $0xab] sm:$0xff] }
 0x5c9   : > { %v7323_v28 = vpack.c.bf16 %v7297_v12, %v7296_v26  ;;  %v7330_v12 = vpack.c.bf16 %v7311_v37, %v7310_v51  ;;  %v7950_v51 = vld [vmem:[#allocation3 + $0x84] sm:$0xff] }
 0x5cf   : > { %18432 = vmatmul.mubr.msk.bf16.gmra.mrb[104].mxu0 %vm451_vm2, %v6744_v30  ;;  %v7301_v30 = vld [vmem:[#allocation3 + $0xcb] sm:$0xff] }
 0x5d0   : > { %18437 = vmatprep.mubr.msk.bf16.mxu0 %vm451_vm2, %v7314_v40  ;;  %v7324_v40 = vpack.c.bf16 %v7299_v58, %v7298_v61  ;;  %v7325_v17 = vpack.c.bf16 %v7301_v30, %v7300_v32  ;;  %v7313_v61 = vld [vmem:[#allocation3 + $0x12b] sm:$0xff]  ;;  %v7312_v58 = vld [vmem:[#allocation3 + $0x123] sm:$0xff] }
 0x5d1   : > { %v7331_v26 = vpack.c.bf16 %v7313_v61, %v7312_v58  ;;  %v20954_v30 = vld [vmem:[%s23452_s6 + $0x28] sm:$0xff]  }
 0x5d2   : > { %v7945_v32 = vld [vmem:[#allocation3 + $0x5c] sm:$0xff]  ;;  %v7954_v58 = vld [vmem:[#allocation3 + $0xa4] sm:$0xff] }
 0x5d7   : > { %18438 = vmatmul.mubr.msk.bf16.vlgmr.msra.gmra.mrb[72].mxu0 %vm451_vm2, %v22503_v6 }
 0x5d8   : > { %18474 = vmatpush3.bf16.msra.mxu0 %v22481_v8  ;;  %18441 = vmatprep.mubr.msk.bf16.mxu0 %vm451_vm2, %v22510_v50  ;;  %v7319_v8 = vpack.c.bf16 %v7289_v10, %v7288_v33  ;;  %v7304_v10 = vld [vmem:[#allocation3 + $0xe3] sm:$0xff]  ;;  %v7309_v33 = vld [vmem:[#allocation3 + $0x10b] sm:$0xff] }
 0x5d9   : > { %18511 = vmatprep.subr.bf16.mxu0 %v22508_v45  ;;  %v7327_v53 = vpack.c.bf16 %v7305_v31, %v7304_v10  ;;  %v7329_v39 = vpack.c.bf16 %v7309_v33, %v7308_v18  ;;  %v7949_v10 = vld [vmem:[#allocation3 + $0x7c] sm:$0xff] }
 0x5da   : > { %v7953_v18 = vld [vmem:[#allocation3 + $0x9c] sm:$0xff] }
 0x5df   : > { %18442 = vmatmul.mubr.msk.bf16.gmra.mrb[76].mxu0 %vm451_vm2, %v7317_v20 }
 0x5e0   : > { %18445 = vmatprep.mubr.msk.bf16.mxu0 %vm451_vm2, %v7318_v43 }
 0x5e7   : > { %18446 = vmatmul.mubr.msk.bf16.gmra.mrb[80].mxu0 %vm451_vm2, %v7319_v8 }
 0x5e8   : > { %18449 = vmatprep.mubr.msk.bf16.mxu0 %vm451_vm2, %v7320_v35 }
 0x5ef   : > { %18450 = vmatmul.mubr.msk.bf16.gmra.mrb[84].mxu0 %vm451_vm2, %v7321_v27 }
 0x5f0   : > { %18453 = vmatprep.mubr.msk.bf16.mxu0 %vm451_vm2, %v7322_v52 }
 0x5f7   : > { %18454 = vmatmul.mubr.msk.bf16.gmra.mrb[88].mxu0 %vm451_vm2, %v7323_v28 }
 0x5f8   : > { %18457 = vmatprep.mubr.msk.bf16.mxu0 %vm451_vm2, %v7324_v40 }
 0x5ff   : > { %18458 = vmatmul.mubr.msk.bf16.gmra.mrb[92].mxu0 %vm451_vm2, %v7325_v17 }
 0x600   : > { %18461 = vmatprep.mubr.msk.bf16.mxu0 %vm451_vm2, %v7326_v4 }
 0x607   : > { %18462 = vmatmul.mubr.msk.bf16.gmra.mrb[96].mxu0 %vm451_vm2, %v7327_v53 }
 0x608   : > { %18465 = vmatprep.mubr.msk.bf16.mxu0 %vm451_vm2, %v7328_v13 }
 0x60f   : > { %18466 = vmatmul.mubr.msk.bf16.gmra.mrb[100].mxu0 %vm451_vm2, %v7329_v39 }
 0x610   : > { %18469 = vmatprep.mubr.msk.bf16.mxu0 %vm451_vm2, %v7330_v12 }
 0x617   : > { %18470 = vmatmul.mubr.msk.bf16.gmra.mrb[104].mxu0 %vm451_vm2, %v7331_v26 }
 0x618   : > { %18475 = vmatprep.mubr.msk.bf16.mxu0 %vm451_vm2, %v22503_v6  ;;  %v7642_v6 = vld [vmem:[#allocation3 + $0x133] sm:$0xff] }
 0x61f   : > { %18476 = vmatmul.mubr.msk.bf16.vlgmr.msra.gmra.mrb[72].mxu0 %vm451_vm2, %v22510_v50  ;;  %v7939_v50 = vld [vmem:[#allocation3 + $0x2c] sm:$0xff] }
 0x620   : > { %18512 = vmatpush3.bf16.msra.mxu0 %v22508_v45  ;;  %18479 = vmatprep.mubr.msk.bf16.mxu0 %vm451_vm2, %v7317_v20  ;;  %v7643_v45 = vld [vmem:[#allocation3 + $0x13b] sm:$0xff] }
 0x621   : > { %18549 = vmatprep.subr.bf16.mxu0 %v20954_v30  ;;  %v7661_v20 = vpack.c.bf16 %v7643_v45, %v7642_v6  ;;  %v7959_v6 = vld [vmem:[#allocation3 + $0xcc] sm:$0xff]  ;;  %v7956_v45 = vld [vmem:[#allocation3 + $0xb4] sm:$0xff] }
 0x627   : > { %18480 = vmatmul.mubr.msk.bf16.gmra.mrb[76].mxu0 %vm451_vm2, %v7318_v43  ;;  %v7938_v43 = vld [vmem:[#allocation3 + $0x24] sm:$0xff] }
 0x628   : > { %18483 = vmatprep.mubr.msk.bf16.mxu0 %vm451_vm2, %v7319_v8  ;;  %v7974_v8 = vpack.c.bf16 %v7939_v50, %v7938_v43 }
 0x62f   : > { %18484 = vmatmul.mubr.msk.bf16.gmra.mrb[80].mxu0 %vm451_vm2, %v7320_v35  ;;  %v7941_v35 = vld [vmem:[#allocation3 + $0x3c] sm:$0xff] }
 0x630   : > { %18487 = vmatprep.mubr.msk.bf16.mxu0 %vm451_vm2, %v7321_v27  ;;  %v7943_v27 = vld [vmem:[#allocation3 + $0x4c] sm:$0xff] }
 0x637   : > { %18488 = vmatmul.mubr.msk.bf16.gmra.mrb[84].mxu0 %vm451_vm2, %v7322_v52  ;;  %v7940_v52 = vld [vmem:[#allocation3 + $0x34] sm:$0xff] }
 0x638   : > { %18491 = vmatprep.mubr.msk.bf16.mxu0 %vm451_vm2, %v7323_v28  ;;  %v7975_v28 = vpack.c.bf16 %v7941_v35, %v7940_v52  ;;  %v7963_v35 = vld [vmem:[#allocation3 + $0xec] sm:$0xff] }
 0x63f   : > { %18492 = vmatmul.mubr.msk.bf16.gmra.mrb[88].mxu0 %vm451_vm2, %v7324_v40  ;;  %v7942_v40 = vld [vmem:[#allocation3 + $0x44] sm:$0xff] }
 0x640   : > { %18495 = vmatprep.mubr.msk.bf16.mxu0 %vm451_vm2, %v7325_v17  ;;  %v7976_v23 = vpack.c.bf16 %v7943_v27, %v7942_v40  ;;  %v7947_v17 = vld [vmem:[#allocation3 + $0x6c] sm:$0xff]  ;;  %v7960_v27 = vld [vmem:[#allocation3 + $0xd4] sm:$0xff] }
 0x641   : > { %v7978_v62 = vpack.c.bf16 %v7947_v17, %v7946_v49  ;;  %v7964_v17 = vld [vmem:[#allocation3 + $0xf4] sm:$0xff] }
 0x647   : > { %18496 = vmatmul.mubr.msk.bf16.gmra.mrb[92].mxu0 %vm451_vm2, %v7326_v4  ;;  %v7944_v4 = vld [vmem:[#allocation3 + $0x54] sm:$0xff] }
 0x648   : > { %18499 = vmatprep.mubr.msk.bf16.mxu0 %vm451_vm2, %v7327_v53  ;;  %v7977_v31 = vpack.c.bf16 %v7945_v32, %v7944_v4  ;;  %v7951_v53 = vld [vmem:[#allocation3 + $0x8c] sm:$0xff] }
 0x649   : > { %v7980_v37 = vpack.c.bf16 %v7951_v53, %v7950_v51  ;;  %v7967_v32 = vld [vmem:[#allocation3 + $0x10c] sm:$0xff]  ;;  %v7968_v53 = vld [vmem:[#allocation3 + $0x114] sm:$0xff] }
 0x64f   : > { %18500 = vmatmul.mubr.msk.bf16.gmra.mrb[96].mxu0 %vm451_vm2, %v7328_v13  ;;  %v7948_v13 = vld [vmem:[#allocation3 + $0x74] sm:$0xff] }
 0x650   : > { %18503 = vmatprep.mubr.msk.bf16.mxu0 %vm451_vm2, %v7329_v39  ;;  %v7979_v33 = vpack.c.bf16 %v7949_v10, %v7948_v13  ;;  %v7955_v39 = vld [vmem:[#allocation3 + $0xac] sm:$0xff] }
 0x651   : > { %v7971_v10 = vld [vmem:[#allocation3 + $0x12c] sm:$0xff] }
 0x657   : > { %18504 = vmatmul.mubr.msk.bf16.gmra.mrb[100].mxu0 %vm451_vm2, %v7330_v12  ;;  %v7952_v12 = vld [vmem:[#allocation3 + $0x94] sm:$0xff] }
 0x658   : > { %18507 = vmatprep.mubr.msk.bf16.mxu0 %vm451_vm2, %v7331_v26  ;;  %v7981_v61 = vpack.c.bf16 %v7953_v18, %v7952_v12  ;;  %v7982_v26 = vpack.c.bf16 %v7955_v39, %v7954_v58  ;;  %v8268_v18 = vld [vmem:[#allocation3 + $0x25] sm:$0xff]  ;;  %v8269_v39 = vld [vmem:[#allocation3 + $0x2d] sm:$0xff] }
 0x659   : > { %v7972_v12 = vld [vmem:[#allocation3 + $0x134] sm:$0xff]  ;;  %v8304_v58 = vpack.c.bf16 %v8269_v39, %v8268_v18 }
 0x65a   : > { %v8289_v18 = vld [vmem:[#allocation3 + $0xcd] sm:$0xff]  ;;  %v8286_v39 = vld [vmem:[#allocation3 + $0xb5] sm:$0xff] }
 0x65f   : > { %18508 = vmatmul.mubr.msk.bf16.gmra.mrb[104].mxu0 %vm451_vm2, %v7661_v20  ;;  %v7958_v20 = vld [vmem:[#allocation3 + $0xc4] sm:$0xff] }
 0x660   : > { %18513 = vmatprep.mubr.msk.bf16.mxu0 %vm451_vm2, %v7974_v8  ;;  %v7984_v43 = vpack.c.bf16 %v7959_v6, %v7958_v20  ;;  %v7961_v8 = vld [vmem:[#allocation3 + $0xdc] sm:$0xff]  ;;  %v8273_v6 = vld [vmem:[#allocation3 + $0x4d] sm:$0xff] }
 0x661   : > { %v7985_v52 = vpack.c.bf16 %v7961_v8, %v7960_v27  ;;  %v22587_v20 = vld [vmem:[%s23452_s6 + $0x38] sm:$0xff]   ;;  %v8275_v8 = vld [vmem:[#allocation3 + $0x5d] sm:$0xff] }
 0x662   : > { %v8277_v27 = vld [vmem:[#allocation3 + $0x6d] sm:$0xff] }
 0x667   : > { %18514 = vmatmul.mubr.msk.bf16.vlgmr.msra.gmra.mrb[72].mxu0 %vm451_vm2, %v7975_v28  ;;  %v7962_v28 = vld [vmem:[#allocation3 + $0xe4] sm:$0xff] }
 0x668   : > { %18550 = vmatpush3.bf16.msra.mxu0 %v20954_v30  ;;  %18517 = vmatprep.mubr.msk.bf16.mxu0 %vm451_vm2, %v7976_v23  ;;  %v7957_v30 = vld [vmem:[#allocation3 + $0xbc] sm:$0xff]  ;;  %v7986_v40 = vpack.c.bf16 %v7963_v35, %v7962_v28  ;;  %v8276_v35 = vld [vmem:[#allocation3 + $0x65] sm:$0xff] }
 0x669   : > { %18587 = vmatprep.subr.bf16.mxu0 %v22561_v46  ;;  %v7983_v50 = vpack.c.bf16 %v7957_v30, %v7956_v45  ;;  %v7965_v23 = vld [vmem:[#allocation3 + $0xfc] sm:$0xff]  ;;  %v8272_v30 = vld [vmem:[#allocation3 + $0x45] sm:$0xff] }
 0x66a   : > { %v7987_v4 = vpack.c.bf16 %v7965_v23, %v7964_v17  ;;  %v8270_v45 = vld [vmem:[#allocation3 + $0x35] sm:$0xff]  ;;  %v8279_v23 = vld [vmem:[#allocation3 + $0x7d] sm:$0xff]  ;;  %v8281_v17 = vld [vmem:[#allocation3 + $0x8d] sm:$0xff] }
 0x66f   : > { %18518 = vmatmul.mubr.msk.bf16.gmra.mrb[76].mxu0 %vm451_vm2, %v7977_v31  ;;  %v7966_v31 = vld [vmem:[#allocation3 + $0x104] sm:$0xff] }
 0x670   : > { %18521 = vmatprep.mubr.msk.bf16.mxu0 %vm451_vm2, %v7978_v62  ;;  %v7988_v49 = vpack.c.bf16 %v7967_v32, %v7966_v31  ;;  %v7969_v62 = vld [vmem:[#allocation3 + $0x11c] sm:$0xff]  ;;  %v8280_v32 = vld [vmem:[#allocation3 + $0x85] sm:$0xff] }
 0x671   : > { %v7989_v13 = vpack.c.bf16 %v7969_v62, %v7968_v53  ;;  %v8310_v31 = vpack.c.bf16 %v8281_v17, %v8280_v32  ;;  %v8284_v62 = vld [vmem:[#allocation3 + $0xa5] sm:$0xff]  ;;  %v8282_v53 = vld [vmem:[#allocation3 + $0x95] sm:$0xff] }
 0x677   : > { %18522 = vmatmul.mubr.msk.bf16.gmra.mrb[80].mxu0 %vm451_vm2, %v7979_v33  ;;  %v7970_v33 = vld [vmem:[#allocation3 + $0x124] sm:$0xff] }
 0x678   : > { %18525 = vmatprep.mubr.msk.bf16.mxu0 %vm451_vm2, %v7980_v37  ;;  %v7990_v51 = vpack.c.bf16 %v7971_v10, %v7970_v33  ;;  %v7973_v37 = vld [vmem:[#allocation3 + $0x13c] sm:$0xff]  ;;  %v8285_v10 = vld [vmem:[#allocation3 + $0xad] sm:$0xff] }
 0x679   : > { %v8312_v33 = vpack.c.bf16 %v8285_v10, %v8284_v62  ;;  %v8301_v62 = vld [vmem:[#allocation3 + $0x12d] sm:$0xff]  ;;  %v8298_v10 = vld [vmem:[#allocation3 + $0x115] sm:$0xff] }
 0x67f   : > { %18526 = vmatmul.mubr.msk.bf16.gmra.mrb[84].mxu0 %vm451_vm2, %v7981_v61  ;;  %v7991_v61 = vpack.c.bf16 %v7973_v37, %v7972_v12  ;;  %v8288_v37 = vld [vmem:[#allocation3 + $0xc5] sm:$0xff] }
 0x680   : > { %18529 = vmatprep.mubr.msk.bf16.mxu0 %vm451_vm2, %v7982_v26  ;;  %v8271_v26 = vld [vmem:[#allocation3 + $0x3d] sm:$0xff] }
 0x687   : > { %18530 = vmatmul.mubr.msk.bf16.gmra.mrb[88].mxu0 %vm451_vm2, %v7983_v50  ;;  %v22582_v50 = vpack.c.bf16 %v8271_v26, %v8270_v45  ;;  %v8292_v26 = vld [vmem:[#allocation3 + $0xe5] sm:$0xff] }
 0x688   : > { %18533 = vmatprep.mubr.msk.bf16.mxu0 %vm451_vm2, %v7984_v43  ;;  %v22589_v43 = vpack.c.bf16 %v8273_v6, %v8272_v30  ;;  %v8293_v30 = vld [vmem:[#allocation3 + $0xed] sm:$0xff]  ;;  %v8290_v6 = vld [vmem:[#allocation3 + $0xd5] sm:$0xff] }
 0x68f   : > { %18534 = vmatmul.mubr.msk.bf16.gmra.mrb[92].mxu0 %vm451_vm2, %v7985_v52  ;;  %v8274_v52 = vld [vmem:[#allocation3 + $0x55] sm:$0xff] }
 0x690   : > { %18537 = vmatprep.mubr.msk.bf16.mxu0 %vm451_vm2, %v7986_v40  ;;  %v8307_v28 = vpack.c.bf16 %v8275_v8, %v8274_v52  ;;  %v8308_v40 = vpack.c.bf16 %v8277_v27, %v8276_v35  ;;  %v8316_v8 = vpack.c.bf16 %v8293_v30, %v8292_v26  ;;  %v8295_v35 = vld [vmem:[#allocation3 + $0xfd] sm:$0xff]  ;;  %v8296_v27 = vld [vmem:[#allocation3 + $0x105] sm:$0xff]  ;;  %v8297_v52 = vld [vmem:[#allocation3 + $0x10d] sm:$0xff] }
 0x691   : > { %v8318_v17 = vpack.c.bf16 %v8297_v52, %v8296_v27  ;;  %v8934_v30 = vld [vmem:[#allocation3 + $0x66] sm:$0xff] }
 0x692   : > { %v20958_v52 = vld [vmem:[%s23454_s8 + $0x10] sm:$0xff]  }
 0x693   : > { %18701 = vmatprep.subr.bf16.mxu1 %v20958_v52 }
 0x694   : > { %18702 = vmatpush3.bf16.msra.mxu1 %v20958_v52  ;;  %v8958_v52 = vld [vmem:[#allocation3 + $0x126] sm:$0xff] }
 0x697   : > { %18538 = vmatmul.mubr.msk.bf16.gmra.mrb[96].mxu0 %vm451_vm2, %v7987_v4  ;;  %v8278_v4 = vld [vmem:[#allocation3 + $0x75] sm:$0xff] }
 0x698   : > { %18541 = vmatprep.mubr.msk.bf16.mxu0 %vm451_vm2, %v7988_v49  ;;  %v8283_v49 = vld [vmem:[#allocation3 + $0x9d] sm:$0xff] }
 0x69f   : > { %18542 = vmatmul.mubr.msk.bf16.gmra.mrb[100].mxu0 %vm451_vm2, %v7989_v13  ;;  %v8311_v13 = vpack.c.bf16 %v8283_v49, %v8282_v53  ;;  %v8300_v49 = vld [vmem:[#allocation3 + $0x125] sm:$0xff] }
 0x6a0   : > { %18545 = vmatprep.mubr.msk.bf16.mxu0 %vm451_vm2, %v7990_v51  ;;  %v8287_v51 = vld [vmem:[#allocation3 + $0xbd] sm:$0xff] }
 0x6a1   : > { %v8313_v12 = vpack.c.bf16 %v8287_v51, %v8286_v39  ;;  %v8320_v51 = vpack.c.bf16 %v8301_v62, %v8300_v49  ;;  %v8940_v62 = vld [vmem:[#allocation3 + $0x96] sm:$0xff] }
 0x6a7   : > { %18546 = vmatmul.mubr.msk.bf16.gmra.mrb[104].mxu0 %vm451_vm2, %v7991_v61  ;;  %v8314_v61 = vpack.c.bf16 %v8289_v18, %v8288_v37  ;;  %v8302_v37 = vld [vmem:[#allocation3 + $0x135] sm:$0xff]  ;;  %v8303_v18 = vld [vmem:[#allocation3 + $0x13d] sm:$0xff] }
 0x6a8   : > { %18551 = vmatprep.mubr.msk.bf16.mxu0 %vm451_vm2, %v8304_v58  ;;  %v8291_v58 = vld [vmem:[#allocation3 + $0xdd] sm:$0xff]  ;;  %v8321_v39 = vpack.c.bf16 %v8303_v18, %v8302_v37 }
 0x6a9   : > { %v8315_v45 = vpack.c.bf16 %v8291_v58, %v8290_v6  ;;  %v20957_v58 = vld [vmem:[%s23452_s6 + $0x40] sm:$0xff]   ;;  %v8935_v6 = vld [vmem:[#allocation3 + $0x6e] sm:$0xff] }
 0x6aa   : > { %v8945_v37 = vld [vmem:[#allocation3 + $0xbe] sm:$0xff] }
 0x6af   : > { %18552 = vmatmul.mubr.msk.bf16.vlgmr.msra.gmra.mrb[72].mxu0 %vm451_vm2, %v22582_v50 }
 0x6b0   : > { %18588 = vmatpush3.bf16.msra.mxu0 %v22561_v46  ;;  %18555 = vmatprep.mubr.msk.bf16.mxu0 %vm451_vm2, %v22589_v43  ;;  %v8309_v46 = vpack.c.bf16 %v8279_v23, %v8278_v4  ;;  %v8294_v23 = vld [vmem:[#allocation3 + $0xf5] sm:$0xff]  ;;  %v8299_v4 = vld [vmem:[#allocation3 + $0x11d] sm:$0xff] }
 0x6b1   : > { %18625 = vmatprep.subr.bf16.mxu0 %v22587_v20  ;;  %v8317_v32 = vpack.c.bf16 %v8295_v35, %v8294_v23  ;;  %v8319_v53 = vpack.c.bf16 %v8299_v4, %v8298_v10  ;;  %v8936_v35 = vld [vmem:[#allocation3 + $0x76] sm:$0xff]  ;;  %v8941_v4 = vld [vmem:[#allocation3 + $0x9e] sm:$0xff] }
 0x6b2   : > { %v20959_v23 = vld [vmem:[%s23454_s8 + $0x18] sm:$0xff]   ;;  %v8970_v10 = vpack.c.bf16 %v8941_v4, %v8940_v62  ;;  %v8962_v62 = vld [vmem:[#allocation3 + $0x146] sm:$0xff] }
 0x6b3   : > { %18703 = vmatprep.subr.bf16.mxu1 %v20959_v23 }
 0x6b4   : > { %18704 = vmatpush3.bf16.msra.mxu1 %v20959_v23  ;;  %v8959_v23 = vld [vmem:[#allocation3 + $0x12e] sm:$0xff] }
 0x6b5   : > { %v8979_v4 = vpack.c.bf16 %v8959_v23, %v8958_v52  ;;  %v9275_v52 = vld [vmem:[#allocation3 + $0xbf] sm:$0xff] }
 0x6b7   : > { %18556 = vmatmul.mubr.msk.bf16.gmra.mrb[76].mxu0 %vm451_vm2, %v8307_v28 }
 0x6b8   : > { %18559 = vmatprep.mubr.msk.bf16.mxu0 %vm451_vm2, %v8308_v40 }
 0x6bf   : > { %18560 = vmatmul.mubr.msk.bf16.gmra.mrb[80].mxu0 %vm451_vm2, %v8309_v46 }
 0x6c0   : > { %18563 = vmatprep.mubr.msk.bf16.mxu0 %vm451_vm2, %v8310_v31 }
 0x6c7   : > { %18564 = vmatmul.mubr.msk.bf16.gmra.mrb[84].mxu0 %vm451_vm2, %v8311_v13 }
 0x6c8   : > { %18567 = vmatprep.mubr.msk.bf16.mxu0 %vm451_vm2, %v8312_v33 }
 0x6cf   : > { %18568 = vmatmul.mubr.msk.bf16.gmra.mrb[88].mxu0 %vm451_vm2, %v8313_v12 }
 0x6d0   : > { %18571 = vmatprep.mubr.msk.bf16.mxu0 %vm451_vm2, %v8314_v61 }
 0x6d7   : > { %18572 = vmatmul.mubr.msk.bf16.gmra.mrb[92].mxu0 %vm451_vm2, %v8315_v45 }
 0x6d8   : > { %18575 = vmatprep.mubr.msk.bf16.mxu0 %vm451_vm2, %v8316_v8 }
 0x6df   : > { %18576 = vmatmul.mubr.msk.bf16.gmra.mrb[96].mxu0 %vm451_vm2, %v8317_v32 }
 0x6e0   : > { %18579 = vmatprep.mubr.msk.bf16.mxu0 %vm451_vm2, %v8318_v17 }
 0x6e7   : > { %18580 = vmatmul.mubr.msk.bf16.gmra.mrb[100].mxu0 %vm451_vm2, %v8319_v53 }
 0x6e8   : > { %18583 = vmatprep.mubr.msk.bf16.mxu0 %vm451_vm2, %v8320_v51 }
 0x6ef   : > { %18584 = vmatmul.mubr.msk.bf16.gmra.mrb[104].mxu0 %vm451_vm2, %v8321_v39 }
 0x6f0   : > { %18589 = vmatprep.mubr.msk.bf16.mxu0 %vm451_vm2, %v22582_v50  ;;  %v8632_v50 = vld [vmem:[#allocation3 + $0x145] sm:$0xff] }
 0x6f7   : > { %18590 = vmatmul.mubr.msk.bf16.vlgmr.msra.gmra.mrb[72].mxu0 %vm451_vm2, %v22589_v43 }
 0x6f8   : > { %18626 = vmatpush3.bf16.msra.mxu0 %v22587_v20  ;;  %18593 = vmatprep.mubr.msk.bf16.mxu0 %vm451_vm2, %v8307_v28  ;;  %v8633_v20 = vld [vmem:[#allocation3 + $0x14d] sm:$0xff]  ;;  %v8929_v28 = vld [vmem:[#allocation3 + $0x3e] sm:$0xff] }
 0x6f9   : > { %18663 = vmatprep.subr.bf16.mxu0 %v20957_v58  ;;  %v8651_v43 = vpack.c.bf16 %v8633_v20, %v8632_v50  ;;  %v8946_v50 = vld [vmem:[#allocation3 + $0xc6] sm:$0xff]  ;;  %v8947_v20 = vld [vmem:[#allocation3 + $0xce] sm:$0xff] }
 0x6ff   : > { %18594 = vmatmul.mubr.msk.bf16.gmra.mrb[76].mxu0 %vm451_vm2, %v8308_v40  ;;  %v8928_v40 = vld [vmem:[#allocation3 + $0x36] sm:$0xff] }
 0x700   : > { %18597 = vmatprep.mubr.msk.bf16.mxu0 %vm451_vm2, %v8309_v46  ;;  %v8964_v46 = vpack.c.bf16 %v8929_v28, %v8928_v40  ;;  %v8973_v28 = vpack.c.bf16 %v8947_v20, %v8946_v50  ;;  %v8948_v40 = vld [vmem:[#allocation3 + $0xd6] sm:$0xff]  ;;  %v9263_v50 = vld [vmem:[#allocation3 + $0x5f] sm:$0xff] }
 0x707   : > { %18598 = vmatmul.mubr.msk.bf16.gmra.mrb[80].mxu0 %vm451_vm2, %v8310_v31  ;;  %v8930_v31 = vld [vmem:[#allocation3 + $0x46] sm:$0xff] }
 0x708   : > { %18601 = vmatprep.mubr.msk.bf16.mxu0 %vm451_vm2, %v8311_v13  ;;  %v8931_v13 = vld [vmem:[#allocation3 + $0x4e] sm:$0xff] }
 0x70f   : > { %18602 = vmatmul.mubr.msk.bf16.gmra.mrb[84].mxu0 %vm451_vm2, %v8312_v33  ;;  %v8933_v33 = vld [vmem:[#allocation3 + $0x5e] sm:$0xff] }
 0x710   : > { %18605 = vmatprep.mubr.msk.bf16.mxu0 %vm451_vm2, %v8313_v12  ;;  %v8965_v12 = vpack.c.bf16 %v8931_v13, %v8930_v31  ;;  %v8950_v31 = vld [vmem:[#allocation3 + $0xe6] sm:$0xff]  ;;  %v8951_v13 = vld [vmem:[#allocation3 + $0xee] sm:$0xff] }
 0x717   : > { %18606 = vmatmul.mubr.msk.bf16.gmra.mrb[88].mxu0 %vm451_vm2, %v8314_v61  ;;  %v8932_v61 = vld [vmem:[#allocation3 + $0x56] sm:$0xff] }
 0x718   : > { %18609 = vmatprep.mubr.msk.bf16.mxu0 %vm451_vm2, %v8315_v45  ;;  %v8966_v26 = vpack.c.bf16 %v8933_v33, %v8932_v61  ;;  %v8937_v45 = vld [vmem:[#allocation3 + $0x7e] sm:$0xff]  ;;  %v8952_v61 = vld [vmem:[#allocation3 + $0xf6] sm:$0xff] }
 0x719   : > { %v8968_v27 = vpack.c.bf16 %v8937_v45, %v8936_v35  ;;  %v8953_v33 = vld [vmem:[#allocation3 + $0xfe] sm:$0xff]  ;;  %v8956_v35 = vld [vmem:[#allocation3 + $0x116] sm:$0xff] }
 0x71a   : > { %v8957_v45 = vld [vmem:[#allocation3 + $0x11e] sm:$0xff] }
 0x71f   : > { %18610 = vmatmul.mubr.msk.bf16.gmra.mrb[92].mxu0 %vm451_vm2, %v8316_v8  ;;  %v8967_v8 = vpack.c.bf16 %v8935_v6, %v8934_v30  ;;  %v8954_v30 = vld [vmem:[#allocation3 + $0x106] sm:$0xff]  ;;  %v8955_v6 = vld [vmem:[#allocation3 + $0x10e] sm:$0xff] }
 0x720   : > { %18613 = vmatprep.mubr.msk.bf16.mxu0 %vm451_vm2, %v8317_v32  ;;  %v8938_v32 = vld [vmem:[#allocation3 + $0x86] sm:$0xff] }
 0x727   : > { %18614 = vmatmul.mubr.msk.bf16.gmra.mrb[96].mxu0 %vm451_vm2, %v8318_v17  ;;  %v8939_v17 = vld [vmem:[#allocation3 + $0x8e] sm:$0xff] }
 0x728   : > { %18617 = vmatprep.mubr.msk.bf16.mxu0 %vm451_vm2, %v8319_v53  ;;  %v8969_v49 = vpack.c.bf16 %v8939_v17, %v8938_v32  ;;  %v8942_v53 = vld [vmem:[#allocation3 + $0xa6] sm:$0xff]  ;;  %v8960_v32 = vld [vmem:[#allocation3 + $0x136] sm:$0xff]  ;;  %v8961_v17 = vld [vmem:[#allocation3 + $0x13e] sm:$0xff] }
 0x72f   : > { %18618 = vmatmul.mubr.msk.bf16.gmra.mrb[100].mxu0 %vm451_vm2, %v8320_v51  ;;  %v8943_v51 = vld [vmem:[#allocation3 + $0xae] sm:$0xff] }
 0x730   : > { %18621 = vmatprep.mubr.msk.bf16.mxu0 %vm451_vm2, %v8321_v39  ;;  %v8971_v18 = vpack.c.bf16 %v8943_v51, %v8942_v53  ;;  %v8944_v39 = vld [vmem:[#allocation3 + $0xb6] sm:$0xff]  ;;  %v9259_v51 = vld [vmem:[#allocation3 + $0x3f] sm:$0xff] }
 0x737   : > { %18622 = vmatmul.mubr.msk.bf16.gmra.mrb[104].mxu0 %vm451_vm2, %v8651_v43  ;;  %v8949_v43 = vld [vmem:[#allocation3 + $0xde] sm:$0xff] }
 0x738   : > { %18627 = vmatprep.mubr.msk.bf16.mxu0 %vm451_vm2, %v8964_v46  ;;  %v8974_v46 = vpack.c.bf16 %v8949_v43, %v8948_v40  ;;  %v9262_v43 = vld [vmem:[#allocation3 + $0x57] sm:$0xff]  ;;  %v9264_v40 = vld [vmem:[#allocation3 + $0x67] sm:$0xff] }
 0x73f   : > { %18628 = vmatmul.mubr.msk.bf16.vlgmr.msra.gmra.mrb[72].mxu0 %vm451_vm2, %v8965_v12  ;;  %v8975_v12 = vpack.c.bf16 %v8951_v13, %v8950_v31  ;;  %v9267_v31 = vld [vmem:[#allocation3 + $0x7f] sm:$0xff] }
 0x740   : > { %18664 = vmatpush3.bf16.msra.mxu0 %v20957_v58  ;;  %18631 = vmatprep.mubr.msk.bf16.mxu0 %vm451_vm2, %v8966_v26  ;;  %v8972_v58 = vpack.c.bf16 %v8945_v37, %v8944_v39  ;;  %v8976_v26 = vpack.c.bf16 %v8953_v33, %v8952_v61  ;;  %v9258_v37 = vld [vmem:[#allocation3 + $0x37] sm:$0xff]  ;;  %v9260_v39 = vld [vmem:[#allocation3 + $0x47] sm:$0xff] }
 0x741   : > { %v9266_v33 = vld [vmem:[#allocation3 + $0x77] sm:$0xff]  ;;  %v9268_v61 = vld [vmem:[#allocation3 + $0x87] sm:$0xff] }
 0x747   : > { %18632 = vmatmul.mubr.msk.bf16.gmra.mrb[76].mxu0 %vm451_vm2, %v8967_v8  ;;  %v8977_v8 = vpack.c.bf16 %v8955_v6, %v8954_v30  ;;  %v9271_v30 = vld [vmem:[#allocation3 + $0x9f] sm:$0xff] }
 0x748   : > { %18635 = vmatprep.mubr.msk.bf16.mxu0 %vm451_vm2, %v8968_v27  ;;  %v8978_v27 = vpack.c.bf16 %v8957_v45, %v8956_v35  ;;  %v9270_v45 = vld [vmem:[#allocation3 + $0x97] sm:$0xff]  ;;  %v9272_v35 = vld [vmem:[#allocation3 + $0xa7] sm:$0xff] }
 0x74f   : > { %18636 = vmatmul.mubr.msk.bf16.gmra.mrb[80].mxu0 %vm451_vm2, %v8969_v49  ;;  %v8980_v49 = vpack.c.bf16 %v8961_v17, %v8960_v32  ;;  %v9274_v32 = vld [vmem:[#allocation3 + $0xb7] sm:$0xff] }
 0x750   : > { %18639 = vmatprep.mubr.msk.bf16.mxu0 %vm451_vm2, %v8970_v10  ;;  %v8963_v10 = vld [vmem:[#allocation3 + $0x14e] sm:$0xff]  ;;  %v9302_v17 = vpack.c.bf16 %v9275_v52, %v9274_v32  ;;  %v23508_v52 = vmov 0.0  }
 0x751   : > { %v8981_v53 = vpack.c.bf16 %v8963_v10, %v8962_v62  ;;  %v9279_v62 = vld [vmem:[#allocation3 + $0xdf] sm:$0xff]  ;;  %479 = vst.msk [vmem:[#allocation4 + $0x20] sm:$0xf] %vm478_vm5, %v23508_v52 }
 0x752   : > { %v23509_v52 = vld [vmem:[#allocation6_spill] sm:$0xff] }
 0x757   : > { %18640 = vmatmul.mubr.msk.bf16.gmra.mrb[84].mxu0 %vm451_vm2, %v8971_v18  ;;  %v9294_v18 = vpack.c.bf16 %v9259_v51, %v9258_v37  ;;  %v9280_v37 = vld [vmem:[#allocation3 + $0xe7] sm:$0xff] }
 0x758   : > { %18643 = vmatprep.mubr.msk.bf16.mxu0 %vm451_vm2, %v8972_v58  ;;  %v9261_v58 = vld [vmem:[#allocation3 + $0x4f] sm:$0xff]  ;;  %v9798_v32 = vld [vmem:[#allocation4 + $0x1a] sm:$0xff] }
 0x759   : > { %v9295_v20 = vpack.c.bf16 %v9261_v58, %v9260_v39  ;;  %v9283_v39 = vld [vmem:[#allocation3 + $0xff] sm:$0xff] }
 0x75f   : > { %18644 = vmatmul.mubr.msk.bf16.gmra.mrb[88].mxu0 %vm451_vm2, %v8973_v28  ;;  %v9296_v28 = vpack.c.bf16 %v9263_v50, %v9262_v43  ;;  %v9282_v50 = vld [vmem:[#allocation3 + $0xf7] sm:$0xff]  ;;  %v9284_v43 = vld [vmem:[#allocation3 + $0x107] sm:$0xff] }
 0x760   : > { %18647 = vmatprep.mubr.msk.bf16.mxu0 %vm451_vm2, %v8974_v46  ;;  %v9265_v46 = vld [vmem:[#allocation3 + $0x6f] sm:$0xff] }
 0x761   : > { %v9297_v13 = vpack.c.bf16 %v9265_v46, %v9264_v40  ;;  %v9287_v40 = vld [vmem:[#allocation3 + $0x11f] sm:$0xff] }
 0x767   : > { %18648 = vmatmul.mubr.msk.bf16.gmra.mrb[92].mxu0 %vm451_vm2, %v8975_v12  ;;  %v9298_v12 = vpack.c.bf16 %v9267_v31, %v9266_v33  ;;  %v9286_v31 = vld [vmem:[#allocation3 + $0x117] sm:$0xff]  ;;  %v9288_v33 = vld [vmem:[#allocation3 + $0x127] sm:$0xff] }
 0x768   : > { %18651 = vmatprep.mubr.msk.bf16.mxu0 %vm451_vm2, %v8976_v26  ;;  %v9269_v26 = vld [vmem:[#allocation3 + $0x8f] sm:$0xff] }
 0x769   : > { %v9299_v6 = vpack.c.bf16 %v9269_v26, %v9268_v61  ;;  %v9290_v61 = vld [vmem:[#allocation3 + $0x137] sm:$0xff]  ;;  %v9291_v26 = vld [vmem:[#allocation3 + $0x13f] sm:$0xff] }
 0x76f   : > { %18652 = vmatmul.mubr.msk.bf16.gmra.mrb[96].mxu0 %vm451_vm2, %v8977_v8  ;;  %v9300_v8 = vpack.c.bf16 %v9271_v30, %v9270_v45  ;;  %v9292_v45 = vld [vmem:[#allocation3 + $0x147] sm:$0xff] }
 0x770   : > { %18655 = vmatprep.mubr.msk.bf16.mxu0 %vm451_vm2, %v8978_v27  ;;  %v9273_v27 = vld [vmem:[#allocation3 + $0xaf] sm:$0xff] }
 0x771   : > { %v9301_v23 = vpack.c.bf16 %v9273_v27, %v9272_v35  ;;  %v22681_v27 = vld [vmem:[%s23454_s8] sm:$0xff]  }
 0x772   : > { %18741 = vmatprep.subr.bf16.mxu1 %v22681_v27 }
 0x777   : > { %18656 = vmatmul.mubr.msk.bf16.gmra.mrb[100].mxu0 %vm451_vm2, %v8979_v4  ;;  %v9276_v4 = vld [vmem:[#allocation3 + $0xc7] sm:$0xff] }
 0x778   : > { %18659 = vmatprep.mubr.msk.bf16.mxu0 %vm451_vm2, %v8980_v49  ;;  %v9277_v49 = vld [vmem:[#allocation3 + $0xcf] sm:$0xff] }
 0x779   : > { %v9303_v10 = vpack.c.bf16 %v9277_v49, %v9276_v4  ;;  %v22689_v4 = vld [vmem:[%s23453_s7] ss:$0 sm:$0xff] }
 0x77f   : > { %18660 = vmatmul.mubr.msk.bf16.gmra.mrb[104].mxu0 %vm451_vm2, %v8981_v53  ;;  %v9278_v53 = vld [vmem:[#allocation3 + $0xd7] sm:$0xff] }
 0x780   : > { %18665 = vmatprep.mubr.msk.bf16.mxu0 %vm451_vm2, %v9294_v18  ;;  %v9304_v51 = vpack.c.bf16 %v9279_v62, %v9278_v53  ;;  %v9281_v18 = vld [vmem:[#allocation3 + $0xef] sm:$0xff] }
 0x781   : > { %v9305_v58 = vpack.c.bf16 %v9281_v18, %v9280_v37 }
 0x787   : > { %18666 = vmatmul.mubr.msk.bf16.vlgmr.msra.gmra.mrb[72].mxu0 %vm451_vm2, %v9295_v20  ;;  %v9306_v20 = vpack.c.bf16 %v9283_v39, %v9282_v50 }
 0x788   : > { %18669 = vmatprep.mubr.msk.bf16.mxu0 %vm451_vm2, %v9296_v28  ;;  %v9285_v28 = vld [vmem:[#allocation3 + $0x10f] sm:$0xff] }
 0x789   : > { %v9307_v46 = vpack.c.bf16 %v9285_v28, %v9284_v43 }
 0x78f   : > { %18670 = vmatmul.mubr.msk.bf16.gmra.mrb[76].mxu0 %vm451_vm2, %v9297_v13  ;;  %v9308_v13 = vpack.c.bf16 %v9287_v40, %v9286_v31 }
 0x790   : > { %18673 = vmatprep.mubr.msk.bf16.mxu0 %vm451_vm2, %v9298_v12  ;;  %v9289_v12 = vld [vmem:[#allocation3 + $0x12f] sm:$0xff] }
 0x791   : > { %v9309_v30 = vpack.c.bf16 %v9289_v12, %v9288_v33 }
 0x797   : > { %18674 = vmatmul.mubr.msk.bf16.gmra.mrb[80].mxu0 %vm451_vm2, %v9299_v6  ;;  %v9310_v6 = vpack.c.bf16 %v9291_v26, %v9290_v61 }
 0x798   : > { %18677 = vmatprep.mubr.msk.bf16.mxu0 %vm451_vm2, %v9300_v8  ;;  %v9293_v8 = vld [vmem:[#allocation3 + $0x14f] sm:$0xff] }
 0x799   : > { %v9311_v35 = vpack.c.bf16 %v9293_v8, %v9292_v45 }
 0x79f   : > { %18678 = vmatmul.mubr.msk.bf16.gmra.mrb[84].mxu0 %vm451_vm2, %v9301_v23  ;;  %v9797_v23 = vld [vmem:[#allocation4 + $0x12] sm:$0xff] }
 0x7a0   : > { %18681 = vmatprep.mubr.msk.bf16.mxu0 %vm451_vm2, %v9302_v17  ;;  %v9833_v17 = vpack.c.bf16 %v9798_v32, %v9797_v23  ;;  %v23510_v32 = vld [vmem:[#allocation5_spill] sm:$0xff] }
 0x7a2   : > { %18705 = vmatprep.mubr.msk.bf16.mxu1 %vm473_vm4, %v9833_v17 }
 0x7a7   : > { %18682 = vmatmul.mubr.msk.bf16.gmra.mrb[88].mxu0 %vm451_vm2, %v9303_v10 }
 0x7a8   : > { %18685 = vmatprep.mubr.msk.bf16.mxu0 %vm451_vm2, %v9304_v51 }
 0x7af   : > { %18686 = vmatmul.mubr.msk.bf16.gmra.mrb[92].mxu0 %vm451_vm2, %v9305_v58 }
 0x7b0   : > { %18689 = vmatprep.mubr.msk.bf16.mxu0 %vm451_vm2, %v9306_v20 }
 0x7b7   : > { %18690 = vmatmul.mubr.msk.bf16.gmra.mrb[96].mxu0 %vm451_vm2, %v9307_v46 }
 0x7b8   : > { %18693 = vmatprep.mubr.msk.bf16.mxu0 %vm451_vm2, %v9308_v13 }
 0x7bf   : > { %18694 = vmatmul.mubr.msk.bf16.gmra.mrb[100].mxu0 %vm451_vm2, %v9309_v30 }
 0x7c0   : > { %18697 = vmatprep.mubr.msk.bf16.mxu0 %vm451_vm2, %v9310_v6 }
 0x7c7   : > { %18698 = vmatmul.mubr.msk.bf16.gmra.mrb[104].mxu0 %vm451_vm2, %v9311_v35 }
 0x85a   : > { %v18667_v49 = vpop.f32.mrb[72].mxu0 }
 0x85b   : > { %v9597_v62 = vadd.f32 %v18667_v49, %v22689_v4  ;;  %v9409_v10 = vpop.f32.mrb[73].mxu0 }
 0x85c   : > { %v9595_v53 = vadd.f32 %v22689_v4, %v9409_v10  ;;  %v18668_v51 = vpop.f32.mrb[74].mxu0 }
 0x85d   : > { %v9633_v37 = vmax.f32 %v9597_v62, 0.0  ;;  %v9598_v18 = vadd.f32 %v18668_v51, %v22689_v4  ;;  %v9412_v39 = vpop.f32.mrb[75].mxu0 }
 0x85e   : > { %v9631_v58 = vmax.f32 %v9595_v53, 0.0  ;;  %v9596_v50 = vadd.f32 %v22689_v4, %v9412_v39 }
 0x85f   : > { %v9669_v20 = vmul.f32 %v9633_v37, %v21749_v0  ;;  %v9634_v43 = vmax.f32 %v9598_v18, 0.0 }
 0x860   : > { %v9667_v28 = vmul.f32 %v9631_v58, %v21747_v63  ;;  %v9632_v40 = vmax.f32 %v9596_v50, 0.0  ;;  %v20961_v50 = vld [vmem:[%s23454_s8 + $0x8] sm:$0xff]  }
 0x861   : > { %9705 = vst.msk [vmem:[#allocation4 + $0x34] sm:$0xff] %vm473_vm4, %v9669_v20  ;;  %v9670_v46 = vmul.f32 %v9634_v43, %v21753_v2 }
 0x862   : > { %9703 = vst.msk [vmem:[#allocation4 + $0x24] sm:$0xff] %vm473_vm4, %v9667_v28  ;;  %v9668_v31 = vmul.f32 %v9632_v40, %v21751_v1  ;;  %v18671_v13 = vpop.f32.mrb[76].mxu0 }
 0x863   : > { %9706 = vst.msk [vmem:[#allocation4 + $0x3c] sm:$0xff] %vm473_vm4, %v9670_v46  ;;  %v9601_v33 = vadd.f32 %v18671_v13, %v22689_v4  ;;  %v9425_v12 = vpop.f32.mrb[77].mxu0 }
 0x864   : > { %9704 = vst.msk [vmem:[#allocation4 + $0x2c] sm:$0xff] %vm473_vm4, %v9668_v31  ;;  %v9599_v0 = vadd.f32 %v22689_v4, %v9425_v12  ;;  %v18672_v63 = vpop.f32.mrb[78].mxu0 }
 0x865   : > { %v9637_v61 = vmax.f32 %v9601_v33, 0.0  ;;  %v9602_v26 = vadd.f32 %v18672_v63, %v22689_v4  ;;  %v9428_v30 = vpop.f32.mrb[79].mxu0  ;;  %v23511_v63 = vld [vmem:[#allocation8_spill] sm:$0xff] }
 0x866   : > { %v9635_v2 = vmax.f32 %v9599_v0, 0.0  ;;  %v9600_v6 = vadd.f32 %v22689_v4, %v9428_v30  ;;  %v22730_v0 = vld [vmem:[%s23454_s8 + $0x20] sm:$0xff]  }
 0x867   : > { %v9673_v1 = vmul.f32 %v9637_v61, %v21759_v5  ;;  %v9638_v45 = vmax.f32 %v9602_v26, 0.0 }
 0x868   : > { %v9671_v8 = vmul.f32 %v9635_v2, %v21755_v3  ;;  %v9636_v35 = vmax.f32 %v9600_v6, 0.0 }
 0x869   : > { %9709 = vst.msk [vmem:[#allocation4 + $0x54] sm:$0xff] %vm473_vm4, %v9673_v1  ;;  %v9674_v23 = vmul.f32 %v9638_v45, %v23509_v52  ;;  %v9799_v5 = vld [vmem:[#allocation4 + $0x22] sm:$0xff] }
 0x86a   : > { %9707 = vst.msk [vmem:[#allocation4 + $0x44] sm:$0xff] %vm473_vm4, %v9671_v8  ;;  %v9672_v17 = vmul.f32 %v9636_v35, %v23510_v32  ;;  %v18675_v49 = vpop.f32.mrb[80].mxu0  ;;  %v9802_v62 = vld [vmem:[#allocation4 + $0x3a] sm:$0xff] }
 0x86b   : > { %9710 = vst.msk [vmem:[#allocation4 + $0x5c] sm:$0xff] %vm473_vm4, %v9674_v23  ;;  %v9605_v10 = vadd.f32 %v18675_v49, %v22689_v4  ;;  %v9441_v53 = vpop.f32.mrb[81].mxu0  ;;  %v9800_v51 = vld [vmem:[#allocation4 + $0x2a] sm:$0xff]  ;;  %v9801_v37 = vld [vmem:[#allocation4 + $0x32] sm:$0xff] }
 0x86c   : > { %9708 = vst.msk [vmem:[#allocation4 + $0x4c] sm:$0xff] %vm473_vm4, %v9672_v17  ;;  %v9603_v3 = vadd.f32 %v22689_v4, %v9441_v53  ;;  %v18676_v18 = vpop.f32.mrb[82].mxu0  ;;  %v9834_v39 = vpack.c.bf16 %v9800_v51, %v9799_v5  ;;  %v9835_v58 = vpack.c.bf16 %v9802_v62, %v9801_v37 }
 0x86d   : > { %v9641_v20 = vmax.f32 %v9605_v10, 0.0  ;;  %v9606_v43 = vadd.f32 %v18676_v18, %v22689_v4  ;;  %v9444_v28 = vpop.f32.mrb[83].mxu0 }
 0x86e   : > { %v9639_v40 = vmax.f32 %v9603_v3, 0.0  ;;  %v9604_v46 = vadd.f32 %v22689_v4, %v9444_v28  ;;  %18706 = vmatmul.mubr.msk.bf16.vlgmr.msra.gmra.mrb[36].mxu1 %vm473_vm4, %v9834_v39 }
 0x86f   : > { %v9677_v31 = vmul.f32 %v9641_v20, %v21767_v9  ;;  %v9642_v13 = vmax.f32 %v9606_v43, 0.0  ;;  %18742 = vmatpush3.bf16.msra.mxu1 %v22681_v27  ;;  %18709 = vmatprep.mubr.msk.bf16.mxu1 %vm473_vm4, %v9835_v58  ;;  %v23512_v9 = vld [vmem:[#allocation7_spill] sm:$0xff] }
 0x870   : > { %v9675_v33 = vmul.f32 %v9639_v40, %v21763_v7  ;;  %v9640_v12 = vmax.f32 %v9604_v46, 0.0  ;;  %18743 = vmatprep.subr.bf16.mxu1 %v20961_v50 }
 0x871   : > { %9713 = vst.msk [vmem:[#allocation4 + $0x74] sm:$0xff] %vm473_vm4, %v9677_v31  ;;  %v9678_v61 = vmul.f32 %v9642_v13, %v23511_v63  ;;  %v9803_v6 = vld [vmem:[#allocation4 + $0x42] sm:$0xff] }
 0x872   : > { %9711 = vst.msk [vmem:[#allocation4 + $0x64] sm:$0xff] %vm473_vm4, %v9675_v33  ;;  %v9676_v26 = vmul.f32 %v9640_v12, %v23512_v9  ;;  %v18679_v27 = vpop.f32.mrb[84].mxu0  ;;  %v9806_v30 = vld [vmem:[#allocation4 + $0x5a] sm:$0xff] }
 0x873   : > { %9714 = vst.msk [vmem:[#allocation4 + $0x7c] sm:$0xff] %vm473_vm4, %v9678_v61  ;;  %v9609_v7 = vadd.f32 %v18679_v27, %v22689_v4  ;;  %v9457_v2 = vpop.f32.mrb[85].mxu0  ;;  %v9804_v1 = vld [vmem:[#allocation4 + $0x4a] sm:$0xff]  ;;  %v9805_v45 = vld [vmem:[#allocation4 + $0x52] sm:$0xff]  ;;  %18744 = vmatpush3.bf16.msra.mxu1 %v20961_v50 }
 0x874   : > { %9712 = vst.msk [vmem:[#allocation4 + $0x6c] sm:$0xff] %vm473_vm4, %v9676_v26  ;;  %v9607_v8 = vadd.f32 %v22689_v4, %v9457_v2  ;;  %v18680_v35 = vpop.f32.mrb[86].mxu0  ;;  %v9836_v52 = vpack.c.bf16 %v9804_v1, %v9803_v6  ;;  %v9837_v23 = vpack.c.bf16 %v9806_v30, %v9805_v45  ;;  %18781 = vmatprep.subr.bf16.mxu1 %v22730_v0 }
 0x875   : > { %v9645_v32 = vmax.f32 %v9609_v7, 0.0  ;;  %v9610_v17 = vadd.f32 %v18680_v35, %v22689_v4  ;;  %v9460_v49 = vpop.f32.mrb[87].mxu0 }
 0x876   : > { %v9643_v62 = vmax.f32 %v9607_v8, 0.0  ;;  %v9608_v10 = vadd.f32 %v22689_v4, %v9460_v49  ;;  %18710 = vmatmul.mubr.msk.bf16.gmra.mrb[40].mxu1 %vm473_vm4, %v9836_v52 }
 0x877   : > { %v9681_v53 = vmul.f32 %v9645_v32, %v21788_v29  ;;  %v9646_v5 = vmax.f32 %v9610_v17, 0.0  ;;  %18713 = vmatprep.mubr.msk.bf16.mxu1 %vm473_vm4, %v9837_v23 }
 0x878   : > { %v9679_v51 = vmul.f32 %v9643_v62, %v21777_v15  ;;  %v9644_v37 = vmax.f32 %v9608_v10, 0.0 }
 0x879   : > { %9717 = vst.msk [vmem:[#allocation4 + $0x94] sm:$0xff] %vm473_vm4, %v9681_v53  ;;  %v9682_v3 = vmul.f32 %v9646_v5, %v21794_v34  ;;  %v9807_v20 = vld [vmem:[#allocation4 + $0x62] sm:$0xff] }
 0x87a   : > { %9715 = vst.msk [vmem:[#allocation4 + $0x84] sm:$0xff] %vm473_vm4, %v9679_v51  ;;  %v9680_v18 = vmul.f32 %v9644_v37, %v21781_v21  ;;  %v18683_v39 = vpop.f32.mrb[88].mxu0  ;;  %v9810_v58 = vld [vmem:[#allocation4 + $0x7a] sm:$0xff] }
 0x87b   : > { %9718 = vst.msk [vmem:[#allocation4 + $0x9c] sm:$0xff] %vm473_vm4, %v9682_v3  ;;  %v9613_v29 = vadd.f32 %v18683_v39, %v22689_v4  ;;  %v9473_v50 = vpop.f32.mrb[89].mxu0  ;;  %v9808_v43 = vld [vmem:[#allocation4 + $0x6a] sm:$0xff]  ;;  %v9809_v28 = vld [vmem:[#allocation4 + $0x72] sm:$0xff] }
 0x87c   : > { %9716 = vst.msk [vmem:[#allocation4 + $0x8c] sm:$0xff] %vm473_vm4, %v9680_v18  ;;  %v9611_v15 = vadd.f32 %v22689_v4, %v9473_v50  ;;  %v18684_v40 = vpop.f32.mrb[90].mxu0  ;;  %v9838_v34 = vpack.c.bf16 %v9808_v43, %v9807_v20  ;;  %v9839_v46 = vpack.c.bf16 %v9810_v58, %v9809_v28 }
 0x87d   : > { %v9649_v31 = vmax.f32 %v9613_v29, 0.0  ;;  %v9614_v21 = vadd.f32 %v18684_v40, %v22689_v4  ;;  %v9476_v13 = vpop.f32.mrb[91].mxu0 }
 0x87e   : > { %v9647_v33 = vmax.f32 %v9611_v15, 0.0  ;;  %v9612_v12 = vadd.f32 %v22689_v4, %v9476_v13  ;;  %18714 = vmatmul.mubr.msk.bf16.gmra.mrb[44].mxu1 %vm473_vm4, %v9838_v34 }
 0x87f   : > { %v9685_v63 = vmul.f32 %v9649_v31, %v21820_v19  ;;  %v9650_v61 = vmax.f32 %v9614_v21, 0.0  ;;  %18717 = vmatprep.mubr.msk.bf16.mxu1 %vm473_vm4, %v9839_v46 }
 0x880   : > { %v9683_v9 = vmul.f32 %v9647_v33, %v21801_v44  ;;  %v9648_v26 = vmax.f32 %v9612_v12, 0.0 }
 0x881   : > { %9721 = vst.msk [vmem:[#allocation4 + $0xb4] sm:$0xff] %vm473_vm4, %v9685_v63  ;;  %v9686_v27 = vmul.f32 %v9650_v61, %v21827_v25  ;;  %v9811_v1 = vld [vmem:[#allocation4 + $0x82] sm:$0xff] }
 0x882   : > { %9719 = vst.msk [vmem:[#allocation4 + $0xa4] sm:$0xff] %vm473_vm4, %v9683_v9  ;;  %v9684_v30 = vmul.f32 %v9648_v26, %v21806_v48  ;;  %v18687_v7 = vpop.f32.mrb[92].mxu0  ;;  %v9814_v2 = vld [vmem:[#allocation4 + $0x9a] sm:$0xff] }
 0x883   : > { %9722 = vst.msk [vmem:[#allocation4 + $0xbc] sm:$0xff] %vm473_vm4, %v9686_v27  ;;  %v9617_v19 = vadd.f32 %v18687_v7, %v22689_v4  ;;  %v9489_v6 = vpop.f32.mrb[93].mxu0  ;;  %v9812_v45 = vld [vmem:[#allocation4 + $0x8a] sm:$0xff]  ;;  %v9813_v8 = vld [vmem:[#allocation4 + $0x92] sm:$0xff] }
 0x884   : > { %9720 = vst.msk [vmem:[#allocation4 + $0xac] sm:$0xff] %vm473_vm4, %v9684_v30  ;;  %v9615_v44 = vadd.f32 %v22689_v4, %v9489_v6  ;;  %v18688_v35 = vpop.f32.mrb[94].mxu0  ;;  %v9840_v25 = vpack.c.bf16 %v9812_v45, %v9811_v1  ;;  %v9841_v52 = vpack.c.bf16 %v9814_v2, %v9813_v8 }
 0x885   : > { %v9653_v23 = vmax.f32 %v9617_v19, 0.0  ;;  %v9618_v48 = vadd.f32 %v18688_v35, %v22689_v4  ;;  %v9492_v32 = vpop.f32.mrb[95].mxu0 }
 0x886   : > { %v9651_v17 = vmax.f32 %v9615_v44, 0.0  ;;  %v9616_v49 = vadd.f32 %v22689_v4, %v9492_v32  ;;  %18718 = vmatmul.mubr.msk.bf16.gmra.mrb[48].mxu1 %vm473_vm4, %v9840_v25 }
 0x887   : > { %v9689_v62 = vmul.f32 %v9653_v23, %v21851_v57  ;;  %v9654_v10 = vmax.f32 %v9618_v48, 0.0  ;;  %18721 = vmatprep.mubr.msk.bf16.mxu1 %vm473_vm4, %v9841_v52 }
 0x888   : > { %v9687_v53 = vmul.f32 %v9651_v17, %v21837_v38  ;;  %v9652_v5 = vmax.f32 %v9616_v49, 0.0 }
 0x889   : > { %9725 = vst.msk [vmem:[#allocation4 + $0xd4] sm:$0xff] %vm473_vm4, %v9689_v62  ;;  %v9690_v51 = vmul.f32 %v9654_v10, %v21857_v22  ;;  %v9815_v58 = vld [vmem:[#allocation4 + $0xa2] sm:$0xff] }
 0x88a   : > { %9723 = vst.msk [vmem:[#allocation4 + $0xc4] sm:$0xff] %vm473_vm4, %v9687_v53  ;;  %v9688_v37 = vmul.f32 %v9652_v5, %v21842_v47  ;;  %v18691_v3 = vpop.f32.mrb[96].mxu0  ;;  %v9818_v18 = vld [vmem:[#allocation4 + $0xba] sm:$0xff] }
 0x88b   : > { %9726 = vst.msk [vmem:[#allocation4 + $0xdc] sm:$0xff] %vm473_vm4, %v9690_v51  ;;  %v9621_v57 = vadd.f32 %v18691_v3, %v22689_v4  ;;  %v9505_v39 = vpop.f32.mrb[97].mxu0  ;;  %v9816_v29 = vld [vmem:[#allocation4 + $0xaa] sm:$0xff]  ;;  %v9817_v50 = vld [vmem:[#allocation4 + $0xb2] sm:$0xff] }
 0x88c   : > { %9724 = vst.msk [vmem:[#allocation4 + $0xcc] sm:$0xff] %vm473_vm4, %v9688_v37  ;;  %v9619_v38 = vadd.f32 %v22689_v4, %v9505_v39  ;;  %v18692_v20 = vpop.f32.mrb[98].mxu0  ;;  %v9842_v22 = vpack.c.bf16 %v9816_v29, %v9815_v58  ;;  %v9843_v43 = vpack.c.bf16 %v9818_v18, %v9817_v50 }
 0x88d   : > { %v9657_v28 = vmax.f32 %v9621_v57, 0.0  ;;  %v9622_v47 = vadd.f32 %v18692_v20, %v22689_v4  ;;  %v9508_v15 = vpop.f32.mrb[99].mxu0 }
 0x88e   : > { %v9655_v40 = vmax.f32 %v9619_v38, 0.0  ;;  %v9620_v34 = vadd.f32 %v22689_v4, %v9508_v15  ;;  %18722 = vmatmul.mubr.msk.bf16.gmra.mrb[52].mxu1 %vm473_vm4, %v9842_v22 }
 0x88f   : > { %v9693_v46 = vmul.f32 %v9657_v28, %v21880_v16  ;;  %v9658_v31 = vmax.f32 %v9622_v47, 0.0  ;;  %18725 = vmatprep.mubr.msk.bf16.mxu1 %vm473_vm4, %v9843_v43 }
 0x890   : > { %v9691_v21 = vmul.f32 %v9655_v40, %v21866_v36  ;;  %v9656_v13 = vmax.f32 %v9620_v34, 0.0  ;;  %v9742_v34 = vld [vmem:[#allocation4 + $0x29] sm:$0xff] }
 0x891   : > { %9729 = vst.msk [vmem:[#allocation4 + $0xf4] sm:$0xff] %vm473_vm4, %v9693_v46  ;;  %v9694_v33 = vmul.f32 %v9658_v31, %v21886_v24  ;;  %v9819_v26 = vld [vmem:[#allocation4 + $0xc2] sm:$0xff]  ;;  %v9743_v46 = vld [vmem:[#allocation4 + $0x31] sm:$0xff]  ;;  %v9744_v31 = vld [vmem:[#allocation4 + $0x39] sm:$0xff] }
 0x892   : > { %9727 = vst.msk [vmem:[#allocation4 + $0xe4] sm:$0xff] %vm473_vm4, %v9691_v21  ;;  %v9692_v12 = vmul.f32 %v9656_v13, %v21871_v41  ;;  %v18695_v63 = vpop.f32.mrb[100].mxu0  ;;  %v9822_v61 = vld [vmem:[#allocation4 + $0xda] sm:$0xff] }
 0x893   : > { %9730 = vst.msk [vmem:[#allocation4 + $0xfc] sm:$0xff] %vm473_vm4, %v9694_v33  ;;  %v9625_v16 = vadd.f32 %v18695_v63, %v22689_v4  ;;  %v9521_v9 = vpop.f32.mrb[101].mxu0  ;;  %v9820_v27 = vld [vmem:[#allocation4 + $0xca] sm:$0xff]  ;;  %v9821_v30 = vld [vmem:[#allocation4 + $0xd2] sm:$0xff]  ;;  %v9741_v21 = vld [vmem:[#allocation4 + $0x21] sm:$0xff] }
 0x894   : > { %9728 = vst.msk [vmem:[#allocation4 + $0xec] sm:$0xff] %vm473_vm4, %v9692_v12  ;;  %v9623_v36 = vadd.f32 %v22689_v4, %v9521_v9  ;;  %v18696_v7 = vpop.f32.mrb[102].mxu0  ;;  %v9844_v24 = vpack.c.bf16 %v9820_v27, %v9819_v26  ;;  %v9845_v2 = vpack.c.bf16 %v9822_v61, %v9821_v30  ;;  %v9776_v13 = vpack.c.bf16 %v9742_v34, %v9741_v21  ;;  %v20963_v33 = vld [vmem:[%s23454_s8 + $0x28] sm:$0xff]   ;;  %v22836_v63 = vld [vmem:[%s23454_s8 + $0x30] sm:$0xff]   ;;  %v9746_v61 = vld [vmem:[#allocation4 + $0x49] sm:$0xff] }
 0x895   : > { %v9661_v19 = vmax.f32 %v9625_v16, 0.0  ;;  %v9626_v41 = vadd.f32 %v18696_v7, %v22689_v4  ;;  %v9524_v6 = vpop.f32.mrb[103].mxu0  ;;  %v9777_v12 = vpack.c.bf16 %v9744_v31, %v9743_v46  ;;  %v9747_v16 = vld [vmem:[#allocation4 + $0x51] sm:$0xff]  ;;  %v9748_v9 = vld [vmem:[#allocation4 + $0x59] sm:$0xff]  ;;  %v9745_v26 = vld [vmem:[#allocation4 + $0x41] sm:$0xff] }
 0x896   : > { %v9659_v1 = vmax.f32 %v9623_v36, 0.0  ;;  %v9624_v45 = vadd.f32 %v22689_v4, %v9524_v6  ;;  %18726 = vmatmul.mubr.msk.bf16.gmra.mrb[56].mxu1 %vm473_vm4, %v9844_v24  ;;  %v9778_v27 = vpack.c.bf16 %v9746_v61, %v9745_v26  ;;  %v9779_v30 = vpack.c.bf16 %v9748_v9, %v9747_v16  ;;  %v9751_v36 = vld [vmem:[#allocation4 + $0x71] sm:$0xff]  ;;  %v9752_v7 = vld [vmem:[#allocation4 + $0x79] sm:$0xff]  ;;  %v9749_v24 = vld [vmem:[#allocation4 + $0x61] sm:$0xff] }
 0x897   : > { %v9697_v8 = vmul.f32 %v9661_v19, %v23496_v42  ;;  %v9662_v44 = vmax.f32 %v9626_v41, 0.0  ;;  %18729 = vmatprep.mubr.msk.bf16.mxu1 %vm473_vm4, %v9845_v2  ;;  %v9781_v19 = vpack.c.bf16 %v9752_v7, %v9751_v36  ;;  %v9754_v41 = vld [vmem:[#allocation4 + $0x89] sm:$0xff]  ;;  %v9755_v6 = vld [vmem:[#allocation4 + $0x91] sm:$0xff]  ;;  %v10351_v31 = vld [vmem:[#allocation4 + $0x5b] sm:$0xff] }
 0x898   : > { %v9695_v35 = vmul.f32 %v9659_v1, %v23497_v54  ;;  %v9660_v25 = vmax.f32 %v9624_v45, 0.0  ;;  %v9756_v1 = vld [vmem:[#allocation4 + $0x99] sm:$0xff]  ;;  %v9753_v45 = vld [vmem:[#allocation4 + $0x81] sm:$0xff]  ;;  %v10349_v34 = vld [vmem:[#allocation4 + $0x4b] sm:$0xff] }
 0x899   : > { %9733 = vst.msk [vmem:[#allocation4 + $0x114] sm:$0xff] %vm473_vm4, %v9697_v8  ;;  %v9698_v52 = vmul.f32 %v9662_v44, %v23498_v14  ;;  %v9823_v49 = vld [vmem:[#allocation4 + $0xe2] sm:$0xff]  ;;  %v9782_v8 = vpack.c.bf16 %v9754_v41, %v9753_v45  ;;  %v9783_v44 = vpack.c.bf16 %v9756_v1, %v9755_v6  ;;  %v10350_v46 = vld [vmem:[#allocation4 + $0x53] sm:$0xff] }
 0x89a   : > { %9731 = vst.msk [vmem:[#allocation4 + $0x104] sm:$0xff] %vm473_vm4, %v9695_v35  ;;  %v9696_v23 = vmul.f32 %v9660_v25, %v23499_v56  ;;  %v18699_v48 = vpop.f32.mrb[104].mxu0  ;;  %v9826_v32 = vld [vmem:[#allocation4 + $0xfa] sm:$0xff]  ;;  %v9758_v35 = vld [vmem:[#allocation4 + $0xa9] sm:$0xff]  ;;  %v9759_v25 = vld [vmem:[#allocation4 + $0xb1] sm:$0xff] }
 0x89b   : > { %9734 = vst.msk [vmem:[#allocation4 + $0x11c] sm:$0xff] %vm473_vm4, %v9698_v52  ;;  %v9629_v42 = vadd.f32 %v18699_v48, %v22689_v4  ;;  %v9537_v17 = vpop.f32.mrb[105].mxu0  ;;  %v9824_v62 = vld [vmem:[#allocation4 + $0xea] sm:$0xff]  ;;  %v9825_v10 = vld [vmem:[#allocation4 + $0xf2] sm:$0xff]  ;;  %v10355_v61 = vld [vmem:[#allocation4 + $0x7b] sm:$0xff] }
 0x89c   : > { %9732 = vst.msk [vmem:[#allocation4 + $0x10c] sm:$0xff] %vm473_vm4, %v9696_v23  ;;  %v9627_v54 = vadd.f32 %v22689_v4, %v9537_v17  ;;  %v18700_v53 = vpop.f32.mrb[106].mxu0  ;;  %v9846_v14 = vpack.c.bf16 %v9824_v62, %v9823_v49  ;;  %v9847_v5 = vpack.c.bf16 %v9826_v32, %v9825_v10  ;;  %v9760_v52 = vld [vmem:[#allocation4 + $0xb9] sm:$0xff]  ;;  %v9757_v23 = vld [vmem:[#allocation4 + $0xa1] sm:$0xff]  ;;  %v9763_v17 = vld [vmem:[#allocation4 + $0xd1] sm:$0xff] }
 0x89d   : > { %v9665_v51 = vmax.f32 %v9629_v42, 0.0  ;;  %v9630_v56 = vadd.f32 %v18700_v53, %v22689_v4  ;;  %v9540_v37 = vpop.f32.mrb[107].mxu0  ;;  %v9784_v48 = vpack.c.bf16 %v9758_v35, %v9757_v23  ;;  %v9785_v32 = vpack.c.bf16 %v9760_v52, %v9759_v25  ;;  %v9762_v42 = vld [vmem:[#allocation4 + $0xc9] sm:$0xff]  ;;  %v9764_v49 = vld [vmem:[#allocation4 + $0xd9] sm:$0xff]  ;;  %v9761_v62 = vld [vmem:[#allocation4 + $0xc1] sm:$0xff] }
 0x89e   : > { %v9663_v3 = vmax.f32 %v9627_v54, 0.0  ;;  %v9628_v18 = vadd.f32 %v22689_v4, %v9540_v37  ;;  %18730 = vmatmul.mubr.msk.bf16.gmra.mrb[60].mxu1 %vm473_vm4, %v9846_v14  ;;  %v9786_v10 = vpack.c.bf16 %v9762_v42, %v9761_v62  ;;  %v9787_v54 = vpack.c.bf16 %v9764_v49, %v9763_v17  ;;  %v9766_v53 = vld [vmem:[#allocation4 + $0xe9] sm:$0xff]  ;;  %v9767_v14 = vld [vmem:[#allocation4 + $0xf1] sm:$0xff]  ;;  %v10363_v41 = vld [vmem:[#allocation4 + $0xbb] sm:$0xff] }
 0x89f   : > { %v9701_v57 = vmul.f32 %v9665_v51, %v23504_v59  ;;  %v9666_v39 = vmax.f32 %v9630_v56, 0.0  ;;  %18733 = vmatprep.mubr.msk.bf16.mxu1 %vm473_vm4, %v9847_v5  ;;  %v9768_v5 = vld [vmem:[#allocation4 + $0xf9] sm:$0xff]  ;;  %v9765_v51 = vld [vmem:[#allocation4 + $0xe1] sm:$0xff] }
 0x8a0   : > { %v9699_v58 = vmul.f32 %v9663_v3, %v23505_v60  ;;  %v9664_v29 = vmax.f32 %v9628_v18, 0.0  ;;  %v9739_v60 = vld [vmem:[#allocation4 + $0x11] sm:$0xff]  ;;  %v9788_v56 = vpack.c.bf16 %v9766_v53, %v9765_v51  ;;  %v9789_v37 = vpack.c.bf16 %v9768_v5, %v9767_v14  ;;  %v10348_v21 = vld [vmem:[#allocation4 + $0x43] sm:$0xff]  ;;  %v10367_v35 = vld [vmem:[#allocation4 + $0xdb] sm:$0xff] }
 0x8a1   : > { %9737 = vst.msk [vmem:[#allocation4 + $0x134] sm:$0xff] %vm473_vm4, %v9701_v57  ;;  %v9702_v50 = vmul.f32 %v9666_v39, %v23506_v55  ;;  %v9827_v4 = vld [vmem:[#allocation4 + $0x102] sm:$0xff]  ;;  %v9740_v55 = vld [vmem:[#allocation4 + $0x19] sm:$0xff] }
 0x8a2   : > { %9735 = vst.msk [vmem:[#allocation4 + $0x124] sm:$0xff] %vm473_vm4, %v9699_v58  ;;  %v9700_v38 = vmul.f32 %v9664_v29, %v23507_v11  ;;  %v9830_v20 = vld [vmem:[#allocation4 + $0x11a] sm:$0xff]  ;;  %v9775_v40 = vpack.c.bf16 %v9740_v55, %v9739_v60  ;;  %v10344_v55 = vld [vmem:[#allocation4 + $0x23] sm:$0xff] }
 0x8a3   : > { %9738 = vst.msk [vmem:[#allocation4 + $0x13c] sm:$0xff] %vm473_vm4, %v9702_v50  ;;  %v9828_v22 = vld [vmem:[#allocation4 + $0x10a] sm:$0xff]  ;;  %v9829_v59 = vld [vmem:[#allocation4 + $0x112] sm:$0xff]  ;;  %v9769_v39 = vld [vmem:[#allocation4 + $0x101] sm:$0xff] }
 0x8a4   : > { %9736 = vst.msk [vmem:[#allocation4 + $0x12c] sm:$0xff] %vm473_vm4, %v9700_v38  ;;  %v9848_v43 = vpack.c.bf16 %v9828_v22, %v9827_v4  ;;  %v9849_v28 = vpack.c.bf16 %v9830_v20, %v9829_v59  ;;  %v9770_v3 = vld [vmem:[#allocation4 + $0x109] sm:$0xff]  ;;  %v9771_v18 = vld [vmem:[#allocation4 + $0x111] sm:$0xff]  ;;  %v9772_v57 = vld [vmem:[#allocation4 + $0x119] sm:$0xff] }
 0x8a5   : > { %v9790_v58 = vpack.c.bf16 %v9770_v3, %v9769_v39  ;;  %v9791_v29 = vpack.c.bf16 %v9772_v57, %v9771_v18  ;;  %v10342_v50 = vld [vmem:[#allocation4 + $0x13] sm:$0xff]  ;;  %v10343_v38 = vld [vmem:[#allocation4 + $0x1b] sm:$0xff]  ;;  %v10352_v16 = vld [vmem:[#allocation4 + $0x63] sm:$0xff] }
 0x8a6   : > { %18734 = vmatmul.mubr.msk.bf16.gmra.mrb[64].mxu1 %vm473_vm4, %v9848_v43  ;;  %v10378_v22 = vpack.c.bf16 %v10343_v38, %v10342_v50  ;;  %v10345_v43 = vld [vmem:[#allocation4 + $0x2b] sm:$0xff]  ;;  %v10347_v60 = vld [vmem:[#allocation4 + $0x3b] sm:$0xff]  ;;  %v10356_v36 = vld [vmem:[#allocation4 + $0x83] sm:$0xff] }
 0x8a7   : > { %18737 = vmatprep.mubr.msk.bf16.mxu1 %vm473_vm4, %v9849_v28  ;;  %v10346_v28 = vld [vmem:[#allocation4 + $0x33] sm:$0xff]  ;;  %v10360_v6 = vld [vmem:[#allocation4 + $0xa3] sm:$0xff]  ;;  %v10371_v42 = vld [vmem:[#allocation4 + $0xfb] sm:$0xff] }
 0x8a8   : > { %v10364_v25 = vld [vmem:[#allocation4 + $0xc3] sm:$0xff]  ;;  %v10375_v53 = vld [vmem:[#allocation4 + $0x11b] sm:$0xff] }
 0x8a9   : > { %v9831_v47 = vld [vmem:[#allocation4 + $0x122] sm:$0xff]  ;;  %v20967_v18 = vld [vmem:[%s23454_s8 + $0x48] sm:$0xff]  }
 0x8aa   : > { %v9773_v4 = vld [vmem:[#allocation4 + $0x121] sm:$0xff] }
 0x8ab   : > { %v9832_v15 = vld [vmem:[#allocation4 + $0x12a] sm:$0xff]  ;;  %v20968_v57 = vld [vmem:[%s23454_s8 + $0x50] sm:$0xff]   ;;  %v10714_v39 = vld [vmem:[#allocation4 + $0x133] sm:$0xff] }
 0x8ac   : > { %v9850_v11 = vpack.c.bf16 %v9832_v15, %v9831_v47  ;;  %v9774_v20 = vld [vmem:[#allocation4 + $0x129] sm:$0xff]  ;;  %v22855_v47 = vpack.c.bf16 %v10345_v43, %v10344_v55 }
 0x8ad   : > { %v9792_v59 = vpack.c.bf16 %v9774_v20, %v9773_v4  ;;  %v20965_v15 = vld [vmem:[%s23454_s8 + $0x38] sm:$0xff]   ;;  %v11021_v4 = vld [vmem:[#allocation4 + $0x3c] sm:$0xff] }
 0x8ae   : > { %18738 = vmatmul.mubr.msk.bf16.gmra.mrb[68].mxu1 %vm473_vm4, %v9850_v11  ;;  %v22870_v11 = vld [vmem:[%s23454_s8 + $0x40] sm:$0xff]   ;;  %v10368_v17 = vld [vmem:[#allocation4 + $0xe3] sm:$0xff] }
 0x8af   : > { %18745 = vmatprep.mubr.msk.bf16.mxu1 %vm473_vm4, %v9775_v40  ;;  %v22860_v40 = vpack.c.bf16 %v10347_v60, %v10346_v28  ;;  %v10372_v14 = vld [vmem:[#allocation4 + $0x103] sm:$0xff] }
 0x8b0   : > { %v11018_v38 = vld [vmem:[#allocation4 + $0x24] sm:$0xff] }
 0x8b1   : > { %v11022_v28 = vld [vmem:[#allocation4 + $0x44] sm:$0xff] }
 0x8b2   : > { %v20969_v60 = vld [vmem:[%s23454_s8 + $0x58] sm:$0xff]  }
 0x8b6   : > { %18746 = vmatmul.mubr.msk.bf16.vlgmr.msra.gmra.mrb[36].mxu1 %vm473_vm4, %v9776_v13  ;;  %v10381_v13 = vpack.c.bf16 %v10349_v34, %v10348_v21  ;;  %v11029_v21 = vld [vmem:[#allocation4 + $0x7c] sm:$0xff] }
 0x8b7   : > { %18782 = vmatpush3.bf16.msra.mxu1 %v22730_v0  ;;  %18749 = vmatprep.mubr.msk.bf16.mxu1 %vm473_vm4, %v9777_v12  ;;  %v9750_v0 = vld [vmem:[#allocation4 + $0x69] sm:$0xff] }
 0x8b8   : > { %18783 = vmatprep.subr.bf16.mxu1 %v20963_v33  ;;  %v9780_v2 = vpack.c.bf16 %v9750_v0, %v9749_v24  ;;  %v10353_v12 = vld [vmem:[#allocation4 + $0x6b] sm:$0xff]  ;;  %v10359_v0 = vld [vmem:[#allocation4 + $0x9b] sm:$0xff] }
 0x8b9   : > { %v10383_v9 = vpack.c.bf16 %v10353_v12, %v10352_v16  ;;  %v11033_v16 = vld [vmem:[#allocation4 + $0x9c] sm:$0xff] }
 0x8bb   : > { %18784 = vmatpush3.bf16.msra.mxu1 %v20963_v33  ;;  %v22873_v33 = vpack.c.bf16 %v10351_v31, %v10350_v46  ;;  %v11026_v46 = vld [vmem:[#allocation4 + $0x64] sm:$0xff] }
 0x8bc   : > { %18821 = vmatprep.subr.bf16.mxu1 %v22836_v63 }
 0x8be   : > { %18750 = vmatmul.mubr.msk.bf16.gmra.mrb[40].mxu1 %vm473_vm4, %v9778_v27  ;;  %v10357_v27 = vld [vmem:[#allocation4 + $0x8b] sm:$0xff] }
 0x8bf   : > { %18753 = vmatprep.mubr.msk.bf16.mxu1 %vm473_vm4, %v9779_v30  ;;  %v10358_v30 = vld [vmem:[#allocation4 + $0x93] sm:$0xff]  ;;  %v10385_v7 = vpack.c.bf16 %v10357_v27, %v10356_v36  ;;  %v11037_v36 = vld [vmem:[#allocation4 + $0xbc] sm:$0xff] }
 0x8c0   : > { %v10386_v24 = vpack.c.bf16 %v10359_v0, %v10358_v30  ;;  %v11034_v30 = vld [vmem:[#allocation4 + $0xa4] sm:$0xff] }
 0x8c6   : > { %18754 = vmatmul.mubr.msk.bf16.gmra.mrb[44].mxu1 %vm473_vm4, %v9780_v2  ;;  %v10361_v2 = vld [vmem:[#allocation4 + $0xab] sm:$0xff] }
 0x8c7   : > { %18757 = vmatprep.mubr.msk.bf16.mxu1 %vm473_vm4, %v9781_v19  ;;  %v10362_v19 = vld [vmem:[#allocation4 + $0xb3] sm:$0xff]  ;;  %v10387_v1 = vpack.c.bf16 %v10361_v2, %v10360_v6  ;;  %v11041_v6 = vld [vmem:[#allocation4 + $0xdc] sm:$0xff] }
 0x8c8   : > { %v10388_v45 = vpack.c.bf16 %v10363_v41, %v10362_v19  ;;  %v11038_v19 = vld [vmem:[#allocation4 + $0xc4] sm:$0xff] }
 0x8ce   : > { %18758 = vmatmul.mubr.msk.bf16.gmra.mrb[48].mxu1 %vm473_vm4, %v9782_v8  ;;  %v10365_v8 = vld [vmem:[#allocation4 + $0xcb] sm:$0xff] }
 0x8cf   : > { %18761 = vmatprep.mubr.msk.bf16.mxu1 %vm473_vm4, %v9783_v44  ;;  %v10366_v44 = vld [vmem:[#allocation4 + $0xd3] sm:$0xff]  ;;  %v10389_v52 = vpack.c.bf16 %v10365_v8, %v10364_v25  ;;  %v11045_v25 = vld [vmem:[#allocation4 + $0xfc] sm:$0xff] }
 0x8d0   : > { %v10390_v23 = vpack.c.bf16 %v10367_v35, %v10366_v44  ;;  %v11042_v44 = vld [vmem:[#allocation4 + $0xe4] sm:$0xff] }
 0x8d6   : > { %18762 = vmatmul.mubr.msk.bf16.gmra.mrb[52].mxu1 %vm473_vm4, %v9784_v48  ;;  %v10369_v48 = vld [vmem:[#allocation4 + $0xeb] sm:$0xff] }
 0x8d7   : > { %18765 = vmatprep.mubr.msk.bf16.mxu1 %vm473_vm4, %v9785_v32  ;;  %v10370_v32 = vld [vmem:[#allocation4 + $0xf3] sm:$0xff]  ;;  %v10391_v49 = vpack.c.bf16 %v10369_v48, %v10368_v17  ;;  %v11049_v17 = vld [vmem:[#allocation4 + $0x11c] sm:$0xff] }
 0x8d8   : > { %v10392_v62 = vpack.c.bf16 %v10371_v42, %v10370_v32  ;;  %v11046_v32 = vld [vmem:[#allocation4 + $0x104] sm:$0xff] }
 0x8de   : > { %18766 = vmatmul.mubr.msk.bf16.gmra.mrb[56].mxu1 %vm473_vm4, %v9786_v10  ;;  %v10373_v10 = vld [vmem:[#allocation4 + $0x10b] sm:$0xff] }
 0x8df   : > { %18769 = vmatprep.mubr.msk.bf16.mxu1 %vm473_vm4, %v9787_v54  ;;  %v10374_v54 = vld [vmem:[#allocation4 + $0x113] sm:$0xff]  ;;  %v10393_v5 = vpack.c.bf16 %v10373_v10, %v10372_v14  ;;  %v11053_v14 = vld [vmem:[#allocation4 + $0x13c] sm:$0xff] }
 0x8e0   : > { %v10394_v51 = vpack.c.bf16 %v10375_v53, %v10374_v54  ;;  %v11050_v54 = vld [vmem:[#allocation4 + $0x124] sm:$0xff] }
 0x8e6   : > { %18770 = vmatmul.mubr.msk.bf16.gmra.mrb[60].mxu1 %vm473_vm4, %v9788_v56  ;;  %v10377_v56 = vld [vmem:[#allocation4 + $0x12b] sm:$0xff] }
 0x8e7   : > { %18773 = vmatprep.mubr.msk.bf16.mxu1 %vm473_vm4, %v9789_v37  ;;  %v10376_v37 = vld [vmem:[#allocation4 + $0x123] sm:$0xff] }
 0x8e8   : > { %v10395_v3 = vpack.c.bf16 %v10377_v56, %v10376_v37  ;;  %v11052_v56 = vld [vmem:[#allocation4 + $0x134] sm:$0xff] }
 0x8e9   : > { %v11071_v37 = vpack.c.bf16 %v11053_v14, %v11052_v56  ;;  %v12033_v14 = vld [vmem:[#allocation4 + $0x3e] sm:$0xff]  ;;  %v12034_v56 = vld [vmem:[#allocation4 + $0x46] sm:$0xff] }
 0x8ee   : > { %18774 = vmatmul.mubr.msk.bf16.gmra.mrb[64].mxu1 %vm473_vm4, %v9790_v58  ;;  %v10715_v58 = vld [vmem:[#allocation4 + $0x13b] sm:$0xff] }
 0x8ef   : > { %18777 = vmatprep.mubr.msk.bf16.mxu1 %vm473_vm4, %v9791_v29  ;;  %v11019_v29 = vld [vmem:[#allocation4 + $0x2c] sm:$0xff]  ;;  %v10733_v50 = vpack.c.bf16 %v10715_v58, %v10714_v39  ;;  %v11358_v58 = vld [vmem:[#allocation4 + $0x35] sm:$0xff] }
 0x8f0   : > { %v11054_v20 = vpack.c.bf16 %v11019_v29, %v11018_v38  ;;  %v11361_v39 = vld [vmem:[#allocation4 + $0x4d] sm:$0xff] }
 0x8f6   : > { %18778 = vmatmul.mubr.msk.bf16.gmra.mrb[68].mxu1 %vm473_vm4, %v9792_v59  ;;  %v11020_v59 = vld [vmem:[#allocation4 + $0x34] sm:$0xff] }
 0x8f7   : > { %18785 = vmatprep.mubr.msk.bf16.mxu1 %vm473_vm4, %v10378_v22  ;;  %v11023_v22 = vld [vmem:[#allocation4 + $0x4c] sm:$0xff]  ;;  %v11055_v43 = vpack.c.bf16 %v11021_v4, %v11020_v59  ;;  %v11363_v4 = vld [vmem:[#allocation4 + $0x5d] sm:$0xff] }
 0x8f8   : > { %v11056_v55 = vpack.c.bf16 %v11023_v22, %v11022_v28  ;;  %v11364_v22 = vld [vmem:[#allocation4 + $0x65] sm:$0xff]  ;;  %v11365_v59 = vld [vmem:[#allocation4 + $0x6d] sm:$0xff] }
 0x8fe   : > { %18786 = vmatmul.mubr.msk.bf16.vlgmr.msra.gmra.mrb[36].mxu1 %vm473_vm4, %v22855_v47 }
 0x8ff   : > { %18822 = vmatpush3.bf16.msra.mxu1 %v22836_v63  ;;  %18789 = vmatprep.mubr.msk.bf16.mxu1 %vm473_vm4, %v22860_v40  ;;  %v10354_v63 = vld [vmem:[#allocation4 + $0x73] sm:$0xff] }
 0x900   : > { %18823 = vmatprep.subr.bf16.mxu1 %v20965_v15  ;;  %v10384_v26 = vpack.c.bf16 %v10355_v61, %v10354_v63  ;;  %v11030_v63 = vld [vmem:[#allocation4 + $0x84] sm:$0xff] }
 0x903   : > { %18824 = vmatpush3.bf16.msra.mxu1 %v20965_v15  ;;  %v11025_v15 = vld [vmem:[#allocation4 + $0x5c] sm:$0xff] }
 0x904   : > { %18861 = vmatprep.subr.bf16.mxu1 %v22870_v11 }
 0x906   : > { %18790 = vmatmul.mubr.msk.bf16.gmra.mrb[40].mxu1 %vm473_vm4, %v10381_v13 }
 0x907   : > { %18793 = vmatprep.mubr.msk.bf16.mxu1 %vm473_vm4, %v22873_v33 }
 0x90e   : > { %18794 = vmatmul.mubr.msk.bf16.gmra.mrb[44].mxu1 %vm473_vm4, %v10383_v9 }
 0x90f   : > { %18797 = vmatprep.mubr.msk.bf16.mxu1 %vm473_vm4, %v10384_v26 }
 0x916   : > { %18798 = vmatmul.mubr.msk.bf16.gmra.mrb[48].mxu1 %vm473_vm4, %v10385_v7 }
 0x917   : > { %18801 = vmatprep.mubr.msk.bf16.mxu1 %vm473_vm4, %v10386_v24 }
 0x91e   : > { %18802 = vmatmul.mubr.msk.bf16.gmra.mrb[52].mxu1 %vm473_vm4, %v10387_v1 }
 0x91f   : > { %18805 = vmatprep.mubr.msk.bf16.mxu1 %vm473_vm4, %v10388_v45 }
 0x926   : > { %18806 = vmatmul.mubr.msk.bf16.gmra.mrb[56].mxu1 %vm473_vm4, %v10389_v52 }
 0x927   : > { %18809 = vmatprep.mubr.msk.bf16.mxu1 %vm473_vm4, %v10390_v23 }
 0x92e   : > { %18810 = vmatmul.mubr.msk.bf16.gmra.mrb[60].mxu1 %vm473_vm4, %v10391_v49 }
 0x92f   : > { %18813 = vmatprep.mubr.msk.bf16.mxu1 %vm473_vm4, %v10392_v62 }
 0x936   : > { %18814 = vmatmul.mubr.msk.bf16.gmra.mrb[64].mxu1 %vm473_vm4, %v10393_v5 }
 0x937   : > { %18817 = vmatprep.mubr.msk.bf16.mxu1 %vm473_vm4, %v10394_v51 }
 0x93e   : > { %18818 = vmatmul.mubr.msk.bf16.gmra.mrb[68].mxu1 %vm473_vm4, %v10395_v3 }
 0x93f   : > { %18825 = vmatprep.mubr.msk.bf16.mxu1 %vm473_vm4, %v22855_v47  ;;  %v22928_v47 = vld [vmem:[%s23454_s8 + $0x60] sm:$0xff]  }
 0x946   : > { %18826 = vmatmul.mubr.msk.bf16.vlgmr.msra.gmra.mrb[36].mxu1 %vm473_vm4, %v22860_v40  ;;  %v11027_v40 = vld [vmem:[#allocation4 + $0x6c] sm:$0xff] }
 0x947   : > { %18862 = vmatpush3.bf16.msra.mxu1 %v22870_v11  ;;  %18829 = vmatprep.mubr.msk.bf16.mxu1 %vm473_vm4, %v10381_v13  ;;  %v11024_v11 = vld [vmem:[#allocation4 + $0x54] sm:$0xff]  ;;  %v11058_v31 = vpack.c.bf16 %v11027_v40, %v11026_v46  ;;  %v11031_v13 = vld [vmem:[#allocation4 + $0x8c] sm:$0xff]  ;;  %v11371_v46 = vld [vmem:[#allocation4 + $0x9d] sm:$0xff] }
 0x948   : > { %18863 = vmatprep.subr.bf16.mxu1 %v20967_v18  ;;  %v11057_v34 = vpack.c.bf16 %v11025_v15, %v11024_v11  ;;  %v11060_v61 = vpack.c.bf16 %v11031_v13, %v11030_v63  ;;  %v11369_v15 = vld [vmem:[#allocation4 + $0x8d] sm:$0xff]  ;;  %v11366_v40 = vld [vmem:[#allocation4 + $0x75] sm:$0xff]  ;;  %v11375_v63 = vld [vmem:[#allocation4 + $0xbd] sm:$0xff] }
 0x949   : > { %v11370_v13 = vld [vmem:[#allocation4 + $0x95] sm:$0xff] }
 0x94b   : > { %18864 = vmatpush3.bf16.msra.mxu1 %v20967_v18  ;;  %v11359_v18 = vld [vmem:[#allocation4 + $0x3d] sm:$0xff] }
 0x94c   : > { %18901 = vmatprep.subr.bf16.mxu1 %v20968_v57  ;;  %v22947_v29 = vpack.c.bf16 %v11359_v18, %v11358_v58 }
 0x94e   : > { %18830 = vmatmul.mubr.msk.bf16.gmra.mrb[40].mxu1 %vm473_vm4, %v22873_v33  ;;  %v11028_v33 = vld [vmem:[#allocation4 + $0x74] sm:$0xff] }
 0x94f   : > { %18833 = vmatprep.mubr.msk.bf16.mxu1 %vm473_vm4, %v10383_v9  ;;  %v11059_v12 = vpack.c.bf16 %v11029_v21, %v11028_v33  ;;  %v11035_v9 = vld [vmem:[#allocation4 + $0xac] sm:$0xff]  ;;  %v11399_v33 = vpack.c.bf16 %v11371_v46, %v11370_v13 }
 0x950   : > { %v11062_v0 = vpack.c.bf16 %v11035_v9, %v11034_v30  ;;  %v11373_v21 = vld [vmem:[#allocation4 + $0xad] sm:$0xff]  ;;  %v11374_v9 = vld [vmem:[#allocation4 + $0xb5] sm:$0xff]  ;;  %v11379_v30 = vld [vmem:[#allocation4 + $0xdd] sm:$0xff] }
 0x951   : > { %v12050_v13 = vld [vmem:[#allocation4 + $0xc6] sm:$0xff] }
 0x956   : > { %18834 = vmatmul.mubr.msk.bf16.gmra.mrb[44].mxu1 %vm473_vm4, %v10384_v26  ;;  %v11032_v26 = vld [vmem:[#allocation4 + $0x94] sm:$0xff] }
 0x957   : > { %18837 = vmatprep.mubr.msk.bf16.mxu1 %vm473_vm4, %v10385_v7  ;;  %v11061_v27 = vpack.c.bf16 %v11033_v16, %v11032_v26  ;;  %v11039_v7 = vld [vmem:[#allocation4 + $0xcc] sm:$0xff]  ;;  %v11401_v26 = vpack.c.bf16 %v11375_v63, %v11374_v9 }
 0x958   : > { %v11064_v41 = vpack.c.bf16 %v11039_v7, %v11038_v19  ;;  %v11377_v16 = vld [vmem:[#allocation4 + $0xcd] sm:$0xff]  ;;  %v11378_v7 = vld [vmem:[#allocation4 + $0xd5] sm:$0xff]  ;;  %v11383_v19 = vld [vmem:[#allocation4 + $0xfd] sm:$0xff] }
 0x959   : > { %v12054_v9 = vld [vmem:[#allocation4 + $0xe6] sm:$0xff] }
 0x95e   : > { %18838 = vmatmul.mubr.msk.bf16.gmra.mrb[48].mxu1 %vm473_vm4, %v10386_v24  ;;  %v11036_v24 = vld [vmem:[#allocation4 + $0xb4] sm:$0xff] }
 0x95f   : > { %18841 = vmatprep.mubr.msk.bf16.mxu1 %vm473_vm4, %v10387_v1  ;;  %v11063_v2 = vpack.c.bf16 %v11037_v36, %v11036_v24  ;;  %v11043_v1 = vld [vmem:[#allocation4 + $0xec] sm:$0xff]  ;;  %v11403_v24 = vpack.c.bf16 %v11379_v30, %v11378_v7 }
 0x960   : > { %v11066_v35 = vpack.c.bf16 %v11043_v1, %v11042_v44  ;;  %v11381_v36 = vld [vmem:[#allocation4 + $0xed] sm:$0xff]  ;;  %v11382_v1 = vld [vmem:[#allocation4 + $0xf5] sm:$0xff]  ;;  %v11387_v44 = vld [vmem:[#allocation4 + $0x11d] sm:$0xff] }
 0x961   : > { %v12058_v7 = vld [vmem:[#allocation4 + $0x106] sm:$0xff] }
 0x966   : > { %18842 = vmatmul.mubr.msk.bf16.gmra.mrb[52].mxu1 %vm473_vm4, %v10388_v45  ;;  %v11040_v45 = vld [vmem:[#allocation4 + $0xd4] sm:$0xff] }
 0x967   : > { %18845 = vmatprep.mubr.msk.bf16.mxu1 %vm473_vm4, %v10389_v52  ;;  %v11065_v8 = vpack.c.bf16 %v11041_v6, %v11040_v45  ;;  %v11047_v52 = vld [vmem:[#allocation4 + $0x10c] sm:$0xff]  ;;  %v11405_v45 = vpack.c.bf16 %v11383_v19, %v11382_v1 }
 0x968   : > { %v11068_v42 = vpack.c.bf16 %v11047_v52, %v11046_v32  ;;  %v11385_v6 = vld [vmem:[#allocation4 + $0x10d] sm:$0xff]  ;;  %v11386_v52 = vld [vmem:[#allocation4 + $0x115] sm:$0xff] }
 0x969   : > { %v11390_v32 = vld [vmem:[#allocation4 + $0x135] sm:$0xff]  ;;  %v12062_v1 = vld [vmem:[#allocation4 + $0x126] sm:$0xff] }
 0x96e   : > { %18846 = vmatmul.mubr.msk.bf16.gmra.mrb[56].mxu1 %vm473_vm4, %v10390_v23  ;;  %v11044_v23 = vld [vmem:[#allocation4 + $0xf4] sm:$0xff] }
 0x96f   : > { %18849 = vmatprep.mubr.msk.bf16.mxu1 %vm473_vm4, %v10391_v49  ;;  %v11067_v48 = vpack.c.bf16 %v11045_v25, %v11044_v23  ;;  %v11051_v49 = vld [vmem:[#allocation4 + $0x12c] sm:$0xff]  ;;  %v11407_v23 = vpack.c.bf16 %v11387_v44, %v11386_v52  ;;  %v12065_v44 = vld [vmem:[#allocation4 + $0x13e] sm:$0xff] }
 0x970   : > { %v11070_v53 = vpack.c.bf16 %v11051_v49, %v11050_v54  ;;  %v11389_v25 = vld [vmem:[#allocation4 + $0x12d] sm:$0xff] }
 0x971   : > { %v20973_v49 = vld [vmem:[%s23454_s8 + $0x78] sm:$0xff]  }
 0x972   : > { %v11729_v54 = vld [vmem:[#allocation4 + $0x14d] sm:$0xff] }
 0x973   : > { %v12066_v52 = vld [vmem:[#allocation4 + $0x146] sm:$0xff] }
 0x976   : > { %18850 = vmatmul.mubr.msk.bf16.gmra.mrb[60].mxu1 %vm473_vm4, %v10392_v62  ;;  %v11048_v62 = vld [vmem:[#allocation4 + $0x114] sm:$0xff] }
 0x977   : > { %18853 = vmatprep.mubr.msk.bf16.mxu1 %vm473_vm4, %v10393_v5  ;;  %v11069_v10 = vpack.c.bf16 %v11049_v17, %v11048_v62  ;;  %v11356_v5 = vld [vmem:[#allocation4 + $0x25] sm:$0xff]  ;;  %v20974_v62 = vld [vmem:[%s23454_s8 + $0x80] sm:$0xff]  }
 0x97e   : > { %18854 = vmatmul.mubr.msk.bf16.gmra.mrb[64].mxu1 %vm473_vm4, %v10394_v51  ;;  %v11357_v51 = vld [vmem:[#allocation4 + $0x2d] sm:$0xff] }
 0x97f   : > { %18857 = vmatprep.mubr.msk.bf16.mxu1 %vm473_vm4, %v10395_v3  ;;  %v11392_v3 = vpack.c.bf16 %v11357_v51, %v11356_v5  ;;  %v12032_v5 = vld [vmem:[#allocation4 + $0x36] sm:$0xff] }
 0x980   : > { %v12068_v51 = vpack.c.bf16 %v12033_v14, %v12032_v5  ;;  %v23042_v14 = vld [vmem:[%s23456_s10] sm:$0xff]  }
 0x986   : > { %18858 = vmatmul.mubr.msk.bf16.gmra.mrb[68].mxu1 %vm473_vm4, %v10733_v50  ;;  %v20971_v50 = vld [vmem:[%s23454_s8 + $0x68] sm:$0xff]  }
 0x987   : > { %18865 = vmatprep.mubr.msk.bf16.mxu1 %vm473_vm4, %v11054_v20  ;;  %v22962_v20 = vld [vmem:[%s23454_s8 + $0x70] sm:$0xff]  }
 0x98e   : > { %18866 = vmatmul.mubr.msk.bf16.vlgmr.msra.gmra.mrb[36].mxu1 %vm473_vm4, %v11055_v43  ;;  %v11362_v43 = vld [vmem:[#allocation4 + $0x55] sm:$0xff] }
 0x98f   : > { %18902 = vmatpush3.bf16.msra.mxu1 %v20968_v57  ;;  %18869 = vmatprep.mubr.msk.bf16.mxu1 %vm473_vm4, %v11056_v55  ;;  %v11360_v57 = vld [vmem:[#allocation4 + $0x45] sm:$0xff]  ;;  %v11395_v28 = vpack.c.bf16 %v11363_v4, %v11362_v43  ;;  %v11367_v55 = vld [vmem:[#allocation4 + $0x7d] sm:$0xff] }
 0x990   : > { %18903 = vmatprep.subr.bf16.mxu1 %v20969_v60  ;;  %v22952_v38 = vpack.c.bf16 %v11361_v39, %v11360_v57  ;;  %v11397_v11 = vpack.c.bf16 %v11367_v55, %v11366_v40  ;;  %v12036_v57 = vld [vmem:[#allocation4 + $0x56] sm:$0xff]  ;;  %v12042_v43 = vld [vmem:[#allocation4 + $0x86] sm:$0xff] }
 0x991   : > { %v20975_v39 = vld [vmem:[%s23454_s8 + $0x88] sm:$0xff]   ;;  %v12046_v40 = vld [vmem:[#allocation4 + $0xa6] sm:$0xff] }
 0x993   : > { %18904 = vmatpush3.bf16.msra.mxu1 %v20969_v60  ;;  %v22965_v60 = vpack.c.bf16 %v11365_v59, %v11364_v22  ;;  %v12040_v22 = vld [vmem:[#allocation4 + $0x76] sm:$0xff] }
 0x994   : > { %18941 = vmatprep.subr.bf16.mxu1 %v22928_v47 }
 0x996   : > { %18870 = vmatmul.mubr.msk.bf16.gmra.mrb[40].mxu1 %vm473_vm4, %v11057_v34 }
 0x997   : > { %18873 = vmatprep.mubr.msk.bf16.mxu1 %vm473_vm4, %v11058_v31  ;;  %v11372_v31 = vld [vmem:[#allocation4 + $0xa5] sm:$0xff] }
 0x99e   : > { %18874 = vmatmul.mubr.msk.bf16.gmra.mrb[44].mxu1 %vm473_vm4, %v11059_v12  ;;  %v11400_v12 = vpack.c.bf16 %v11373_v21, %v11372_v31  ;;  %v12048_v31 = vld [vmem:[#allocation4 + $0xb6] sm:$0xff] }
 0x99f   : > { %18877 = vmatprep.mubr.msk.bf16.mxu1 %vm473_vm4, %v11060_v61  ;;  %v11376_v61 = vld [vmem:[#allocation4 + $0xc5] sm:$0xff] }
 0x9a6   : > { %18878 = vmatmul.mubr.msk.bf16.gmra.mrb[48].mxu1 %vm473_vm4, %v11061_v27  ;;  %v11402_v27 = vpack.c.bf16 %v11377_v16, %v11376_v61  ;;  %v12052_v61 = vld [vmem:[#allocation4 + $0xd6] sm:$0xff] }
 0x9a7   : > { %18881 = vmatprep.mubr.msk.bf16.mxu1 %vm473_vm4, %v11062_v0  ;;  %v11380_v0 = vld [vmem:[#allocation4 + $0xe5] sm:$0xff] }
 0x9ae   : > { %18882 = vmatmul.mubr.msk.bf16.gmra.mrb[52].mxu1 %vm473_vm4, %v11063_v2  ;;  %v11404_v2 = vpack.c.bf16 %v11381_v36, %v11380_v0  ;;  %v12056_v0 = vld [vmem:[#allocation4 + $0xf6] sm:$0xff] }
 0x9af   : > { %18885 = vmatprep.mubr.msk.bf16.mxu1 %vm473_vm4, %v11064_v41  ;;  %v11384_v41 = vld [vmem:[#allocation4 + $0x105] sm:$0xff] }
 0x9b6   : > { %18886 = vmatmul.mubr.msk.bf16.gmra.mrb[56].mxu1 %vm473_vm4, %v11065_v8  ;;  %v11406_v8 = vpack.c.bf16 %v11385_v6, %v11384_v41  ;;  %v12060_v41 = vld [vmem:[#allocation4 + $0x116] sm:$0xff] }
 0x9b7   : > { %18889 = vmatprep.mubr.msk.bf16.mxu1 %vm473_vm4, %v11066_v35  ;;  %v11388_v35 = vld [vmem:[#allocation4 + $0x125] sm:$0xff] }
 0x9be   : > { %18890 = vmatmul.mubr.msk.bf16.gmra.mrb[60].mxu1 %vm473_vm4, %v11067_v48  ;;  %v11408_v48 = vpack.c.bf16 %v11389_v25, %v11388_v35 }
 0x9bf   : > { %18893 = vmatprep.mubr.msk.bf16.mxu1 %vm473_vm4, %v11068_v42  ;;  %v11391_v42 = vld [vmem:[#allocation4 + $0x13d] sm:$0xff] }
 0x9c0   : > { %v11409_v17 = vpack.c.bf16 %v11391_v42, %v11390_v32  ;;  %v12371_v32 = vld [vmem:[#allocation4 + $0x3f] sm:$0xff]  ;;  %v12370_v42 = vld [vmem:[#allocation4 + $0x37] sm:$0xff] }
 0x9c6   : > { %18894 = vmatmul.mubr.msk.bf16.gmra.mrb[64].mxu1 %vm473_vm4, %v11069_v10  ;;  %v11728_v10 = vld [vmem:[#allocation4 + $0x145] sm:$0xff] }
 0x9c7   : > { %18897 = vmatprep.mubr.msk.bf16.mxu1 %vm473_vm4, %v11070_v53  ;;  %v11747_v53 = vpack.c.bf16 %v11729_v54, %v11728_v10  ;;  %v12375_v10 = vld [vmem:[#allocation4 + $0x5f] sm:$0xff] }
 0x9ce   : > { %18898 = vmatmul.mubr.msk.bf16.gmra.mrb[68].mxu1 %vm473_vm4, %v11071_v37  ;;  %v12035_v37 = vld [vmem:[#allocation4 + $0x4e] sm:$0xff] }
 0x9cf   : > { %18905 = vmatprep.mubr.msk.bf16.mxu1 %vm473_vm4, %v11392_v3  ;;  %v12037_v3 = vld [vmem:[#allocation4 + $0x5e] sm:$0xff]  ;;  %v12069_v18 = vpack.c.bf16 %v12035_v37, %v12034_v56  ;;  %v12377_v56 = vld [vmem:[#allocation4 + $0x6f] sm:$0xff] }
 0x9d0   : > { %v12070_v58 = vpack.c.bf16 %v12037_v3, %v12036_v57  ;;  %v12379_v37 = vld [vmem:[#allocation4 + $0x7f] sm:$0xff] }
 0x9d6   : > { %18906 = vmatmul.mubr.msk.bf16.vlgmr.msra.gmra.mrb[36].mxu1 %vm473_vm4, %v22947_v29 }
 0x9d7   : > { %18942 = vmatpush3.bf16.msra.mxu1 %v22928_v47  ;;  %18909 = vmatprep.mubr.msk.bf16.mxu1 %vm473_vm4, %v22952_v38  ;;  %v11368_v47 = vld [vmem:[#allocation4 + $0x85] sm:$0xff] }
 0x9d8   : > { %18943 = vmatprep.subr.bf16.mxu1 %v20971_v50  ;;  %v11398_v34 = vpack.c.bf16 %v11369_v15, %v11368_v47  ;;  %v12044_v47 = vld [vmem:[#allocation4 + $0x96] sm:$0xff] }
 0x9db   : > { %18944 = vmatpush3.bf16.msra.mxu1 %v20971_v50  ;;  %v12038_v50 = vld [vmem:[#allocation4 + $0x66] sm:$0xff] }
 0x9dc   : > { %18981 = vmatprep.subr.bf16.mxu1 %v22962_v20 }
 0x9de   : > { %18910 = vmatmul.mubr.msk.bf16.gmra.mrb[40].mxu1 %vm473_vm4, %v11395_v28 }
 0x9df   : > { %18913 = vmatprep.mubr.msk.bf16.mxu1 %vm473_vm4, %v22965_v60 }
 0x9e6   : > { %18914 = vmatmul.mubr.msk.bf16.gmra.mrb[44].mxu1 %vm473_vm4, %v11397_v11 }
 0x9e7   : > { %18917 = vmatprep.mubr.msk.bf16.mxu1 %vm473_vm4, %v11398_v34 }
 0x9ee   : > { %18918 = vmatmul.mubr.msk.bf16.gmra.mrb[48].mxu1 %vm473_vm4, %v11399_v33 }
 0x9ef   : > { %18921 = vmatprep.mubr.msk.bf16.mxu1 %vm473_vm4, %v11400_v12 }
 0x9f6   : > { %18922 = vmatmul.mubr.msk.bf16.gmra.mrb[52].mxu1 %vm473_vm4, %v11401_v26 }
 0x9f7   : > { %18925 = vmatprep.mubr.msk.bf16.mxu1 %vm473_vm4, %v11402_v27 }
 0x9fe   : > { %18926 = vmatmul.mubr.msk.bf16.gmra.mrb[56].mxu1 %vm473_vm4, %v11403_v24 }
 0x9ff   : > { %18929 = vmatprep.mubr.msk.bf16.mxu1 %vm473_vm4, %v11404_v2 }
 0xa06   : > { %18930 = vmatmul.mubr.msk.bf16.gmra.mrb[60].mxu1 %vm473_vm4, %v11405_v45 }
 0xa07   : > { %18933 = vmatprep.mubr.msk.bf16.mxu1 %vm473_vm4, %v11406_v8 }
 0xa0e   : > { %18934 = vmatmul.mubr.msk.bf16.gmra.mrb[64].mxu1 %vm473_vm4, %v11407_v23 }
 0xa0f   : > { %18937 = vmatprep.mubr.msk.bf16.mxu1 %vm473_vm4, %v11408_v48 }
 0xa16   : > { %18938 = vmatmul.mubr.msk.bf16.gmra.mrb[68].mxu1 %vm473_vm4, %v11409_v17 }
 0xa17   : > { %18945 = vmatprep.mubr.msk.bf16.mxu1 %vm473_vm4, %v22947_v29  ;;  %v23020_v29 = vld [vmem:[%s23456_s10 + $0x8] sm:$0xff]  }
 0xa1e   : > { %18946 = vmatmul.mubr.msk.bf16.vlgmr.msra.gmra.mrb[36].mxu1 %vm473_vm4, %v22952_v38  ;;  %v12039_v38 = vld [vmem:[#allocation4 + $0x6e] sm:$0xff] }
 0xa1f   : > { %18982 = vmatpush3.bf16.msra.mxu1 %v22962_v20  ;;  %18949 = vmatprep.mubr.msk.bf16.mxu1 %vm473_vm4, %v11395_v28  ;;  %v12041_v20 = vld [vmem:[#allocation4 + $0x7e] sm:$0xff]  ;;  %v12071_v4 = vpack.c.bf16 %v12039_v38, %v12038_v50  ;;  %v12043_v28 = vld [vmem:[#allocation4 + $0x8e] sm:$0xff] }
 0xa20   : > { %18983 = vmatprep.subr.bf16.mxu1 %v20973_v49  ;;  %v12072_v59 = vpack.c.bf16 %v12041_v20, %v12040_v22  ;;  %v12073_v55 = vpack.c.bf16 %v12043_v28, %v12042_v43  ;;  %v12383_v50 = vld [vmem:[#allocation4 + $0x9f] sm:$0xff]  ;;  %v12382_v20 = vld [vmem:[#allocation4 + $0x97] sm:$0xff]  ;;  %v12385_v22 = vld [vmem:[#allocation4 + $0xaf] sm:$0xff] }
 0xa21   : > { %v12386_v28 = vld [vmem:[#allocation4 + $0xb7] sm:$0xff] }
 0xa23   : > { %18984 = vmatpush3.bf16.msra.mxu1 %v20973_v49  ;;  %v12372_v49 = vld [vmem:[#allocation4 + $0x47] sm:$0xff] }
 0xa24   : > { %19021 = vmatprep.subr.bf16.mxu1 %v20974_v62 }
 0xa26   : > { %18950 = vmatmul.mubr.msk.bf16.gmra.mrb[40].mxu1 %vm473_vm4, %v22965_v60  ;;  %v12045_v60 = vld [vmem:[#allocation4 + $0x9e] sm:$0xff] }
 0xa27   : > { %18953 = vmatprep.mubr.msk.bf16.mxu1 %vm473_vm4, %v11397_v11  ;;  %v12074_v15 = vpack.c.bf16 %v12045_v60, %v12044_v47  ;;  %v12047_v11 = vld [vmem:[#allocation4 + $0xae] sm:$0xff] }
 0xa28   : > { %v12075_v46 = vpack.c.bf16 %v12047_v11, %v12046_v40  ;;  %v12389_v47 = vld [vmem:[#allocation4 + $0xcf] sm:$0xff]  ;;  %v12390_v11 = vld [vmem:[#allocation4 + $0xd7] sm:$0xff] }
 0xa2e   : > { %18954 = vmatmul.mubr.msk.bf16.gmra.mrb[44].mxu1 %vm473_vm4, %v11398_v34  ;;  %v12049_v34 = vld [vmem:[#allocation4 + $0xbe] sm:$0xff] }
 0xa2f   : > { %18957 = vmatprep.mubr.msk.bf16.mxu1 %vm473_vm4, %v11399_v33  ;;  %v12076_v21 = vpack.c.bf16 %v12049_v34, %v12048_v31  ;;  %v12051_v33 = vld [vmem:[#allocation4 + $0xce] sm:$0xff] }
 0xa30   : > { %v12077_v63 = vpack.c.bf16 %v12051_v33, %v12050_v13  ;;  %v12393_v31 = vld [vmem:[#allocation4 + $0xef] sm:$0xff]  ;;  %v12394_v33 = vld [vmem:[#allocation4 + $0xf7] sm:$0xff] }
 0xa36   : > { %18958 = vmatmul.mubr.msk.bf16.gmra.mrb[48].mxu1 %vm473_vm4, %v11400_v12  ;;  %v12053_v12 = vld [vmem:[#allocation4 + $0xde] sm:$0xff] }
 0xa37   : > { %18961 = vmatprep.mubr.msk.bf16.mxu1 %vm473_vm4, %v11401_v26  ;;  %v12078_v16 = vpack.c.bf16 %v12053_v12, %v12052_v61  ;;  %v12055_v26 = vld [vmem:[#allocation4 + $0xee] sm:$0xff] }
 0xa38   : > { %v12079_v30 = vpack.c.bf16 %v12055_v26, %v12054_v9  ;;  %v12397_v61 = vld [vmem:[#allocation4 + $0x10f] sm:$0xff]  ;;  %v12398_v26 = vld [vmem:[#allocation4 + $0x117] sm:$0xff] }
 0xa3e   : > { %18962 = vmatmul.mubr.msk.bf16.gmra.mrb[52].mxu1 %vm473_vm4, %v11402_v27  ;;  %v12057_v27 = vld [vmem:[#allocation4 + $0xfe] sm:$0xff] }
 0xa3f   : > { %18965 = vmatprep.mubr.msk.bf16.mxu1 %vm473_vm4, %v11403_v24  ;;  %v12080_v36 = vpack.c.bf16 %v12057_v27, %v12056_v0  ;;  %v12059_v24 = vld [vmem:[#allocation4 + $0x10e] sm:$0xff] }
 0xa40   : > { %v12081_v19 = vpack.c.bf16 %v12059_v24, %v12058_v7  ;;  %v12401_v0 = vld [vmem:[#allocation4 + $0x12f] sm:$0xff]  ;;  %v12403_v7 = vld [vmem:[#allocation4 + $0x13f] sm:$0xff] }
 0xa46   : > { %18966 = vmatmul.mubr.msk.bf16.gmra.mrb[56].mxu1 %vm473_vm4, %v11404_v2  ;;  %v12061_v2 = vld [vmem:[#allocation4 + $0x11e] sm:$0xff] }
 0xa47   : > { %18969 = vmatprep.mubr.msk.bf16.mxu1 %vm473_vm4, %v11405_v45  ;;  %v12082_v6 = vpack.c.bf16 %v12061_v2, %v12060_v41  ;;  %v12063_v45 = vld [vmem:[#allocation4 + $0x12e] sm:$0xff] }
 0xa48   : > { %v12083_v35 = vpack.c.bf16 %v12063_v45, %v12062_v1  ;;  %v12405_v41 = vld [vmem:[#allocation4 + $0x14f] sm:$0xff] }
 0xa49   : > { %v12808_v1 = vld [vmem:[#allocation3 + $0x1a] sm:$0xff] }
 0xa4e   : > { %18970 = vmatmul.mubr.msk.bf16.gmra.mrb[60].mxu1 %vm473_vm4, %v11406_v8  ;;  %v12064_v8 = vld [vmem:[#allocation4 + $0x136] sm:$0xff] }
 0xa4f   : > { %18973 = vmatprep.mubr.msk.bf16.mxu1 %vm473_vm4, %v11407_v23  ;;  %v12084_v25 = vpack.c.bf16 %v12065_v44, %v12064_v8  ;;  %v12067_v23 = vld [vmem:[#allocation4 + $0x14e] sm:$0xff]  ;;  %v12810_v44 = vld [vmem:[#allocation3 + $0x2a] sm:$0xff] }
 0xa56   : > { %18974 = vmatmul.mubr.msk.bf16.gmra.mrb[64].mxu1 %vm473_vm4, %v11408_v48  ;;  %v12085_v48 = vpack.c.bf16 %v12067_v23, %v12066_v52  ;;  %v12809_v52 = vld [vmem:[#allocation3 + $0x22] sm:$0xff] }
 0xa57   : > { %18977 = vmatprep.mubr.msk.bf16.mxu1 %vm473_vm4, %v11409_v17  ;;  %v12406_v17 = vpack.c.bf16 %v12371_v32, %v12370_v42  ;;  %v12844_v23 = vpack.c.bf16 %v12810_v44, %v12809_v52  ;;  %v12814_v42 = vld [vmem:[#allocation3 + $0x4a] sm:$0xff]  ;;  %v12760_v44 = vld [vmem:[#allocation3 + $0x59] sm:$0xff] }
 0xa5e   : > { %18978 = vmatmul.mubr.msk.bf16.gmra.mrb[68].mxu1 %vm473_vm4, %v11747_v53  ;;  %v12374_v53 = vld [vmem:[#allocation4 + $0x57] sm:$0xff] }
 0xa5f   : > { %18985 = vmatprep.mubr.msk.bf16.mxu1 %vm473_vm4, %v12068_v51  ;;  %v12408_v5 = vpack.c.bf16 %v12375_v10, %v12374_v53  ;;  %v12376_v51 = vld [vmem:[#allocation4 + $0x67] sm:$0xff] }
 0xa60   : > { %v12409_v3 = vpack.c.bf16 %v12377_v56, %v12376_v51  ;;  %v12818_v53 = vld [vmem:[#allocation3 + $0x6a] sm:$0xff]  ;;  %v12820_v51 = vld [vmem:[#allocation3 + $0x7a] sm:$0xff]  ;;  %v12817_v56 = vld [vmem:[#allocation3 + $0x62] sm:$0xff] }
 0xa66   : > { %18986 = vmatmul.mubr.msk.bf16.vlgmr.msra.gmra.mrb[36].mxu1 %vm473_vm4, %v12069_v18  ;;  %v12378_v18 = vld [vmem:[#allocation4 + $0x77] sm:$0xff] }
 0xa67   : > { %19022 = vmatpush3.bf16.msra.mxu1 %v20974_v62  ;;  %18989 = vmatprep.mubr.msk.bf16.mxu1 %vm473_vm4, %v12070_v58  ;;  %v12373_v62 = vld [vmem:[#allocation4 + $0x4f] sm:$0xff]  ;;  %v12410_v57 = vpack.c.bf16 %v12379_v37, %v12378_v18  ;;  %v12848_v37 = vpack.c.bf16 %v12818_v53, %v12817_v56  ;;  %v12765_v53 = vld [vmem:[#allocation3 + $0x81] sm:$0xff]  ;;  %v12770_v56 = vld [vmem:[#allocation3 + $0xa9] sm:$0xff] }
 0xa68   : > { %19023 = vmatprep.subr.bf16.mxu1 %v20975_v39  ;;  %v12407_v54 = vpack.c.bf16 %v12373_v62, %v12372_v49  ;;  %v12381_v58 = vld [vmem:[#allocation4 + $0x8f] sm:$0xff]  ;;  %v12813_v62 = vld [vmem:[#allocation3 + $0x42] sm:$0xff] }
 0xa69   : > { %v12816_v49 = vld [vmem:[#allocation3 + $0x5a] sm:$0xff]  ;;  %v12846_v10 = vpack.c.bf16 %v12814_v42, %v12813_v62  ;;  %v12823_v18 = vld [vmem:[#allocation3 + $0x92] sm:$0xff]  ;;  %v12766_v62 = vld [vmem:[#allocation3 + $0x89] sm:$0xff] }
 0xa6a   : > { %v12764_v42 = vld [vmem:[#allocation3 + $0x79] sm:$0xff] }
 0xa6b   : > { %19024 = vmatpush3.bf16.msra.mxu1 %v20975_v39  ;;  %v12380_v39 = vld [vmem:[#allocation4 + $0x87] sm:$0xff] }
 0xa6c   : > { %19061 = vmatprep.subr.bf16.mxu1 %v23020_v29  ;;  %v12411_v38 = vpack.c.bf16 %v12381_v58, %v12380_v39  ;;  %v12821_v39 = vld [vmem:[#allocation3 + $0x82] sm:$0xff] }
 0xa6e   : > { %18990 = vmatmul.mubr.msk.bf16.gmra.mrb[40].mxu1 %vm473_vm4, %v12071_v4  ;;  %v12384_v4 = vld [vmem:[#allocation4 + $0xa7] sm:$0xff] }
 0xa6f   : > { %18993 = vmatprep.mubr.msk.bf16.mxu1 %vm473_vm4, %v12072_v59  ;;  %v12387_v59 = vld [vmem:[#allocation4 + $0xbf] sm:$0xff]  ;;  %v12413_v43 = vpack.c.bf16 %v12385_v22, %v12384_v4 }
 0xa70   : > { %v12414_v60 = vpack.c.bf16 %v12387_v59, %v12386_v28  ;;  %v12825_v4 = vld [vmem:[#allocation3 + $0xa2] sm:$0xff]  ;;  %v12831_v28 = vld [vmem:[#allocation3 + $0xd2] sm:$0xff] }
 0xa76   : > { %18994 = vmatmul.mubr.msk.bf16.gmra.mrb[44].mxu1 %vm473_vm4, %v12073_v55  ;;  %v12388_v55 = vld [vmem:[#allocation4 + $0xc7] sm:$0xff] }
 0xa77   : > { %18997 = vmatprep.mubr.msk.bf16.mxu1 %vm473_vm4, %v12074_v15  ;;  %v12391_v15 = vld [vmem:[#allocation4 + $0xdf] sm:$0xff]  ;;  %v12415_v40 = vpack.c.bf16 %v12389_v47, %v12388_v55 }
 0xa78   : > { %v12416_v34 = vpack.c.bf16 %v12391_v15, %v12390_v11  ;;  %v12829_v55 = vld [vmem:[#allocation3 + $0xc2] sm:$0xff]  ;;  %v12835_v11 = vld [vmem:[#allocation3 + $0xf2] sm:$0xff] }
 0xa7e   : > { %18998 = vmatmul.mubr.msk.bf16.gmra.mrb[48].mxu1 %vm473_vm4, %v12075_v46  ;;  %v12392_v46 = vld [vmem:[#allocation4 + $0xe7] sm:$0xff] }
 0xa7f   : > { %19001 = vmatprep.mubr.msk.bf16.mxu1 %vm473_vm4, %v12076_v21  ;;  %v12395_v21 = vld [vmem:[#allocation4 + $0xff] sm:$0xff]  ;;  %v12417_v13 = vpack.c.bf16 %v12393_v31, %v12392_v46 }
 0xa80   : > { %v12418_v12 = vpack.c.bf16 %v12395_v21, %v12394_v33  ;;  %v12833_v46 = vld [vmem:[#allocation3 + $0xe2] sm:$0xff]  ;;  %v12839_v33 = vld [vmem:[#allocation3 + $0x112] sm:$0xff] }
 0xa86   : > { %19002 = vmatmul.mubr.msk.bf16.gmra.mrb[52].mxu1 %vm473_vm4, %v12077_v63  ;;  %v12396_v63 = vld [vmem:[#allocation4 + $0x107] sm:$0xff] }
 0xa87   : > { %19005 = vmatprep.mubr.msk.bf16.mxu1 %vm473_vm4, %v12078_v16  ;;  %v12399_v16 = vld [vmem:[#allocation4 + $0x11f] sm:$0xff]  ;;  %v12419_v9 = vpack.c.bf16 %v12397_v61, %v12396_v63 }
 0xa88   : > { %v12420_v27 = vpack.c.bf16 %v12399_v16, %v12398_v26  ;;  %v12837_v63 = vld [vmem:[#allocation3 + $0x102] sm:$0xff]  ;;  %v12752_v26 = vld [vmem:[#allocation3 + $0x19] sm:$0xff] }
 0xa8e   : > { %19006 = vmatmul.mubr.msk.bf16.gmra.mrb[56].mxu1 %vm473_vm4, %v12079_v30  ;;  %v12400_v30 = vld [vmem:[#allocation4 + $0x127] sm:$0xff] }
 0xa8f   : > { %19009 = vmatprep.mubr.msk.bf16.mxu1 %vm473_vm4, %v12080_v36  ;;  %v12402_v36 = vld [vmem:[#allocation4 + $0x137] sm:$0xff]  ;;  %v12421_v24 = vpack.c.bf16 %v12401_v0, %v12400_v30 }
 0xa90   : > { %v12422_v2 = vpack.c.bf16 %v12403_v7, %v12402_v36  ;;  %v12841_v30 = vld [vmem:[#allocation3 + $0x122] sm:$0xff] }
 0xa91   : > { %v12754_v7 = vld [vmem:[#allocation3 + $0x29] sm:$0xff] }
 0xa96   : > { %19010 = vmatmul.mubr.msk.bf16.gmra.mrb[60].mxu1 %vm473_vm4, %v12081_v19  ;;  %v12404_v19 = vld [vmem:[#allocation4 + $0x147] sm:$0xff] }
 0xa97   : > { %19013 = vmatprep.mubr.msk.bf16.mxu1 %vm473_vm4, %v12082_v6  ;;  %v12807_v6 = vld [vmem:[#allocation3 + $0x12] sm:$0xff]  ;;  %v12423_v45 = vpack.c.bf16 %v12405_v41, %v12404_v19  ;;  %v12753_v19 = vld [vmem:[#allocation3 + $0x21] sm:$0xff] }
 0xa98   : > { %v12843_v8 = vpack.c.bf16 %v12808_v1, %v12807_v6  ;;  %v12788_v41 = vpack.c.bf16 %v12754_v7, %v12753_v19  ;;  %v23092_v6 = vld [vmem:[%s23456_s10 + $0x18] sm:$0xff]   ;;  %v13347_v7 = vld [vmem:[#allocation3 + $0x5b] sm:$0xff] }
 0xa9e   : > { %19014 = vmatmul.mubr.msk.bf16.gmra.mrb[64].mxu1 %vm473_vm4, %v12083_v35  ;;  %v12811_v35 = vld [vmem:[#allocation3 + $0x32] sm:$0xff] }
 0xa9f   : > { %19017 = vmatprep.mubr.msk.bf16.mxu1 %vm473_vm4, %v12084_v25  ;;  %v12812_v25 = vld [vmem:[#allocation3 + $0x3a] sm:$0xff] }
 0xaa0   : > { %v12845_v32 = vpack.c.bf16 %v12812_v25, %v12811_v35  ;;  %v12757_v35 = vld [vmem:[#allocation3 + $0x41] sm:$0xff] }
 0xaa6   : > { %19018 = vmatmul.mubr.msk.bf16.gmra.mrb[68].mxu1 %vm473_vm4, %v12085_v48  ;;  %v23067_v48 = vld [vmem:[%s23456_s10 + $0x10] sm:$0xff]  }
 0xaa7   : > { %19025 = vmatprep.mubr.msk.bf16.mxu1 %vm473_vm4, %v12406_v17  ;;  %v12815_v17 = vld [vmem:[#allocation3 + $0x52] sm:$0xff] }
 0xaae   : > { %19026 = vmatmul.mubr.msk.bf16.vlgmr.msra.gmra.mrb[36].mxu1 %vm473_vm4, %v12407_v54  ;;  %v12847_v54 = vpack.c.bf16 %v12816_v49, %v12815_v17  ;;  %v12761_v17 = vld [vmem:[#allocation3 + $0x61] sm:$0xff] }
 0xaaf   : > { %19062 = vmatpush3.bf16.msra.mxu1 %v23020_v29  ;;  %19029 = vmatprep.mubr.msk.bf16.mxu1 %vm473_vm4, %v12408_v5  ;;  %v12412_v29 = vpack.c.bf16 %v12383_v50, %v12382_v20  ;;  %v12819_v5 = vld [vmem:[#allocation3 + $0x72] sm:$0xff] }
 0xab0   : > { %19099 = vmatprep.subr.bf16.mxu1 %v23042_v14  ;;  %v12827_v20 = vld [vmem:[#allocation3 + $0xb2] sm:$0xff] }
 0xab6   : > { %19030 = vmatmul.mubr.msk.bf16.gmra.mrb[40].mxu1 %vm473_vm4, %v12409_v3  ;;  %v12822_v3 = vld [vmem:[#allocation3 + $0x8a] sm:$0xff] }
 0xab7   : > { %19033 = vmatprep.mubr.msk.bf16.mxu1 %vm473_vm4, %v12410_v57  ;;  %v12824_v57 = vld [vmem:[#allocation3 + $0x9a] sm:$0xff]  ;;  %v12850_v58 = vpack.c.bf16 %v12822_v3, %v12821_v39  ;;  %v12774_v39 = vld [vmem:[#allocation3 + $0xc9] sm:$0xff] }
 0xab8   : > { %v12851_v50 = vpack.c.bf16 %v12824_v57, %v12823_v18  ;;  %v12769_v3 = vld [vmem:[#allocation3 + $0xa1] sm:$0xff] }
 0xab9   : > { %v12796_v18 = vpack.c.bf16 %v12770_v56, %v12769_v3  ;;  %v13360_v56 = vld [vmem:[#allocation3 + $0xc3] sm:$0xff]  ;;  %v13365_v3 = vld [vmem:[#allocation3 + $0xeb] sm:$0xff] }
 0xabe   : > { %19034 = vmatmul.mubr.msk.bf16.gmra.mrb[44].mxu1 %vm473_vm4, %v12411_v38  ;;  %v12826_v38 = vld [vmem:[#allocation3 + $0xaa] sm:$0xff] }
 0xabf   : > { %19037 = vmatprep.mubr.msk.bf16.mxu1 %vm473_vm4, %v12412_v29  ;;  %v12828_v29 = vld [vmem:[#allocation3 + $0xba] sm:$0xff]  ;;  %v12852_v22 = vpack.c.bf16 %v12826_v38, %v12825_v4  ;;  %v12778_v4 = vld [vmem:[#allocation3 + $0xe9] sm:$0xff] }
 0xac0   : > { %v12853_v59 = vpack.c.bf16 %v12828_v29, %v12827_v20  ;;  %v12773_v38 = vld [vmem:[#allocation3 + $0xc1] sm:$0xff] }
 0xac1   : > { %v12798_v20 = vpack.c.bf16 %v12774_v39, %v12773_v38  ;;  %v13364_v39 = vld [vmem:[#allocation3 + $0xe3] sm:$0xff]  ;;  %v13369_v38 = vld [vmem:[#allocation3 + $0x10b] sm:$0xff] }
 0xac6   : > { %19038 = vmatmul.mubr.msk.bf16.gmra.mrb[48].mxu1 %vm473_vm4, %v12413_v43  ;;  %v12830_v43 = vld [vmem:[#allocation3 + $0xca] sm:$0xff] }
 0xac7   : > { %19041 = vmatprep.mubr.msk.bf16.mxu1 %vm473_vm4, %v12414_v60  ;;  %v12832_v60 = vld [vmem:[#allocation3 + $0xda] sm:$0xff]  ;;  %v12854_v47 = vpack.c.bf16 %v12830_v43, %v12829_v55  ;;  %v12782_v55 = vld [vmem:[#allocation3 + $0x109] sm:$0xff] }
 0xac8   : > { %v12855_v15 = vpack.c.bf16 %v12832_v60, %v12831_v28  ;;  %v12777_v43 = vld [vmem:[#allocation3 + $0xe1] sm:$0xff] }
 0xac9   : > { %v12800_v28 = vpack.c.bf16 %v12778_v4, %v12777_v43  ;;  %v13368_v4 = vld [vmem:[#allocation3 + $0x103] sm:$0xff]  ;;  %v13373_v43 = vld [vmem:[#allocation3 + $0x12b] sm:$0xff] }
 0xace   : > { %19042 = vmatmul.mubr.msk.bf16.gmra.mrb[52].mxu1 %vm473_vm4, %v12415_v40  ;;  %v12834_v40 = vld [vmem:[#allocation3 + $0xea] sm:$0xff] }
 0xacf   : > { %19045 = vmatprep.mubr.msk.bf16.mxu1 %vm473_vm4, %v12416_v34  ;;  %v12836_v34 = vld [vmem:[#allocation3 + $0xfa] sm:$0xff]  ;;  %v12856_v31 = vpack.c.bf16 %v12834_v40, %v12833_v46 }
 0xad0   : > { %v12857_v21 = vpack.c.bf16 %v12836_v34, %v12835_v11  ;;  %v12781_v40 = vld [vmem:[#allocation3 + $0x101] sm:$0xff]  ;;  %v13338_v46 = vld [vmem:[#allocation3 + $0x13] sm:$0xff] }
 0xad1   : > { %v12802_v11 = vpack.c.bf16 %v12782_v55, %v12781_v40  ;;  %v20981_v55 = vld [vmem:[%s23456_s10 + $0x28] sm:$0xff]   ;;  %v13999_v40 = vld [vmem:[#allocation3 + $0x2c] sm:$0xff] }
 0xad6   : > { %19046 = vmatmul.mubr.msk.bf16.gmra.mrb[56].mxu1 %vm473_vm4, %v12417_v13  ;;  %v12838_v13 = vld [vmem:[#allocation3 + $0x10a] sm:$0xff] }
 0xad7   : > { %19049 = vmatprep.mubr.msk.bf16.mxu1 %vm473_vm4, %v12418_v12  ;;  %v12840_v12 = vld [vmem:[#allocation3 + $0x11a] sm:$0xff]  ;;  %v12858_v61 = vpack.c.bf16 %v12838_v13, %v12837_v63  ;;  %v13341_v63 = vld [vmem:[#allocation3 + $0x2b] sm:$0xff] }
 0xad8   : > { %v12859_v16 = vpack.c.bf16 %v12840_v12, %v12839_v33  ;;  %v12785_v13 = vld [vmem:[#allocation3 + $0x121] sm:$0xff] }
 0xade   : > { %19050 = vmatmul.mubr.msk.bf16.gmra.mrb[60].mxu1 %vm473_vm4, %v12419_v9  ;;  %v12751_v9 = vld [vmem:[#allocation3 + $0x11] sm:$0xff] }
 0xadf   : > { %19053 = vmatprep.mubr.msk.bf16.mxu1 %vm473_vm4, %v12420_v27  ;;  %v12842_v27 = vld [vmem:[#allocation3 + $0x12a] sm:$0xff]  ;;  %v12787_v0 = vpack.c.bf16 %v12752_v26, %v12751_v9 }
 0xae0   : > { %v12860_v36 = vpack.c.bf16 %v12842_v27, %v12841_v30  ;;  %v13340_v9 = vld [vmem:[#allocation3 + $0x23] sm:$0xff]  ;;  %v23119_v27 = vld [vmem:[%s23456_s10 + $0x20] sm:$0xff]  }
 0xae1   : > { %v23114_v26 = vpack.c.bf16 %v13341_v63, %v13340_v9  ;;  %v23172_v63 = vld [vmem:[%s23456_s10 + $0x30] sm:$0xff]  }
 0xae2   : > { %v14007_v9 = vld [vmem:[#allocation3 + $0x6c] sm:$0xff] }
 0xae6   : > { %19054 = vmatmul.mubr.msk.bf16.gmra.mrb[64].mxu1 %vm473_vm4, %v12421_v24  ;;  %v12755_v24 = vld [vmem:[#allocation3 + $0x31] sm:$0xff] }
 0xae7   : > { %19057 = vmatprep.mubr.msk.bf16.mxu1 %vm473_vm4, %v12422_v2  ;;  %v12756_v2 = vld [vmem:[#allocation3 + $0x39] sm:$0xff] }
 0xae8   : > { %v12789_v1 = vpack.c.bf16 %v12756_v2, %v12755_v24  ;;  %v13344_v24 = vld [vmem:[#allocation3 + $0x43] sm:$0xff] }
 0xaee   : > { %19058 = vmatmul.mubr.msk.bf16.gmra.mrb[68].mxu1 %vm473_vm4, %v12423_v45  ;;  %v12758_v45 = vld [vmem:[#allocation3 + $0x49] sm:$0xff] }
 0xaef   : > { %19063 = vmatprep.mubr.msk.bf16.mxu1 %vm451_vm2, %v12843_v8  ;;  %v12759_v8 = vld [vmem:[#allocation3 + $0x51] sm:$0xff]  ;;  %v12790_v25 = vpack.c.bf16 %v12758_v45, %v12757_v35  ;;  %v13351_v45 = vld [vmem:[#allocation3 + $0x7b] sm:$0xff] }
 0xaf0   : > { %v12791_v52 = vpack.c.bf16 %v12760_v44, %v12759_v8  ;;  %v13348_v8 = vld [vmem:[#allocation3 + $0x63] sm:$0xff]  ;;  %v13353_v35 = vld [vmem:[#allocation3 + $0x8b] sm:$0xff] }
 0xaf6   : > { %19064 = vmatmul.mubr.msk.bf16.vlgmr.msra.gmra.mrb[36].mxu1 %vm451_vm2, %v12844_v23  ;;  %v12762_v23 = vld [vmem:[#allocation3 + $0x69] sm:$0xff] }
 0xaf7   : > { %19100 = vmatpush3.bf16.msra.mxu1 %v23042_v14  ;;  %19067 = vmatprep.mubr.msk.bf16.mxu1 %vm451_vm2, %v12845_v32  ;;  %v12849_v14 = vpack.c.bf16 %v12820_v51, %v12819_v5  ;;  %v12763_v32 = vld [vmem:[#allocation3 + $0x71] sm:$0xff]  ;;  %v12792_v49 = vpack.c.bf16 %v12762_v23, %v12761_v17  ;;  %v12794_v5 = vpack.c.bf16 %v12766_v62, %v12765_v53  ;;  %v13352_v23 = vld [vmem:[#allocation3 + $0x83] sm:$0xff] }
 0xaf8   : > { %19137 = vmatprep.subr.bf16.mxu1 %v23067_v48  ;;  %v13357_v17 = vld [vmem:[#allocation3 + $0xab] sm:$0xff]  ;;  %v13356_v62 = vld [vmem:[#allocation3 + $0xa3] sm:$0xff] }
 0xaf9   : > { %v13361_v53 = vld [vmem:[#allocation3 + $0xcb] sm:$0xff] }
 0xafe   : > { %19068 = vmatmul.mubr.msk.bf16.gmra.mrb[40].mxu1 %vm451_vm2, %v12846_v10  ;;  %v12767_v10 = vld [vmem:[#allocation3 + $0x91] sm:$0xff] }
 0xaff   : > { %19071 = vmatprep.mubr.msk.bf16.mxu1 %vm451_vm2, %v12847_v54  ;;  %v12768_v54 = vld [vmem:[#allocation3 + $0x99] sm:$0xff] }
 0xb00   : > { %v12795_v51 = vpack.c.bf16 %v12768_v54, %v12767_v10  ;;  %v13383_v10 = vpack.c.bf16 %v13357_v17, %v13356_v62  ;;  %v14020_v62 = vld [vmem:[#allocation3 + $0xd4] sm:$0xff] }
 0xb06   : > { %19072 = vmatmul.mubr.msk.bf16.gmra.mrb[44].mxu1 %vm451_vm2, %v12848_v37  ;;  %v12771_v37 = vld [vmem:[#allocation3 + $0xb1] sm:$0xff] }
 0xb07   : > { %19075 = vmatprep.mubr.msk.bf16.mxu1 %vm451_vm2, %v12849_v14  ;;  %v12772_v14 = vld [vmem:[#allocation3 + $0xb9] sm:$0xff] }
 0xb08   : > { %v12797_v57 = vpack.c.bf16 %v12772_v14, %v12771_v37  ;;  %v13385_v37 = vpack.c.bf16 %v13361_v53, %v13360_v56  ;;  %v14024_v56 = vld [vmem:[#allocation3 + $0xf4] sm:$0xff] }
 0xb0e   : > { %19076 = vmatmul.mubr.msk.bf16.gmra.mrb[48].mxu1 %vm451_vm2, %v12850_v58  ;;  %v12775_v58 = vld [vmem:[#allocation3 + $0xd1] sm:$0xff] }
 0xb0f   : > { %19079 = vmatprep.mubr.msk.bf16.mxu1 %vm451_vm2, %v12851_v50  ;;  %v12776_v50 = vld [vmem:[#allocation3 + $0xd9] sm:$0xff] }
 0xb10   : > { %v12799_v29 = vpack.c.bf16 %v12776_v50, %v12775_v58  ;;  %v13387_v58 = vpack.c.bf16 %v13365_v3, %v13364_v39  ;;  %v14028_v39 = vld [vmem:[#allocation3 + $0x114] sm:$0xff] }
 0xb16   : > { %19080 = vmatmul.mubr.msk.bf16.gmra.mrb[52].mxu1 %vm451_vm2, %v12852_v22  ;;  %v12779_v22 = vld [vmem:[#allocation3 + $0xf1] sm:$0xff] }
 0xb17   : > { %19083 = vmatprep.mubr.msk.bf16.mxu1 %vm451_vm2, %v12853_v59  ;;  %v12780_v59 = vld [vmem:[#allocation3 + $0xf9] sm:$0xff] }
 0xb18   : > { %v12801_v60 = vpack.c.bf16 %v12780_v59, %v12779_v22  ;;  %v13389_v22 = vpack.c.bf16 %v13369_v38, %v13368_v4  ;;  %v14329_v4 = vld [vmem:[#allocation3 + $0x2d] sm:$0xff] }
 0xb1e   : > { %19084 = vmatmul.mubr.msk.bf16.gmra.mrb[56].mxu1 %vm451_vm2, %v12854_v47  ;;  %v12783_v47 = vld [vmem:[#allocation3 + $0x111] sm:$0xff] }
 0xb1f   : > { %19087 = vmatprep.mubr.msk.bf16.mxu1 %vm451_vm2, %v12855_v15  ;;  %v12784_v15 = vld [vmem:[#allocation3 + $0x119] sm:$0xff] }
 0xb20   : > { %v12803_v34 = vpack.c.bf16 %v12784_v15, %v12783_v47  ;;  %v13702_v47 = vld [vmem:[#allocation3 + $0x133] sm:$0xff]  ;;  %v13703_v15 = vld [vmem:[#allocation3 + $0x13b] sm:$0xff] }
 0xb26   : > { %19088 = vmatmul.mubr.msk.bf16.gmra.mrb[60].mxu1 %vm451_vm2, %v12856_v31  ;;  %v13339_v31 = vld [vmem:[#allocation3 + $0x1b] sm:$0xff] }
 0xb27   : > { %19091 = vmatprep.mubr.msk.bf16.mxu1 %vm451_vm2, %v12857_v21  ;;  %v12786_v21 = vld [vmem:[#allocation3 + $0x129] sm:$0xff]  ;;  %v13374_v33 = vpack.c.bf16 %v13339_v31, %v13338_v46  ;;  %v14001_v31 = vld [vmem:[#allocation3 + $0x3c] sm:$0xff] }
 0xb28   : > { %v12804_v12 = vpack.c.bf16 %v12786_v21, %v12785_v13  ;;  %v14003_v21 = vld [vmem:[#allocation3 + $0x4c] sm:$0xff]  ;;  %v14000_v13 = vld [vmem:[#allocation3 + $0x34] sm:$0xff] }
 0xb2e   : > { %19092 = vmatmul.mubr.msk.bf16.gmra.mrb[64].mxu1 %vm451_vm2, %v12858_v61  ;;  %v13342_v61 = vld [vmem:[#allocation3 + $0x33] sm:$0xff] }
 0xb2f   : > { %19095 = vmatprep.mubr.msk.bf16.mxu1 %vm451_vm2, %v12859_v16  ;;  %v13343_v16 = vld [vmem:[#allocation3 + $0x3b] sm:$0xff] }
 0xb30   : > { %v23121_v30 = vpack.c.bf16 %v13343_v16, %v13342_v61  ;;  %v14005_v16 = vld [vmem:[#allocation3 + $0x5c] sm:$0xff] }
 0xb36   : > { %19096 = vmatmul.mubr.msk.bf16.gmra.mrb[68].mxu1 %vm451_vm2, %v12860_v36  ;;  %v13346_v36 = vld [vmem:[#allocation3 + $0x53] sm:$0xff] }
 0xb37   : > { %19101 = vmatprep.mubr.msk.bf16.mxu1 %vm451_vm2, %v12787_v0  ;;  %v13345_v0 = vld [vmem:[#allocation3 + $0x4b] sm:$0xff]  ;;  %v13378_v19 = vpack.c.bf16 %v13347_v7, %v13346_v36  ;;  %v14009_v36 = vld [vmem:[#allocation3 + $0x7c] sm:$0xff] }
 0xb38   : > { %v13377_v2 = vpack.c.bf16 %v13345_v0, %v13344_v24  ;;  %v14011_v7 = vld [vmem:[#allocation3 + $0x8c] sm:$0xff]  ;;  %v14008_v24 = vld [vmem:[#allocation3 + $0x74] sm:$0xff] }
 0xb3e   : > { %19102 = vmatmul.mubr.msk.bf16.vlgmr.msra.gmra.mrb[36].mxu1 %vm451_vm2, %v12788_v41  ;;  %v13349_v41 = vld [vmem:[#allocation3 + $0x6b] sm:$0xff] }
 0xb3f   : > { %19138 = vmatpush3.bf16.msra.mxu1 %v23067_v48  ;;  %19105 = vmatprep.mubr.msk.bf16.mxu1 %vm451_vm2, %v12789_v1  ;;  %v12793_v48 = vpack.c.bf16 %v12764_v42, %v12763_v32  ;;  %v13350_v1 = vld [vmem:[#allocation3 + $0x73] sm:$0xff]  ;;  %v13381_v32 = vpack.c.bf16 %v13353_v35, %v13352_v23 }
 0xb40   : > { %19175 = vmatprep.subr.bf16.mxu1 %v23092_v6  ;;  %v13380_v44 = vpack.c.bf16 %v13351_v45, %v13350_v1  ;;  %v14013_v1 = vld [vmem:[#allocation3 + $0x9c] sm:$0xff]  ;;  %v14015_v45 = vld [vmem:[#allocation3 + $0xac] sm:$0xff]  ;;  %v14016_v23 = vld [vmem:[#allocation3 + $0xb4] sm:$0xff] }
 0xb46   : > { %19106 = vmatmul.mubr.msk.bf16.gmra.mrb[40].mxu1 %vm451_vm2, %v12790_v25  ;;  %v13354_v25 = vld [vmem:[#allocation3 + $0x93] sm:$0xff] }
 0xb47   : > { %19109 = vmatprep.mubr.msk.bf16.mxu1 %vm451_vm2, %v12791_v52  ;;  %v13355_v52 = vld [vmem:[#allocation3 + $0x9b] sm:$0xff] }
 0xb48   : > { %v13382_v42 = vpack.c.bf16 %v13355_v52, %v13354_v25  ;;  %v14017_v25 = vld [vmem:[#allocation3 + $0xbc] sm:$0xff]  ;;  %v14019_v52 = vld [vmem:[#allocation3 + $0xcc] sm:$0xff] }
 0xb4e   : > { %19110 = vmatmul.mubr.msk.bf16.gmra.mrb[44].mxu1 %vm451_vm2, %v12792_v49  ;;  %v13358_v49 = vld [vmem:[#allocation3 + $0xb3] sm:$0xff] }
 0xb4f   : > { %19113 = vmatprep.mubr.msk.bf16.mxu1 %vm451_vm2, %v12793_v48  ;;  %v13359_v48 = vld [vmem:[#allocation3 + $0xbb] sm:$0xff] }
 0xb50   : > { %v13384_v54 = vpack.c.bf16 %v13359_v48, %v13358_v49  ;;  %v14021_v49 = vld [vmem:[#allocation3 + $0xdc] sm:$0xff]  ;;  %v14023_v48 = vld [vmem:[#allocation3 + $0xec] sm:$0xff] }
 0xb56   : > { %19114 = vmatmul.mubr.msk.bf16.gmra.mrb[48].mxu1 %vm451_vm2, %v12794_v5  ;;  %v13362_v5 = vld [vmem:[#allocation3 + $0xd3] sm:$0xff] }
 0xb57   : > { %19117 = vmatprep.mubr.msk.bf16.mxu1 %vm451_vm2, %v12795_v51  ;;  %v13363_v51 = vld [vmem:[#allocation3 + $0xdb] sm:$0xff] }
 0xb58   : > { %v13386_v14 = vpack.c.bf16 %v13363_v51, %v13362_v5  ;;  %v14025_v5 = vld [vmem:[#allocation3 + $0xfc] sm:$0xff]  ;;  %v14027_v51 = vld [vmem:[#allocation3 + $0x10c] sm:$0xff] }
 0xb5e   : > { %19118 = vmatmul.mubr.msk.bf16.gmra.mrb[52].mxu1 %vm451_vm2, %v12796_v18  ;;  %v13366_v18 = vld [vmem:[#allocation3 + $0xf3] sm:$0xff] }
 0xb5f   : > { %19121 = vmatprep.mubr.msk.bf16.mxu1 %vm451_vm2, %v12797_v57  ;;  %v13367_v57 = vld [vmem:[#allocation3 + $0xfb] sm:$0xff] }
 0xb60   : > { %v13388_v50 = vpack.c.bf16 %v13367_v57, %v13366_v18  ;;  %v14029_v18 = vld [vmem:[#allocation3 + $0x11c] sm:$0xff]  ;;  %v14031_v57 = vld [vmem:[#allocation3 + $0x12c] sm:$0xff] }
 0xb66   : > { %19122 = vmatmul.mubr.msk.bf16.gmra.mrb[56].mxu1 %vm451_vm2, %v12798_v20  ;;  %v13370_v20 = vld [vmem:[#allocation3 + $0x113] sm:$0xff] }
 0xb67   : > { %19125 = vmatprep.mubr.msk.bf16.mxu1 %vm451_vm2, %v12799_v29  ;;  %v13371_v29 = vld [vmem:[#allocation3 + $0x11b] sm:$0xff] }
 0xb68   : > { %v13390_v59 = vpack.c.bf16 %v13371_v29, %v13370_v20  ;;  %v14033_v20 = vld [vmem:[#allocation3 + $0x13c] sm:$0xff]  ;;  %v14328_v29 = vld [vmem:[#allocation3 + $0x25] sm:$0xff] }
 0xb6e   : > { %19126 = vmatmul.mubr.msk.bf16.gmra.mrb[60].mxu1 %vm451_vm2, %v12800_v28  ;;  %v13372_v28 = vld [vmem:[#allocation3 + $0x123] sm:$0xff] }
 0xb6f   : > { %19129 = vmatprep.mubr.msk.bf16.mxu1 %vm451_vm2, %v12801_v60  ;;  %v13391_v60 = vpack.c.bf16 %v13373_v43, %v13372_v28  ;;  %v14364_v43 = vpack.c.bf16 %v14329_v4, %v14328_v29  ;;  %v14331_v28 = vld [vmem:[#allocation3 + $0x3d] sm:$0xff]  ;;  %v14990_v29 = vld [vmem:[#allocation3 + $0x46] sm:$0xff]  ;;  %v14991_v4 = vld [vmem:[#allocation3 + $0x4e] sm:$0xff] }
 0xb76   : > { %19130 = vmatmul.mubr.msk.bf16.gmra.mrb[64].mxu1 %vm451_vm2, %v12802_v11  ;;  %v13721_v11 = vpack.c.bf16 %v13703_v15, %v13702_v47  ;;  %v14330_v47 = vld [vmem:[#allocation3 + $0x35] sm:$0xff] }
 0xb77   : > { %19133 = vmatprep.mubr.msk.bf16.mxu1 %vm451_vm2, %v12803_v34  ;;  %v13998_v34 = vld [vmem:[#allocation3 + $0x24] sm:$0xff]  ;;  %v23193_v15 = vpack.c.bf16 %v14331_v28, %v14330_v47 }
 0xb78   : > { %v14034_v46 = vpack.c.bf16 %v13999_v40, %v13998_v34  ;;  %v23198_v40 = vld [vmem:[%s23456_s10 + $0x38] sm:$0xff]   ;;  %v14335_v34 = vld [vmem:[#allocation3 + $0x5d] sm:$0xff] }
 0xb79   : > { %v14997_v47 = vld [vmem:[#allocation3 + $0x7e] sm:$0xff] }
 0xb7e   : > { %19134 = vmatmul.mubr.msk.bf16.gmra.mrb[68].mxu1 %vm451_vm2, %v12804_v12  ;;  %v14002_v12 = vld [vmem:[#allocation3 + $0x44] sm:$0xff] }
 0xb7f   : > { %19139 = vmatprep.mubr.msk.bf16.mxu1 %vm451_vm2, %v13374_v33  ;;  %v14035_v33 = vpack.c.bf16 %v14001_v31, %v14000_v13  ;;  %v14036_v61 = vpack.c.bf16 %v14003_v21, %v14002_v12  ;;  %v14337_v31 = vld [vmem:[#allocation3 + $0x6d] sm:$0xff]  ;;  %v14334_v21 = vld [vmem:[#allocation3 + $0x55] sm:$0xff]  ;;  %v14339_v12 = vld [vmem:[#allocation3 + $0x7d] sm:$0xff] }
 0xb80   : > { %v14367_v13 = vpack.c.bf16 %v14335_v34, %v14334_v21  ;;  %v14998_v34 = vld [vmem:[#allocation3 + $0x86] sm:$0xff] }
 0xb86   : > { %19140 = vmatmul.mubr.msk.bf16.vlgmr.msra.gmra.mrb[36].mxu1 %vm451_vm2, %v23114_v26 }
 0xb87   : > { %19176 = vmatpush3.bf16.msra.mxu1 %v23092_v6  ;;  %19143 = vmatprep.mubr.msk.bf16.mxu1 %vm451_vm2, %v23121_v30  ;;  %v13379_v6 = vpack.c.bf16 %v13349_v41, %v13348_v8  ;;  %v14012_v8 = vld [vmem:[#allocation3 + $0x94] sm:$0xff] }
 0xb88   : > { %19213 = vmatprep.subr.bf16.mxu1 %v23119_v27 }
 0xb8e   : > { %19144 = vmatmul.mubr.msk.bf16.gmra.mrb[40].mxu1 %vm451_vm2, %v13377_v2 }
 0xb8f   : > { %19147 = vmatprep.mubr.msk.bf16.mxu1 %vm451_vm2, %v13378_v19 }
 0xb96   : > { %19148 = vmatmul.mubr.msk.bf16.gmra.mrb[44].mxu1 %vm451_vm2, %v13379_v6 }
 0xb97   : > { %19151 = vmatprep.mubr.msk.bf16.mxu1 %vm451_vm2, %v13380_v44 }
 0xb9e   : > { %19152 = vmatmul.mubr.msk.bf16.gmra.mrb[48].mxu1 %vm451_vm2, %v13381_v32 }
 0xb9f   : > { %19155 = vmatprep.mubr.msk.bf16.mxu1 %vm451_vm2, %v13382_v42 }
 0xba6   : > { %19156 = vmatmul.mubr.msk.bf16.gmra.mrb[52].mxu1 %vm451_vm2, %v13383_v10 }
 0xba7   : > { %19159 = vmatprep.mubr.msk.bf16.mxu1 %vm451_vm2, %v13384_v54 }
 0xbae   : > { %19160 = vmatmul.mubr.msk.bf16.gmra.mrb[56].mxu1 %vm451_vm2, %v13385_v37 }
 0xbaf   : > { %19163 = vmatprep.mubr.msk.bf16.mxu1 %vm451_vm2, %v13386_v14 }
 0xbb6   : > { %19164 = vmatmul.mubr.msk.bf16.gmra.mrb[60].mxu1 %vm451_vm2, %v13387_v58 }
 0xbb7   : > { %19167 = vmatprep.mubr.msk.bf16.mxu1 %vm451_vm2, %v13388_v50 }
 0xbbe   : > { %19168 = vmatmul.mubr.msk.bf16.gmra.mrb[64].mxu1 %vm451_vm2, %v13389_v22 }
 0xbbf   : > { %19171 = vmatprep.mubr.msk.bf16.mxu1 %vm451_vm2, %v13390_v59 }
 0xbc6   : > { %19172 = vmatmul.mubr.msk.bf16.gmra.mrb[68].mxu1 %vm451_vm2, %v13391_v60 }
 0xbc7   : > { %19177 = vmatprep.mubr.msk.bf16.mxu1 %vm451_vm2, %v23114_v26  ;;  %v14004_v26 = vld [vmem:[#allocation3 + $0x54] sm:$0xff] }
 0xbce   : > { %19178 = vmatmul.mubr.msk.bf16.vlgmr.msra.gmra.mrb[36].mxu1 %vm451_vm2, %v23121_v30  ;;  %v14006_v30 = vld [vmem:[#allocation3 + $0x64] sm:$0xff] }
 0xbcf   : > { %19214 = vmatpush3.bf16.msra.mxu1 %v23119_v27  ;;  %19181 = vmatprep.mubr.msk.bf16.mxu1 %vm451_vm2, %v13377_v2  ;;  %v14037_v27 = vpack.c.bf16 %v14005_v16, %v14004_v26  ;;  %v14038_v0 = vpack.c.bf16 %v14007_v9, %v14006_v30  ;;  %v14039_v2 = vpack.c.bf16 %v14009_v36, %v14008_v24  ;;  %v14341_v16 = vld [vmem:[#allocation3 + $0x8d] sm:$0xff]  ;;  %v14338_v9 = vld [vmem:[#allocation3 + $0x75] sm:$0xff]  ;;  %v14344_v30 = vld [vmem:[#allocation3 + $0xa5] sm:$0xff] }
 0xbd0   : > { %19251 = vmatprep.subr.bf16.mxu1 %v20981_v55  ;;  %v14342_v36 = vld [vmem:[#allocation3 + $0x95] sm:$0xff] }
 0xbd6   : > { %19182 = vmatmul.mubr.msk.bf16.gmra.mrb[40].mxu1 %vm451_vm2, %v13378_v19  ;;  %v14010_v19 = vld [vmem:[#allocation3 + $0x84] sm:$0xff] }
 0xbd7   : > { %19185 = vmatprep.mubr.msk.bf16.mxu1 %vm451_vm2, %v13379_v6  ;;  %v14040_v41 = vpack.c.bf16 %v14011_v7, %v14010_v19  ;;  %v14041_v6 = vpack.c.bf16 %v14013_v1, %v14012_v8  ;;  %v14348_v19 = vld [vmem:[#allocation3 + $0xc5] sm:$0xff]  ;;  %v14346_v1 = vld [vmem:[#allocation3 + $0xb5] sm:$0xff] }
 0xbde   : > { %19186 = vmatmul.mubr.msk.bf16.gmra.mrb[44].mxu1 %vm451_vm2, %v13380_v44  ;;  %v14014_v44 = vld [vmem:[#allocation3 + $0xa4] sm:$0xff] }
 0xbdf   : > { %19189 = vmatprep.mubr.msk.bf16.mxu1 %vm451_vm2, %v13381_v32  ;;  %v14042_v35 = vpack.c.bf16 %v14015_v45, %v14014_v44  ;;  %v14043_v32 = vpack.c.bf16 %v14017_v25, %v14016_v23  ;;  %v14352_v44 = vld [vmem:[#allocation3 + $0xe5] sm:$0xff]  ;;  %v14350_v25 = vld [vmem:[#allocation3 + $0xd5] sm:$0xff] }
 0xbe6   : > { %19190 = vmatmul.mubr.msk.bf16.gmra.mrb[48].mxu1 %vm451_vm2, %v13382_v42  ;;  %v14018_v42 = vld [vmem:[#allocation3 + $0xc4] sm:$0xff] }
 0xbe7   : > { %19193 = vmatprep.mubr.msk.bf16.mxu1 %vm451_vm2, %v13383_v10  ;;  %v14044_v17 = vpack.c.bf16 %v14019_v52, %v14018_v42  ;;  %v14045_v10 = vpack.c.bf16 %v14021_v49, %v14020_v62  ;;  %v14356_v42 = vld [vmem:[#allocation3 + $0x105] sm:$0xff]  ;;  %v14354_v49 = vld [vmem:[#allocation3 + $0xf5] sm:$0xff] }
 0xbee   : > { %19194 = vmatmul.mubr.msk.bf16.gmra.mrb[52].mxu1 %vm451_vm2, %v13384_v54  ;;  %v14022_v54 = vld [vmem:[#allocation3 + $0xe4] sm:$0xff] }
 0xbef   : > { %19197 = vmatprep.mubr.msk.bf16.mxu1 %vm451_vm2, %v13385_v37  ;;  %v14046_v53 = vpack.c.bf16 %v14023_v48, %v14022_v54  ;;  %v14047_v37 = vpack.c.bf16 %v14025_v5, %v14024_v56  ;;  %v14360_v54 = vld [vmem:[#allocation3 + $0x125] sm:$0xff]  ;;  %v14358_v5 = vld [vmem:[#allocation3 + $0x115] sm:$0xff] }
 0xbf6   : > { %19198 = vmatmul.mubr.msk.bf16.gmra.mrb[56].mxu1 %vm451_vm2, %v13386_v14  ;;  %v14026_v14 = vld [vmem:[#allocation3 + $0x104] sm:$0xff] }
 0xbf7   : > { %19201 = vmatprep.mubr.msk.bf16.mxu1 %vm451_vm2, %v13387_v58  ;;  %v14048_v3 = vpack.c.bf16 %v14027_v51, %v14026_v14  ;;  %v14049_v58 = vpack.c.bf16 %v14029_v18, %v14028_v39  ;;  %v14363_v14 = vld [vmem:[#allocation3 + $0x13d] sm:$0xff]  ;;  %v14693_v39 = vld [vmem:[#allocation3 + $0x14d] sm:$0xff] }
 0xbf8   : > { %v20984_v18 = vld [vmem:[%s23456_s10 + $0x40] sm:$0xff]  }
 0xbfe   : > { %19202 = vmatmul.mubr.msk.bf16.gmra.mrb[60].mxu1 %vm451_vm2, %v13388_v50  ;;  %v14030_v50 = vld [vmem:[#allocation3 + $0x124] sm:$0xff] }
 0xbff   : > { %19205 = vmatprep.mubr.msk.bf16.mxu1 %vm451_vm2, %v13389_v22  ;;  %v14050_v38 = vpack.c.bf16 %v14031_v57, %v14030_v50  ;;  %v14032_v22 = vld [vmem:[#allocation3 + $0x134] sm:$0xff]  ;;  %v14692_v57 = vld [vmem:[#allocation3 + $0x145] sm:$0xff] }
 0xc00   : > { %v14989_v50 = vld [vmem:[#allocation3 + $0x3e] sm:$0xff] }
 0xc06   : > { %19206 = vmatmul.mubr.msk.bf16.gmra.mrb[64].mxu1 %vm451_vm2, %v13390_v59  ;;  %v14051_v59 = vpack.c.bf16 %v14033_v20, %v14032_v22  ;;  %v14993_v22 = vld [vmem:[#allocation3 + $0x5e] sm:$0xff] }
 0xc07   : > { %19209 = vmatprep.mubr.msk.bf16.mxu1 %vm451_vm2, %v13391_v60  ;;  %v14332_v60 = vld [vmem:[#allocation3 + $0x45] sm:$0xff] }
 0xc0e   : > { %19210 = vmatmul.mubr.msk.bf16.gmra.mrb[68].mxu1 %vm451_vm2, %v13721_v11 }
 0xc0f   : > { %19215 = vmatprep.mubr.msk.bf16.mxu1 %vm451_vm2, %v14034_v46  ;;  %v14336_v46 = vld [vmem:[#allocation3 + $0x65] sm:$0xff] }
 0xc16   : > { %19216 = vmatmul.mubr.msk.bf16.vlgmr.msra.gmra.mrb[36].mxu1 %vm451_vm2, %v14035_v33  ;;  %v14368_v33 = vpack.c.bf16 %v14337_v31, %v14336_v46  ;;  %v14999_v46 = vld [vmem:[#allocation3 + $0x8e] sm:$0xff]  ;;  %v15001_v31 = vld [vmem:[#allocation3 + $0x9e] sm:$0xff] }
 0xc17   : > { %19252 = vmatpush3.bf16.msra.mxu1 %v20981_v55  ;;  %19219 = vmatprep.mubr.msk.bf16.mxu1 %vm451_vm2, %v14036_v61  ;;  %v14333_v55 = vld [vmem:[#allocation3 + $0x4d] sm:$0xff]  ;;  %v14340_v61 = vld [vmem:[#allocation3 + $0x85] sm:$0xff]  ;;  %v15029_v21 = vpack.c.bf16 %v14999_v46, %v14998_v34  ;;  %v15334_v34 = vld [vmem:[#allocation3 + $0xb7] sm:$0xff] }
 0xc18   : > { %19289 = vmatprep.subr.bf16.mxu1 %v23172_v63  ;;  %v23200_v11 = vpack.c.bf16 %v14333_v55, %v14332_v60  ;;  %v14370_v26 = vpack.c.bf16 %v14341_v16, %v14340_v61  ;;  %v14994_v60 = vld [vmem:[#allocation3 + $0x66] sm:$0xff]  ;;  %v14995_v55 = vld [vmem:[#allocation3 + $0x6e] sm:$0xff]  ;;  %v15005_v16 = vld [vmem:[#allocation3 + $0xbe] sm:$0xff] }
 0xc19   : > { %v15003_v61 = vld [vmem:[#allocation3 + $0xae] sm:$0xff] }
 0xc1e   : > { %19220 = vmatmul.mubr.msk.bf16.gmra.mrb[40].mxu1 %vm451_vm2, %v14037_v27  ;;  %v14343_v27 = vld [vmem:[#allocation3 + $0x9d] sm:$0xff] }
 0xc1f   : > { %19223 = vmatprep.mubr.msk.bf16.mxu1 %vm451_vm2, %v14038_v0  ;;  %v14345_v0 = vld [vmem:[#allocation3 + $0xad] sm:$0xff]  ;;  %v14371_v7 = vpack.c.bf16 %v14343_v27, %v14342_v36 }
 0xc20   : > { %v14372_v24 = vpack.c.bf16 %v14345_v0, %v14344_v30  ;;  %v15006_v27 = vld [vmem:[#allocation3 + $0xc6] sm:$0xff]  ;;  %v15007_v30 = vld [vmem:[#allocation3 + $0xce] sm:$0xff]  ;;  %v15009_v0 = vld [vmem:[#allocation3 + $0xde] sm:$0xff] }
 0xc21   : > { %v15033_v36 = vpack.c.bf16 %v15007_v30, %v15006_v27  ;;  %v15342_v27 = vld [vmem:[#allocation3 + $0xf7] sm:$0xff] }
 0xc26   : > { %19224 = vmatmul.mubr.msk.bf16.gmra.mrb[44].mxu1 %vm451_vm2, %v14039_v2  ;;  %v14347_v2 = vld [vmem:[#allocation3 + $0xbd] sm:$0xff] }
 0xc27   : > { %19227 = vmatprep.mubr.msk.bf16.mxu1 %vm451_vm2, %v14040_v41  ;;  %v14349_v41 = vld [vmem:[#allocation3 + $0xcd] sm:$0xff]  ;;  %v14373_v45 = vpack.c.bf16 %v14347_v2, %v14346_v1 }
 0xc28   : > { %v14374_v8 = vpack.c.bf16 %v14349_v41, %v14348_v19  ;;  %v15010_v2 = vld [vmem:[#allocation3 + $0xe6] sm:$0xff]  ;;  %v15011_v19 = vld [vmem:[#allocation3 + $0xee] sm:$0xff]  ;;  %v15013_v41 = vld [vmem:[#allocation3 + $0xfe] sm:$0xff] }
 0xc29   : > { %v15035_v1 = vpack.c.bf16 %v15011_v19, %v15010_v2  ;;  %v15346_v2 = vld [vmem:[#allocation3 + $0x117] sm:$0xff] }
 0xc2e   : > { %19228 = vmatmul.mubr.msk.bf16.gmra.mrb[48].mxu1 %vm451_vm2, %v14041_v6  ;;  %v14351_v6 = vld [vmem:[#allocation3 + $0xdd] sm:$0xff] }
 0xc2f   : > { %19231 = vmatprep.mubr.msk.bf16.mxu1 %vm451_vm2, %v14042_v35  ;;  %v14353_v35 = vld [vmem:[#allocation3 + $0xed] sm:$0xff]  ;;  %v14375_v52 = vpack.c.bf16 %v14351_v6, %v14350_v25 }
 0xc30   : > { %v14376_v23 = vpack.c.bf16 %v14353_v35, %v14352_v44  ;;  %v15014_v6 = vld [vmem:[#allocation3 + $0x106] sm:$0xff]  ;;  %v15015_v44 = vld [vmem:[#allocation3 + $0x10e] sm:$0xff]  ;;  %v15017_v35 = vld [vmem:[#allocation3 + $0x11e] sm:$0xff] }
 0xc31   : > { %v15037_v25 = vpack.c.bf16 %v15015_v44, %v15014_v6 }
 0xc36   : > { %19232 = vmatmul.mubr.msk.bf16.gmra.mrb[52].mxu1 %vm451_vm2, %v14043_v32  ;;  %v14355_v32 = vld [vmem:[#allocation3 + $0xfd] sm:$0xff] }
 0xc37   : > { %19235 = vmatprep.mubr.msk.bf16.mxu1 %vm451_vm2, %v14044_v17  ;;  %v14357_v17 = vld [vmem:[#allocation3 + $0x10d] sm:$0xff]  ;;  %v14377_v48 = vpack.c.bf16 %v14355_v32, %v14354_v49  ;;  %v15021_v49 = vld [vmem:[#allocation3 + $0x13e] sm:$0xff] }
 0xc38   : > { %v14378_v62 = vpack.c.bf16 %v14357_v17, %v14356_v42  ;;  %v15018_v32 = vld [vmem:[#allocation3 + $0x126] sm:$0xff]  ;;  %v15019_v42 = vld [vmem:[#allocation3 + $0x12e] sm:$0xff]  ;;  %v15020_v17 = vld [vmem:[#allocation3 + $0x136] sm:$0xff] }
 0xc3e   : > { %19236 = vmatmul.mubr.msk.bf16.gmra.mrb[56].mxu1 %vm451_vm2, %v14045_v10  ;;  %v14359_v10 = vld [vmem:[#allocation3 + $0x11d] sm:$0xff] }
 0xc3f   : > { %19239 = vmatprep.mubr.msk.bf16.mxu1 %vm451_vm2, %v14046_v53  ;;  %v14361_v53 = vld [vmem:[#allocation3 + $0x12d] sm:$0xff]  ;;  %v14379_v51 = vpack.c.bf16 %v14359_v10, %v14358_v5  ;;  %v15319_v5 = vld [vmem:[#allocation3 + $0x3f] sm:$0xff] }
 0xc40   : > { %v14380_v56 = vpack.c.bf16 %v14361_v53, %v14360_v54  ;;  %v15022_v10 = vld [vmem:[#allocation3 + $0x146] sm:$0xff]  ;;  %v15023_v54 = vld [vmem:[#allocation3 + $0x14e] sm:$0xff] }
 0xc41   : > { %v15041_v53 = vpack.c.bf16 %v15023_v54, %v15022_v10 }
 0xc46   : > { %19240 = vmatmul.mubr.msk.bf16.gmra.mrb[60].mxu1 %vm451_vm2, %v14047_v37  ;;  %v14362_v37 = vld [vmem:[#allocation3 + $0x135] sm:$0xff] }
 0xc47   : > { %19243 = vmatprep.mubr.msk.bf16.mxu1 %vm451_vm2, %v14048_v3  ;;  %v14381_v3 = vpack.c.bf16 %v14363_v14, %v14362_v37  ;;  %v15320_v37 = vld [vmem:[#allocation3 + $0x47] sm:$0xff]  ;;  %v15321_v14 = vld [vmem:[#allocation3 + $0x4f] sm:$0xff] }
 0xc4e   : > { %19244 = vmatmul.mubr.msk.bf16.gmra.mrb[64].mxu1 %vm451_vm2, %v14049_v58  ;;  %v14711_v58 = vpack.c.bf16 %v14693_v39, %v14692_v57  ;;  %v15322_v57 = vld [vmem:[#allocation3 + $0x57] sm:$0xff] }
 0xc4f   : > { %19247 = vmatprep.mubr.msk.bf16.mxu1 %vm451_vm2, %v14050_v38  ;;  %v14988_v38 = vld [vmem:[#allocation3 + $0x36] sm:$0xff] }
 0xc50   : > { %v15024_v20 = vpack.c.bf16 %v14989_v50, %v14988_v38  ;;  %v15325_v50 = vld [vmem:[#allocation3 + $0x6f] sm:$0xff]  ;;  %v15327_v38 = vld [vmem:[#allocation3 + $0x7f] sm:$0xff] }
 0xc56   : > { %19248 = vmatmul.mubr.msk.bf16.gmra.mrb[68].mxu1 %vm451_vm2, %v14051_v59  ;;  %v15025_v59 = vpack.c.bf16 %v14991_v4, %v14990_v29  ;;  %v15326_v29 = vld [vmem:[#allocation3 + $0x77] sm:$0xff] }
 0xc57   : > { %19253 = vmatprep.mubr.msk.bf16.mxu1 %vm451_vm2, %v14364_v43  ;;  %v14992_v43 = vld [vmem:[#allocation3 + $0x56] sm:$0xff]  ;;  %v15358_v4 = vpack.c.bf16 %v15327_v38, %v15326_v29 }
 0xc58   : > { %v15026_v28 = vpack.c.bf16 %v14993_v22, %v14992_v43  ;;  %v15328_v22 = vld [vmem:[#allocation3 + $0x87] sm:$0xff]  ;;  %v15331_v43 = vld [vmem:[#allocation3 + $0x9f] sm:$0xff] }
 0xc5e   : > { %19254 = vmatmul.mubr.msk.bf16.vlgmr.msra.gmra.mrb[36].mxu1 %vm451_vm2, %v23193_v15 }
 0xc5f   : > { %19290 = vmatpush3.bf16.msra.mxu1 %v23172_v63  ;;  %19257 = vmatprep.mubr.msk.bf16.mxu1 %vm451_vm2, %v23200_v11  ;;  %v14369_v63 = vpack.c.bf16 %v14339_v12, %v14338_v9  ;;  %v15002_v12 = vld [vmem:[#allocation3 + $0xa6] sm:$0xff] }
 0xc60   : > { %19327 = vmatprep.subr.bf16.mxu1 %v23198_v40  ;;  %v15031_v9 = vpack.c.bf16 %v15003_v61, %v15002_v12  ;;  %v15338_v12 = vld [vmem:[#allocation3 + $0xd7] sm:$0xff] }
 0xc66   : > { %19258 = vmatmul.mubr.msk.bf16.gmra.mrb[40].mxu1 %vm451_vm2, %v14367_v13 }
 0xc67   : > { %19261 = vmatprep.mubr.msk.bf16.mxu1 %vm451_vm2, %v14368_v33 }
 0xc6e   : > { %19262 = vmatmul.mubr.msk.bf16.gmra.mrb[44].mxu1 %vm451_vm2, %v14369_v63 }
 0xc6f   : > { %19265 = vmatprep.mubr.msk.bf16.mxu1 %vm451_vm2, %v14370_v26 }
 0xc76   : > { %19266 = vmatmul.mubr.msk.bf16.gmra.mrb[48].mxu1 %vm451_vm2, %v14371_v7 }
 0xc77   : > { %19269 = vmatprep.mubr.msk.bf16.mxu1 %vm451_vm2, %v14372_v24 }
 0xc7e   : > { %19270 = vmatmul.mubr.msk.bf16.gmra.mrb[52].mxu1 %vm451_vm2, %v14373_v45 }
 0xc7f   : > { %19273 = vmatprep.mubr.msk.bf16.mxu1 %vm451_vm2, %v14374_v8 }
 0xc86   : > { %19274 = vmatmul.mubr.msk.bf16.gmra.mrb[56].mxu1 %vm451_vm2, %v14375_v52 }
 0xc87   : > { %19277 = vmatprep.mubr.msk.bf16.mxu1 %vm451_vm2, %v14376_v23 }
 0xc8e   : > { %19278 = vmatmul.mubr.msk.bf16.gmra.mrb[60].mxu1 %vm451_vm2, %v14377_v48 }
 0xc8f   : > { %19281 = vmatprep.mubr.msk.bf16.mxu1 %vm451_vm2, %v14378_v62 }
 0xc96   : > { %19282 = vmatmul.mubr.msk.bf16.gmra.mrb[64].mxu1 %vm451_vm2, %v14379_v51 }
 0xc97   : > { %19285 = vmatprep.mubr.msk.bf16.mxu1 %vm451_vm2, %v14380_v56 }
 0xc9e   : > { %19286 = vmatmul.mubr.msk.bf16.gmra.mrb[68].mxu1 %vm451_vm2, %v14381_v3 }
 0xc9f   : > { %19291 = vmatprep.mubr.msk.bf16.mxu1 %vm451_vm2, %v23193_v15  ;;  %v15027_v15 = vpack.c.bf16 %v14995_v55, %v14994_v60  ;;  %v15330_v60 = vld [vmem:[#allocation3 + $0x97] sm:$0xff] }
 0xca0   : > { %v15360_v55 = vpack.c.bf16 %v15331_v43, %v15330_v60 }
 0xca6   : > { %19292 = vmatmul.mubr.msk.bf16.vlgmr.msra.gmra.mrb[36].mxu1 %vm451_vm2, %v23200_v11 }
 0xca7   : > { %19328 = vmatpush3.bf16.msra.mxu1 %v23198_v40  ;;  %19295 = vmatprep.mubr.msk.bf16.mxu1 %vm451_vm2, %v14367_v13  ;;  %v14996_v40 = vld [vmem:[#allocation3 + $0x76] sm:$0xff] }
 0xca8   : > { %19365 = vmatprep.subr.bf16.mxu1 %v20984_v18  ;;  %v15028_v11 = vpack.c.bf16 %v14997_v47, %v14996_v40  ;;  %v15000_v13 = vld [vmem:[#allocation3 + $0x96] sm:$0xff]  ;;  %v15332_v47 = vld [vmem:[#allocation3 + $0xa7] sm:$0xff]  ;;  %v15335_v40 = vld [vmem:[#allocation3 + $0xbf] sm:$0xff] }
 0xca9   : > { %v15362_v46 = vpack.c.bf16 %v15335_v40, %v15334_v34 }
 0xcae   : > { %19296 = vmatmul.mubr.msk.bf16.gmra.mrb[40].mxu1 %vm451_vm2, %v14368_v33  ;;  %v15030_v33 = vpack.c.bf16 %v15001_v31, %v15000_v13  ;;  %v15336_v31 = vld [vmem:[#allocation3 + $0xc7] sm:$0xff]  ;;  %v15339_v13 = vld [vmem:[#allocation3 + $0xdf] sm:$0xff] }
 0xcaf   : > { %19299 = vmatprep.mubr.msk.bf16.mxu1 %vm451_vm2, %v14369_v63  ;;  %v15004_v63 = vld [vmem:[#allocation3 + $0xb6] sm:$0xff]  ;;  %v15364_v61 = vpack.c.bf16 %v15339_v13, %v15338_v12 }
 0xcb6   : > { %19300 = vmatmul.mubr.msk.bf16.gmra.mrb[44].mxu1 %vm451_vm2, %v14370_v26  ;;  %v15032_v26 = vpack.c.bf16 %v15005_v16, %v15004_v63  ;;  %v15340_v16 = vld [vmem:[#allocation3 + $0xe7] sm:$0xff]  ;;  %v15343_v63 = vld [vmem:[#allocation3 + $0xff] sm:$0xff] }
 0xcb7   : > { %19303 = vmatprep.mubr.msk.bf16.mxu1 %vm451_vm2, %v14371_v7  ;;  %v15008_v7 = vld [vmem:[#allocation3 + $0xd6] sm:$0xff]  ;;  %v15366_v30 = vpack.c.bf16 %v15343_v63, %v15342_v27 }
 0xcbe   : > { %19304 = vmatmul.mubr.msk.bf16.gmra.mrb[48].mxu1 %vm451_vm2, %v14372_v24  ;;  %v15034_v24 = vpack.c.bf16 %v15009_v0, %v15008_v7  ;;  %v15344_v0 = vld [vmem:[#allocation3 + $0x107] sm:$0xff]  ;;  %v15347_v7 = vld [vmem:[#allocation3 + $0x11f] sm:$0xff] }
 0xcbf   : > { %19307 = vmatprep.mubr.msk.bf16.mxu1 %vm451_vm2, %v14373_v45  ;;  %v15012_v45 = vld [vmem:[#allocation3 + $0xf6] sm:$0xff]  ;;  %v15368_v19 = vpack.c.bf16 %v15347_v7, %v15346_v2 }
 0xcc6   : > { %19308 = vmatmul.mubr.msk.bf16.gmra.mrb[52].mxu1 %vm451_vm2, %v14374_v8  ;;  %v15036_v8 = vpack.c.bf16 %v15013_v41, %v15012_v45  ;;  %v15348_v41 = vld [vmem:[#allocation3 + $0x127] sm:$0xff]  ;;  %v15350_v45 = vld [vmem:[#allocation3 + $0x137] sm:$0xff] }
 0xcc7   : > { %19311 = vmatprep.mubr.msk.bf16.mxu1 %vm451_vm2, %v14375_v52  ;;  %v15016_v52 = vld [vmem:[#allocation3 + $0x116] sm:$0xff] }
 0xcce   : > { %19312 = vmatmul.mubr.msk.bf16.gmra.mrb[56].mxu1 %vm451_vm2, %v14376_v23  ;;  %v15038_v23 = vpack.c.bf16 %v15017_v35, %v15016_v52  ;;  %v15352_v35 = vld [vmem:[#allocation3 + $0x147] sm:$0xff] }
 0xccf   : > { %19315 = vmatprep.mubr.msk.bf16.mxu1 %vm451_vm2, %v14377_v48  ;;  %v15039_v48 = vpack.c.bf16 %v15019_v42, %v15018_v32  ;;  %v23292_v42 = vld [vmem:[%s23457_s11] ss:$0 sm:$0xff] }
 0xcd6   : > { %19316 = vmatmul.mubr.msk.bf16.gmra.mrb[60].mxu1 %vm451_vm2, %v14378_v62  ;;  %v15040_v62 = vpack.c.bf16 %v15021_v49, %v15020_v17 }
 0xcd7   : > { %19319 = vmatprep.mubr.msk.bf16.mxu1 %vm451_vm2, %v14379_v51  ;;  %v15318_v51 = vld [vmem:[#allocation3 + $0x37] sm:$0xff] }
 0xcde   : > { %19320 = vmatmul.mubr.msk.bf16.gmra.mrb[64].mxu1 %vm451_vm2, %v14380_v56  ;;  %v15354_v56 = vpack.c.bf16 %v15319_v5, %v15318_v51 }
 0xcdf   : > { %19323 = vmatprep.mubr.msk.bf16.mxu1 %vm451_vm2, %v14381_v3  ;;  %v15323_v3 = vld [vmem:[#allocation3 + $0x5f] sm:$0xff] }
 0xce0   : > { %v15356_v39 = vpack.c.bf16 %v15323_v3, %v15322_v57 }
 0xce6   : > { %19324 = vmatmul.mubr.msk.bf16.gmra.mrb[68].mxu1 %vm451_vm2, %v14711_v58  ;;  %v15324_v58 = vld [vmem:[#allocation3 + $0x67] sm:$0xff] }
 0xce7   : > { %19329 = vmatprep.mubr.msk.bf16.mxu1 %vm451_vm2, %v15024_v20  ;;  %v15357_v20 = vpack.c.bf16 %v15325_v50, %v15324_v58 }
 0xcee   : > { %19330 = vmatmul.mubr.msk.bf16.vlgmr.msra.gmra.mrb[36].mxu1 %vm451_vm2, %v15025_v59  ;;  %v15329_v59 = vld [vmem:[#allocation3 + $0x8f] sm:$0xff] }
 0xcef   : > { %19366 = vmatpush3.bf16.msra.mxu1 %v20984_v18  ;;  %19333 = vmatprep.mubr.msk.bf16.mxu1 %vm451_vm2, %v15026_v28  ;;  %v15355_v18 = vpack.c.bf16 %v15321_v14, %v15320_v37  ;;  %v15359_v28 = vpack.c.bf16 %v15329_v59, %v15328_v22 }
 0xcf6   : > { %19334 = vmatmul.mubr.msk.bf16.gmra.mrb[40].mxu1 %vm451_vm2, %v15027_v15  ;;  %v15333_v15 = vld [vmem:[#allocation3 + $0xaf] sm:$0xff] }
 0xcf7   : > { %19337 = vmatprep.mubr.msk.bf16.mxu1 %vm451_vm2, %v15028_v11  ;;  %v15361_v11 = vpack.c.bf16 %v15333_v15, %v15332_v47 }
 0xcfe   : > { %19338 = vmatmul.mubr.msk.bf16.gmra.mrb[44].mxu1 %vm451_vm2, %v15029_v21  ;;  %v15337_v21 = vld [vmem:[#allocation3 + $0xcf] sm:$0xff] }
 0xcff   : > { %19341 = vmatprep.mubr.msk.bf16.mxu1 %vm451_vm2, %v15030_v33  ;;  %v15363_v33 = vpack.c.bf16 %v15337_v21, %v15336_v31 }
 0xd06   : > { %19342 = vmatmul.mubr.msk.bf16.gmra.mrb[48].mxu1 %vm451_vm2, %v15031_v9  ;;  %v15341_v9 = vld [vmem:[#allocation3 + $0xef] sm:$0xff] }
 0xd07   : > { %19345 = vmatprep.mubr.msk.bf16.mxu1 %vm451_vm2, %v15032_v26  ;;  %v15365_v26 = vpack.c.bf16 %v15341_v9, %v15340_v16 }
 0xd0e   : > { %19346 = vmatmul.mubr.msk.bf16.gmra.mrb[52].mxu1 %vm451_vm2, %v15033_v36  ;;  %v15345_v36 = vld [vmem:[#allocation3 + $0x10f] sm:$0xff] }
 0xd0f   : > { %19349 = vmatprep.mubr.msk.bf16.mxu1 %vm451_vm2, %v15034_v24  ;;  %v15367_v24 = vpack.c.bf16 %v15345_v36, %v15344_v0 }
 0xd16   : > { %19350 = vmatmul.mubr.msk.bf16.gmra.mrb[56].mxu1 %vm451_vm2, %v15035_v1  ;;  %v15349_v1 = vld [vmem:[#allocation3 + $0x12f] sm:$0xff] }
 0xd17   : > { %19353 = vmatprep.mubr.msk.bf16.mxu1 %vm451_vm2, %v15036_v8  ;;  %v15351_v8 = vld [vmem:[#allocation3 + $0x13f] sm:$0xff]  ;;  %v15369_v6 = vpack.c.bf16 %v15349_v1, %v15348_v41 }
 0xd18   : > { %v15370_v44 = vpack.c.bf16 %v15351_v8, %v15350_v45 }
 0xd1e   : > { %19354 = vmatmul.mubr.msk.bf16.gmra.mrb[60].mxu1 %vm451_vm2, %v15037_v25  ;;  %v15353_v25 = vld [vmem:[#allocation3 + $0x14f] sm:$0xff] }
 0xd1f   : > { %19357 = vmatprep.mubr.msk.bf16.mxu1 %vm451_vm2, %v15038_v23  ;;  %v15371_v52 = vpack.c.bf16 %v15353_v25, %v15352_v35  ;;  %v23286_v23 = vld [vmem:[%s23455_s9] ss:$0 sm:$0xff] }
 0xd26   : > { %19358 = vmatmul.mubr.msk.bf16.gmra.mrb[64].mxu1 %vm451_vm2, %v15039_v48 }
 0xd27   : > { %19361 = vmatprep.mubr.msk.bf16.mxu1 %vm451_vm2, %v15040_v62 }
 0xd2e   : > { %19362 = vmatmul.mubr.msk.bf16.gmra.mrb[68].mxu1 %vm451_vm2, %v15041_v53 }
 0xd2f   : > { %19367 = vmatprep.mubr.msk.bf16.mxu1 %vm451_vm2, %v15354_v56 }
 0xd36   : > { %19368 = vmatmul.mubr.msk.bf16.vlgmr.msra.gmra.mrb[36].mxu1 %vm451_vm2, %v15355_v18 }
 0xd37   : > { %19371 = vmatprep.mubr.msk.bf16.mxu1 %vm451_vm2, %v15356_v39 }
 0xd3e   : > { %19372 = vmatmul.mubr.msk.bf16.gmra.mrb[40].mxu1 %vm451_vm2, %v15357_v20 }
 0xd3f   : > { %19375 = vmatprep.mubr.msk.bf16.mxu1 %vm451_vm2, %v15358_v4 }
 0xd46   : > { %19376 = vmatmul.mubr.msk.bf16.gmra.mrb[44].mxu1 %vm451_vm2, %v15359_v28 }
 0xd47   : > { %19379 = vmatprep.mubr.msk.bf16.mxu1 %vm451_vm2, %v15360_v55 }
 0xd4e   : > { %19380 = vmatmul.mubr.msk.bf16.gmra.mrb[48].mxu1 %vm451_vm2, %v15361_v11 }
 0xd4f   : > { %19383 = vmatprep.mubr.msk.bf16.mxu1 %vm451_vm2, %v15362_v46 }
 0xd56   : > { %19384 = vmatmul.mubr.msk.bf16.gmra.mrb[52].mxu1 %vm451_vm2, %v15363_v33 }
 0xd57   : > { %19387 = vmatprep.mubr.msk.bf16.mxu1 %vm451_vm2, %v15364_v61 }
 0xd5e   : > { %19388 = vmatmul.mubr.msk.bf16.gmra.mrb[56].mxu1 %vm451_vm2, %v15365_v26 }
 0xd5f   : > { %19391 = vmatprep.mubr.msk.bf16.mxu1 %vm451_vm2, %v15366_v30 }
 0xd66   : > { %19392 = vmatmul.mubr.msk.bf16.gmra.mrb[60].mxu1 %vm451_vm2, %v15367_v24 }
 0xd67   : > { %19395 = vmatprep.mubr.msk.bf16.mxu1 %vm451_vm2, %v15368_v19 }
 0xd6e   : > { %19396 = vmatmul.mubr.msk.bf16.gmra.mrb[64].mxu1 %vm451_vm2, %v15369_v6 }
 0xd6f   : > { %19399 = vmatprep.mubr.msk.bf16.mxu1 %vm451_vm2, %v15370_v44 }
 0xd76   : > { %19400 = vmatmul.mubr.msk.bf16.gmra.mrb[68].mxu1 %vm451_vm2, %v15371_v52 }
 0xe09   : > { %v19369_v32 = vpop.f32.mrb[36].mxu1 }
 0xe0a   : > { %v19441_v17 = vadd.f32 %v19369_v32, %v23286_v23  ;;  %v15469_v49 = vpop.f32.mrb[37].mxu1 }
 0xe0b   : > { %v19442_v48 = vadd.f32 %v23286_v23, %v15469_v49  ;;  %v19370_v62 = vpop.f32.mrb[38].mxu1 }
 0xe0c   : > { %v15693_v10 = vadd.f32 %v19441_v17, %v23292_v42  ;;  %v19443_v54 = vadd.f32 %v19370_v62, %v23286_v23  ;;  %v15472_v53 = vpop.f32.mrb[39].mxu1 }
 0xe0d   : > { %v15691_v5 = vadd.f32 %v19442_v48, %v23292_v42  ;;  %v19444_v51 = vadd.f32 %v23286_v23, %v15472_v53 }
 0xe0e   : > { %v15729_v56 = vmax.f32 %v15693_v10, 0.0  ;;  %v15694_v37 = vadd.f32 %v19443_v54, %v23292_v42 }
 0xe0f   : > { %v15727_v14 = vmax.f32 %v15691_v5, 0.0  ;;  %v15692_v3 = vadd.f32 %v19444_v51, %v23292_v42 }
 0xe10   : > { %15765 = vst.msk [vmem:[%s23301_s22 + $0x10] sm:$0xff] %vm473_vm4, %v15729_v56  ;;  %v15730_v18 = vmax.f32 %v15694_v37, 0.0 }
 0xe11   : > { %15763 = vst.msk [vmem:[%s23301_s22] sm:$0xff] %vm473_vm4, %v15727_v14  ;;  %v15728_v57 = vmax.f32 %v15692_v3, 0.0  ;;  %v19373_v39 = vpop.f32.mrb[40].mxu1 }
 0xe12   : > { %15766 = vst.msk [vmem:[%s23301_s22 + $0x18] sm:$0xff] %vm473_vm4, %v15730_v18  ;;  %v19445_v58 = vadd.f32 %v19373_v39, %v23286_v23  ;;  %v15485_v50 = vpop.f32.mrb[41].mxu1 }
 0xe13   : > { %15764 = vst.msk [vmem:[%s23301_s22 + $0x8] sm:$0xff] %vm473_vm4, %v15728_v57  ;;  %v19446_v38 = vadd.f32 %v23286_v23, %v15485_v50  ;;  %v19374_v20 = vpop.f32.mrb[42].mxu1 }
 0xe14   : > { %v15697_v29 = vadd.f32 %v19445_v58, %v23292_v42  ;;  %v19447_v4 = vadd.f32 %v19374_v20, %v23286_v23  ;;  %v15488_v22 = vpop.f32.mrb[43].mxu1 }
 0xe15   : > { %v15695_v59 = vadd.f32 %v19446_v38, %v23292_v42  ;;  %v19448_v43 = vadd.f32 %v23286_v23, %v15488_v22 }
 0xe16   : > { %v15733_v28 = vmax.f32 %v15697_v29, 0.0  ;;  %v15698_v60 = vadd.f32 %v19447_v4, %v23292_v42 }
 0xe17   : > { %v15731_v55 = vmax.f32 %v15695_v59, 0.0  ;;  %v15696_v47 = vadd.f32 %v19448_v43, %v23292_v42 }
 0xe18   : > { %15769 = vst.msk [vmem:[%s23301_s22 + $0x30] sm:$0xff] %vm473_vm4, %v15733_v28  ;;  %v15734_v15 = vmax.f32 %v15698_v60, 0.0 }
 0xe19   : > { %15767 = vst.msk [vmem:[%s23301_s22 + $0x20] sm:$0xff] %vm473_vm4, %v15731_v55  ;;  %v15732_v40 = vmax.f32 %v15696_v47, 0.0  ;;  %v19377_v11 = vpop.f32.mrb[44].mxu1 }
 0xe1a   : > { %15770 = vst.msk [vmem:[%s23301_s22 + $0x38] sm:$0xff] %vm473_vm4, %v15734_v15  ;;  %v19449_v34 = vadd.f32 %v19377_v11, %v23286_v23  ;;  %v15501_v46 = vpop.f32.mrb[45].mxu1 }
 0xe1b   : > { %15768 = vst.msk [vmem:[%s23301_s22 + $0x28] sm:$0xff] %vm473_vm4, %v15732_v40  ;;  %v19450_v31 = vadd.f32 %v23286_v23, %v15501_v46  ;;  %v19378_v21 = vpop.f32.mrb[46].mxu1 }
 0xe1c   : > { %v15701_v13 = vadd.f32 %v19449_v34, %v23292_v42  ;;  %v19451_v33 = vadd.f32 %v19378_v21, %v23286_v23  ;;  %v15504_v12 = vpop.f32.mrb[47].mxu1 }
 0xe1d   : > { %v15699_v61 = vadd.f32 %v19450_v31, %v23292_v42  ;;  %v19452_v16 = vadd.f32 %v23286_v23, %v15504_v12 }
 0xe1e   : > { %v15737_v9 = vmax.f32 %v15701_v13, 0.0  ;;  %v15702_v63 = vadd.f32 %v19451_v33, %v23292_v42 }
 0xe1f   : > { %v15735_v26 = vmax.f32 %v15699_v61, 0.0  ;;  %v15700_v27 = vadd.f32 %v19452_v16, %v23292_v42 }
 0xe20   : > { %15773 = vst.msk [vmem:[%s23301_s22 + $0x50] sm:$0xff] %vm473_vm4, %v15737_v9  ;;  %v15738_v30 = vmax.f32 %v15702_v63, 0.0 }
 0xe21   : > { %15771 = vst.msk [vmem:[%s23301_s22 + $0x40] sm:$0xff] %vm473_vm4, %v15735_v26  ;;  %v15736_v0 = vmax.f32 %v15700_v27, 0.0  ;;  %v19381_v36 = vpop.f32.mrb[48].mxu1 }
 0xe22   : > { %15774 = vst.msk [vmem:[%s23301_s22 + $0x58] sm:$0xff] %vm473_vm4, %v15738_v30  ;;  %v19453_v7 = vadd.f32 %v19381_v36, %v23286_v23  ;;  %v15517_v24 = vpop.f32.mrb[49].mxu1 }
 0xe23   : > { %15772 = vst.msk [vmem:[%s23301_s22 + $0x48] sm:$0xff] %vm473_vm4, %v15736_v0  ;;  %v19454_v2 = vadd.f32 %v23286_v23, %v15517_v24  ;;  %v19382_v19 = vpop.f32.mrb[50].mxu1 }
 0xe24   : > { %v15705_v41 = vadd.f32 %v19453_v7, %v23292_v42  ;;  %v19455_v1 = vadd.f32 %v19382_v19, %v23286_v23  ;;  %v15520_v45 = vpop.f32.mrb[51].mxu1 }
 0xe25   : > { %v15703_v8 = vadd.f32 %v19454_v2, %v23292_v42  ;;  %v19456_v6 = vadd.f32 %v23286_v23, %v15520_v45 }
 0xe26   : > { %v15741_v44 = vmax.f32 %v15705_v41, 0.0  ;;  %v15706_v35 = vadd.f32 %v19455_v1, %v23292_v42 }
 0xe27   : > { %v15739_v25 = vmax.f32 %v15703_v8, 0.0  ;;  %v15704_v52 = vadd.f32 %v19456_v6, %v23292_v42 }
 0xe28   : > { %15777 = vst.msk [vmem:[%s23301_s22 + $0x70] sm:$0xff] %vm473_vm4, %v15741_v44  ;;  %v15742_v32 = vmax.f32 %v15706_v35, 0.0 }
 0xe29   : > { %15775 = vst.msk [vmem:[%s23301_s22 + $0x60] sm:$0xff] %vm473_vm4, %v15739_v25  ;;  %v15740_v17 = vmax.f32 %v15704_v52, 0.0  ;;  %v19385_v49 = vpop.f32.mrb[52].mxu1 }
 0xe2a   : > { %15778 = vst.msk [vmem:[%s23301_s22 + $0x78] sm:$0xff] %vm473_vm4, %v15742_v32  ;;  %v19457_v48 = vadd.f32 %v19385_v49, %v23286_v23  ;;  %v15533_v62 = vpop.f32.mrb[53].mxu1 }
 0xe2b   : > { %15776 = vst.msk [vmem:[%s23301_s22 + $0x68] sm:$0xff] %vm473_vm4, %v15740_v17  ;;  %v19458_v10 = vadd.f32 %v23286_v23, %v15533_v62  ;;  %v19386_v54 = vpop.f32.mrb[54].mxu1 }
 0xe2c   : > { %v15709_v53 = vadd.f32 %v19457_v48, %v23292_v42  ;;  %v19459_v5 = vadd.f32 %v19386_v54, %v23286_v23  ;;  %v15536_v51 = vpop.f32.mrb[55].mxu1 }
 0xe2d   : > { %v15707_v56 = vadd.f32 %v19458_v10, %v23292_v42  ;;  %v19460_v37 = vadd.f32 %v23286_v23, %v15536_v51 }
 0xe2e   : > { %v15745_v14 = vmax.f32 %v15709_v53, 0.0  ;;  %v15710_v3 = vadd.f32 %v19459_v5, %v23292_v42 }
 0xe2f   : > { %v15743_v18 = vmax.f32 %v15707_v56, 0.0  ;;  %v15708_v57 = vadd.f32 %v19460_v37, %v23292_v42 }
 0xe30   : > { %15781 = vst.msk [vmem:[%s23301_s22 + $0x90] sm:$0xff] %vm473_vm4, %v15745_v14  ;;  %v15746_v39 = vmax.f32 %v15710_v3, 0.0 }
 0xe31   : > { %15779 = vst.msk [vmem:[%s23301_s22 + $0x80] sm:$0xff] %vm473_vm4, %v15743_v18  ;;  %v15744_v58 = vmax.f32 %v15708_v57, 0.0  ;;  %v19389_v50 = vpop.f32.mrb[56].mxu1 }
 0xe32   : > { %15782 = vst.msk [vmem:[%s23301_s22 + $0x98] sm:$0xff] %vm473_vm4, %v15746_v39  ;;  %v19461_v38 = vadd.f32 %v19389_v50, %v23286_v23  ;;  %v15549_v20 = vpop.f32.mrb[57].mxu1 }
 0xe33   : > { %15780 = vst.msk [vmem:[%s23301_s22 + $0x88] sm:$0xff] %vm473_vm4, %v15744_v58  ;;  %v19462_v29 = vadd.f32 %v23286_v23, %v15549_v20  ;;  %v19390_v4 = vpop.f32.mrb[58].mxu1 }
 0xe34   : > { %v15713_v22 = vadd.f32 %v19461_v38, %v23292_v42  ;;  %v19463_v59 = vadd.f32 %v19390_v4, %v23286_v23  ;;  %v15552_v43 = vpop.f32.mrb[59].mxu1 }
 0xe35   : > { %v15711_v28 = vadd.f32 %v19462_v29, %v23292_v42  ;;  %v19464_v60 = vadd.f32 %v23286_v23, %v15552_v43 }
 0xe36   : > { %v15749_v55 = vmax.f32 %v15713_v22, 0.0  ;;  %v15714_v47 = vadd.f32 %v19463_v59, %v23292_v42 }
 0xe37   : > { %v15747_v15 = vmax.f32 %v15711_v28, 0.0  ;;  %v15712_v40 = vadd.f32 %v19464_v60, %v23292_v42 }
 0xe38   : > { %15785 = vst.msk [vmem:[%s23301_s22 + $0xb0] sm:$0xff] %vm473_vm4, %v15749_v55  ;;  %v15750_v11 = vmax.f32 %v15714_v47, 0.0 }
 0xe39   : > { %15783 = vst.msk [vmem:[%s23301_s22 + $0xa0] sm:$0xff] %vm473_vm4, %v15747_v15  ;;  %v15748_v34 = vmax.f32 %v15712_v40, 0.0  ;;  %v19393_v46 = vpop.f32.mrb[60].mxu1 }
 0xe3a   : > { %15786 = vst.msk [vmem:[%s23301_s22 + $0xb8] sm:$0xff] %vm473_vm4, %v15750_v11  ;;  %v19465_v31 = vadd.f32 %v19393_v46, %v23286_v23  ;;  %v15565_v21 = vpop.f32.mrb[61].mxu1 }
 0xe3b   : > { %15784 = vst.msk [vmem:[%s23301_s22 + $0xa8] sm:$0xff] %vm473_vm4, %v15748_v34  ;;  %v19466_v13 = vadd.f32 %v23286_v23, %v15565_v21  ;;  %v19394_v33 = vpop.f32.mrb[62].mxu1 }
 0xe3c   : > { %v15717_v12 = vadd.f32 %v19465_v31, %v23292_v42  ;;  %v19467_v61 = vadd.f32 %v19394_v33, %v23286_v23  ;;  %v15568_v16 = vpop.f32.mrb[63].mxu1 }
 0xe3d   : > { %v15715_v9 = vadd.f32 %v19466_v13, %v23292_v42  ;;  %v19468_v63 = vadd.f32 %v23286_v23, %v15568_v16 }
 0xe3e   : > { %v15753_v26 = vmax.f32 %v15717_v12, 0.0  ;;  %v15718_v27 = vadd.f32 %v19467_v61, %v23292_v42 }
 0xe3f   : > { %v15751_v30 = vmax.f32 %v15715_v9, 0.0  ;;  %v15716_v0 = vadd.f32 %v19468_v63, %v23292_v42 }
 0xe40   : > { %15789 = vst.msk [vmem:[%s23301_s22 + $0xd0] sm:$0xff] %vm473_vm4, %v15753_v26  ;;  %v15754_v36 = vmax.f32 %v15718_v27, 0.0 }
 0xe41   : > { %15787 = vst.msk [vmem:[%s23301_s22 + $0xc0] sm:$0xff] %vm473_vm4, %v15751_v30  ;;  %v15752_v7 = vmax.f32 %v15716_v0, 0.0  ;;  %v19397_v24 = vpop.f32.mrb[64].mxu1 }
 0xe42   : > { %15790 = vst.msk [vmem:[%s23301_s22 + $0xd8] sm:$0xff] %vm473_vm4, %v15754_v36  ;;  %v19469_v2 = vadd.f32 %v19397_v24, %v23286_v23  ;;  %v15581_v19 = vpop.f32.mrb[65].mxu1 }
 0xe43   : > { %15788 = vst.msk [vmem:[%s23301_s22 + $0xc8] sm:$0xff] %vm473_vm4, %v15752_v7  ;;  %v19470_v41 = vadd.f32 %v23286_v23, %v15581_v19  ;;  %v19398_v1 = vpop.f32.mrb[66].mxu1 }
 0xe44   : > { %v15721_v45 = vadd.f32 %v19469_v2, %v23292_v42  ;;  %v19471_v8 = vadd.f32 %v19398_v1, %v23286_v23  ;;  %v15584_v6 = vpop.f32.mrb[67].mxu1 }
 0xe45   : > { %v15719_v44 = vadd.f32 %v19470_v41, %v23292_v42  ;;  %v19472_v35 = vadd.f32 %v23286_v23, %v15584_v6 }
 0xe46   : > { %v15757_v25 = vmax.f32 %v15721_v45, 0.0  ;;  %v15722_v52 = vadd.f32 %v19471_v8, %v23292_v42 }
 0xe47   : > { %v15755_v32 = vmax.f32 %v15719_v44, 0.0  ;;  %v15720_v17 = vadd.f32 %v19472_v35, %v23292_v42 }
 0xe48   : > { %15793 = vst.msk [vmem:[%s23301_s22 + $0xf0] sm:$0xff] %vm473_vm4, %v15757_v25  ;;  %v15758_v49 = vmax.f32 %v15722_v52, 0.0 }
 0xe49   : > { %15791 = vst.msk [vmem:[%s23301_s22 + $0xe0] sm:$0xff] %vm473_vm4, %v15755_v32  ;;  %v15756_v48 = vmax.f32 %v15720_v17, 0.0  ;;  %v19401_v62 = vpop.f32.mrb[68].mxu1 }
 0xe4a   : > { %15794 = vst.msk [vmem:[%s23301_s22 + $0xf8] sm:$0xff] %vm473_vm4, %v15758_v49  ;;  %v19473_v10 = vadd.f32 %v19401_v62, %v23286_v23  ;;  %v15597_v54 = vpop.f32.mrb[69].mxu1 }
 0xe4b   : > { %15792 = vst.msk [vmem:[%s23301_s22 + $0xe8] sm:$0xff] %vm473_vm4, %v15756_v48  ;;  %v19474_v53 = vadd.f32 %v23286_v23, %v15597_v54  ;;  %v19402_v5 = vpop.f32.mrb[70].mxu1 }
 0xe4c   : > { %v15725_v51 = vadd.f32 %v19473_v10, %v23292_v42  ;;  %v19475_v56 = vadd.f32 %v19402_v5, %v23286_v23  ;;  %v15600_v37 = vpop.f32.mrb[71].mxu1 }
 0xe4d   : > { %v15723_v14 = vadd.f32 %v19474_v53, %v23292_v42  ;;  %v19476_v3 = vadd.f32 %v23286_v23, %v15600_v37 }
 0xe4e   : > { %v15761_v18 = vmax.f32 %v15725_v51, 0.0  ;;  %v15726_v57 = vadd.f32 %v19475_v56, %v23292_v42 }
 0xe4f   : > { %v15759_v39 = vmax.f32 %v15723_v14, 0.0  ;;  %v15724_v58 = vadd.f32 %v19476_v3, %v23292_v42 }
 0xe50   : > { %15797 = vst.msk [vmem:[%s23301_s22 + $0x110] sm:$0xff] %vm473_vm4, %v15761_v18  ;;  %v15762_v50 = vmax.f32 %v15726_v57, 0.0 }
 0xe51   : > { %15795 = vst.msk [vmem:[%s23301_s22 + $0x100] sm:$0xff] %vm473_vm4, %v15759_v39  ;;  %v15760_v38 = vmax.f32 %v15724_v58, 0.0 }
 0xe52   : > { %15798 = vst.msk [vmem:[%s23301_s22 + $0x118] sm:$0xff] %vm473_vm4, %v15762_v50 }
 0xe53   : > { %15796 = vst.msk [vmem:[%s23301_s22 + $0x108] sm:$0xff] %vm473_vm4, %v15760_v38 }
 0xe54 PF: > { %s22_s21 = sadd.s32 1, %s20992_s21  }
 0xe55   : > { %p19_p4 = scmp.ge.s32.totalorder %s22_s21, 4  }
 0xe57   :  { %21 = sbr.rel (!%p19_p4) target bundleno = 1 (0x1), region = 138 }

</bundles_post_ra>
